<compile_context>
chip_gen: v6e
topology: v6e:2x2x1
jax: 0.10.0
libtpu: 0.0.40
codegen_flags: <defaults>
</compile_context>

<pallas_src>
import functools

import jax
import jax.numpy as jnp
from jax.experimental import pallas as pl
from jax.experimental.pallas import tpu as pltpu


def _conv_weight_matrix(w_oihw):
    """OIHW -> (Cout, K*K*Cin), rows ordered (kh, kw, cin) to match im2col."""
    cout, cin, kh, kw = w_oihw.shape
    return jnp.transpose(w_oihw, (0, 2, 3, 1)).reshape(cout, kh * kw * cin)


def _upsample2x_matrix(H, W, dtype=jnp.float32):
    """(H*W, 4*H*W) 0/1 matrix: y_flat @ U == nearest-2x upsample (flattened)."""
    n = jnp.arange(4 * H * W)
    src = (n // (2 * W) // 2) * W + (n % (2 * W)) // 2       # source flat index
    return (src[None, :] == jnp.arange(H * W)[:, None]).astype(dtype)


def _conv_bias_relu(src_ref, w_ref, b_ref, *, K, pad, H, W, B, slack, vchunk):
    """'Same' KxK conv + bias + ReLU over B images packed along the lane axis.

    src_ref : (Cin, slack + B*H*W + slack) VMEM ref.  Image n's row-major
              flattened pixels occupy lanes [slack + n*H*W, slack + (n+1)*H*W).
    w_ref   : (Cout, K*K*Cin) ref, rows ordered (kh, kw, cin).
    b_ref   : (Cout, 1) ref.
    vchunk  : vertical tap rows folded into one MXU matmul
              (K -> one im2col matmul; 1 -> per-row chunked accumulation).
    returns : (Cout, B*H*W) f32.
    """
    C = src_ref.shape[0]
    L = B * H * W

    # Hoisted per-shift validity masks: one compare per distinct shift, reused
    # by every tap (kills row wrap, image-edge padding and cross-image bleed).
    q = jax.lax.broadcasted_iota(jnp.int32, (C, L), 1)
    w_in_row = q % W             # column inside the image row
    r_in_img = q % (H * W)       # flat position inside the image
    vmask, hmask = {}, {}
    for d in range(1, pad + 1):
        vmask[-d] = r_in_img >= d * W              # output row index >= d
        vmask[d] = r_in_img < (H - d) * W          # output row index <  H - d
        hmask[-d] = w_in_row >= d
        hmask[d] = w_in_row < W - d

    acc = None
    for a0 in range(0, K, vchunk):
        n_a = min(a0 + vchunk, K) - a0
        taps = []
        for a in range(a0, a0 + n_a):              # vertical tap
            da = a - pad
            for b in range(K):                     # horizontal tap
                db = b - pad
                start = slack + da * W + db
                t = src_ref[:, start:start + L]    # lane-shifted view
                m = vmask.get(da)
                if db != 0:
                    m = hmask[db] if m is None else (m & hmask[db])
                if m is not None:
                    t = jnp.where(m, t, 0.0)
                taps.append(t)
        col = jnp.concatenate(taps, axis=0) if len(taps) > 1 else taps[0]
        w_rows = w_ref[:, a0 * K * C:(a0 + n_a) * K * C]
        part = jnp.dot(w_rows, col, preferred_element_type=jnp.float32)
        acc = part if acc is None else acc + part
    return jnp.maximum(acc + b_ref[...], 0.0)


def _decoder_kernel(x_ref, w1_ref, b1_ref, u1_ref, w2_ref, b2_ref, u2_ref,
                    w3_ref, b3_ref, o_ref, buf2, buf3, *, B, H0, W0):
    H1, W1 = 2 * H0, 2 * W0
    H2, W2 = 2 * H1, 2 * W1
    S1 = W0 + 1           # slack lanes for 3x3 / pad=1 (pre-padded in HBM)
    S2 = W1 + 1
    S3 = 2 * W2 + 2       # slack lanes for 5x5 / pad=2
    hw0, hw1, hw2 = H0 * W0, H1 * W1, H2 * W2

    # ---- stage 1: conv3x3 + bias + ReLU, straight off the padded input block
    y1 = _conv_bias_relu(x_ref, w1_ref, b1_ref,
                         K=3, pad=1, H=H0, W=W0, B=B, slack=S1, vchunk=3)

    # ---- nearest-2x upsample of y1, written directly into buf2's interior ----
    # (ReLU commutes with nearest upsampling, so relu-then-upsample is exact.)
    zero2 = jnp.zeros((buf2.shape[0], S2), jnp.float32)
    buf2[:, 0:S2] = zero2                              # zero only the pads
    buf2[:, S2 + B * hw1:S2 + B * hw1 + S2] = zero2
    u1 = u1_ref[...].astype(jnp.float32)               # bf16 0/1 matrix, exact
    for n in range(B):
        seg = y1[:, n * hw0:(n + 1) * hw0]
        buf2[:, S2 + n * hw1:S2 + (n + 1) * hw1] = jnp.dot(
            seg, u1, preferred_element_type=jnp.float32)

    # ---- stage 2: conv3x3 + bias + ReLU ----
    y2 = _conv_bias_relu(buf2, w2_ref, b2_ref,
                         K=3, pad=1, H=H1, W=W1, B=B, slack=S2, vchunk=3)

    # ---- nearest-2x upsample of y2 into buf3's interior ----
    zero3 = jnp.zeros((buf3.shape[0], S3), jnp.float32)
    buf3[:, 0:S3] = zero3
    buf3[:, S3 + B * hw2:S3 + B * hw2 + S3] = zero3
    u2 = u2_ref[...].astype(jnp.float32)
    for n in range(B):
        seg = y2[:, n * hw1:(n + 1) * hw1]
        buf3[:, S3 + n * hw2:S3 + (n + 1) * hw2] = jnp.dot(
            seg, u2, preferred_element_type=jnp.float32)

    # ---- stage 3: conv5x5 + bias + ReLU, accumulated per vertical tap row ----
    y3 = _conv_bias_relu(buf3, w3_ref, b3_ref,
                         K=5, pad=2, H=H2, W=W2, B=B, slack=S3, vchunk=1)
    o_ref[...] = y3.astype(o_ref.dtype)                # lane-dense (Cout, B*H2*W2)


def decoder_forward(x_nchw, params, *, block_b=None):
    """ConvVAE decoder: relu(up2(conv1)) -> relu(up2(conv2)) -> relu(conv3)."""
    N, Cin, H0, W0 = x_nchw.shape
    Ch = params["w1"].shape[0]
    Cout = params["w3"].shape[0]
    H1, W1 = 2 * H0, 2 * W0
    H2, W2 = 2 * H1, 2 * W1

    # Batch block: B images are packed image-major along the lane axis so every
    # matmul is B*H*W lanes wide.  For large N keep grid >= 2 steps per core.
    B = min(N, 4) if block_b is None else block_b
    n_pad = (-N) % B
    Nb = (N + n_pad) // B

    # Pad input channels to a sublane multiple (8); zero channels are exact.
    cin_p = -(-Cin // 8) * 8
    x = x_nchw
    w1 = params["w1"]
    if cin_p != Cin:
        x = jnp.pad(x, ((0, 0), (0, cin_p - Cin), (0, 0), (0, 0)))
        w1 = jnp.pad(w1, ((0, 0), (0, cin_p - Cin), (0, 0), (0, 0)))
    if n_pad:
        x = jnp.pad(x, ((0, n_pad), (0, 0), (0, 0), (0, 0)))

    # (N, C, H, W) -> (Nb, C, B*H*W): image-major lane packing (tiny transpose),
    # then pre-pad stage-1 slack lanes so the kernel slices taps in place.
    x_blk = (x.reshape(Nb, B, cin_p, H0 * W0)
              .transpose(0, 2, 1, 3)
              .reshape(Nb, cin_p, B * H0 * W0))
    S1 = W0 + 1
    x_blk = jnp.pad(x_blk, ((0, 0), (0, 0), (S1, S1)))

    w1m = _conv_weight_matrix(w1)
    w2m = _conv_weight_matrix(params["w2"])
    w3m = _conv_weight_matrix(params["w3"])
    b1 = params["b1"].reshape(Ch, 1)
    b2 = params["b2"].reshape(Ch, 1)
    b3 = params["b3"].reshape(Cout, 1)
    # 0/1 upsample matrices are exact in bf16 -> half the DMA / VMEM footprint.
    u1 = _upsample2x_matrix(H0, W0, jnp.bfloat16)      # (H0*W0, H1*W1)
    u2 = _upsample2x_matrix(H1, W1, jnp.bfloat16)      # (H1*W1, H2*W2)

    S2 = W1 + 1
    S3 = 2 * W2 + 2
    L2 = B * H1 * W1 + 2 * S2
    L3 = B * H2 * W2 + 2 * S3

    kernel = functools.partial(_decoder_kernel, B=B, H0=H0, W0=W0)
    rep = lambda i: (0, 0)      # replicated operands: constant block index

    out = pl.pallas_call(
        kernel,
        out_shape=jax.ShapeDtypeStruct((Nb, Cout, B * H2 * W2), jnp.float32),
        grid_spec=pltpu.PrefetchScalarGridSpec(
            num_scalar_prefetch=0,
            grid=(Nb,),
            in_specs=[
                pl.BlockSpec((None, cin_p, x_blk.shape[-1]), lambda i: (i, 0, 0)),
                pl.BlockSpec(w1m.shape, rep),
                pl.BlockSpec(b1.shape, rep),
                pl.BlockSpec(u1.shape, rep),
                pl.BlockSpec(w2m.shape, rep),
                pl.BlockSpec(b2.shape, rep),
                pl.BlockSpec(u2.shape, rep),
                pl.BlockSpec(w3m.shape, rep),
                pl.BlockSpec(b3.shape, rep),
            ],
            out_specs=pl.BlockSpec((None, Cout, B * H2 * W2), lambda i: (i, 0, 0)),
            scratch_shapes=[
                pltpu.VMEM((Ch, L2), jnp.float32),
                pltpu.VMEM((Ch, L3), jnp.float32),
            ],
        ),
        compiler_params=pltpu.CompilerParams(
            dimension_semantics=("parallel",),     # shard batch blocks over TCs
            vmem_limit_bytes=32 * 1024 * 1024,
        ),
    )(x_blk, w1m, b1, u1, w2m, b2, u2, w3m, b3)

    out = (out.reshape(Nb, Cout, B, H2, W2)
              .transpose(0, 2, 1, 3, 4)
              .reshape(Nb * B, Cout, H2, W2))
    return out[:N]


def init_params(key, in_chan, hidden_ch, out_chan):
    """Deterministic synthetic weights with PyTorch Conv2d shapes (OIHW)."""
    ks = jax.random.split(key, 6)

    def conv_w(k, cout, cin, ksz):
        return jax.random.normal(k, (cout, cin, ksz, ksz), jnp.float32) * 0.1

    return {
        "w1": conv_w(ks[0], hidden_ch, in_chan, 3),
        "b1": jax.random.normal(ks[1], (hidden_ch,), jnp.float32) * 0.1,
        "w2": conv_w(ks[2], hidden_ch, hidden_ch, 3),
        "b2": jax.random.normal(ks[3], (hidden_ch,), jnp.float32) * 0.1,
        "w3": conv_w(ks[4], out_chan, hidden_ch, 5),
        "b3": jax.random.normal(ks[5], (out_chan,), jnp.float32) * 0.1,
    }


def _reference_forward(x_nchw, params):
    """Pure-JAX (XLA conv) reference matching the PyTorch forward exactly."""
    def conv(x, w_oihw, b, pad):
        y = jax.lax.conv_general_dilated(
            x, w_oihw, window_strides=(1, 1), padding=[(pad, pad), (pad, pad)],
            dimension_numbers=("NCHW", "OIHW", "NCHW"))
        return y + b.reshape(1, -1, 1, 1)

    def up2(x):  # nearest, NCHW
        x = jnp.repeat(x, 2, axis=2)
        return jnp.repeat(x, 2, axis=3)

    x = jax.nn.relu(up2(conv(x_nchw, params["w1"], params["b1"], 1)))
    x = jax.nn.relu(up2(conv(x, params["w2"], params["b2"], 1)))
    x = jax.nn.relu(conv(x, params["w3"], params["b3"], 2))
    return x


if __name__ == "__main__":
    key = jax.random.PRNGKey(0)
    kp, kx = jax.random.split(key)

    in_chan, hidden_ch, out_chan = 4, 8, 3
    N, H, W = 2, 8, 8   # final output is (N, 3, 32, 32)

    params = init_params(kp, in_chan, hidden_ch, out_chan)
    x = jax.random.normal(kx, (N, in_chan, H, W), jnp.float32)

    y = jax.jit(decoder_forward)(x, params)
    y = jax.block_until_ready(y)

    assert y.shape == (N, out_chan, 4 * H, 4 * W), y.shape

    y_ref = _reference_forward(x, params)
    if not jnp.allclose(y, y_ref, atol=2e-3, rtol=2e-3):
        raise AssertionError("Pallas decoder output mismatch vs JAX reference")

    print("KERNEL_OK")
</pallas_src>

<mosaic_0001>
module attributes {stable_mosaic.version = 11 : i64} {
  func.func @_decoder_kernel(%arg0: i32, %arg1: memref<1x8x146xf32, #tpu.memory_space<vmem>>, %arg2: memref<8x72xf32, #tpu.memory_space<vmem>>, %arg3: memref<8x1xf32, #tpu.memory_space<vmem>>, %arg4: memref<64x256xbf16, #tpu.memory_space<vmem>>, %arg5: memref<8x72xf32, #tpu.memory_space<vmem>>, %arg6: memref<8x1xf32, #tpu.memory_space<vmem>>, %arg7: memref<256x1024xbf16, #tpu.memory_space<vmem>>, %arg8: memref<3x200xf32, #tpu.memory_space<vmem>>, %arg9: memref<3x1xf32, #tpu.memory_space<vmem>>, %arg10: memref<1x3x2048xf32, #tpu.memory_space<vmem>>, %arg11: memref<8x546xf32, #tpu.memory_space<vmem>>, %arg12: memref<8x2180xf32, #tpu.memory_space<vmem>>) attributes {dimension_semantics = [#tpu.dimension_semantics<parallel>], iteration_bounds = array<i64: 1>, scalar_prefetch = 0 : i64, scratch_operands = 2 : i64, tpu.core_type = #tpu.core_type<tc>, window_params = [{transform_indices = @transform_0, window_bounds = array<i64: 1, 8, 146>}, {pipeline_mode = #tpu.pipeline_mode<synchronous>, transform_indices = @transform_1, window_bounds = array<i64: 8, 72>}, {pipeline_mode = #tpu.pipeline_mode<synchronous>, transform_indices = @transform_2, window_bounds = array<i64: 8, 1>}, {pipeline_mode = #tpu.pipeline_mode<synchronous>, transform_indices = @transform_3, window_bounds = array<i64: 64, 256>}, {pipeline_mode = #tpu.pipeline_mode<synchronous>, transform_indices = @transform_4, window_bounds = array<i64: 8, 72>}, {pipeline_mode = #tpu.pipeline_mode<synchronous>, transform_indices = @transform_5, window_bounds = array<i64: 8, 1>}, {pipeline_mode = #tpu.pipeline_mode<synchronous>, transform_indices = @transform_6, window_bounds = array<i64: 256, 1024>}, {pipeline_mode = #tpu.pipeline_mode<synchronous>, transform_indices = @transform_7, window_bounds = array<i64: 3, 200>}, {pipeline_mode = #tpu.pipeline_mode<synchronous>, transform_indices = @transform_8, window_bounds = array<i64: 3, 1>}, {transform_indices = @transform_9, window_bounds = array<i64: 1, 3, 2048>}]} {
    %0 = tpu.iota {dimensions = array<i32: 1>} : vector<8x128xi32>
    %c8_i32 = arith.constant 8 : i32
    %c0_i32 = arith.constant 0 : i32
    %1 = arith.cmpi eq, %c8_i32, %c0_i32 : i32
    %c1_i32 = arith.constant 1 : i32
    %2 = arith.select %1, %c1_i32, %c8_i32 : i32
    %3 = vector.broadcast %2 : i32 to vector<8x128xi32>
    %4 = arith.remsi %0, %3 : vector<8x128xi32>
    %c0_i32_0 = arith.constant 0 : i32
    %5 = vector.broadcast %c0_i32_0 : i32 to vector<8x128xi32>
    %6 = arith.cmpi ne, %4, %5 : vector<8x128xi32>
    %c0_i32_1 = arith.constant 0 : i32
    %7 = vector.broadcast %c0_i32_1 : i32 to vector<8x128xi32>
    %8 = arith.cmpi slt, %4, %7 : vector<8x128xi32>
    %c0_i32_2 = arith.constant 0 : i32
    %9 = arith.cmpi slt, %2, %c0_i32_2 : i32
    %10 = vector.broadcast %9 : i1 to vector<8x128xi1>
    %11 = vector.broadcast %10 : vector<8x128xi1> to vector<8x128xi1>
    %12 = arith.xori %8, %11 : vector<8x128xi1>
    %13 = arith.andi %12, %6 : vector<8x128xi1>
    %14 = vector.broadcast %2 : i32 to vector<8x128xi32>
    %15 = arith.addi %4, %14 : vector<8x128xi32>
    %16 = arith.select %13, %15, %4 : vector<8x128xi1>, vector<8x128xi32>
    %c64_i32 = arith.constant 64 : i32
    %c0_i32_3 = arith.constant 0 : i32
    %17 = arith.cmpi eq, %c64_i32, %c0_i32_3 : i32
    %c1_i32_4 = arith.constant 1 : i32
    %18 = arith.select %17, %c1_i32_4, %c64_i32 : i32
    %19 = vector.broadcast %18 : i32 to vector<8x128xi32>
    %20 = arith.remsi %0, %19 : vector<8x128xi32>
    %c0_i32_5 = arith.constant 0 : i32
    %21 = vector.broadcast %c0_i32_5 : i32 to vector<8x128xi32>
    %22 = arith.cmpi ne, %20, %21 : vector<8x128xi32>
    %c0_i32_6 = arith.constant 0 : i32
    %23 = vector.broadcast %c0_i32_6 : i32 to vector<8x128xi32>
    %24 = arith.cmpi slt, %20, %23 : vector<8x128xi32>
    %c0_i32_7 = arith.constant 0 : i32
    %25 = arith.cmpi slt, %18, %c0_i32_7 : i32
    %26 = vector.broadcast %25 : i1 to vector<8x128xi1>
    %27 = vector.broadcast %26 : vector<8x128xi1> to vector<8x128xi1>
    %28 = arith.xori %24, %27 : vector<8x128xi1>
    %29 = arith.andi %28, %22 : vector<8x128xi1>
    %30 = vector.broadcast %18 : i32 to vector<8x128xi32>
    %31 = arith.addi %20, %30 : vector<8x128xi32>
    %32 = arith.select %29, %31, %20 : vector<8x128xi1>, vector<8x128xi32>
    %c8_i32_8 = arith.constant 8 : i32
    %33 = vector.broadcast %c8_i32_8 : i32 to vector<8x128xi32>
    %34 = arith.cmpi sge, %32, %33 : vector<8x128xi32>
    %c56_i32 = arith.constant 56 : i32
    %35 = vector.broadcast %c56_i32 : i32 to vector<8x128xi32>
    %36 = arith.cmpi slt, %32, %35 : vector<8x128xi32>
    %c1_i32_9 = arith.constant 1 : i32
    %37 = vector.broadcast %c1_i32_9 : i32 to vector<8x128xi32>
    %38 = arith.cmpi sge, %16, %37 : vector<8x128xi32>
    %c7_i32 = arith.constant 7 : i32
    %39 = vector.broadcast %c7_i32 : i32 to vector<8x128xi32>
    %40 = arith.cmpi slt, %16, %39 : vector<8x128xi32>
    %c0 = arith.constant 0 : index
    %c0_10 = arith.constant 0 : index
    %c0_11 = arith.constant 0 : index
    %41 = vector.load %arg1[%c0, %c0_10, %c0_11] : memref<1x8x146xf32, #tpu.memory_space<vmem>>, vector<1x8x128xf32>
    %42 = vector.shape_cast %41 : vector<1x8x128xf32> to vector<8x128xf32>
    %43 = arith.andi %34, %38 : vector<8x128xi1>
    %cst = arith.constant 0.000000e+00 : f32
    %44 = vector.broadcast %cst : f32 to vector<8x128xf32>
    %45 = arith.select %43, %42, %44 : vector<8x128xi1>, vector<8x128xf32>
    %c0_12 = arith.constant 0 : index
    %c0_13 = arith.constant 0 : index
    %c1 = arith.constant 1 : index
    %46 = vector.load %arg1[%c0_12, %c0_13, %c1] : memref<1x8x146xf32, #tpu.memory_space<vmem>>, vector<1x8x128xf32>
    %47 = vector.shape_cast %46 : vector<1x8x128xf32> to vector<8x128xf32>
    %cst_14 = arith.constant 0.000000e+00 : f32
    %48 = vector.broadcast %cst_14 : f32 to vector<8x128xf32>
    %49 = arith.select %34, %47, %48 : vector<8x128xi1>, vector<8x128xf32>
    %c0_15 = arith.constant 0 : index
    %c0_16 = arith.constant 0 : index
    %c2 = arith.constant 2 : index
    %50 = vector.load %arg1[%c0_15, %c0_16, %c2] : memref<1x8x146xf32, #tpu.memory_space<vmem>>, vector<1x8x128xf32>
    %51 = vector.shape_cast %50 : vector<1x8x128xf32> to vector<8x128xf32>
    %52 = arith.andi %34, %40 : vector<8x128xi1>
    %cst_17 = arith.constant 0.000000e+00 : f32
    %53 = vector.broadcast %cst_17 : f32 to vector<8x128xf32>
    %54 = arith.select %52, %51, %53 : vector<8x128xi1>, vector<8x128xf32>
    %c0_18 = arith.constant 0 : index
    %c0_19 = arith.constant 0 : index
    %c8 = arith.constant 8 : index
    %55 = vector.load %arg1[%c0_18, %c0_19, %c8] : memref<1x8x146xf32, #tpu.memory_space<vmem>>, vector<1x8x128xf32>
    %56 = vector.shape_cast %55 : vector<1x8x128xf32> to vector<8x128xf32>
    %cst_20 = arith.constant 0.000000e+00 : f32
    %57 = vector.broadcast %cst_20 : f32 to vector<8x128xf32>
    %58 = arith.select %38, %56, %57 : vector<8x128xi1>, vector<8x128xf32>
    %c0_21 = arith.constant 0 : index
    %c0_22 = arith.constant 0 : index
    %c9 = arith.constant 9 : index
    %59 = vector.load %arg1[%c0_21, %c0_22, %c9] : memref<1x8x146xf32, #tpu.memory_space<vmem>>, vector<1x8x128xf32>
    %60 = vector.shape_cast %59 : vector<1x8x128xf32> to vector<8x128xf32>
    %c0_23 = arith.constant 0 : index
    %c0_24 = arith.constant 0 : index
    %c10 = arith.constant 10 : index
    %61 = vector.load %arg1[%c0_23, %c0_24, %c10] : memref<1x8x146xf32, #tpu.memory_space<vmem>>, vector<1x8x128xf32>
    %62 = vector.shape_cast %61 : vector<1x8x128xf32> to vector<8x128xf32>
    %cst_25 = arith.constant 0.000000e+00 : f32
    %63 = vector.broadcast %cst_25 : f32 to vector<8x128xf32>
    %64 = arith.select %40, %62, %63 : vector<8x128xi1>, vector<8x128xf32>
    %c0_26 = arith.constant 0 : index
    %c0_27 = arith.constant 0 : index
    %c16 = arith.constant 16 : index
    %65 = vector.load %arg1[%c0_26, %c0_27, %c16] : memref<1x8x146xf32, #tpu.memory_space<vmem>>, vector<1x8x128xf32>
    %66 = vector.shape_cast %65 : vector<1x8x128xf32> to vector<8x128xf32>
    %67 = arith.andi %36, %38 : vector<8x128xi1>
    %cst_28 = arith.constant 0.000000e+00 : f32
    %68 = vector.broadcast %cst_28 : f32 to vector<8x128xf32>
    %69 = arith.select %67, %66, %68 : vector<8x128xi1>, vector<8x128xf32>
    %c0_29 = arith.constant 0 : index
    %c0_30 = arith.constant 0 : index
    %c17 = arith.constant 17 : index
    %70 = vector.load %arg1[%c0_29, %c0_30, %c17] : memref<1x8x146xf32, #tpu.memory_space<vmem>>, vector<1x8x128xf32>
    %71 = vector.shape_cast %70 : vector<1x8x128xf32> to vector<8x128xf32>
    %cst_31 = arith.constant 0.000000e+00 : f32
    %72 = vector.broadcast %cst_31 : f32 to vector<8x128xf32>
    %73 = arith.select %36, %71, %72 : vector<8x128xi1>, vector<8x128xf32>
    %c0_32 = arith.constant 0 : index
    %c0_33 = arith.constant 0 : index
    %c18 = arith.constant 18 : index
    %74 = vector.load %arg1[%c0_32, %c0_33, %c18] : memref<1x8x146xf32, #tpu.memory_space<vmem>>, vector<1x8x128xf32>
    %75 = vector.shape_cast %74 : vector<1x8x128xf32> to vector<8x128xf32>
    %76 = arith.andi %36, %40 : vector<8x128xi1>
    %cst_34 = arith.constant 0.000000e+00 : f32
    %77 = vector.broadcast %cst_34 : f32 to vector<8x128xf32>
    %78 = arith.select %76, %75, %77 : vector<8x128xi1>, vector<8x128xf32>
    %79 = tpu.concatenate %45, %49, %54, %58, %60, %64, %69, %73, %78 in 0 : vector<8x128xf32>, vector<8x128xf32>, vector<8x128xf32>, vector<8x128xf32>, vector<8x128xf32>, vector<8x128xf32>, vector<8x128xf32>, vector<8x128xf32>, vector<8x128xf32> -> vector<72x128xf32>
    %c0_35 = arith.constant 0 : index
    %c0_36 = arith.constant 0 : index
    %80 = vector.load %arg2[%c0_35, %c0_36] : memref<8x72xf32, #tpu.memory_space<vmem>>, vector<8x72xf32>
    %cst_37 = arith.constant dense<0.000000e+00> : vector<8x128xf32>
    %81 = tpu.matmul %80, %79, %cst_37 {dimension_numbers = #tpu.dot_dimension_numbers<[1], [0], [0], [1], [0, 0, 1, 1], [], []>} : vector<8x72xf32>, vector<72x128xf32>, vector<8x128xf32> -> vector<8x128xf32>
    %c0_38 = arith.constant 0 : index
    %c0_39 = arith.constant 0 : index
    %82 = vector.load %arg3[%c0_38, %c0_39] : memref<8x1xf32, #tpu.memory_space<vmem>>, vector<8x1xf32>
    %83 = vector.broadcast %82 : vector<8x1xf32> to vector<8x128xf32>
    %84 = arith.addf %81, %83 : vector<8x128xf32>
    %cst_40 = arith.constant 0.000000e+00 : f32
    %85 = vector.broadcast %cst_40 : f32 to vector<8x128xf32>
    %86 = arith.maximumf %84, %85 : vector<8x128xf32>
    %cst_41 = arith.constant 0.000000e+00 : f32
    %87 = vector.broadcast %cst_41 : f32 to vector<8x17xf32>
    %c0_42 = arith.constant 0 : index
    %c0_43 = arith.constant 0 : index
    %88 = vector.load %arg11[%c0_42, %c0_43] : memref<8x546xf32, #tpu.memory_space<vmem>>, vector<8x17xf32>
    tpu.vector_store %arg11[%c0_42, %c0_43], %87 {strides = array<i32>} : memref<8x546xf32, #tpu.memory_space<vmem>>, vector<8x17xf32>,
    %c0_44 = arith.constant 0 : index
    %c529 = arith.constant 529 : index
    %89 = vector.load %arg11[%c0_44, %c529] : memref<8x546xf32, #tpu.memory_space<vmem>>, vector<8x17xf32>
    tpu.vector_store %arg11[%c0_44, %c529], %87 {strides = array<i32>} : memref<8x546xf32, #tpu.memory_space<vmem>>, vector<8x17xf32>,
    %c0_45 = arith.constant 0 : index
    %c0_46 = arith.constant 0 : index
    %90 = vector.load %arg4[%c0_45, %c0_46] : memref<64x256xbf16, #tpu.memory_space<vmem>>, vector<64x256xbf16>
    %91 = arith.extf %90 : vector<64x256xbf16> to vector<64x256xf32>
    %92 = vector.extract_strided_slice %86 {offsets = [0, 0], sizes = [8, 64], strides = [1, 1]} : vector<8x128xf32> to vector<8x64xf32>
    %cst_47 = arith.constant dense<0.000000e+00> : vector<8x256xf32>
    %93 = tpu.matmul %92, %91, %cst_47 {dimension_numbers = #tpu.dot_dimension_numbers<[1], [0], [0], [1], [0, 0, 1, 1], [], []>} : vector<8x64xf32>, vector<64x256xf32>, vector<8x256xf32> -> vector<8x256xf32>
    %c0_48 = arith.constant 0 : index
    %c17_49 = arith.constant 17 : index
    %94 = vector.load %arg11[%c0_48, %c17_49] : memref<8x546xf32, #tpu.memory_space<vmem>>, vector<8x256xf32>
    tpu.vector_store %arg11[%c0_48, %c17_49], %93 {strides = array<i32>} : memref<8x546xf32, #tpu.memory_space<vmem>>, vector<8x256xf32>,
    %95 = vector.extract_strided_slice %86 {offsets = [0, 64], sizes = [8, 64], strides = [1, 1]} : vector<8x128xf32> to vector<8x64xf32>
    %cst_50 = arith.constant dense<0.000000e+00> : vector<8x256xf32>
    %96 = tpu.matmul %95, %91, %cst_50 {dimension_numbers = #tpu.dot_dimension_numbers<[1], [0], [0], [1], [0, 0, 1, 1], [], []>} : vector<8x64xf32>, vector<64x256xf32>, vector<8x256xf32> -> vector<8x256xf32>
    %c0_51 = arith.constant 0 : index
    %c273 = arith.constant 273 : index
    %97 = vector.load %arg11[%c0_51, %c273] : memref<8x546xf32, #tpu.memory_space<vmem>>, vector<8x256xf32>
    tpu.vector_store %arg11[%c0_51, %c273], %96 {strides = array<i32>} : memref<8x546xf32, #tpu.memory_space<vmem>>, vector<8x256xf32>,
    %98 = tpu.iota {dimensions = array<i32: 1>} : vector<8x512xi32>
    %c16_i32 = arith.constant 16 : i32
    %c0_i32_52 = arith.constant 0 : i32
    %99 = arith.cmpi eq, %c16_i32, %c0_i32_52 : i32
    %c1_i32_53 = arith.constant 1 : i32
    %100 = arith.select %99, %c1_i32_53, %c16_i32 : i32
    %101 = vector.broadcast %100 : i32 to vector<8x512xi32>
    %102 = arith.remsi %98, %101 : vector<8x512xi32>
    %c0_i32_54 = arith.constant 0 : i32
    %103 = vector.broadcast %c0_i32_54 : i32 to vector<8x512xi32>
    %104 = arith.cmpi ne, %102, %103 : vector<8x512xi32>
    %c0_i32_55 = arith.constant 0 : i32
    %105 = vector.broadcast %c0_i32_55 : i32 to vector<8x512xi32>
    %106 = arith.cmpi slt, %102, %105 : vector<8x512xi32>
    %c0_i32_56 = arith.constant 0 : i32
    %107 = arith.cmpi slt, %100, %c0_i32_56 : i32
    %108 = vector.broadcast %107 : i1 to vector<8x512xi1>
    %109 = vector.broadcast %108 : vector<8x512xi1> to vector<8x512xi1>
    %110 = arith.xori %106, %109 : vector<8x512xi1>
    %111 = arith.andi %110, %104 : vector<8x512xi1>
    %112 = vector.broadcast %100 : i32 to vector<8x512xi32>
    %113 = arith.addi %102, %112 : vector<8x512xi32>
    %114 = arith.select %111, %113, %102 : vector<8x512xi1>, vector<8x512xi32>
    %c256_i32 = arith.constant 256 : i32
    %c0_i32_57 = arith.constant 0 : i32
    %115 = arith.cmpi eq, %c256_i32, %c0_i32_57 : i32
    %c1_i32_58 = arith.constant 1 : i32
    %116 = arith.select %115, %c1_i32_58, %c256_i32 : i32
    %117 = vector.broadcast %116 : i32 to vector<8x512xi32>
    %118 = arith.remsi %98, %117 : vector<8x512xi32>
    %c0_i32_59 = arith.constant 0 : i32
    %119 = vector.broadcast %c0_i32_59 : i32 to vector<8x512xi32>
    %120 = arith.cmpi ne, %118, %119 : vector<8x512xi32>
    %c0_i32_60 = arith.constant 0 : i32
    %121 = vector.broadcast %c0_i32_60 : i32 to vector<8x512xi32>
    %122 = arith.cmpi slt, %118, %121 : vector<8x512xi32>
    %c0_i32_61 = arith.constant 0 : i32
    %123 = arith.cmpi slt, %116, %c0_i32_61 : i32
    %124 = vector.broadcast %123 : i1 to vector<8x512xi1>
    %125 = vector.broadcast %124 : vector<8x512xi1> to vector<8x512xi1>
    %126 = arith.xori %122, %125 : vector<8x512xi1>
    %127 = arith.andi %126, %120 : vector<8x512xi1>
    %128 = vector.broadcast %116 : i32 to vector<8x512xi32>
    %129 = arith.addi %118, %128 : vector<8x512xi32>
    %130 = arith.select %127, %129, %118 : vector<8x512xi1>, vector<8x512xi32>
    %c16_i32_62 = arith.constant 16 : i32
    %131 = vector.broadcast %c16_i32_62 : i32 to vector<8x512xi32>
    %132 = arith.cmpi sge, %130, %131 : vector<8x512xi32>
    %c240_i32 = arith.constant 240 : i32
    %133 = vector.broadcast %c240_i32 : i32 to vector<8x512xi32>
    %134 = arith.cmpi slt, %130, %133 : vector<8x512xi32>
    %c1_i32_63 = arith.constant 1 : i32
    %135 = vector.broadcast %c1_i32_63 : i32 to vector<8x512xi32>
    %136 = arith.cmpi sge, %114, %135 : vector<8x512xi32>
    %c15_i32 = arith.constant 15 : i32
    %137 = vector.broadcast %c15_i32 : i32 to vector<8x512xi32>
    %138 = arith.cmpi slt, %114, %137 : vector<8x512xi32>
    %c0_64 = arith.constant 0 : index
    %c0_65 = arith.constant 0 : index
    %139 = vector.load %arg11[%c0_64, %c0_65] : memref<8x546xf32, #tpu.memory_space<vmem>>, vector<8x512xf32>
    %140 = arith.andi %132, %136 : vector<8x512xi1>
    %cst_66 = arith.constant 0.000000e+00 : f32
    %141 = vector.broadcast %cst_66 : f32 to vector<8x512xf32>
    %142 = arith.select %140, %139, %141 : vector<8x512xi1>, vector<8x512xf32>
    %c0_67 = arith.constant 0 : index
    %c1_68 = arith.constant 1 : index
    %143 = vector.load %arg11[%c0_67, %c1_68] : memref<8x546xf32, #tpu.memory_space<vmem>>, vector<8x512xf32>
    %cst_69 = arith.constant 0.000000e+00 : f32
    %144 = vector.broadcast %cst_69 : f32 to vector<8x512xf32>
    %145 = arith.select %132, %143, %144 : vector<8x512xi1>, vector<8x512xf32>
    %c0_70 = arith.constant 0 : index
    %c2_71 = arith.constant 2 : index
    %146 = vector.load %arg11[%c0_70, %c2_71] : memref<8x546xf32, #tpu.memory_space<vmem>>, vector<8x512xf32>
    %147 = arith.andi %132, %138 : vector<8x512xi1>
    %cst_72 = arith.constant 0.000000e+00 : f32
    %148 = vector.broadcast %cst_72 : f32 to vector<8x512xf32>
    %149 = arith.select %147, %146, %148 : vector<8x512xi1>, vector<8x512xf32>
    %c0_73 = arith.constant 0 : index
    %c16_74 = arith.constant 16 : index
    %150 = vector.load %arg11[%c0_73, %c16_74] : memref<8x546xf32, #tpu.memory_space<vmem>>, vector<8x512xf32>
    %cst_75 = arith.constant 0.000000e+00 : f32
    %151 = vector.broadcast %cst_75 : f32 to vector<8x512xf32>
    %152 = arith.select %136, %150, %151 : vector<8x512xi1>, vector<8x512xf32>
    %c0_76 = arith.constant 0 : index
    %c17_77 = arith.constant 17 : index
    %153 = vector.load %arg11[%c0_76, %c17_77] : memref<8x546xf32, #tpu.memory_space<vmem>>, vector<8x512xf32>
    %c0_78 = arith.constant 0 : index
    %c18_79 = arith.constant 18 : index
    %154 = vector.load %arg11[%c0_78, %c18_79] : memref<8x546xf32, #tpu.memory_space<vmem>>, vector<8x512xf32>
    %cst_80 = arith.constant 0.000000e+00 : f32
    %155 = vector.broadcast %cst_80 : f32 to vector<8x512xf32>
    %156 = arith.select %138, %154, %155 : vector<8x512xi1>, vector<8x512xf32>
    %c0_81 = arith.constant 0 : index
    %c32 = arith.constant 32 : index
    %157 = vector.load %arg11[%c0_81, %c32] : memref<8x546xf32, #tpu.memory_space<vmem>>, vector<8x512xf32>
    %158 = arith.andi %134, %136 : vector<8x512xi1>
    %cst_82 = arith.constant 0.000000e+00 : f32
    %159 = vector.broadcast %cst_82 : f32 to vector<8x512xf32>
    %160 = arith.select %158, %157, %159 : vector<8x512xi1>, vector<8x512xf32>
    %c0_83 = arith.constant 0 : index
    %c33 = arith.constant 33 : index
    %161 = vector.load %arg11[%c0_83, %c33] : memref<8x546xf32, #tpu.memory_space<vmem>>, vector<8x512xf32>
    %cst_84 = arith.constant 0.000000e+00 : f32
    %162 = vector.broadcast %cst_84 : f32 to vector<8x512xf32>
    %163 = arith.select %134, %161, %162 : vector<8x512xi1>, vector<8x512xf32>
    %c0_85 = arith.constant 0 : index
    %c34 = arith.constant 34 : index
    %164 = vector.load %arg11[%c0_85, %c34] : memref<8x546xf32, #tpu.memory_space<vmem>>, vector<8x512xf32>
    %165 = arith.andi %134, %138 : vector<8x512xi1>
    %cst_86 = arith.constant 0.000000e+00 : f32
    %166 = vector.broadcast %cst_86 : f32 to vector<8x512xf32>
    %167 = arith.select %165, %164, %166 : vector<8x512xi1>, vector<8x512xf32>
    %168 = tpu.concatenate %142, %145, %149, %152, %153, %156, %160, %163, %167 in 0 : vector<8x512xf32>, vector<8x512xf32>, vector<8x512xf32>, vector<8x512xf32>, vector<8x512xf32>, vector<8x512xf32>, vector<8x512xf32>, vector<8x512xf32>, vector<8x512xf32> -> vector<72x512xf32>
    %c0_87 = arith.constant 0 : index
    %c0_88 = arith.constant 0 : index
    %169 = vector.load %arg5[%c0_87, %c0_88] : memref<8x72xf32, #tpu.memory_space<vmem>>, vector<8x72xf32>
    %cst_89 = arith.constant dense<0.000000e+00> : vector<8x512xf32>
    %170 = tpu.matmul %169, %168, %cst_89 {dimension_numbers = #tpu.dot_dimension_numbers<[1], [0], [0], [1], [0, 0, 1, 1], [], []>} : vector<8x72xf32>, vector<72x512xf32>, vector<8x512xf32> -> vector<8x512xf32>
    %c0_90 = arith.constant 0 : index
    %c0_91 = arith.constant 0 : index
    %171 = vector.load %arg6[%c0_90, %c0_91] : memref<8x1xf32, #tpu.memory_space<vmem>>, vector<8x1xf32>
    %172 = vector.broadcast %171 : vector<8x1xf32> to vector<8x512xf32>
    %173 = arith.addf %170, %172 : vector<8x512xf32>
    %cst_92 = arith.constant 0.000000e+00 : f32
    %174 = vector.broadcast %cst_92 : f32 to vector<8x512xf32>
    %175 = arith.maximumf %173, %174 : vector<8x512xf32>
    %cst_93 = arith.constant 0.000000e+00 : f32
    %176 = vector.broadcast %cst_93 : f32 to vector<8x66xf32>
    %c0_94 = arith.constant 0 : index
    %c0_95 = arith.constant 0 : index
    %177 = vector.load %arg12[%c0_94, %c0_95] : memref<8x2180xf32, #tpu.memory_space<vmem>>, vector<8x66xf32>
    tpu.vector_store %arg12[%c0_94, %c0_95], %176 {strides = array<i32>} : memref<8x2180xf32, #tpu.memory_space<vmem>>, vector<8x66xf32>,
    %c0_96 = arith.constant 0 : index
    %c2114 = arith.constant 2114 : index
    %178 = vector.load %arg12[%c0_96, %c2114] : memref<8x2180xf32, #tpu.memory_space<vmem>>, vector<8x66xf32>
    tpu.vector_store %arg12[%c0_96, %c2114], %176 {strides = array<i32>} : memref<8x2180xf32, #tpu.memory_space<vmem>>, vector<8x66xf32>,
    %c0_97 = arith.constant 0 : index
    %c0_98 = arith.constant 0 : index
    %179 = vector.load %arg7[%c0_97, %c0_98] : memref<256x1024xbf16, #tpu.memory_space<vmem>>, vector<256x1024xbf16>
    %180 = arith.extf %179 : vector<256x1024xbf16> to vector<256x1024xf32>
    %181 = vector.extract_strided_slice %175 {offsets = [0, 0], sizes = [8, 256], strides = [1, 1]} : vector<8x512xf32> to vector<8x256xf32>
    %cst_99 = arith.constant dense<0.000000e+00> : vector<8x1024xf32>
    %182 = tpu.matmul %181, %180, %cst_99 {dimension_numbers = #tpu.dot_dimension_numbers<[1], [0], [0], [1], [0, 0, 1, 1], [], []>} : vector<8x256xf32>, vector<256x1024xf32>, vector<8x1024xf32> -> vector<8x1024xf32>
    %c0_100 = arith.constant 0 : index
    %c66 = arith.constant 66 : index
    %183 = vector.load %arg12[%c0_100, %c66] : memref<8x2180xf32, #tpu.memory_space<vmem>>, vector<8x1024xf32>
    tpu.vector_store %arg12[%c0_100, %c66], %182 {strides = array<i32>} : memref<8x2180xf32, #tpu.memory_space<vmem>>, vector<8x1024xf32>,
    %184 = vector.extract_strided_slice %175 {offsets = [0, 256], sizes = [8, 256], strides = [1, 1]} : vector<8x512xf32> to vector<8x256xf32>
    %cst_101 = arith.constant dense<0.000000e+00> : vector<8x1024xf32>
    %185 = tpu.matmul %184, %180, %cst_101 {dimension_numbers = #tpu.dot_dimension_numbers<[1], [0], [0], [1], [0, 0, 1, 1], [], []>} : vector<8x256xf32>, vector<256x1024xf32>, vector<8x1024xf32> -> vector<8x1024xf32>
    %c0_102 = arith.constant 0 : index
    %c1090 = arith.constant 1090 : index
    %186 = vector.load %arg12[%c0_102, %c1090] : memref<8x2180xf32, #tpu.memory_space<vmem>>, vector<8x1024xf32>
    tpu.vector_store %arg12[%c0_102, %c1090], %185 {strides = array<i32>} : memref<8x2180xf32, #tpu.memory_space<vmem>>, vector<8x1024xf32>,
    %187 = tpu.iota {dimensions = array<i32: 1>} : vector<8x2048xi32>
    %c32_i32 = arith.constant 32 : i32
    %c0_i32_103 = arith.constant 0 : i32
    %188 = arith.cmpi eq, %c32_i32, %c0_i32_103 : i32
    %c1_i32_104 = arith.constant 1 : i32
    %189 = arith.select %188, %c1_i32_104, %c32_i32 : i32
    %190 = vector.broadcast %189 : i32 to vector<8x2048xi32>
    %191 = arith.remsi %187, %190 : vector<8x2048xi32>
    %c0_i32_105 = arith.constant 0 : i32
    %192 = vector.broadcast %c0_i32_105 : i32 to vector<8x2048xi32>
    %193 = arith.cmpi ne, %191, %192 : vector<8x2048xi32>
    %c0_i32_106 = arith.constant 0 : i32
    %194 = vector.broadcast %c0_i32_106 : i32 to vector<8x2048xi32>
    %195 = arith.cmpi slt, %191, %194 : vector<8x2048xi32>
    %c0_i32_107 = arith.constant 0 : i32
    %196 = arith.cmpi slt, %189, %c0_i32_107 : i32
    %197 = vector.broadcast %196 : i1 to vector<8x2048xi1>
    %198 = vector.broadcast %197 : vector<8x2048xi1> to vector<8x2048xi1>
    %199 = arith.xori %195, %198 : vector<8x2048xi1>
    %200 = arith.andi %199, %193 : vector<8x2048xi1>
    %201 = vector.broadcast %189 : i32 to vector<8x2048xi32>
    %202 = arith.addi %191, %201 : vector<8x2048xi32>
    %203 = arith.select %200, %202, %191 : vector<8x2048xi1>, vector<8x2048xi32>
    %c1024_i32 = arith.constant 1024 : i32
    %c0_i32_108 = arith.constant 0 : i32
    %204 = arith.cmpi eq, %c1024_i32, %c0_i32_108 : i32
    %c1_i32_109 = arith.constant 1 : i32
    %205 = arith.select %204, %c1_i32_109, %c1024_i32 : i32
    %206 = vector.broadcast %205 : i32 to vector<8x2048xi32>
    %207 = arith.remsi %187, %206 : vector<8x2048xi32>
    %c0_i32_110 = arith.constant 0 : i32
    %208 = vector.broadcast %c0_i32_110 : i32 to vector<8x2048xi32>
    %209 = arith.cmpi ne, %207, %208 : vector<8x2048xi32>
    %c0_i32_111 = arith.constant 0 : i32
    %210 = vector.broadcast %c0_i32_111 : i32 to vector<8x2048xi32>
    %211 = arith.cmpi slt, %207, %210 : vector<8x2048xi32>
    %c0_i32_112 = arith.constant 0 : i32
    %212 = arith.cmpi slt, %205, %c0_i32_112 : i32
    %213 = vector.broadcast %212 : i1 to vector<8x2048xi1>
    %214 = vector.broadcast %213 : vector<8x2048xi1> to vector<8x2048xi1>
    %215 = arith.xori %211, %214 : vector<8x2048xi1>
    %216 = arith.andi %215, %209 : vector<8x2048xi1>
    %217 = vector.broadcast %205 : i32 to vector<8x2048xi32>
    %218 = arith.addi %207, %217 : vector<8x2048xi32>
    %219 = arith.select %216, %218, %207 : vector<8x2048xi1>, vector<8x2048xi32>
    %c32_i32_113 = arith.constant 32 : i32
    %220 = vector.broadcast %c32_i32_113 : i32 to vector<8x2048xi32>
    %221 = arith.cmpi sge, %219, %220 : vector<8x2048xi32>
    %c992_i32 = arith.constant 992 : i32
    %222 = vector.broadcast %c992_i32 : i32 to vector<8x2048xi32>
    %223 = arith.cmpi slt, %219, %222 : vector<8x2048xi32>
    %c1_i32_114 = arith.constant 1 : i32
    %224 = vector.broadcast %c1_i32_114 : i32 to vector<8x2048xi32>
    %225 = arith.cmpi sge, %203, %224 : vector<8x2048xi32>
    %c31_i32 = arith.constant 31 : i32
    %226 = vector.broadcast %c31_i32 : i32 to vector<8x2048xi32>
    %227 = arith.cmpi slt, %203, %226 : vector<8x2048xi32>
    %c64_i32_115 = arith.constant 64 : i32
    %228 = vector.broadcast %c64_i32_115 : i32 to vector<8x2048xi32>
    %229 = arith.cmpi sge, %219, %228 : vector<8x2048xi32>
    %c960_i32 = arith.constant 960 : i32
    %230 = vector.broadcast %c960_i32 : i32 to vector<8x2048xi32>
    %231 = arith.cmpi slt, %219, %230 : vector<8x2048xi32>
    %c2_i32 = arith.constant 2 : i32
    %232 = vector.broadcast %c2_i32 : i32 to vector<8x2048xi32>
    %233 = arith.cmpi sge, %203, %232 : vector<8x2048xi32>
    %c30_i32 = arith.constant 30 : i32
    %234 = vector.broadcast %c30_i32 : i32 to vector<8x2048xi32>
    %235 = arith.cmpi slt, %203, %234 : vector<8x2048xi32>
    %c0_116 = arith.constant 0 : index
    %c0_117 = arith.constant 0 : index
    %236 = vector.load %arg12[%c0_116, %c0_117] : memref<8x2180xf32, #tpu.memory_space<vmem>>, vector<8x2048xf32>
    %237 = arith.andi %229, %233 : vector<8x2048xi1>
    %cst_118 = arith.constant 0.000000e+00 : f32
    %238 = vector.broadcast %cst_118 : f32 to vector<8x2048xf32>
    %239 = arith.select %237, %236, %238 : vector<8x2048xi1>, vector<8x2048xf32>
    %c0_119 = arith.constant 0 : index
    %c1_120 = arith.constant 1 : index
    %240 = vector.load %arg12[%c0_119, %c1_120] : memref<8x2180xf32, #tpu.memory_space<vmem>>, vector<8x2048xf32>
    %241 = arith.andi %229, %225 : vector<8x2048xi1>
    %cst_121 = arith.constant 0.000000e+00 : f32
    %242 = vector.broadcast %cst_121 : f32 to vector<8x2048xf32>
    %243 = arith.select %241, %240, %242 : vector<8x2048xi1>, vector<8x2048xf32>
    %c0_122 = arith.constant 0 : index
    %c2_123 = arith.constant 2 : index
    %244 = vector.load %arg12[%c0_122, %c2_123] : memref<8x2180xf32, #tpu.memory_space<vmem>>, vector<8x2048xf32>
    %cst_124 = arith.constant 0.000000e+00 : f32
    %245 = vector.broadcast %cst_124 : f32 to vector<8x2048xf32>
    %246 = arith.select %229, %244, %245 : vector<8x2048xi1>, vector<8x2048xf32>
    %c0_125 = arith.constant 0 : index
    %c3 = arith.constant 3 : index
    %247 = vector.load %arg12[%c0_125, %c3] : memref<8x2180xf32, #tpu.memory_space<vmem>>, vector<8x2048xf32>
    %248 = arith.andi %229, %227 : vector<8x2048xi1>
    %cst_126 = arith.constant 0.000000e+00 : f32
    %249 = vector.broadcast %cst_126 : f32 to vector<8x2048xf32>
    %250 = arith.select %248, %247, %249 : vector<8x2048xi1>, vector<8x2048xf32>
    %c0_127 = arith.constant 0 : index
    %c4 = arith.constant 4 : index
    %251 = vector.load %arg12[%c0_127, %c4] : memref<8x2180xf32, #tpu.memory_space<vmem>>, vector<8x2048xf32>
    %252 = arith.andi %229, %235 : vector<8x2048xi1>
    %cst_128 = arith.constant 0.000000e+00 : f32
    %253 = vector.broadcast %cst_128 : f32 to vector<8x2048xf32>
    %254 = arith.select %252, %251, %253 : vector<8x2048xi1>, vector<8x2048xf32>
    %255 = tpu.concatenate %239, %243, %246, %250, %254 in 0 : vector<8x2048xf32>, vector<8x2048xf32>, vector<8x2048xf32>, vector<8x2048xf32>, vector<8x2048xf32> -> vector<40x2048xf32>
    %c0_129 = arith.constant 0 : index
    %c0_130 = arith.constant 0 : index
    %256 = vector.load %arg8[%c0_129, %c0_130] : memref<3x200xf32, #tpu.memory_space<vmem>>, vector<3x40xf32>
    %cst_131 = arith.constant dense<0.000000e+00> : vector<3x2048xf32>
    %257 = tpu.matmul %256, %255, %cst_131 {dimension_numbers = #tpu.dot_dimension_numbers<[1], [0], [0], [1], [0, 0, 1, 1], [], []>} : vector<3x40xf32>, vector<40x2048xf32>, vector<3x2048xf32> -> vector<3x2048xf32>
    %c0_132 = arith.constant 0 : index
    %c32_133 = arith.constant 32 : index
    %258 = vector.load %arg12[%c0_132, %c32_133] : memref<8x2180xf32, #tpu.memory_space<vmem>>, vector<8x2048xf32>
    %259 = arith.andi %221, %233 : vector<8x2048xi1>
    %cst_134 = arith.constant 0.000000e+00 : f32
    %260 = vector.broadcast %cst_134 : f32 to vector<8x2048xf32>
    %261 = arith.select %259, %258, %260 : vector<8x2048xi1>, vector<8x2048xf32>
    %c0_135 = arith.constant 0 : index
    %c33_136 = arith.constant 33 : index
    %262 = vector.load %arg12[%c0_135, %c33_136] : memref<8x2180xf32, #tpu.memory_space<vmem>>, vector<8x2048xf32>
    %263 = arith.andi %221, %225 : vector<8x2048xi1>
    %cst_137 = arith.constant 0.000000e+00 : f32
    %264 = vector.broadcast %cst_137 : f32 to vector<8x2048xf32>
    %265 = arith.select %263, %262, %264 : vector<8x2048xi1>, vector<8x2048xf32>
    %c0_138 = arith.constant 0 : index
    %c34_139 = arith.constant 34 : index
    %266 = vector.load %arg12[%c0_138, %c34_139] : memref<8x2180xf32, #tpu.memory_space<vmem>>, vector<8x2048xf32>
    %cst_140 = arith.constant 0.000000e+00 : f32
    %267 = vector.broadcast %cst_140 : f32 to vector<8x2048xf32>
    %268 = arith.select %221, %266, %267 : vector<8x2048xi1>, vector<8x2048xf32>
    %c0_141 = arith.constant 0 : index
    %c35 = arith.constant 35 : index
    %269 = vector.load %arg12[%c0_141, %c35] : memref<8x2180xf32, #tpu.memory_space<vmem>>, vector<8x2048xf32>
    %270 = arith.andi %221, %227 : vector<8x2048xi1>
    %cst_142 = arith.constant 0.000000e+00 : f32
    %271 = vector.broadcast %cst_142 : f32 to vector<8x2048xf32>
    %272 = arith.select %270, %269, %271 : vector<8x2048xi1>, vector<8x2048xf32>
    %c0_143 = arith.constant 0 : index
    %c36 = arith.constant 36 : index
    %273 = vector.load %arg12[%c0_143, %c36] : memref<8x2180xf32, #tpu.memory_space<vmem>>, vector<8x2048xf32>
    %274 = arith.andi %221, %235 : vector<8x2048xi1>
    %cst_144 = arith.constant 0.000000e+00 : f32
    %275 = vector.broadcast %cst_144 : f32 to vector<8x2048xf32>
    %276 = arith.select %274, %273, %275 : vector<8x2048xi1>, vector<8x2048xf32>
    %277 = tpu.concatenate %261, %265, %268, %272, %276 in 0 : vector<8x2048xf32>, vector<8x2048xf32>, vector<8x2048xf32>, vector<8x2048xf32>, vector<8x2048xf32> -> vector<40x2048xf32>
    %c0_145 = arith.constant 0 : index
    %c40 = arith.constant 40 : index
    %278 = vector.load %arg8[%c0_145, %c40] : memref<3x200xf32, #tpu.memory_space<vmem>>, vector<3x40xf32>
    %cst_146 = arith.constant dense<0.000000e+00> : vector<3x2048xf32>
    %279 = tpu.matmul %278, %277, %cst_146 {dimension_numbers = #tpu.dot_dimension_numbers<[1], [0], [0], [1], [0, 0, 1, 1], [], []>} : vector<3x40xf32>, vector<40x2048xf32>, vector<3x2048xf32> -> vector<3x2048xf32>
    %280 = arith.addf %257, %279 : vector<3x2048xf32>
    %c0_147 = arith.constant 0 : index
    %c64 = arith.constant 64 : index
    %281 = vector.load %arg12[%c0_147, %c64] : memref<8x2180xf32, #tpu.memory_space<vmem>>, vector<8x2048xf32>
    %cst_148 = arith.constant 0.000000e+00 : f32
    %282 = vector.broadcast %cst_148 : f32 to vector<8x2048xf32>
    %283 = arith.select %233, %281, %282 : vector<8x2048xi1>, vector<8x2048xf32>
    %c0_149 = arith.constant 0 : index
    %c65 = arith.constant 65 : index
    %284 = vector.load %arg12[%c0_149, %c65] : memref<8x2180xf32, #tpu.memory_space<vmem>>, vector<8x2048xf32>
    %cst_150 = arith.constant 0.000000e+00 : f32
    %285 = vector.broadcast %cst_150 : f32 to vector<8x2048xf32>
    %286 = arith.select %225, %284, %285 : vector<8x2048xi1>, vector<8x2048xf32>
    %c0_151 = arith.constant 0 : index
    %c66_152 = arith.constant 66 : index
    %287 = vector.load %arg12[%c0_151, %c66_152] : memref<8x2180xf32, #tpu.memory_space<vmem>>, vector<8x2048xf32>
    %c0_153 = arith.constant 0 : index
    %c67 = arith.constant 67 : index
    %288 = vector.load %arg12[%c0_153, %c67] : memref<8x2180xf32, #tpu.memory_space<vmem>>, vector<8x2048xf32>
    %cst_154 = arith.constant 0.000000e+00 : f32
    %289 = vector.broadcast %cst_154 : f32 to vector<8x2048xf32>
    %290 = arith.select %227, %288, %289 : vector<8x2048xi1>, vector<8x2048xf32>
    %c0_155 = arith.constant 0 : index
    %c68 = arith.constant 68 : index
    %291 = vector.load %arg12[%c0_155, %c68] : memref<8x2180xf32, #tpu.memory_space<vmem>>, vector<8x2048xf32>
    %cst_156 = arith.constant 0.000000e+00 : f32
    %292 = vector.broadcast %cst_156 : f32 to vector<8x2048xf32>
    %293 = arith.select %235, %291, %292 : vector<8x2048xi1>, vector<8x2048xf32>
    %294 = tpu.concatenate %283, %286, %287, %290, %293 in 0 : vector<8x2048xf32>, vector<8x2048xf32>, vector<8x2048xf32>, vector<8x2048xf32>, vector<8x2048xf32> -> vector<40x2048xf32>
    %c0_157 = arith.constant 0 : index
    %c80 = arith.constant 80 : index
    %295 = vector.load %arg8[%c0_157, %c80] : memref<3x200xf32, #tpu.memory_space<vmem>>, vector<3x40xf32>
    %cst_158 = arith.constant dense<0.000000e+00> : vector<3x2048xf32>
    %296 = tpu.matmul %295, %294, %cst_158 {dimension_numbers = #tpu.dot_dimension_numbers<[1], [0], [0], [1], [0, 0, 1, 1], [], []>} : vector<3x40xf32>, vector<40x2048xf32>, vector<3x2048xf32> -> vector<3x2048xf32>
    %297 = arith.addf %280, %296 : vector<3x2048xf32>
    %c0_159 = arith.constant 0 : index
    %c96 = arith.constant 96 : index
    %298 = vector.load %arg12[%c0_159, %c96] : memref<8x2180xf32, #tpu.memory_space<vmem>>, vector<8x2048xf32>
    %299 = arith.andi %223, %233 : vector<8x2048xi1>
    %cst_160 = arith.constant 0.000000e+00 : f32
    %300 = vector.broadcast %cst_160 : f32 to vector<8x2048xf32>
    %301 = arith.select %299, %298, %300 : vector<8x2048xi1>, vector<8x2048xf32>
    %c0_161 = arith.constant 0 : index
    %c97 = arith.constant 97 : index
    %302 = vector.load %arg12[%c0_161, %c97] : memref<8x2180xf32, #tpu.memory_space<vmem>>, vector<8x2048xf32>
    %303 = arith.andi %223, %225 : vector<8x2048xi1>
    %cst_162 = arith.constant 0.000000e+00 : f32
    %304 = vector.broadcast %cst_162 : f32 to vector<8x2048xf32>
    %305 = arith.select %303, %302, %304 : vector<8x2048xi1>, vector<8x2048xf32>
    %c0_163 = arith.constant 0 : index
    %c98 = arith.constant 98 : index
    %306 = vector.load %arg12[%c0_163, %c98] : memref<8x2180xf32, #tpu.memory_space<vmem>>, vector<8x2048xf32>
    %cst_164 = arith.constant 0.000000e+00 : f32
    %307 = vector.broadcast %cst_164 : f32 to vector<8x2048xf32>
    %308 = arith.select %223, %306, %307 : vector<8x2048xi1>, vector<8x2048xf32>
    %c0_165 = arith.constant 0 : index
    %c99 = arith.constant 99 : index
    %309 = vector.load %arg12[%c0_165, %c99] : memref<8x2180xf32, #tpu.memory_space<vmem>>, vector<8x2048xf32>
    %310 = arith.andi %223, %227 : vector<8x2048xi1>
    %cst_166 = arith.constant 0.000000e+00 : f32
    %311 = vector.broadcast %cst_166 : f32 to vector<8x2048xf32>
    %312 = arith.select %310, %309, %311 : vector<8x2048xi1>, vector<8x2048xf32>
    %c0_167 = arith.constant 0 : index
    %c100 = arith.constant 100 : index
    %313 = vector.load %arg12[%c0_167, %c100] : memref<8x2180xf32, #tpu.memory_space<vmem>>, vector<8x2048xf32>
    %314 = arith.andi %223, %235 : vector<8x2048xi1>
    %cst_168 = arith.constant 0.000000e+00 : f32
    %315 = vector.broadcast %cst_168 : f32 to vector<8x2048xf32>
    %316 = arith.select %314, %313, %315 : vector<8x2048xi1>, vector<8x2048xf32>
    %317 = tpu.concatenate %301, %305, %308, %312, %316 in 0 : vector<8x2048xf32>, vector<8x2048xf32>, vector<8x2048xf32>, vector<8x2048xf32>, vector<8x2048xf32> -> vector<40x2048xf32>
    %c0_169 = arith.constant 0 : index
    %c120 = arith.constant 120 : index
    %318 = vector.load %arg8[%c0_169, %c120] : memref<3x200xf32, #tpu.memory_space<vmem>>, vector<3x40xf32>
    %cst_170 = arith.constant dense<0.000000e+00> : vector<3x2048xf32>
    %319 = tpu.matmul %318, %317, %cst_170 {dimension_numbers = #tpu.dot_dimension_numbers<[1], [0], [0], [1], [0, 0, 1, 1], [], []>} : vector<3x40xf32>, vector<40x2048xf32>, vector<3x2048xf32> -> vector<3x2048xf32>
    %320 = arith.addf %297, %319 : vector<3x2048xf32>
    %c0_171 = arith.constant 0 : index
    %c128 = arith.constant 128 : index
    %321 = vector.load %arg12[%c0_171, %c128] : memref<8x2180xf32, #tpu.memory_space<vmem>>, vector<8x2048xf32>
    %322 = arith.andi %231, %233 : vector<8x2048xi1>
    %cst_172 = arith.constant 0.000000e+00 : f32
    %323 = vector.broadcast %cst_172 : f32 to vector<8x2048xf32>
    %324 = arith.select %322, %321, %323 : vector<8x2048xi1>, vector<8x2048xf32>
    %c0_173 = arith.constant 0 : index
    %c129 = arith.constant 129 : index
    %325 = vector.load %arg12[%c0_173, %c129] : memref<8x2180xf32, #tpu.memory_space<vmem>>, vector<8x2048xf32>
    %326 = arith.andi %231, %225 : vector<8x2048xi1>
    %cst_174 = arith.constant 0.000000e+00 : f32
    %327 = vector.broadcast %cst_174 : f32 to vector<8x2048xf32>
    %328 = arith.select %326, %325, %327 : vector<8x2048xi1>, vector<8x2048xf32>
    %c0_175 = arith.constant 0 : index
    %c130 = arith.constant 130 : index
    %329 = vector.load %arg12[%c0_175, %c130] : memref<8x2180xf32, #tpu.memory_space<vmem>>, vector<8x2048xf32>
    %cst_176 = arith.constant 0.000000e+00 : f32
    %330 = vector.broadcast %cst_176 : f32 to vector<8x2048xf32>
    %331 = arith.select %231, %329, %330 : vector<8x2048xi1>, vector<8x2048xf32>
    %c0_177 = arith.constant 0 : index
    %c131 = arith.constant 131 : index
    %332 = vector.load %arg12[%c0_177, %c131] : memref<8x2180xf32, #tpu.memory_space<vmem>>, vector<8x2048xf32>
    %333 = arith.andi %231, %227 : vector<8x2048xi1>
    %cst_178 = arith.constant 0.000000e+00 : f32
    %334 = vector.broadcast %cst_178 : f32 to vector<8x2048xf32>
    %335 = arith.select %333, %332, %334 : vector<8x2048xi1>, vector<8x2048xf32>
    %c0_179 = arith.constant 0 : index
    %c132 = arith.constant 132 : index
    %336 = vector.load %arg12[%c0_179, %c132] : memref<8x2180xf32, #tpu.memory_space<vmem>>, vector<8x2048xf32>
    %337 = arith.andi %231, %235 : vector<8x2048xi1>
    %cst_180 = arith.constant 0.000000e+00 : f32
    %338 = vector.broadcast %cst_180 : f32 to vector<8x2048xf32>
    %339 = arith.select %337, %336, %338 : vector<8x2048xi1>, vector<8x2048xf32>
    %340 = tpu.concatenate %324, %328, %331, %335, %339 in 0 : vector<8x2048xf32>, vector<8x2048xf32>, vector<8x2048xf32>, vector<8x2048xf32>, vector<8x2048xf32> -> vector<40x2048xf32>
    %c0_181 = arith.constant 0 : index
    %c160 = arith.constant 160 : index
    %341 = vector.load %arg8[%c0_181, %c160] : memref<3x200xf32, #tpu.memory_space<vmem>>, vector<3x40xf32>
    %cst_182 = arith.constant dense<0.000000e+00> : vector<3x2048xf32>
    %342 = tpu.matmul %341, %340, %cst_182 {dimension_numbers = #tpu.dot_dimension_numbers<[1], [0], [0], [1], [0, 0, 1, 1], [], []>} : vector<3x40xf32>, vector<40x2048xf32>, vector<3x2048xf32> -> vector<3x2048xf32>
    %343 = arith.addf %320, %342 : vector<3x2048xf32>
    %c0_183 = arith.constant 0 : index
    %c0_184 = arith.constant 0 : index
    %344 = vector.load %arg9[%c0_183, %c0_184] : memref<3x1xf32, #tpu.memory_space<vmem>>, vector<3x1xf32>
    %345 = vector.broadcast %344 : vector<3x1xf32> to vector<3x2048xf32>
    %346 = arith.addf %343, %345 : vector<3x2048xf32>
    %cst_185 = arith.constant 0.000000e+00 : f32
    %347 = vector.broadcast %cst_185 : f32 to vector<3x2048xf32>
    %348 = arith.maximumf %346, %347 : vector<3x2048xf32>
    %c0_186 = arith.constant 0 : index
    %c0_187 = arith.constant 0 : index
    %c0_188 = arith.constant 0 : index
    %349 = vector.load %arg10[%c0_186, %c0_187, %c0_188] : memref<1x3x2048xf32, #tpu.memory_space<vmem>>, vector<1x3x2048xf32>
    %350 = vector.shape_cast %349 : vector<1x3x2048xf32> to vector<3x2048xf32>
    %351 = vector.shape_cast %348 : vector<3x2048xf32> to vector<1x3x2048xf32>
    tpu.vector_store %arg10[%c0_186, %c0_187, %c0_188], %351 {strides = array<i32>} : memref<1x3x2048xf32, #tpu.memory_space<vmem>>, vector<1x3x2048xf32>,
    return
  }
  func.func @transform_0(%arg0: i32) -> (i32, i32, i32) {
    %c0_i32 = arith.constant 0 : i32
    %c0_i32_0 = arith.constant 0 : i32
    %c0_i32_1 = arith.constant 0 : i32
    return %arg0, %c0_i32, %c0_i32_0 : i32, i32, i32
  }
  func.func @transform_1(%arg0: i32) -> (i32, i32) {
    %c0_i32 = arith.constant 0 : i32
    %c0_i32_0 = arith.constant 0 : i32
    %c0_i32_1 = arith.constant 0 : i32
    return %c0_i32, %c0_i32_0 : i32, i32
  }
  func.func @transform_2(%arg0: i32) -> (i32, i32) {
    %c0_i32 = arith.constant 0 : i32
    %c0_i32_0 = arith.constant 0 : i32
    %c0_i32_1 = arith.constant 0 : i32
    return %c0_i32, %c0_i32_0 : i32, i32
  }
  func.func @transform_3(%arg0: i32) -> (i32, i32) {
    %c0_i32 = arith.constant 0 : i32
    %c0_i32_0 = arith.constant 0 : i32
    %c0_i32_1 = arith.constant 0 : i32
    return %c0_i32, %c0_i32_0 : i32, i32
  }
  func.func @transform_4(%arg0: i32) -> (i32, i32) {
    %c0_i32 = arith.constant 0 : i32
    %c0_i32_0 = arith.constant 0 : i32
    %c0_i32_1 = arith.constant 0 : i32
    return %c0_i32, %c0_i32_0 : i32, i32
  }
  func.func @transform_5(%arg0: i32) -> (i32, i32) {
    %c0_i32 = arith.constant 0 : i32
    %c0_i32_0 = arith.constant 0 : i32
    %c0_i32_1 = arith.constant 0 : i32
    return %c0_i32, %c0_i32_0 : i32, i32
  }
  func.func @transform_6(%arg0: i32) -> (i32, i32) {
    %c0_i32 = arith.constant 0 : i32
    %c0_i32_0 = arith.constant 0 : i32
    %c0_i32_1 = arith.constant 0 : i32
    return %c0_i32, %c0_i32_0 : i32, i32
  }
  func.func @transform_7(%arg0: i32) -> (i32, i32) {
    %c0_i32 = arith.constant 0 : i32
    %c0_i32_0 = arith.constant 0 : i32
    %c0_i32_1 = arith.constant 0 : i32
    return %c0_i32, %c0_i32_0 : i32, i32
  }
  func.func @transform_8(%arg0: i32) -> (i32, i32) {
    %c0_i32 = arith.constant 0 : i32
    %c0_i32_0 = arith.constant 0 : i32
    %c0_i32_1 = arith.constant 0 : i32
    return %c0_i32, %c0_i32_0 : i32, i32
  }
  func.func @transform_9(%arg0: i32) -> (i32, i32, i32) {
    %c0_i32 = arith.constant 0 : i32
    %c0_i32_0 = arith.constant 0 : i32
    %c0_i32_1 = arith.constant 0 : i32
    return %arg0, %c0_i32, %c0_i32_0 : i32, i32, i32
  }
}

</mosaic_0001>

<bundles_post_ra>
// kernel: decoder_forward.1
= control target key start
LH: loop header
LB: loop body
LE: loop exit
PB: predicated region body
PF: predicated region fallthrough
CT: control target
= control target key end

     0   :  { %v14771_v1 = vmov 0.0   ;;  %s8297_s11 = smov 111   ;;  %s8298_s12 = smov 110   ;;  %vm8302_vm0 = vmmov 0   ;;  %v8304_v4 = vmov 0   ;;  %v32_v22 = vlaneseq  ;;  %s14760_s0 = inlined_call_operand.vmem [shape: f32[1,8,146], index: 0, kind: input, shape index: {}]   ;;  %s14761_s3 = inlined_call_operand.vmem [shape: bf16[64,256], index: 3, kind: input, shape index: {}]   ;;  %s14762_s2 = inlined_call_operand.vmem [shape: f32[8,1], index: 2, kind: input, shape index: {}]   ;;  %s14763_s1 = inlined_call_operand.vmem [shape: f32[8,72], index: 1, kind: input, shape index: {}]   ;;  %s14764_s5 = inlined_call_operand.vmem [shape: f32[8,1], index: 5, kind: input, shape index: {}]   ;;  %s14765_s7 = inlined_call_operand.vmem [shape: f32[3,200], index: 7, kind: input, shape index: {}]   ;;  %s14766_s4 = inlined_call_operand.vmem [shape: f32[8,72], index: 4, kind: input, shape index: {}]   ;;  %s14767_s6 = inlined_call_operand.vmem [shape: bf16[256,1024], index: 6, kind: input, shape index: {}]   ;;  %s14768_s8 = inlined_call_operand.vmem [shape: f32[3,1], index: 8, kind: input, shape index: {}]   ;;  %s14769_s9 = inlined_call_operand.vmem [shape: f32[1,3,2048], index: 9, kind: output, shape index: {}]  }
   0x1   :  { %v8382_v0 = vld [vmem:[%s14760_s0] sm:$0xff]  ;;  %8205 = vmatprep.subr.mxu0 %v14771_v1  ;;  %312 = vmatprep.mubr.f32.mxu1 %v14771_v1  ;;  %v65_v2 = vld [vmem:[%s14760_s0 + $0x8] sm:$0xff]  ;;  %s8299_s15 = smov 112   ;;  %s8300_s16 = smov 118   ;;  %v8405_v3 = vld [vmem:[%s14761_s3 + $0x38] sm:$0xff]  ;;  %vm123_vm3 = vcmask 900096  }
   0x2   :  { %110 = vrot.lane.b32.xlu1 %v8382_v0, %s8297_s11  ;;  %119 = vrot.lane.b32.xlu0 %v8382_v0, %s8298_s12  ;;  %s8301_s17 = smov 119   ;;  %s8303_s0 = smov 120   ;;  %v243_v5 = vunpack.c.h.bf16 %v8405_v3  ;;  %v242_v6 = vunpack.c.l.bf16 %v8405_v3  ;;  %v8412_v7 = vld [vmem:[%s14761_s3 + $0x30] sm:$0xff]  ;;  %v8418_v9 = vld [vmem:[%s14761_s3 + $0x28] sm:$0xff]  ;;  %v8474_v23 = vand.u32 127, %v32_v22  ;;  %vm114_vm5 = vcmask 908288  }
   0x3   :  { %8223 = vmatprep.mubr.msk.f32.mxu0 %vm8302_vm0, %v14771_v1  ;;  %8259 = vset.pattern.permute.xlu0 %v8304_v4  ;;  %v241_v8 = vunpack.c.h.bf16 %v8412_v7  ;;  %v240_v10 = vunpack.c.l.bf16 %v8412_v7  ;;  %s8305_s24 = smov 126   ;;  %v8429_v11 = vld [vmem:[%s14761_s3 + $0x20] sm:$0xff]  ;;  %v239_v12 = vunpack.c.h.bf16 %v8418_v9  ;;  %v238_v13 = vunpack.c.l.bf16 %v8418_v9  ;;  %v8440_v14 = vld [vmem:[%s14761_s3 + $0x18] sm:$0xff]  ;;  %s8306_s29 = smov 127   ;;  %v8452_v17 = vld [vmem:[%s14761_s3 + $0x10] sm:$0xff] }
   0x4   :  { %8260 = vset.pattern.permute.xlu1 %v8304_v4  ;;  %264 = vmatprep.subr.mxu1 %v243_v5  ;;  %v237_v15 = vunpack.c.h.bf16 %v8429_v11  ;;  %v236_v16 = vunpack.c.l.bf16 %v8429_v11  ;;  %v135_v18 = vld [vmem:[%s14762_s2] sm:$0xff]  ;;  %v235_v19 = vunpack.c.h.bf16 %v8440_v14  ;;  %v234_v20 = vunpack.c.l.bf16 %v8440_v14  ;;  %15307 = vst [vmem:[#allocation4_spill] sm:$0xff] %v8474_v23  ;;  %v221_v56 = vld [vmem:[%s14761_s3 + $0x8] sm:$0xff]  ;;  %s8307_s19 = smov 64   ;;  %s8309_s20 = smov 94  }
   0x5   :  { %265 = vmatpush1.msra.mxu1 %v242_v6  ;;  %v233_v21 = vunpack.c.h.bf16 %v8452_v17  ;;  %v38_v24 = vand.u32 7, %v8474_v23  ;;  %v50_v25 = vand.u32 63, %v8474_v23  ;;  %vm106_vm7 = vcmask 916480   ;;  %v134_v54 = vld [vmem:[%s14763_s1] sm:$0xff]  ;;  %s8310_s21 = smov 95   ;;  %s8311_s22 = smov 96  }
   0x6   :  { %112 = vrot.lane.b32.xlu1 %v65_v2, %s8297_s11  ;;  %121 = vrot.lane.b32.xlu0 %v65_v2, %s8298_s12  ;;  %vm97_vm9 = vcmask 965632   ;;  %vm131_vm10 = vcmask 973824   ;;  %vm89_vm11 = vcmask 982016   ;;  %vm15299_vm13 = vcmask 1031168   ;;  %v220_v59 = vld [vmem:[%s14761_s3] sm:$0xff]  ;;  %s8308_s3 = smov 17  }
   0x7   :  { %266 = vmatprep.subr.mxu1 %v241_v8  ;;  %vm8478_vm1 = vcmp.lt.s32.totalorder %v50_v25, 56  ;;  %vm8482_vm2 = vcmp.lt.s32.totalorder %v38_v24, 7  ;;  %vm8490_vm6 = vcmp.ge.s32.totalorder %v38_v24, 1  ;;  %vm8510_vm12 = vcmp.ge.s32.totalorder %v50_v25, 8  ;;  %s8312_s28 = smov 8   ;;  %s8313_s13 = smov 88  }
   0x8   :  { %267 = vmatpush1.msra.mxu1 %v240_v10  ;;  %vm118_vm4 = vmand %vm8478_vm1, %vm8482_vm2  ;;  %vm15298_vm15 = vcmask 1039360   ;;  %v232_v55 = vunpack.c.l.bf16 %v8452_v17  ;;  %v231_v57 = vunpack.c.h.bf16 %v221_v56  ;;  %v230_v58 = vunpack.c.l.bf16 %v221_v56  ;;  %v742_v17 = vld [vmem:[%s14764_s5] sm:$0xff]  ;;  %s8317_s23 = smov 125   ;;  %s8318_s25 = smov 93  }
   0x9   :  { %268 = vmatprep.subr.mxu1 %v239_v12  ;;  %vm101_vm8 = vmand %vm8478_vm1, %vm8490_vm6  ;;  %v229_v60 = vunpack.c.h.bf16 %v220_v59  ;;  %v228_v61 = vunpack.c.l.bf16 %v220_v59  ;;  %v8652_v32 = vadd.s32 128, %v8474_v23  ;;  %s8319_s26 = smov 63   ;;  %s8320_s27 = smov 92  }
   0xa   :  { %104 = vrot.lane.b32.xlu1 %v65_v2, %s8299_s15  ;;  %102 = vrot.lane.b32.xlu0 %v8382_v0, %s8299_s15  ;;  %vm76_vm14 = vmand %vm8510_vm12, %vm8482_vm2  ;;  %s8322_s30 = smov 29   ;;  %s8323_s10 = smov 61  }
   0xb   :  { %269 = vmatpush1.msra.mxu1 %v238_v13  ;;  %vm63_vm0 = vmand %vm8510_vm12, %vm8490_vm6  ;;  %15316 = vst [vmem:[#allocation5_spill] sm:$0xff] %v8652_v32  ;;  %s8325_s14 = smov 62   ;;  %s8327_s2 = smov 30  }
   0xc   :  { %270 = vmatprep.subr.mxu1 %v237_v15 }
   0xd   :  { %271 = vmatpush1.msra.mxu1 %v236_v16 }
   0xe   :  { %95 = vrot.lane.b32.xlu1 %v65_v2, %s8300_s16  ;;  %93 = vrot.lane.b32.xlu0 %v8382_v0, %s8300_s16  ;;  %s8314_s16 = smov 48  }
   0xf   :  { %272 = vmatprep.subr.mxu1 %v235_v19 }
  0x10   :  { %273 = vmatpush1.msra.mxu1 %v234_v20 }
  0x11   :  { %274 = vmatprep.subr.mxu1 %v233_v21 }
  0x12   :  { %129 = vrot.lane.b32.xlu1 %v65_v2, %s8301_s17  ;;  %127 = vrot.lane.b32.xlu0 %v8382_v0, %s8301_s17 }
  0x13   :  { %275 = vmatpush1.msra.mxu1 %v232_v55 }
  0x14   :  { %276 = vmatprep.subr.mxu1 %v231_v57 }
  0x15   :  { %277 = vmatpush1.msra.mxu1 %v230_v58 }
  0x16   :  { %87 = vrot.lane.b32.xlu1 %v65_v2, %s8303_s0  ;;  %85 = vrot.lane.b32.xlu0 %v8382_v0, %s8303_s0 }
  0x17   :  { %278 = vmatprep.subr.mxu1 %v229_v60 }
  0x18   :  { %279 = vmatpush1.msra.mxu1 %v228_v61 }
  0x19   :  { %353 = vmatprep.subr.mxu1 %v243_v5 }
  0x1a   :  { %79 = vrot.lane.b32.xlu1 %v65_v2, %s8305_s24  ;;  %77 = vrot.lane.b32.xlu0 %v8382_v0, %s8305_s24 }
  0x1e   :  { %70 = vrot.lane.b32.xlu1 %v65_v2, %s8306_s29  ;;  %68 = vrot.lane.b32.xlu0 %v8382_v0, %s8306_s29 }
  0x22   :  { %138 = vperm.xlu0 %8259, %v135_v18   ;;  %v2921_v18 = vld [vmem:[%s14765_s7] sm:$0x7] }
  0x74   :  { %v111_v26 = vpop.permute.xlu1 %110  ;;  %v120_v27 = vpop.permute.xlu0 %119 }
  0x78   :  { %v113_v30 = vpop.permute.xlu1 %112  ;;  %v122_v31 = vpop.permute.xlu0 %121 }
  0x79   :  { %v124_v33 = vsel %vm123_vm3, %v120_v27, %v122_v31  ;;  %v115_v34 = vsel %vm114_vm5, %v111_v26, %v113_v30 }
  0x7a   :  { %8206 = vmatpush3.msk.msra.mxu0 %vm118_vm4, %v124_v33  ;;  %vm216_vm4 = vcmask 138240  }
  0x7b   :  { %8207 = vmatprep.subr.mxu0 %v14771_v1  ;;  %217 = vst.msk [vmem:[#allocation2] sm:$0xff] %vm216_vm4, %v14771_v1 }
  0x7c   :  { %v105_v35 = vpop.permute.xlu1 %104  ;;  %8208 = vmatpush3.msk.msra.mxu0 %vm8478_vm1, %v115_v34  ;;  %v103_v36 = vpop.permute.xlu0 %102  ;;  %vm141_vm1 = vcmask 588800  }
  0x7d   :  { %v107_v37 = vsel %vm106_vm7, %v103_v36, %v105_v35  ;;  %8209 = vmatprep.subr.mxu0 %v14771_v1  ;;  %v435_v35 = vand.u32 15, %v8652_v32  ;;  %v483_v36 = vand.u32 255, %v8652_v32 }
  0x7e   :  { %8210 = vmatpush3.msk.msra.mxu0 %vm101_vm8, %v107_v37  ;;  %vm218_vm8 = vcmask 277640  }
  0x7f   :  { %8211 = vmatprep.subr.mxu0 %v14771_v1  ;;  %219 = vst.msk [vmem:[#allocation2 + $0x20] sm:$0xff] %vm218_vm8, %v14771_v1  ;;  %vm660_vm8 = vcmask 785408  }
  0x80   :  { %v96_v38 = vpop.permute.xlu1 %95  ;;  %v94_v39 = vpop.permute.xlu0 %93 }
  0x81   :  { %v98_v40 = vsel %vm97_vm9, %v94_v39, %v96_v38  ;;  %vm8656_vm9 = vcmp.lt.s32.totalorder %v483_v36, 240 }
  0x82   :  { %8212 = vmatpush3.msk.msra.mxu0 %vm8482_vm2, %v98_v40  ;;  %vm14770_vm2 = vcmask 523264   ;;  %v8883_v40 = vld [vmem:[%s14767_s6 + $0xe0] sm:$0xff] }
  0x83   :  { %8213 = vmatprep.subr.mxu0 %v14771_v1 }
  0x84   :  { %v130_v41 = vpop.permute.xlu1 %129  ;;  %v128_v42 = vpop.permute.xlu0 %127 }
  0x85   :  { %v132_v43 = vsel %vm131_vm10, %v128_v42, %v130_v41  ;;  %vm8660_vm10 = vcmp.lt.s32.totalorder %v435_v35, 15  ;;  %v428_v41 = vand.u32 15, %v8474_v23 }
  0x86   :  { %8214 = vmatpush3.msra.mxu0 %v132_v43 }
  0x87   :  { %8215 = vmatprep.subr.mxu0 %v14771_v1 }
  0x88   :  { %v88_v44 = vpop.permute.xlu1 %87  ;;  %v86_v45 = vpop.permute.xlu0 %85 }
  0x89   :  { %v90_v47 = vsel %vm89_vm11, %v86_v45, %v88_v44  ;;  %vm710_vm11 = vcmask 769024   ;;  %v14805_v44 = vunpack.c.l.bf16 %v8883_v40  ;;  %v8896_v45 = vld [vmem:[%s14767_s6 + $0xc0] sm:$0xff] }
  0x8a   :  { %8216 = vmatpush3.msk.msra.mxu0 %vm8490_vm6, %v90_v47  ;;  %vm329_vm6 = vcmask 1047688  }
  0x8b   :  { %8217 = vmatprep.subr.mxu0 %v14771_v1 }
  0x8c   :  { %v80_v48 = vpop.permute.xlu1 %79  ;;  %v78_v49 = vpop.permute.xlu0 %77 }
  0x8d   :  { %v82_v50 = vsel %vm15299_vm13, %v78_v49, %v80_v48 }
  0x8e   :  { %8218 = vmatpush3.msk.msra.mxu0 %vm76_vm14, %v82_v50  ;;  %vm8673_vm14 = vcmp.lt.s32.totalorder %v428_v41, 15 }
  0x8f   :  { %8219 = vmatprep.subr.mxu0 %v14771_v1 }
  0x90   :  { %v71_v51 = vpop.permute.xlu1 %70  ;;  %v69_v52 = vpop.permute.xlu0 %68 }
  0x91   :  { %v73_v53 = vsel %vm15298_vm15, %v69_v52, %v71_v51 }
  0x92   :  { %8220 = vmatpush3.msk.msra.mxu0 %vm8510_vm12, %v73_v53  ;;  %vm697_vm12 = vmand %vm8656_vm9, %vm8660_vm10 }
  0x93   :  { %8221 = vmatprep.subr.mxu0 %v14771_v1 }
  0x94   :  { %8222 = vmatpush3.msk.msra.mxu0 %vm63_vm0, %v8382_v0  ;;  %vm8677_vm0 = vcmp.ge.s32.totalorder %v435_v35, 1 }
  0x95   :  { %8224 = vmatmul.mubr.msk.f32.vlgmr.msra.gmra.mxu0 %vm141_vm1, %v134_v54  ;;  %v476_v54 = vand.u32 255, %v8474_v23 }
  0x96   :  { %815 = vmatprep.mubr.f32.mxu0 %v14771_v1 }
  0x9d   :  { %v139_v62 = vpop.permute.xlu0 %138 }
 0x155   :  { %v211_v63 = vpop.f32.mrf.mxu0 }
 0x156   :  { %v212_v0 = vadd.f32 %v211_v63, %v139_v62 }
 0x157   :  { %v8225_v2 = vpop.f32.mrf.mxu0 }
 0x158   :  { %v215_v4 = vmax.f32 %v212_v0, 0.0 }
 0x15a   :  { %333 = vrot.lane.b32.xlu1 %v215_v4, %s8307_s19  ;;  %7795 = vmatmul.mubr.msk.f32.vlgmr.msra.gmra.mxu1 %vm14770_vm2, %v215_v4 }
 0x15b   :  { %354 = vmatpush1.msra.mxu1 %v242_v6  ;;  %401 = vmatprep.mubr.f32.mxu1 %v14771_v1 }
 0x15c   :  { %355 = vmatprep.subr.mxu1 %v241_v8 }
 0x15d   :  { %356 = vmatpush1.msra.mxu1 %v240_v10 }
 0x15e   :  { %357 = vmatprep.subr.mxu1 %v239_v12 }
 0x15f   :  { %358 = vmatpush1.msra.mxu1 %v238_v13 }
 0x160   :  { %359 = vmatprep.subr.mxu1 %v237_v15  ;;  %v6077_v15 = vld [vmem:[%s14765_s7] sm:$0x77] }
 0x161   :  { %360 = vmatpush1.msra.mxu1 %v236_v16  ;;  %v6079_v16 = vcombine.high %v6077_v15, %v6077_v15 }
 0x162   :  { %361 = vmatprep.subr.mxu1 %v235_v19  ;;  %v4974_v19 = vld [vmem:[%s14765_s7] sm:$0x7] }
 0x163   :  { %362 = vmatpush1.msra.mxu1 %v234_v20 }
 0x164   :  { %363 = vmatprep.subr.mxu1 %v233_v21 }
 0x165   :  { %364 = vmatpush1.msra.mxu1 %v232_v55 }
 0x166   :  { %365 = vmatprep.subr.mxu1 %v231_v57 }
 0x167   :  { %366 = vmatpush1.msra.mxu1 %v230_v58 }
 0x168   :  { %367 = vmatprep.subr.mxu1 %v229_v60 }
 0x169   :  { %368 = vmatpush1.msra.mxu1 %v228_v61  ;;  %v8946_v61 = vld [vmem:[%s14767_s6 + $0x40] sm:$0xff] }
 0x1cc   :  { %v334_v3 = vpop.permute.xlu1 %333 }
 0x1cd   :  { %7796 = vmatmul.mubr.msk.f32.vlgmr.msra.gmra.mxu1 %vm14770_vm2, %v334_v3  ;;  %vm647_vm2 = vmand %vm8656_vm9, %vm8677_vm0 }
 0x1ce   :  { %886 = vmatprep.mubr.f32.mxu1 %v14771_v1 }
 0x21a   :  { %v314_v5 = vpop.f32.mrf.mxu1 }
 0x21b   :  { %321 = vrot.lane.b32.xlu1 %v314_v5, %s8308_s3 }
 0x21c   :  { %v316_v6 = vpop.f32.mrf.mxu1 }
 0x21d   :  { %323 = vrot.lane.b32.xlu0 %v316_v6, %s8308_s3 }
 0x28d   :  { %v322_v7 = vpop.permute.xlu1 %321  ;;  %v403_v8 = vpop.f32.mrf.mxu1 }
 0x28e   :  { %330 = vst.msk [vmem:[#allocation2] sm:$0xff] %vm329_vm6, %v322_v7  ;;  %410 = vrot.lane.b32.xlu1 %v403_v8, %s8308_s3 }
 0x28f   :  { %v324_v9 = vpop.permute.xlu0 %323  ;;  %v405_v14 = vpop.f32.mrf.mxu1 }
 0x290   :  { %v8578_v10 = vsel %vm216_vm4, %v322_v7, %v324_v9  ;;  %332 = vst.msk [vmem:[#allocation2 + $0x10] sm:$0xff] %vm216_vm4, %v324_v9 }
 0x295   :  { %v8581_v11 = vld [vmem:[#allocation2] sm:$0xff] }
 0x296   :  { %700 = vrot.lane.b32.xlu0 %v8581_v11, %s8309_s20  ;;  %673 = vrot.lane.b32.xlu1 %v8581_v11, %s8310_s21 }
 0x29a   :  { %650 = vrot.lane.b32.xlu0 %v8581_v11, %s8311_s22  ;;  %624 = vrot.lane.b32.xlu1 %v8581_v11, %s8298_s12 }
 0x29e   :  { %723 = vrot.lane.b32.xlu0 %v8581_v11, %s8297_s11  ;;  %602 = vrot.lane.b32.xlu1 %v8581_v11, %s8299_s15 }
 0x2a2   :  { %580 = vrot.lane.b32.xlu0 %v8581_v11, %s8305_s24  ;;  %675 = vrot.lane.b32.xlu1 %v8578_v10, %s8310_s21 }
 0x2a6   :  { %702 = vrot.lane.b32.xlu0 %v8578_v10, %s8309_s20  ;;  %626 = vrot.lane.b32.xlu1 %v8578_v10, %s8298_s12 }
 0x2aa   :  { %652 = vrot.lane.b32.xlu0 %v8578_v10, %s8311_s22  ;;  %604 = vrot.lane.b32.xlu1 %v8578_v10, %s8299_s15 }
 0x2ae   :  { %725 = vrot.lane.b32.xlu0 %v8578_v10, %s8297_s11  ;;  %556 = vrot.lane.b32.xlu1 %v8578_v10, %s8306_s29 }
 0x2b2   :  { %582 = vrot.lane.b32.xlu0 %v8578_v10, %s8305_s24 }
 0x300   :  { %v8613_v12 = vpop.permute.xlu1 %410 }
 0x301   :  { %418 = vst.msk [vmem:[#allocation2 + $0x10] sm:$0xff] %vm329_vm6, %v8613_v12  ;;  %vm683_vm6 = vcmask 777216  }
 0x308   :  { %v8617_v13 = vld [vmem:[#allocation2 + $0x10] sm:$0xff]  ;;  %v701_v20 = vpop.permute.xlu0 %700  ;;  %v674_v21 = vpop.permute.xlu1 %673 }
 0x309   :  { %677 = vrot.lane.b32.xlu0 %v8617_v13, %s8310_s21  ;;  %704 = vrot.lane.b32.xlu1 %v8617_v13, %s8309_s20 }
 0x30c   :  { %v651_v22 = vpop.permute.xlu0 %650  ;;  %v625_v24 = vpop.permute.xlu1 %624 }
 0x30d   :  { %628 = vrot.lane.b32.xlu0 %v8617_v13, %s8298_s12  ;;  %654 = vrot.lane.b32.xlu1 %v8617_v13, %s8311_s22 }
 0x310   :  { %v724_v25 = vpop.permute.xlu0 %723  ;;  %v603_v26 = vpop.permute.xlu1 %602 }
 0x311   :  { %606 = vrot.lane.b32.xlu0 %v8617_v13, %s8299_s15  ;;  %727 = vrot.lane.b32.xlu1 %v8617_v13, %s8297_s11 }
 0x314   :  { %v581_v27 = vpop.permute.xlu0 %580  ;;  %v676_v28 = vpop.permute.xlu1 %675 }
 0x315   :  { %558 = vrot.lane.b32.xlu0 %v8617_v13, %s8306_s29  ;;  %584 = vrot.lane.b32.xlu1 %v8617_v13, %s8305_s24  ;;  %v684_v51 = vsel %vm683_vm6, %v674_v21, %v676_v28 }
 0x318   :  { %v703_v29 = vpop.permute.xlu0 %702  ;;  %v627_v30 = vpop.permute.xlu1 %626 }
 0x319   :  { %554 = vrot.lane.b32.xlu1 %v8581_v11, %s8306_s29  ;;  %412 = vrot.lane.b32.xlu0 %v405_v14, %s8308_s3  ;;  %v711_v47 = vsel %vm710_vm11, %v701_v20, %v703_v29  ;;  %v634_v57 = vsel %vm123_vm3, %v625_v24, %v627_v30  ;;  %v8805_v20 = vld [vmem:[%s14767_s6 + $0x1a0] sm:$0xff]  ;;  %s8316_s3 = smov 124  }
 0x31a   :  { %v14833_v21 = vunpack.c.h.bf16 %v8805_v20  ;;  %v8818_v24 = vld [vmem:[%s14767_s6 + $0x180] sm:$0xff] }
 0x31c   :  { %v653_v31 = vpop.permute.xlu0 %652  ;;  %v605_v33 = vpop.permute.xlu1 %604 }
 0x31d   :  { %745 = vperm.xlu1 %8260, %v742_v17   ;;  %6082 = vrot.lane.b32.xlu0 %v6079_v16, %s8312_s28  ;;  %v661_v55 = vsel %vm660_vm8, %v651_v22, %v653_v31  ;;  %v612_v0 = vsel %vm106_vm7, %v603_v26, %v605_v33  ;;  %v8783_v16 = vld [vmem:[%s14767_s6 + $0x1e0] sm:$0xff]  ;;  %v14832_v22 = vunpack.c.l.bf16 %v8805_v20  ;;  %v14830_v26 = vunpack.c.l.bf16 %v8818_v24 }
 0x31e   :  { %v8792_v17 = vld [vmem:[%s14767_s6 + $0x1c0] sm:$0xff] }
 0x320   :  { %v726_v34 = vpop.permute.xlu0 %725  ;;  %v557_v37 = vpop.permute.xlu1 %556 }
 0x321   :  { %3399 = vrot.lane.b32.xlu1 %v2921_v18, %s8313_s13  ;;  %v733_v62 = vsel %vm114_vm5, %v724_v25, %v726_v34  ;;  %v14835_v18 = vunpack.c.h.bf16 %v8792_v17  ;;  %v14831_v25 = vunpack.c.h.bf16 %v8818_v24  ;;  %s8324_s13 = smov 31  }
 0x324   :  { %v583_v38 = vpop.permute.xlu0 %582 }
 0x325   :  { %4976 = vrot.lane.b32.xlu1 %v4974_v19, %s8314_s16  ;;  %v590_v5 = vsel %vm15299_vm13, %v581_v27, %v583_v38  ;;  %v14834_v19 = vunpack.c.l.bf16 %v8792_v17  ;;  %v8831_v27 = vld [vmem:[%s14767_s6 + $0x160] sm:$0xff]  ;;  %s8328_s16 = smov 32  }
 0x329   :  { %6080 = vrot.lane.b32.xlu1 %v6077_v15, %s8312_s28  ;;  %v8764_v15 = vld [vmem:[%s14766_s4] sm:$0xff]  ;;  %s8321_s28 = smov 60  }
 0x37b   :  { %v8669_v42 = vpop.permute.xlu0 %677  ;;  %v8671_v43 = vpop.permute.xlu1 %704 }
 0x37c   :  { %v712_v46 = vsel %vm710_vm11, %v703_v29, %v8671_v43  ;;  %v685_v48 = vsel %vm683_vm6, %v676_v28, %v8669_v42  ;;  %v14828_v28 = vunpack.c.h.bf16 %v8831_v27  ;;  %v14826_v29 = vunpack.c.l.bf16 %v8831_v27 }
 0x37d   :  { %7797 = vmatprep.subr.msk.mxu0 %vm697_vm12, %v712_v46  ;;  %vm8699_vm12 = vcmp.ge.s32.totalorder %v428_v41, 1  ;;  %v14808_v41 = vunpack.c.h.bf16 %v8883_v40  ;;  %v14802_v46 = vunpack.c.h.bf16 %v8896_v45 }
 0x37e   :  { %7798 = vmatpush1.msk.msra.mxu0 %vm8673_vm14, %v711_v47  ;;  %v14799_v47 = vunpack.c.l.bf16 %v8896_v45 }
 0x37f   :  { %v8692_v49 = vpop.permute.xlu0 %628  ;;  %7799 = vmatprep.subr.msk.mxu0 %vm8656_vm9, %v685_v48  ;;  %v8696_v50 = vpop.permute.xlu1 %654  ;;  %v8909_v48 = vld [vmem:[%s14767_s6 + $0xa0] sm:$0xff] }
 0x380   :  { %768 = vmatpush1.msra.mxu0 %v684_v51  ;;  %v662_v53 = vsel %vm660_vm8, %v653_v31, %v8696_v50  ;;  %v635_v56 = vsel %vm123_vm3, %v627_v30, %v8692_v49  ;;  %v8844_v30 = vld [vmem:[%s14767_s6 + $0x140] sm:$0xff]  ;;  %v14793_v51 = vunpack.c.l.bf16 %v8909_v48  ;;  %v14796_v52 = vunpack.c.h.bf16 %v8909_v48 }
 0x381   :  { %7800 = vmatprep.subr.msk.mxu0 %vm647_vm2, %v662_v53  ;;  %vm8722_vm2 = vcmp.ge.s32.totalorder %v476_v54, 16  ;;  %v14824_v31 = vunpack.c.h.bf16 %v8844_v30  ;;  %v8922_v53 = vld [vmem:[%s14767_s6 + $0x80] sm:$0xff] }
 0x382   :  { %7801 = vmatpush1.msk.msra.mxu0 %vm8699_vm12, %v661_v55  ;;  %vm576_vm9 = vmand %vm8722_vm2, %vm8673_vm14  ;;  %v14787_v54 = vunpack.c.l.bf16 %v8922_v53  ;;  %v14790_v55 = vunpack.c.h.bf16 %v8922_v53 }
 0x383   :  { %v8712_v58 = vpop.permute.xlu0 %606  ;;  %7802 = vmatprep.subr.msk.mxu0 %vm8660_vm10, %v635_v56  ;;  %v8716_v59 = vpop.permute.xlu1 %727  ;;  %v8935_v56 = vld [vmem:[%s14767_s6 + $0x60] sm:$0xff] }
 0x384   :  { %7803 = vmatpush1.msk.msra.mxu0 %vm8673_vm14, %v634_v57  ;;  %v734_v60 = vsel %vm114_vm5, %v726_v34, %v8716_v59  ;;  %v613_v63 = vsel %vm106_vm7, %v605_v33, %v8712_v58  ;;  %v14823_v33 = vunpack.c.l.bf16 %v8844_v30  ;;  %v8857_v34 = vld [vmem:[%s14767_s6 + $0x120] sm:$0xff]  ;;  %v14781_v57 = vunpack.c.l.bf16 %v8935_v56 }
 0x385   :  { %773 = vmatprep.subr.mxu0 %v734_v60  ;;  %v14822_v35 = vunpack.c.h.bf16 %v8857_v34  ;;  %v14819_v36 = vunpack.c.l.bf16 %v8857_v34  ;;  %v14784_v60 = vunpack.c.h.bf16 %v8935_v56 }
 0x386   :  { %774 = vmatpush1.msra.mxu0 %v733_v62  ;;  %v14775_v62 = vunpack.c.l.bf16 %v8946_v61 }
 0x387   :  { %v8730_v2 = vpop.permute.xlu0 %558  ;;  %7804 = vmatprep.subr.msk.mxu0 %vm8677_vm0, %v613_v63  ;;  %v8734_v4 = vpop.permute.xlu1 %584  ;;  %v14778_v63 = vunpack.c.h.bf16 %v8946_v61 }
 0x388   :  { %7805 = vmatpush1.msk.msra.mxu0 %vm8699_vm12, %v612_v0  ;;  %v591_v3 = vsel %vm15299_vm13, %v583_v38, %v8734_v4  ;;  %v565_v6 = vsel %vm15298_vm15, %v557_v37, %v8730_v2  ;;  %v8959_v0 = vld [vmem:[%s14767_s6 + $0x20] sm:$0xff] }
 0x389   :  { %7806 = vmatprep.subr.msk.mxu0 %vm8660_vm10, %v591_v3  ;;  %vm540_vm10 = vmand %vm8722_vm2, %vm8699_vm12  ;;  %v14774_v3 = vunpack.c.l.bf16 %v8959_v0 }
 0x38a   :  { %7807 = vmatpush1.msk.msra.mxu0 %vm576_vm9, %v590_v5  ;;  %v14773_v5 = vunpack.c.h.bf16 %v8959_v0 }
 0x38b   :  { %779 = vmatprep.subr.mxu0 %v565_v6  ;;  %v555_v7 = vpop.permute.xlu1 %554  ;;  %v413_v8 = vpop.permute.xlu0 %412  ;;  %v8970_v6 = vld [vmem:[%s14767_s6] sm:$0xff] }
 0x38c   :  { %v564_v9 = vsel %vm15298_vm15, %v555_v7, %v557_v37  ;;  %v8752_v14 = vsel %vm216_vm4, %v8613_v12, %v413_v8  ;;  %420 = vst.msk [vmem:[#allocation2 + $0x20] sm:$0xff] %vm216_vm4, %v413_v8  ;;  %v8870_v37 = vld [vmem:[%s14767_s6 + $0x100] sm:$0xff]  ;;  %v14777_v7 = vunpack.c.l.bf16 %v8970_v6  ;;  %v14776_v8 = vunpack.c.h.bf16 %v8970_v6 }
 0x38d   :  { %7808 = vmatpush1.msk.msra.mxu0 %vm8722_vm2, %v564_v9  ;;  %706 = vrot.lane.b32.xlu1 %v8752_v14, %s8309_s20  ;;  %v14816_v38 = vunpack.c.h.bf16 %v8870_v37  ;;  %v14812_v39 = vunpack.c.l.bf16 %v8870_v37  ;;  %v8981_v9 = vld [vmem:[%s14767_s6 + $0x3e0] sm:$0xff] }
 0x38e   :  { %7809 = vmatprep.subr.msk.mxu0 %vm8677_vm0, %v8578_v10  ;;  %v14837_v10 = vunpack.c.h.bf16 %v8783_v16  ;;  %v14779_v1 = vunpack.c.h.bf16 %v8981_v9 }
 0x38f   :  { %7810 = vmatpush1.msk.msra.mxu0 %vm540_vm10, %v8581_v11  ;;  %v14836_v11 = vunpack.c.l.bf16 %v8783_v16 }
 0x390   :  { %7811 = vmatmul.mubr.msk.f32.vlgmr.msra.gmra.mxu0 %vm141_vm1, %v8764_v15  ;;  %1287 = vmatprep.subr.mxu0 %v14837_v10 }
 0x391   :  { %679 = vrot.lane.b32.xlu1 %v8752_v14, %s8310_s21  ;;  %1288 = vmatpush1.msra.mxu0 %v14836_v11 }
 0x392   :  { %1289 = vmatprep.subr.mxu0 %v14835_v18 }
 0x393   :  { %v8776_v12 = vld [vmem:[#allocation2 + $0x20] sm:$0xff]  ;;  %1290 = vmatpush1.msra.mxu0 %v14834_v19 }
 0x394   :  { %708 = vrot.lane.b32.xlu0 %v8776_v12, %s8309_s20  ;;  %1291 = vmatprep.subr.mxu0 %v14833_v21 }
 0x395   :  { %656 = vrot.lane.b32.xlu1 %v8752_v14, %s8311_s22  ;;  %1292 = vmatpush1.msra.mxu0 %v14832_v22 }
 0x396   :  { %1293 = vmatprep.subr.mxu0 %v14831_v25 }
 0x397   :  { %1294 = vmatpush1.msra.mxu0 %v14830_v26 }
 0x398   :  { %681 = vrot.lane.b32.xlu0 %v8776_v12, %s8310_s21  ;;  %1295 = vmatprep.subr.mxu0 %v14828_v28 }
 0x399   :  { %630 = vrot.lane.b32.xlu1 %v8752_v14, %s8298_s12  ;;  %1296 = vmatpush1.msra.mxu0 %v14826_v29 }
 0x39a   :  { %1297 = vmatprep.subr.mxu0 %v14824_v31  ;;  %v9175_v31 = vadd.s32 384, %v8474_v23 }
 0x39b   :  { %1298 = vmatpush1.msra.mxu0 %v14823_v33 }
 0x39c   :  { %658 = vrot.lane.b32.xlu0 %v8776_v12, %s8311_s22  ;;  %1299 = vmatprep.subr.mxu0 %v14822_v35  ;;  %15339 = vst [vmem:[#allocation16_spill] sm:$0xff] %v9175_v31  ;;  %v497_v29 = vand.u32 255, %v9175_v31 }
 0x39d   :  { %729 = vrot.lane.b32.xlu1 %v8752_v14, %s8297_s11  ;;  %1300 = vmatpush1.msra.mxu0 %v14819_v36 }
 0x39e   :  { %1301 = vmatprep.subr.mxu0 %v14816_v38  ;;  %vm9184_vm4 = vcmp.lt.s32.totalorder %v497_v29, 240 }
 0x39f   :  { %1302 = vmatpush1.msra.mxu0 %v14812_v39  ;;  %v9135_v39 = vld [vmem:[%s14767_s6 + $0x220] sm:$0xff] }
 0x3a0   :  { %632 = vrot.lane.b32.xlu0 %v8776_v12, %s8298_s12  ;;  %1303 = vmatprep.subr.mxu0 %v14808_v41  ;;  %15332 = vst [vmem:[#allocation9_spill] sm:$0xff] %v9135_v39  ;;  %s8326_s12 = smov 28  }
 0x3a1   :  { %608 = vrot.lane.b32.xlu1 %v8752_v14, %s8299_s15  ;;  %1304 = vmatpush1.msra.mxu0 %v14805_v44 }
 0x3a2   :  { %1305 = vmatprep.subr.mxu0 %v14802_v46 }
 0x3a3   :  { %1306 = vmatpush1.msra.mxu0 %v14799_v47 }
 0x3a4   :  { %731 = vrot.lane.b32.xlu0 %v8776_v12, %s8297_s11  ;;  %1307 = vmatprep.subr.mxu0 %v14796_v52 }
 0x3a5   :  { %586 = vrot.lane.b32.xlu1 %v8752_v14, %s8305_s24  ;;  %1308 = vmatpush1.msra.mxu0 %v14793_v51 }
 0x3a6   :  { %1309 = vmatprep.subr.mxu0 %v14790_v55 }
 0x3a7   :  { %1310 = vmatpush1.msra.mxu0 %v14787_v54 }
 0x3a8   :  { %610 = vrot.lane.b32.xlu0 %v8776_v12, %s8299_s15  ;;  %1311 = vmatprep.subr.mxu0 %v14784_v60 }
 0x3a9   :  { %560 = vrot.lane.b32.xlu1 %v8752_v14, %s8306_s29  ;;  %1312 = vmatpush1.msra.mxu0 %v14781_v57 }
 0x3aa   :  { %1313 = vmatprep.subr.mxu0 %v14778_v63 }
 0x3ab   :  { %1314 = vmatpush1.msra.mxu0 %v14775_v62 }
 0x3ac   :  { %588 = vrot.lane.b32.xlu0 %v8776_v12, %s8305_s24  ;;  %1315 = vmatprep.subr.mxu0 %v14773_v5  ;;  %v8992_v5 = vld [vmem:[%s14767_s6 + $0x3c0] sm:$0xff] }
 0x3ad   :  { %1316 = vmatpush1.msra.mxu0 %v14774_v3  ;;  %v14783_v3 = vunpack.c.l.bf16 %v8992_v5  ;;  %v14782_v62 = vunpack.c.h.bf16 %v8992_v5 }
 0x3ae   :  { %1317 = vmatprep.subr.mxu0 %v14776_v8  ;;  %v9003_v8 = vld [vmem:[%s14767_s6 + $0x3a0] sm:$0xff] }
 0x3af   :  { %1318 = vmatpush1.msra.mxu0 %v14777_v7  ;;  %v14786_v7 = vunpack.c.l.bf16 %v9003_v8  ;;  %v14785_v63 = vunpack.c.h.bf16 %v9003_v8 }
 0x3b0   :  { %562 = vrot.lane.b32.xlu0 %v8776_v12, %s8306_s29  ;;  %v14780_v12 = vunpack.c.l.bf16 %v8981_v9  ;;  %1319 = vmatprep.subr.mxu0 %v14779_v1  ;;  %v9014_v1 = vld [vmem:[%s14767_s6 + $0x380] sm:$0xff] }
 0x3b1   :  { %v14788_v57 = vunpack.c.h.bf16 %v9014_v1 }
 0x3b2   :  { %1320 = vmatpush2.msra.mxu0 %v14780_v12  ;;  %v14789_v12 = vunpack.c.l.bf16 %v9014_v1 }
 0x3b3   :  { %1321 = vmatprep.subr.mxu0 %v14782_v62  ;;  %v9025_v62 = vld [vmem:[%s14767_s6 + $0x360] sm:$0xff] }
 0x3b4   :  { %1322 = vmatpush2.msra.mxu0 %v14783_v3  ;;  %v14792_v3 = vunpack.c.l.bf16 %v9025_v62  ;;  %v14791_v60 = vunpack.c.h.bf16 %v9025_v62 }
 0x3b5   :  { %1323 = vmatprep.subr.mxu0 %v14785_v63  ;;  %v9036_v63 = vld [vmem:[%s14767_s6 + $0x340] sm:$0xff] }
 0x3b6   :  { %1324 = vmatpush2.msra.mxu0 %v14786_v7  ;;  %v14795_v7 = vunpack.c.l.bf16 %v9036_v63  ;;  %v14794_v54 = vunpack.c.h.bf16 %v9036_v63 }
 0x3b7   :  { %1325 = vmatprep.subr.mxu0 %v14788_v57  ;;  %v9047_v57 = vld [vmem:[%s14767_s6 + $0x320] sm:$0xff] }
 0x3b8   :  { %1326 = vmatpush2.msra.mxu0 %v14789_v12  ;;  %v14798_v12 = vunpack.c.l.bf16 %v9047_v57  ;;  %v14797_v55 = vunpack.c.h.bf16 %v9047_v57 }
 0x3b9   :  { %1327 = vmatprep.subr.mxu0 %v14791_v60  ;;  %v9058_v60 = vld [vmem:[%s14767_s6 + $0x300] sm:$0xff] }
 0x3ba   :  { %1328 = vmatpush2.msra.mxu0 %v14792_v3  ;;  %v14801_v3 = vunpack.c.l.bf16 %v9058_v60  ;;  %v14800_v51 = vunpack.c.h.bf16 %v9058_v60 }
 0x3bb   :  { %1329 = vmatprep.subr.mxu0 %v14794_v54  ;;  %v9069_v54 = vld [vmem:[%s14767_s6 + $0x2e0] sm:$0xff] }
 0x3bc   :  { %1330 = vmatpush2.msra.mxu0 %v14795_v7  ;;  %v14804_v7 = vunpack.c.l.bf16 %v9069_v54  ;;  %v14803_v52 = vunpack.c.h.bf16 %v9069_v54 }
 0x3bd   :  { %1331 = vmatprep.subr.mxu0 %v14797_v55  ;;  %v9080_v55 = vld [vmem:[%s14767_s6 + $0x2c0] sm:$0xff] }
 0x3be   :  { %1332 = vmatpush2.msra.mxu0 %v14798_v12  ;;  %v14807_v12 = vunpack.c.l.bf16 %v9080_v55  ;;  %v14806_v47 = vunpack.c.h.bf16 %v9080_v55 }
 0x3bf   :  { %1333 = vmatprep.subr.mxu0 %v14800_v51  ;;  %v9091_v51 = vld [vmem:[%s14767_s6 + $0x2a0] sm:$0xff] }
 0x3c0   :  { %1334 = vmatpush2.msra.mxu0 %v14801_v3  ;;  %v14810_v3 = vunpack.c.l.bf16 %v9091_v51  ;;  %v14809_v46 = vunpack.c.h.bf16 %v9091_v51 }
 0x3c1   :  { %1335 = vmatprep.subr.mxu0 %v14803_v52  ;;  %v9102_v52 = vld [vmem:[%s14767_s6 + $0x280] sm:$0xff] }
 0x3c2   :  { %1336 = vmatpush2.msra.mxu0 %v14804_v7  ;;  %15329 = vst [vmem:[#allocation6_spill] sm:$0xff] %v9102_v52  ;;  %v14813_v7 = vunpack.c.l.bf16 %v9102_v52  ;;  %v14811_v44 = vunpack.c.h.bf16 %v9102_v52 }
 0x3c3   :  { %1337 = vmatprep.subr.mxu0 %v14806_v47  ;;  %v9113_v47 = vld [vmem:[%s14767_s6 + $0x260] sm:$0xff] }
 0x3c4   :  { %1338 = vmatpush2.msra.mxu0 %v14807_v12  ;;  %15330 = vst [vmem:[#allocation7_spill] sm:$0xff] %v9113_v47  ;;  %v14815_v12 = vunpack.c.l.bf16 %v9113_v47  ;;  %v14814_v41 = vunpack.c.h.bf16 %v9113_v47  ;;  %v9531_v47 = vld [vmem:[%s14767_s6 + $0x2e8] sm:$0xff] }
 0x3c5   :  { %1339 = vmatprep.subr.mxu0 %v14809_v46  ;;  %v9124_v46 = vld [vmem:[%s14767_s6 + $0x240] sm:$0xff]  ;;  %15365 = vst [vmem:[#allocation24_spill] sm:$0xff] %v9531_v47  ;;  %v15380_v52 = vunpack.c.l.bf16 %v9531_v47 }
 0x3c6   :  { %1340 = vmatpush2.msra.mxu0 %v14810_v3  ;;  %15331 = vst [vmem:[#allocation8_spill] sm:$0xff] %v9124_v46  ;;  %v14817_v3 = vunpack.c.h.bf16 %v9124_v46 }
 0x3c7   :  { %1341 = vmatprep.subr.mxu0 %v14811_v44  ;;  %v14818_v44 = vunpack.c.l.bf16 %v9124_v46 }
 0x3c8   :  { %1342 = vmatpush2.msra.mxu0 %v14813_v7  ;;  %v14820_v7 = vunpack.c.h.bf16 %v9135_v39 }
 0x3c9   :  { %1343 = vmatprep.subr.mxu0 %v14814_v41  ;;  %v14821_v41 = vunpack.c.l.bf16 %v9135_v39 }
 0x3ca   :  { %1344 = vmatpush2.msra.mxu0 %v14815_v12  ;;  %v9146_v12 = vld [vmem:[%s14767_s6 + $0x200] sm:$0xff] }
 0x3cb   :  { %1345 = vmatprep.subr.mxu0 %v14817_v3  ;;  %15333 = vst [vmem:[#allocation10_spill] sm:$0xff] %v9146_v12  ;;  %v14825_v38 = vunpack.c.h.bf16 %v9146_v12  ;;  %v14827_v3 = vunpack.c.l.bf16 %v9146_v12 }
 0x3cc   :  { %1346 = vmatpush2.msra.mxu0 %v14818_v44  ;;  %v9157_v44 = vld [vmem:[%s14767_s6 + $0x1f0] sm:$0xff] }
 0x3cd   :  { %1347 = vmatprep.subr.mxu0 %v14820_v7  ;;  %15334 = vst [vmem:[#allocation11_spill] sm:$0xff] %v9157_v44  ;;  %v14829_v36 = vunpack.c.h.bf16 %v9157_v44  ;;  %v9166_v7 = vpop.permute.xlu1 %745 }
 0x3ce   :  { %1348 = vmatpush2.msra.mxu0 %v14821_v41  ;;  %15335 = vst [vmem:[#allocation12_spill] sm:$0xff] %v9166_v7 }
 0x3cf   :  { %1349 = vmatprep.subr.mxu0 %v14825_v38  ;;  %v449_v38 = vand.u32 15, %v9175_v31 }
 0x3d0   :  { %1350 = vmatpush2.msra.mxu0 %v14827_v3  ;;  %v9180_v3 = vadd.s32 256, %v8474_v23 }
 0x3d1   :  { %1429 = vmatprep.subr.mxu0 %v14829_v36  ;;  %v9168_v41 = vpop.permute.xlu1 %3399  ;;  %v9182_v36 = vpop.permute.xlu0 %6082  ;;  %vm9188_vm14 = vcmp.lt.s32.totalorder %v449_v38, 15  ;;  %vm9206_vm2 = vcmp.ge.s32.totalorder %v449_v38, 1 }
 0x3d2   :  { %15336 = vst [vmem:[#allocation13_spill] sm:$0xff] %v9168_v41  ;;  %15340 = vst [vmem:[#allocation17_spill] sm:$0xff] %v9180_v3  ;;  %v442_v22 = vand.u32 15, %v9180_v3 }
 0x3d3   :  { %15341 = vst [vmem:[#allocation18_spill] sm:$0xff] %v9182_v36  ;;  %vm699_vm0 = vmand %vm9184_vm4, %vm9188_vm14 }
 0x3d4   :  { %vm9197_vm12 = vcmp.lt.s32.totalorder %v442_v22, 15  ;;  %vm649_vm9 = vmand %vm9184_vm4, %vm9206_vm2  ;;  %vm9219_vm10 = vcmp.ge.s32.totalorder %v442_v22, 1 }
 0x3d5   :  { %v9170_v35 = vpop.permute.xlu1 %4976 }
 0x3d6   :  { %15337 = vst [vmem:[#allocation14_spill] sm:$0xff] %v9170_v35 }
 0x3d9   :  { %v9172_v33 = vpop.permute.xlu1 %6080 }
 0x3da   :  { %15338 = vst [vmem:[#allocation15_spill] sm:$0xff] %v9172_v33 }
 0x3ff   :  { %v707_v28 = vpop.permute.xlu1 %706 }
 0x400   :  { %v713_v10 = vsel %vm710_vm11, %v8671_v43, %v707_v28 }
 0x403   :  { %v680_v21 = vpop.permute.xlu1 %679 }
 0x406   :  { %v709_v19 = vpop.permute.xlu0 %708 }
 0x407   :  { %v714_v29 = vsel %vm710_vm11, %v707_v28, %v709_v19  ;;  %v657_v11 = vpop.permute.xlu1 %656  ;;  %v686_v19 = vsel %vm683_vm6, %v8669_v42, %v680_v21 }
 0x408   :  { %7812 = vmatprep.subr.msk.mxu1 %vm699_vm0, %v714_v29 }
 0x409   :  { %7813 = vmatpush1.msk.msra.mxu1 %vm9197_vm12, %v713_v10 }
 0x40a   :  { %v682_v33 = vpop.permute.xlu0 %681 }
 0x40b   :  { %v687_v35 = vsel %vm683_vm6, %v680_v21, %v682_v33  ;;  %v631_v31 = vpop.permute.xlu1 %630 }
 0x40c   :  { %7814 = vmatprep.subr.msk.mxu1 %vm9184_vm4, %v687_v35  ;;  %v663_v35 = vsel %vm660_vm8, %v8696_v50, %v657_v11  ;;  %v636_v26 = vsel %vm123_vm3, %v8692_v49, %v631_v31  ;;  %vm899_vm4 = vcmask 1048080  }
 0x40d   :  { %839 = vmatpush1.msra.mxu1 %v686_v19 }
 0x40e   :  { %v659_v43 = vpop.permute.xlu0 %658 }
 0x40f   :  { %v664_v28 = vsel %vm660_vm8, %v657_v11, %v659_v43  ;;  %v730_v33 = vpop.permute.xlu1 %729  ;;  %v490_v11 = vand.u32 255, %v9180_v3 }
 0x410   :  { %7815 = vmatprep.subr.msk.mxu1 %vm649_vm9, %v664_v28  ;;  %v735_v29 = vsel %vm114_vm5, %v8716_v59, %v730_v33 }
 0x411   :  { %7816 = vmatpush1.msk.msra.mxu1 %vm9219_vm10, %v663_v35 }
 0x412   :  { %v633_v42 = vpop.permute.xlu0 %632 }
 0x413   :  { %v637_v21 = vsel %vm123_vm3, %v631_v31, %v633_v42  ;;  %v609_v22 = vpop.permute.xlu1 %608  ;;  %vm9240_vm3 = vcmp.ge.s32.totalorder %v490_v11, 16  ;;  %v9262_v42 = vld [vmem:[%s14767_s6 + $0x1e8] sm:$0xff] }
 0x414   :  { %7817 = vmatprep.subr.msk.mxu1 %vm9188_vm14, %v637_v21  ;;  %v614_v28 = vsel %vm106_vm7, %v8712_v58, %v609_v22  ;;  %v14867_v25 = vunpack.c.h.bf16 %v9262_v42 }
 0x415   :  { %7818 = vmatpush1.msk.msra.mxu1 %vm9197_vm12, %v636_v26  ;;  %v9268_v26 = vld [vmem:[%s14767_s6 + $0x1c8] sm:$0xff] }
 0x416   :  { %v732_v38 = vpop.permute.xlu0 %731  ;;  %v14858_v10 = vunpack.c.l.bf16 %v9268_v26 }
 0x417   :  { %v736_v50 = vsel %vm114_vm5, %v730_v33, %v732_v38  ;;  %v587_v31 = vpop.permute.xlu1 %586  ;;  %vm578_vm5 = vmand %vm9240_vm3, %vm9197_vm12  ;;  %v9283_v38 = vld [vmem:[%s14767_s6 + $0x1a8] sm:$0xff]  ;;  %vm3349_vm12 = vcmask 752640  }
 0x418   :  { %844 = vmatprep.subr.mxu1 %v736_v50  ;;  %v592_v33 = vsel %vm15299_vm13, %v8734_v4, %v587_v31  ;;  %v9294_v50 = vld [vmem:[%s14767_s6 + $0x188] sm:$0xff]  ;;  %v14855_v36 = vunpack.c.h.bf16 %v9283_v38 }
 0x419   :  { %845 = vmatpush1.msra.mxu1 %v735_v29  ;;  %v14846_v11 = vunpack.c.l.bf16 %v9294_v50  ;;  %v9318_v29 = vld [vmem:[%s14767_s6 + $0x148] sm:$0xff] }
 0x41a   :  { %v611_v19 = vpop.permute.xlu0 %610  ;;  %v14841_v43 = vunpack.c.h.bf16 %v9318_v29 }
 0x41b   :  { %v615_v49 = vsel %vm106_vm7, %v609_v22, %v611_v19  ;;  %v561_v58 = vpop.permute.xlu1 %560  ;;  %vm542_vm7 = vmand %vm9240_vm3, %vm9219_vm10  ;;  %v14864_v22 = vunpack.c.l.bf16 %v9262_v42 }
 0x41c   :  { %7819 = vmatprep.subr.msk.mxu1 %vm9206_vm2, %v615_v49  ;;  %v566_v4 = vsel %vm15298_vm15, %v8730_v2, %v561_v58  ;;  %v14861_v2 = vunpack.c.h.bf16 %v9268_v26 }
 0x41d   :  { %7820 = vmatpush1.msk.msra.mxu1 %vm9219_vm10, %v614_v28  ;;  %v14842_v28 = vunpack.c.l.bf16 %v9318_v29  ;;  %vm3250_vm10 = vcmask 760832  }
 0x41e   :  { %v589_v35 = vpop.permute.xlu0 %588 }
 0x41f   :  { %v593_v59 = vsel %vm15299_vm13, %v587_v31, %v589_v35  ;;  %v9329_v31 = vld [vmem:[%s14767_s6 + $0x128] sm:$0xff] }
 0x420   :  { %7821 = vmatprep.subr.msk.mxu1 %vm9188_vm14, %v593_v59  ;;  %v9340_v35 = vld [vmem:[%s14767_s6 + $0x108] sm:$0xff]  ;;  %v14844_v59 = vunpack.c.h.bf16 %v9329_v31 }
 0x421   :  { %7822 = vmatpush1.msk.msra.mxu1 %vm578_vm5, %v592_v33  ;;  %v14845_v33 = vunpack.c.l.bf16 %v9329_v31 }
 0x422   :  { %v563_v21 = vpop.permute.xlu0 %562 }
 0x423   :  { %v567_v18 = vsel %vm15298_vm15, %v561_v58, %v563_v21  ;;  %v9351_v58 = vld [vmem:[%s14767_s6 + $0xe8] sm:$0xff]  ;;  %v14847_v21 = vunpack.c.h.bf16 %v9340_v35 }
 0x424   :  { %850 = vmatprep.subr.mxu1 %v567_v18  ;;  %v14848_v18 = vunpack.c.l.bf16 %v9340_v35 }
 0x425   :  { %7823 = vmatpush1.msk.msra.mxu1 %vm9240_vm3, %v566_v4  ;;  %v9362_v4 = vld [vmem:[%s14767_s6 + $0xc8] sm:$0xff] }
 0x426   :  { %7824 = vmatprep.subr.msk.mxu1 %vm9206_vm2, %v8752_v14  ;;  %v9307_v14 = vld [vmem:[%s14767_s6 + $0x168] sm:$0xff] }
 0x427   :  { %7825 = vmatpush1.msk.msra.mxu1 %vm542_vm7, %v8617_v13  ;;  %v14852_v13 = vunpack.c.l.bf16 %v9283_v38  ;;  %v14843_v19 = vunpack.c.h.bf16 %v9307_v14  ;;  %v14840_v49 = vunpack.c.l.bf16 %v9307_v14 }
 0x428   :  { %7826 = vmatmul.mubr.msk.f32.vlgmr.msra.gmra.mxu1 %vm141_vm1, %v8764_v15  ;;  %1358 = vmatprep.subr.mxu1 %v14867_v25  ;;  %v14849_v15 = vunpack.c.h.bf16 %v9294_v50  ;;  %vm897_vm1 = vcmask 539648  }
 0x429   :  { %1359 = vmatpush1.msra.mxu1 %v14864_v22 }
 0x42a   :  { %1360 = vmatprep.subr.mxu1 %v14861_v2 }
 0x42b   :  { %1361 = vmatpush1.msra.mxu1 %v14858_v10 }
 0x42c   :  { %1362 = vmatprep.subr.mxu1 %v14855_v36 }
 0x42d   :  { %1363 = vmatpush1.msra.mxu1 %v14852_v13 }
 0x42e   :  { %1364 = vmatprep.subr.mxu1 %v14849_v15 }
 0x42f   :  { %1365 = vmatpush1.msra.mxu1 %v14846_v11 }
 0x430   :  { %1366 = vmatprep.subr.mxu1 %v14843_v19  ;;  %v14853_v19 = vunpack.c.h.bf16 %v9362_v4 }
 0x431   :  { %1367 = vmatpush1.msra.mxu1 %v14840_v49  ;;  %v14850_v49 = vunpack.c.h.bf16 %v9351_v58 }
 0x432   :  { %1368 = vmatprep.subr.mxu1 %v14841_v43  ;;  %v14851_v43 = vunpack.c.l.bf16 %v9351_v58 }
 0x433   :  { %1369 = vmatpush1.msra.mxu1 %v14842_v28  ;;  %v9373_v28 = vld [vmem:[%s14767_s6 + $0xa8] sm:$0xff] }
 0x434   :  { %1370 = vmatprep.subr.mxu1 %v14844_v59  ;;  %v14854_v59 = vunpack.c.l.bf16 %v9362_v4  ;;  %v14856_v11 = vunpack.c.h.bf16 %v9373_v28 }
 0x435   :  { %1371 = vmatpush1.msra.mxu1 %v14845_v33  ;;  %v9384_v33 = vld [vmem:[%s14767_s6 + $0x88] sm:$0xff] }
 0x436   :  { %1372 = vmatprep.subr.mxu1 %v14847_v21  ;;  %v14857_v21 = vunpack.c.l.bf16 %v9373_v28  ;;  %v14859_v15 = vunpack.c.h.bf16 %v9384_v33 }
 0x437   :  { %1373 = vmatpush1.msra.mxu1 %v14848_v18  ;;  %v9395_v18 = vld [vmem:[%s14767_s6 + $0x68] sm:$0xff] }
 0x438   :  { %1374 = vmatprep.subr.mxu1 %v14850_v49  ;;  %v14860_v49 = vunpack.c.l.bf16 %v9384_v33  ;;  %v14862_v13 = vunpack.c.h.bf16 %v9395_v18 }
 0x439   :  { %1375 = vmatpush1.msra.mxu1 %v14851_v43  ;;  %v9406_v43 = vld [vmem:[%s14767_s6 + $0x48] sm:$0xff] }
 0x43a   :  { %1376 = vmatprep.subr.mxu1 %v14853_v19  ;;  %v14863_v19 = vunpack.c.l.bf16 %v9395_v18  ;;  %v14865_v36 = vunpack.c.h.bf16 %v9406_v43 }
 0x43b   :  { %1377 = vmatpush1.msra.mxu1 %v14854_v59  ;;  %v9417_v59 = vld [vmem:[%s14767_s6 + $0x28] sm:$0xff] }
 0x43c   :  { %1378 = vmatprep.subr.mxu1 %v14856_v11  ;;  %v14866_v11 = vunpack.c.l.bf16 %v9406_v43  ;;  %v14868_v10 = vunpack.c.h.bf16 %v9417_v59 }
 0x43d   :  { %1379 = vmatpush1.msra.mxu1 %v14857_v21  ;;  %v9428_v21 = vld [vmem:[%s14767_s6 + $0x8] sm:$0xff] }
 0x43e   :  { %1380 = vmatprep.subr.mxu1 %v14859_v15  ;;  %v14869_v15 = vunpack.c.l.bf16 %v9417_v59  ;;  %v14871_v2 = vunpack.c.h.bf16 %v9428_v21 }
 0x43f   :  { %1381 = vmatpush1.msra.mxu1 %v14860_v49  ;;  %v9439_v49 = vld [vmem:[%s14767_s6 + $0x3e8] sm:$0xff] }
 0x440   :  { %1382 = vmatprep.subr.mxu1 %v14862_v13  ;;  %v14872_v13 = vunpack.c.l.bf16 %v9428_v21  ;;  %v14874_v22 = vunpack.c.h.bf16 %v9439_v49  ;;  %v15355_v3 = vunpack.c.l.bf16 %v9439_v49 }
 0x441   :  { %1383 = vmatpush1.msra.mxu1 %v14863_v19  ;;  %v9450_v19 = vld [vmem:[%s14767_s6 + $0x3c8] sm:$0xff] }
 0x442   :  { %1384 = vmatprep.subr.mxu1 %v14865_v36  ;;  %v14876_v25 = vunpack.c.h.bf16 %v9450_v19  ;;  %v15357_v41 = vunpack.c.l.bf16 %v9450_v19 }
 0x443   :  { %1385 = vmatpush1.msra.mxu1 %v14866_v11  ;;  %v9461_v11 = vld [vmem:[%s14767_s6 + $0x3a8] sm:$0xff] }
 0x444   :  { %1386 = vmatprep.subr.mxu1 %v14868_v10  ;;  %v14879_v36 = vunpack.c.h.bf16 %v9461_v11  ;;  %v15359_v32 = vunpack.c.l.bf16 %v9461_v11 }
 0x445   :  { %1387 = vmatpush1.msra.mxu1 %v14869_v15  ;;  %v9472_v15 = vld [vmem:[%s14767_s6 + $0x388] sm:$0xff] }
 0x446   :  { %1388 = vmatprep.subr.mxu1 %v14871_v2  ;;  %15354 = vst [vmem:[#allocation19_spill] sm:$0xff] %v9472_v15  ;;  %v14882_v10 = vunpack.c.h.bf16 %v9472_v15  ;;  %v15361_v23 = vunpack.c.l.bf16 %v9472_v15  ;;  %v9593_v15 = vld [vmem:[%s14767_s6 + $0x288] sm:$0xff] }
 0x447   :  { %1389 = vmatpush1.msra.mxu1 %v14872_v13  ;;  %v9483_v13 = vld [vmem:[%s14767_s6 + $0x368] sm:$0xff]  ;;  %15377 = vst [vmem:[#allocation30_spill] sm:$0xff] %v9593_v15 }
 0x448   :  { %1390 = vmatprep.subr.mxu1 %v14874_v22  ;;  %15356 = vst [vmem:[#allocation20_spill] sm:$0xff] %v9483_v13  ;;  %v14889_v2 = vunpack.c.h.bf16 %v9483_v13 }
 0x449   :  { %1391 = vmatpush2.msra.mxu1 %v15355_v3  ;;  %v9494_v3 = vld [vmem:[%s14767_s6 + $0x348] sm:$0xff] }
 0x44a   :  { %1392 = vmatprep.subr.mxu1 %v14876_v25  ;;  %15358 = vst [vmem:[#allocation21_spill] sm:$0xff] %v9494_v3  ;;  %v15366_v12 = vunpack.c.l.bf16 %v9494_v3 }
 0x44b   :  { %1393 = vmatpush2.msra.mxu1 %v15357_v41  ;;  %v9505_v41 = vld [vmem:[%s14767_s6 + $0x328] sm:$0xff] }
 0x44c   :  { %1394 = vmatprep.subr.mxu1 %v14879_v36  ;;  %15360 = vst [vmem:[#allocation22_spill] sm:$0xff] %v9505_v41  ;;  %v14892_v22 = vunpack.c.l.bf16 %v9505_v41  ;;  %v15364_v36 = vunpack.c.h.bf16 %v9494_v3  ;;  %v15376_v3 = vunpack.c.h.bf16 %v9531_v47 }
 0x44d   :  { %1395 = vmatpush2.msra.mxu1 %v15359_v32  ;;  %v9516_v32 = vld [vmem:[%s14767_s6 + $0x308] sm:$0xff] }
 0x44e   :  { %1396 = vmatprep.subr.mxu1 %v14882_v10  ;;  %15362 = vst [vmem:[#allocation23_spill] sm:$0xff] %v9516_v32  ;;  %v15363_v10 = vunpack.c.l.bf16 %v9483_v13 }
 0x44f   :  { %1397 = vmatpush2.msra.mxu1 %v15361_v23 }
 0x450   :  { %v817_v25 = vpop.f32.mrf.mxu0  ;;  %1398 = vmatprep.subr.mxu1 %v14889_v2 }
 0x451   :  { %1399 = vmatpush2.msra.mxu1 %v15363_v10  ;;  %v818_v23 = vadd.f32 %v817_v25, %v9166_v7  ;;  %v9539_v25 = vld [vmem:[%s14767_s6 + $0x1d0] sm:$0xff]  ;;  %v15368_v10 = vunpack.c.h.bf16 %v9505_v41  ;;  %v9572_v41 = vld [vmem:[%s14767_s6 + $0x2a8] sm:$0xff] }
 0x452   :  { %v819_v39 = vpop.f32.mrf.mxu0  ;;  %1400 = vmatprep.subr.mxu1 %v15364_v36  ;;  %15367 = vst [vmem:[#allocation25_spill] sm:$0xff] %v9539_v25  ;;  %15372 = vst [vmem:[#allocation28_spill] sm:$0xff] %v9572_v41  ;;  %v15381_v13 = vunpack.c.l.bf16 %v9539_v25  ;;  %v15391_v47 = vunpack.c.l.bf16 %v9572_v41 }
 0x453   :  { %v820_v2 = vadd.f32 %v819_v39, %v9166_v7  ;;  %1401 = vmatpush2.msra.mxu1 %v15366_v12  ;;  %v9553_v12 = vld [vmem:[%s14767_s6 + $0x2c8] sm:$0xff]  ;;  %v9560_v36 = vmax.f32 %v818_v23, 0.0  ;;  %v9577_v23 = vld [vmem:[%s14767_s6 + $0x190] sm:$0xff]  ;;  %v15375_v39 = vunpack.c.l.bf16 %v9157_v44  ;;  %v15379_v7 = vunpack.c.h.bf16 %v9539_v25 }
 0x454   :  { %1402 = vmatprep.subr.mxu1 %v15368_v10  ;;  %15369 = vst [vmem:[#allocation26_spill] sm:$0xff] %v9553_v12  ;;  %v9558_v10 = vld [vmem:[%s14767_s6 + $0x1b0] sm:$0xff]  ;;  %15373 = vst [vmem:[#allocation29_spill] sm:$0xff] %v9577_v23  ;;  %v15389_v44 = vunpack.c.h.bf16 %v9572_v41 }
 0x455   :  { %v9544_v46 = vmax.f32 %v820_v2, 0.0  ;;  %1403 = vmatpush2.msra.mxu1 %v14892_v22  ;;  %15370 = vst [vmem:[#allocation27_spill] sm:$0xff] %v9558_v10  ;;  %v15371_v2 = vunpack.c.h.bf16 %v9516_v32  ;;  %v15385_v22 = vunpack.c.l.bf16 %v9553_v12  ;;  %v15386_v25 = vunpack.c.l.bf16 %v9558_v10 }
 0x457   :  { %1404 = vmatprep.subr.mxu1 %v15371_v2  ;;  %1351 = vmatprep.mubr.f32.mxu0 %v9544_v46  ;;  %v15374_v2 = vunpack.c.l.bf16 %v9516_v32  ;;  %v15395_v32 = vunpack.c.h.bf16 %v9593_v15 }
 0x458   :  { %1422 = vmatprep.mubr.f32.mxu1 %v9544_v46  ;;  %1352 = vmatmul.mubr.f32.vlgmr.msra.gmra.mxu0 %v9560_v36 }
 0x459   :  { %1405 = vmatpush2.msra.mxu1 %v15374_v2  ;;  %1430 = vmatpush1.msra.mxu0 %v15375_v39  ;;  %v9598_v2 = vld [vmem:[%s14767_s6 + $0x170] sm:$0xff]  ;;  %v15383_v39 = vunpack.c.h.bf16 %v9553_v12 }
 0x45a   :  { %1406 = vmatprep.subr.mxu1 %v15376_v3  ;;  %15378 = vst [vmem:[#allocation31_spill] sm:$0xff] %v9598_v2  ;;  %1431 = vmatprep.subr.mxu0 %v15379_v7  ;;  %v9614_v7 = vld [vmem:[%s14767_s6 + $0x268] sm:$0xff]  ;;  %v9619_v3 = vld [vmem:[%s14767_s6 + $0x150] sm:$0xff] }
 0x45b   :  { %1493 = vmatprep.mubr.f32.mxu0 %v9544_v46  ;;  %1407 = vmatpush2.msra.mxu1 %v15380_v52  ;;  %15382 = vst [vmem:[#allocation32_spill] sm:$0xff] %v9619_v3  ;;  %v15384_v52 = vunpack.c.h.bf16 %v9558_v10  ;;  %v15397_v10 = vunpack.c.l.bf16 %v9593_v15  ;;  %v15401_v12 = vunpack.c.h.bf16 %v9614_v7 }
 0x45c   :  { %1432 = vmatpush1.msra.mxu0 %v15381_v13  ;;  %1408 = vmatprep.subr.mxu1 %v15383_v39  ;;  %v9636_v39 = vld [vmem:[%s14767_s6 + $0x248] sm:$0xff]  ;;  %v15392_v13 = vunpack.c.l.bf16 %v9577_v23 }
 0x45d   :  { %1433 = vmatprep.subr.mxu0 %v15384_v52  ;;  %1409 = vmatpush2.msra.mxu1 %v15385_v22  ;;  %15387 = vst [vmem:[#allocation33_spill] sm:$0xff] %v9636_v39  ;;  %v9641_v52 = vld [vmem:[%s14767_s6 + $0x130] sm:$0xff]  ;;  %v15390_v22 = vunpack.c.h.bf16 %v9577_v23  ;;  %v15403_v23 = vunpack.c.l.bf16 %v9614_v7  ;;  %v15409_v15 = vunpack.c.l.bf16 %v9636_v39 }
 0x45e   :  { %1434 = vmatpush1.msra.mxu0 %v15386_v25  ;;  %15388 = vst [vmem:[#allocation34_spill] sm:$0xff] %v9641_v52  ;;  %1410 = vmatprep.subr.mxu1 %v15389_v44  ;;  %v9658_v44 = vld [vmem:[%s14767_s6 + $0x228] sm:$0xff]  ;;  %v15398_v25 = vunpack.c.l.bf16 %v9598_v2  ;;  %v15407_v41 = vunpack.c.h.bf16 %v9641_v52 }
 0x45f   :  { %1435 = vmatprep.subr.mxu0 %v15390_v22  ;;  %1411 = vmatpush2.msra.mxu1 %v15391_v47  ;;  %15393 = vst [vmem:[#allocation35_spill] sm:$0xff] %v9658_v44  ;;  %v9663_v22 = vld [vmem:[%s14767_s6 + $0x110] sm:$0xff]  ;;  %v15396_v47 = vunpack.c.h.bf16 %v9598_v2  ;;  %v15410_v2 = vunpack.c.l.bf16 %v9641_v52 }
 0x460   :  { %1436 = vmatpush1.msra.mxu0 %v15392_v13  ;;  %15394 = vst [vmem:[#allocation36_spill] sm:$0xff] %v9663_v22  ;;  %1412 = vmatprep.subr.mxu1 %v15395_v32  ;;  %v9680_v32 = vld [vmem:[%s14767_s6 + $0x208] sm:$0xff]  ;;  %v15404_v13 = vunpack.c.l.bf16 %v9619_v3 }
 0x461   :  { %1437 = vmatprep.subr.mxu0 %v15396_v47  ;;  %1413 = vmatpush2.msra.mxu1 %v15397_v10  ;;  %15399 = vst [vmem:[#allocation37_spill] sm:$0xff] %v9680_v32  ;;  %v9685_v47 = vld [vmem:[%s14767_s6 + $0xf0] sm:$0xff]  ;;  %v15402_v10 = vunpack.c.h.bf16 %v9619_v3  ;;  %v15417_v3 = vunpack.c.h.bf16 %v9680_v32 }
 0x462   :  { %1438 = vmatpush1.msra.mxu0 %v15398_v25  ;;  %15400 = vst [vmem:[#allocation38_spill] sm:$0xff] %v9685_v47  ;;  %1414 = vmatprep.subr.mxu1 %v15401_v12  ;;  %v9702_v12 = vld [vmem:[%s14767_s6 + $0xd0] sm:$0xff]  ;;  %v15412_v25 = vunpack.c.h.bf16 %v9663_v22 }
 0x463   :  { %1439 = vmatprep.subr.mxu0 %v15402_v10  ;;  %1415 = vmatpush2.msra.mxu1 %v15403_v23  ;;  %15405 = vst [vmem:[#allocation39_spill] sm:$0xff] %v9702_v12  ;;  %v15406_v10 = vunpack.c.h.bf16 %v9636_v39  ;;  %v9729_v39 = vld [vmem:[%s14767_s6 + $0xb0] sm:$0xff] }
 0x464   :  { %1440 = vmatpush1.msra.mxu0 %v15404_v13  ;;  %v9713_v13 = vld [vmem:[%s14767_s6 + $0x1f8] sm:$0xff]  ;;  %15413 = vst [vmem:[#allocation41_spill] sm:$0xff] %v9729_v39 }
 0x465   :  { %1416 = vmatprep.subr.mxu1 %v15406_v10  ;;  %1441 = vmatprep.subr.mxu0 %v15407_v41  ;;  %15408 = vst [vmem:[#allocation40_spill] sm:$0xff] %v9713_v13  ;;  %v15411_v41 = vunpack.c.h.bf16 %v9658_v44  ;;  %v15418_v10 = vunpack.c.h.bf16 %v9685_v47  ;;  %v15426_v52 = vunpack.c.h.bf16 %v9713_v13  ;;  %v15428_v23 = vunpack.c.l.bf16 %v9713_v13 }
 0x466   :  { %1417 = vmatpush2.msra.mxu1 %v15409_v15  ;;  %1442 = vmatpush1.msra.mxu0 %v15410_v2  ;;  %v9734_v15 = vld [vmem:[%s14767_s6 + $0x1d8] sm:$0xff]  ;;  %v15415_v2 = vunpack.c.l.bf16 %v9658_v44  ;;  %v9750_v44 = vld [vmem:[%s14767_s6 + $0x90] sm:$0xff] }
 0x467   :  { %1418 = vmatprep.subr.mxu1 %v15411_v41  ;;  %1443 = vmatprep.subr.mxu0 %v15412_v25  ;;  %15414 = vst [vmem:[#allocation42_spill] sm:$0xff] %v9734_v15  ;;  %v15416_v41 = vunpack.c.l.bf16 %v9663_v22  ;;  %15419 = vst [vmem:[#allocation43_spill] sm:$0xff] %v9750_v44  ;;  %v15423_v25 = vunpack.c.h.bf16 %v9702_v12  ;;  %v15431_v22 = vunpack.c.h.bf16 %v9729_v39 }
 0x468   :  { %1419 = vmatpush2.msra.mxu1 %v15415_v2  ;;  %v9755_v2 = vld [vmem:[%s14767_s6 + $0x1b8] sm:$0xff] }
 0x469   :  { %1444 = vmatpush1.msra.mxu0 %v15416_v41  ;;  %1420 = vmatprep.subr.mxu1 %v15417_v3  ;;  %15420 = vst [vmem:[#allocation44_spill] sm:$0xff] %v9755_v2  ;;  %v15421_v41 = vunpack.c.l.bf16 %v9680_v32  ;;  %v15422_v3 = vunpack.c.l.bf16 %v9685_v47  ;;  %v15433_v47 = vunpack.c.l.bf16 %v9729_v39  ;;  %v15437_v32 = vunpack.c.h.bf16 %v9750_v44 }
 0x46a   :  { %1445 = vmatprep.subr.mxu0 %v15418_v10  ;;  %v15427_v10 = vunpack.c.l.bf16 %v9702_v12  ;;  %v15439_v12 = vunpack.c.l.bf16 %v9750_v44 }
 0x46b   :  { %1421 = vmatpush2.msra.mxu1 %v15421_v41  ;;  %1446 = vmatpush1.msra.mxu0 %v15422_v3  ;;  %v9771_v41 = vld [vmem:[%s14767_s6 + $0x70] sm:$0xff]  ;;  %v9776_v3 = vld [vmem:[%s14767_s6 + $0x198] sm:$0xff] }
 0x46c   :  { %1423 = vmatmul.mubr.f32.vlgmr.msra.gmra.mxu1 %v9560_v36  ;;  %1447 = vmatprep.subr.mxu0 %v15423_v25  ;;  %15424 = vst [vmem:[#allocation45_spill] sm:$0xff] %v9771_v41  ;;  %15425 = vst [vmem:[#allocation46_spill] sm:$0xff] %v9776_v3  ;;  %v15434_v25 = vunpack.c.l.bf16 %v9734_v15  ;;  %v15443_v13 = vunpack.c.h.bf16 %v9771_v41  ;;  %v15445_v39 = vunpack.c.l.bf16 %v9771_v41 }
 0x46d   :  { %1500 = vmatprep.subr.mxu1 %v15426_v52  ;;  %1448 = vmatpush1.msra.mxu0 %v15427_v10  ;;  %v9792_v52 = vld [vmem:[%s14767_s6 + $0x50] sm:$0xff]  ;;  %v9797_v10 = vld [vmem:[%s14767_s6 + $0x178] sm:$0xff] }
 0x46e   :  { %1501 = vmatpush1.msra.mxu1 %v15428_v23  ;;  %1564 = vmatprep.mubr.f32.mxu1 %v9544_v46  ;;  %15429 = vst [vmem:[#allocation47_spill] sm:$0xff] %v9792_v52  ;;  %15430 = vst [vmem:[#allocation48_spill] sm:$0xff] %v9797_v10  ;;  %v15432_v23 = vunpack.c.h.bf16 %v9734_v15  ;;  %v15440_v46 = vunpack.c.l.bf16 %v9755_v2  ;;  %v15449_v15 = vunpack.c.h.bf16 %v9792_v52  ;;  %v15451_v44 = vunpack.c.l.bf16 %v9792_v52 }
 0x46f   :  { %1449 = vmatprep.subr.mxu0 %v15431_v22  ;;  %v9814_v22 = vld [vmem:[%s14767_s6 + $0x30] sm:$0xff] }
 0x470   :  { %1502 = vmatprep.subr.mxu1 %v15432_v23  ;;  %1450 = vmatpush1.msra.mxu0 %v15433_v47  ;;  %15435 = vst [vmem:[#allocation49_spill] sm:$0xff] %v9814_v22  ;;  %v9819_v23 = vld [vmem:[%s14767_s6 + $0x158] sm:$0xff]  ;;  %v15438_v47 = vunpack.c.h.bf16 %v9755_v2  ;;  %v15455_v2 = vunpack.c.h.bf16 %v9814_v22  ;;  %v15457_v41 = vunpack.c.l.bf16 %v9814_v22 }
 0x471   :  { %1503 = vmatpush1.msra.mxu1 %v15434_v25  ;;  %15436 = vst [vmem:[#allocation50_spill] sm:$0xff] %v9819_v23  ;;  %1451 = vmatprep.subr.mxu0 %v15437_v32  ;;  %v9836_v32 = vld [vmem:[%s14767_s6 + $0x10] sm:$0xff]  ;;  %v15446_v25 = vunpack.c.l.bf16 %v9776_v3 }
 0x472   :  { %1504 = vmatprep.subr.mxu1 %v15438_v47  ;;  %1452 = vmatpush1.msra.mxu0 %v15439_v12  ;;  %15441 = vst [vmem:[#allocation51_spill] sm:$0xff] %v9836_v32  ;;  %v9841_v47 = vld [vmem:[%s14767_s6 + $0x138] sm:$0xff]  ;;  %v15444_v12 = vunpack.c.h.bf16 %v9776_v3  ;;  %v15461_v3 = vunpack.c.h.bf16 %v9836_v32  ;;  %v15463_v52 = vunpack.c.l.bf16 %v9836_v32 }
 0x473   :  { %1505 = vmatpush1.msra.mxu1 %v15440_v46  ;;  %15442 = vst [vmem:[#allocation52_spill] sm:$0xff] %v9841_v47  ;;  %1453 = vmatprep.subr.mxu0 %v15443_v13  ;;  %v9858_v13 = vld [vmem:[%s14767_s6 + $0x3f0] sm:$0xff]  ;;  %v15452_v46 = vunpack.c.l.bf16 %v9797_v10 }
 0x474   :  { %1506 = vmatprep.subr.mxu1 %v15444_v12  ;;  %1454 = vmatpush1.msra.mxu0 %v15445_v39  ;;  %15447 = vst [vmem:[#allocation53_spill] sm:$0xff] %v9858_v13  ;;  %v9863_v12 = vld [vmem:[%s14767_s6 + $0x118] sm:$0xff]  ;;  %v15450_v39 = vunpack.c.h.bf16 %v9797_v10  ;;  %v15467_v10 = vunpack.c.h.bf16 %v9858_v13  ;;  %v15469_v22 = vunpack.c.l.bf16 %v9858_v13 }
 0x475   :  { %1507 = vmatpush1.msra.mxu1 %v15446_v25  ;;  %15448 = vst [vmem:[#allocation54_spill] sm:$0xff] %v9863_v12  ;;  %1455 = vmatprep.subr.mxu0 %v15449_v15  ;;  %v9880_v15 = vld [vmem:[%s14767_s6 + $0x3d0] sm:$0xff]  ;;  %v15458_v25 = vunpack.c.l.bf16 %v9819_v23 }
 0x476   :  { %1508 = vmatprep.subr.mxu1 %v15450_v39  ;;  %1456 = vmatpush1.msra.mxu0 %v15451_v44  ;;  %15453 = vst [vmem:[#allocation55_spill] sm:$0xff] %v9880_v15  ;;  %v9885_v39 = vld [vmem:[%s14767_s6 + $0xf8] sm:$0xff]  ;;  %v15456_v44 = vunpack.c.h.bf16 %v9819_v23  ;;  %v15473_v23 = vunpack.c.h.bf16 %v9880_v15  ;;  %v15475_v32 = vunpack.c.l.bf16 %v9880_v15 }
 0x477   :  { %1509 = vmatpush1.msra.mxu1 %v15452_v46  ;;  %15454 = vst [vmem:[#allocation56_spill] sm:$0xff] %v9885_v39  ;;  %1457 = vmatprep.subr.mxu0 %v15455_v2  ;;  %v9902_v2 = vld [vmem:[%s14767_s6 + $0x3b0] sm:$0xff]  ;;  %v15464_v46 = vunpack.c.l.bf16 %v9841_v47 }
 0x478   :  { %1510 = vmatprep.subr.mxu1 %v15456_v44  ;;  %1458 = vmatpush1.msra.mxu0 %v15457_v41  ;;  %15459 = vst [vmem:[#allocation57_spill] sm:$0xff] %v9902_v2  ;;  %v9907_v44 = vld [vmem:[%s14767_s6 + $0xd8] sm:$0xff]  ;;  %v15462_v41 = vunpack.c.h.bf16 %v9841_v47  ;;  %v15479_v47 = vunpack.c.h.bf16 %v9902_v2  ;;  %v15481_v13 = vunpack.c.l.bf16 %v9902_v2 }
 0x479   :  { %1511 = vmatpush1.msra.mxu1 %v15458_v25  ;;  %15460 = vst [vmem:[#allocation58_spill] sm:$0xff] %v9907_v44  ;;  %1459 = vmatprep.subr.mxu0 %v15461_v3  ;;  %v9924_v3 = vld [vmem:[%s14767_s6 + $0x390] sm:$0xff]  ;;  %v15470_v25 = vunpack.c.l.bf16 %v9863_v12 }
 0x47a   :  { %1512 = vmatprep.subr.mxu1 %v15462_v41  ;;  %1460 = vmatpush1.msra.mxu0 %v15463_v52  ;;  %15465 = vst [vmem:[#allocation59_spill] sm:$0xff] %v9924_v3  ;;  %v9929_v41 = vld [vmem:[%s14767_s6 + $0xb8] sm:$0xff]  ;;  %v15468_v52 = vunpack.c.h.bf16 %v9863_v12  ;;  %v15485_v12 = vunpack.c.h.bf16 %v9924_v3  ;;  %v15487_v15 = vunpack.c.l.bf16 %v9924_v3 }
 0x47b   :  { %1513 = vmatpush1.msra.mxu1 %v15464_v46  ;;  %15466 = vst [vmem:[#allocation60_spill] sm:$0xff] %v9929_v41  ;;  %1461 = vmatprep.subr.mxu0 %v15467_v10  ;;  %v9946_v10 = vld [vmem:[%s14767_s6 + $0x370] sm:$0xff]  ;;  %v15476_v46 = vunpack.c.l.bf16 %v9885_v39 }
 0x47c   :  { %1514 = vmatprep.subr.mxu1 %v15468_v52  ;;  %1462 = vmatpush2.msra.mxu0 %v15469_v22  ;;  %15471 = vst [vmem:[#allocation61_spill] sm:$0xff] %v9946_v10  ;;  %v9951_v52 = vld [vmem:[%s14767_s6 + $0x98] sm:$0xff]  ;;  %v15474_v22 = vunpack.c.h.bf16 %v9885_v39  ;;  %v15491_v39 = vunpack.c.h.bf16 %v9946_v10  ;;  %v15493_v2 = vunpack.c.l.bf16 %v9946_v10 }
 0x47d   :  { %1515 = vmatpush1.msra.mxu1 %v15470_v25  ;;  %15472 = vst [vmem:[#allocation62_spill] sm:$0xff] %v9951_v52  ;;  %1463 = vmatprep.subr.mxu0 %v15473_v23  ;;  %v9968_v23 = vld [vmem:[%s14767_s6 + $0x350] sm:$0xff]  ;;  %v15482_v25 = vunpack.c.l.bf16 %v9907_v44 }
 0x47e   :  { %1516 = vmatprep.subr.mxu1 %v15474_v22  ;;  %1464 = vmatpush2.msra.mxu0 %v15475_v32  ;;  %15477 = vst [vmem:[#allocation63_spill] sm:$0xff] %v9968_v23  ;;  %v9973_v22 = vld [vmem:[%s14767_s6 + $0x78] sm:$0xff]  ;;  %v15480_v32 = vunpack.c.h.bf16 %v9907_v44  ;;  %v15497_v44 = vunpack.c.h.bf16 %v9968_v23  ;;  %v15499_v3 = vunpack.c.l.bf16 %v9968_v23 }
 0x47f   :  { %1517 = vmatpush1.msra.mxu1 %v15476_v46  ;;  %15478 = vst [vmem:[#allocation64_spill] sm:$0xff] %v9973_v22  ;;  %1465 = vmatprep.subr.mxu0 %v15479_v47  ;;  %v9990_v47 = vld [vmem:[%s14767_s6 + $0x330] sm:$0xff]  ;;  %v15488_v46 = vunpack.c.l.bf16 %v9929_v41 }
 0x480   :  { %1518 = vmatprep.subr.mxu1 %v15480_v32  ;;  %1466 = vmatpush2.msra.mxu0 %v15481_v13  ;;  %15483 = vst [vmem:[#allocation65_spill] sm:$0xff] %v9990_v47  ;;  %v9995_v32 = vld [vmem:[%s14767_s6 + $0x58] sm:$0xff]  ;;  %v15486_v13 = vunpack.c.h.bf16 %v9929_v41  ;;  %v15503_v41 = vunpack.c.h.bf16 %v9990_v47  ;;  %v15505_v10 = vunpack.c.l.bf16 %v9990_v47 }
 0x481   :  { %1519 = vmatpush1.msra.mxu1 %v15482_v25  ;;  %15484 = vst [vmem:[#allocation66_spill] sm:$0xff] %v9995_v32  ;;  %1467 = vmatprep.subr.mxu0 %v15485_v12  ;;  %v10012_v12 = vld [vmem:[%s14767_s6 + $0x310] sm:$0xff]  ;;  %v15494_v25 = vunpack.c.l.bf16 %v9951_v52 }
 0x482   :  { %1520 = vmatprep.subr.mxu1 %v15486_v13  ;;  %1468 = vmatpush2.msra.mxu0 %v15487_v15  ;;  %15489 = vst [vmem:[#allocation67_spill] sm:$0xff] %v10012_v12  ;;  %v10017_v13 = vld [vmem:[%s14767_s6 + $0x38] sm:$0xff]  ;;  %v15492_v15 = vunpack.c.h.bf16 %v9951_v52  ;;  %v15509_v52 = vunpack.c.h.bf16 %v10012_v12  ;;  %v15511_v23 = vunpack.c.l.bf16 %v10012_v12 }
 0x483   :  { %1521 = vmatpush1.msra.mxu1 %v15488_v46  ;;  %15490 = vst [vmem:[#allocation68_spill] sm:$0xff] %v10017_v13  ;;  %1469 = vmatprep.subr.mxu0 %v15491_v39  ;;  %v10034_v39 = vld [vmem:[%s14767_s6 + $0x2f0] sm:$0xff]  ;;  %v15500_v46 = vunpack.c.l.bf16 %v9973_v22 }
 0x484   :  { %1522 = vmatprep.subr.mxu1 %v15492_v15  ;;  %1470 = vmatpush2.msra.mxu0 %v15493_v2  ;;  %15495 = vst [vmem:[#allocation69_spill] sm:$0xff] %v10034_v39  ;;  %v10039_v15 = vld [vmem:[%s14767_s6 + $0x18] sm:$0xff]  ;;  %v15498_v2 = vunpack.c.h.bf16 %v9973_v22  ;;  %v15515_v22 = vunpack.c.h.bf16 %v10034_v39  ;;  %v15517_v47 = vunpack.c.l.bf16 %v10034_v39 }
 0x485   :  { %1523 = vmatpush1.msra.mxu1 %v15494_v25  ;;  %15496 = vst [vmem:[#allocation70_spill] sm:$0xff] %v10039_v15  ;;  %1471 = vmatprep.subr.mxu0 %v15497_v44  ;;  %v10056_v44 = vld [vmem:[%s14767_s6 + $0x2d0] sm:$0xff]  ;;  %v15506_v25 = vunpack.c.l.bf16 %v9995_v32 }
 0x486   :  { %1524 = vmatprep.subr.mxu1 %v15498_v2  ;;  %1472 = vmatpush2.msra.mxu0 %v15499_v3  ;;  %15501 = vst [vmem:[#allocation71_spill] sm:$0xff] %v10056_v44  ;;  %v10061_v2 = vld [vmem:[%s14767_s6 + $0x3f8] sm:$0xff]  ;;  %v15504_v3 = vunpack.c.h.bf16 %v9995_v32  ;;  %v15520_v32 = vunpack.c.h.bf16 %v10056_v44  ;;  %v15522_v12 = vunpack.c.l.bf16 %v10056_v44 }
 0x487   :  { %1525 = vmatpush1.msra.mxu1 %v15500_v46  ;;  %15502 = vst [vmem:[#allocation72_spill] sm:$0xff] %v10061_v2  ;;  %1473 = vmatprep.subr.mxu0 %v15503_v41  ;;  %v10078_v41 = vld [vmem:[%s14767_s6 + $0x2b0] sm:$0xff]  ;;  %v15512_v46 = vunpack.c.l.bf16 %v10017_v13 }
 0x488   :  { %1526 = vmatprep.subr.mxu1 %v15504_v3  ;;  %1474 = vmatpush2.msra.mxu0 %v15505_v10  ;;  %15507 = vst [vmem:[#allocation73_spill] sm:$0xff] %v10078_v41  ;;  %v10083_v3 = vld [vmem:[%s14767_s6 + $0x3d8] sm:$0xff]  ;;  %v15510_v10 = vunpack.c.h.bf16 %v10017_v13  ;;  %v15525_v13 = vunpack.c.h.bf16 %v10078_v41  ;;  %v15527_v39 = vunpack.c.l.bf16 %v10078_v41 }
 0x489   :  { %1527 = vmatpush1.msra.mxu1 %v15506_v25  ;;  %15508 = vst [vmem:[#allocation74_spill] sm:$0xff] %v10083_v3  ;;  %1475 = vmatprep.subr.mxu0 %v15509_v52  ;;  %v10100_v52 = vld [vmem:[%s14767_s6 + $0x290] sm:$0xff]  ;;  %v15518_v25 = vunpack.c.l.bf16 %v10039_v15 }
 0x48a   :  { %1528 = vmatprep.subr.mxu1 %v15510_v10  ;;  %1476 = vmatpush2.msra.mxu0 %v15511_v23  ;;  %15513 = vst [vmem:[#allocation75_spill] sm:$0xff] %v10100_v52  ;;  %v10105_v10 = vld [vmem:[%s14767_s6 + $0x3b8] sm:$0xff]  ;;  %v15516_v23 = vunpack.c.h.bf16 %v10039_v15  ;;  %v15530_v15 = vunpack.c.h.bf16 %v10100_v52  ;;  %v15532_v44 = vunpack.c.l.bf16 %v10100_v52 }
 0x48b   :  { %1529 = vmatpush1.msra.mxu1 %v15512_v46  ;;  %15514 = vst [vmem:[#allocation76_spill] sm:$0xff] %v10105_v10  ;;  %1477 = vmatprep.subr.mxu0 %v15515_v22  ;;  %v10122_v22 = vld [vmem:[%s14767_s6 + $0x270] sm:$0xff]  ;;  %v15523_v46 = vunpack.c.l.bf16 %v10061_v2  ;;  %v10242_v52 = vld [vmem:[%s14767_s6 + $0x2d8] sm:$0xff] }
 0x48c   :  { %1530 = vmatprep.subr.mxu1 %v15516_v23  ;;  %1478 = vmatpush2.msra.mxu0 %v15517_v47  ;;  %15519 = vst [vmem:[#allocation77_spill] sm:$0xff] %v10122_v22  ;;  %v10127_v23 = vld [vmem:[%s14767_s6 + $0x398] sm:$0xff]  ;;  %v15521_v47 = vunpack.c.h.bf16 %v10061_v2  ;;  %v15535_v2 = vunpack.c.h.bf16 %v10122_v22  ;;  %v15537_v41 = vunpack.c.l.bf16 %v10122_v22  ;;  %v15554_v22 = vunpack.c.h.bf16 %v8783_v16 }
 0x48d   :  { %1531 = vmatpush1.msra.mxu1 %v15518_v25  ;;  %1479 = vmatprep.subr.mxu0 %v15520_v32  ;;  %v10144_v32 = vld [vmem:[%s14767_s6 + $0x250] sm:$0xff]  ;;  %v15528_v25 = vunpack.c.l.bf16 %v10083_v3 }
 0x48e   :  { %1532 = vmatprep.subr.mxu1 %v15521_v47  ;;  %1480 = vmatpush2.msra.mxu0 %v15522_v12  ;;  %15524 = vst [vmem:[#allocation78_spill] sm:$0xff] %v10144_v32  ;;  %v10149_v47 = vld [vmem:[%s14767_s6 + $0x378] sm:$0xff]  ;;  %v15526_v12 = vunpack.c.h.bf16 %v10083_v3 }
 0x48f   :  { %1533 = vmatpush2.msra.mxu1 %v15523_v46  ;;  %1481 = vmatprep.subr.mxu0 %v15525_v13  ;;  %v10166_v13 = vld [vmem:[%s14767_s6 + $0x230] sm:$0xff]  ;;  %v15533_v46 = vunpack.c.l.bf16 %v10105_v10  ;;  %v15540_v3 = vunpack.c.h.bf16 %v10149_v47 }
 0x490   :  { %1534 = vmatprep.subr.mxu1 %v15526_v12  ;;  %1482 = vmatpush2.msra.mxu0 %v15527_v39  ;;  %15529 = vst [vmem:[#allocation79_spill] sm:$0xff] %v10166_v13  ;;  %v10171_v12 = vld [vmem:[%s14767_s6 + $0x358] sm:$0xff]  ;;  %v15531_v39 = vunpack.c.h.bf16 %v10105_v10  ;;  %v15542_v10 = vunpack.c.l.bf16 %v10149_v47 }
 0x491   :  { %1535 = vmatpush2.msra.mxu1 %v15528_v25  ;;  %1483 = vmatprep.subr.mxu0 %v15530_v15  ;;  %v10188_v15 = vld [vmem:[%s14767_s6 + $0x210] sm:$0xff]  ;;  %v15538_v25 = vunpack.c.l.bf16 %v10127_v23 }
 0x492   :  { %1536 = vmatprep.subr.mxu1 %v15531_v39  ;;  %1484 = vmatpush2.msra.mxu0 %v15532_v44  ;;  %15534 = vst [vmem:[#allocation80_spill] sm:$0xff] %v10188_v15  ;;  %v10193_v39 = vld [vmem:[%s14767_s6 + $0x338] sm:$0xff]  ;;  %v15536_v44 = vunpack.c.h.bf16 %v10127_v23 }
 0x493   :  { %1537 = vmatpush2.msra.mxu1 %v15533_v46  ;;  %1485 = vmatprep.subr.mxu0 %v15535_v2  ;;  %v10210_v2 = vld [vmem:[%s14767_s6 + $0x318] sm:$0xff]  ;;  %v15544_v46 = vunpack.c.h.bf16 %v10171_v12 }
 0x494   :  { %1538 = vmatprep.subr.mxu1 %v15536_v44  ;;  %1486 = vmatpush2.msra.mxu0 %v15537_v41  ;;  %v15539_v44 = vunpack.c.h.bf16 %v10144_v32  ;;  %v15545_v41 = vunpack.c.l.bf16 %v10166_v13 }
 0x495   :  { %1539 = vmatpush2.msra.mxu1 %v15538_v25  ;;  %v15541_v25 = vunpack.c.l.bf16 %v10144_v32  ;;  %v10284_v32 = vld [vmem:[%s14767_s6 + $0x278] sm:$0xff] }
 0x496   :  { %1487 = vmatprep.subr.mxu0 %v15539_v44  ;;  %1540 = vmatprep.subr.mxu1 %v15540_v3  ;;  %v10227_v44 = vld [vmem:[%s14767_s6 + $0x2f8] sm:$0xff]  ;;  %v15543_v3 = vunpack.c.h.bf16 %v10166_v13 }
 0x497   :  { %1488 = vmatpush2.msra.mxu0 %v15541_v25  ;;  %1541 = vmatpush2.msra.mxu1 %v15542_v10  ;;  %v15546_v10 = vunpack.c.l.bf16 %v10171_v12  ;;  %v10257_v13 = vld [vmem:[%s14767_s6 + $0x2b8] sm:$0xff]  ;;  %v15552_v25 = vunpack.c.l.bf16 %v10210_v2 }
 0x498   :  { %1489 = vmatprep.subr.mxu0 %v15543_v3  ;;  %1542 = vmatprep.subr.mxu1 %v15544_v46  ;;  %v15547_v3 = vunpack.c.h.bf16 %v10188_v15  ;;  %v15548_v46 = vunpack.c.h.bf16 %v10193_v39 }
 0x499   :  { %1490 = vmatpush2.msra.mxu0 %v15545_v41  ;;  %1543 = vmatpush2.msra.mxu1 %v15546_v10  ;;  %v15549_v41 = vunpack.c.l.bf16 %v10188_v15  ;;  %v15550_v10 = vunpack.c.l.bf16 %v10193_v39  ;;  %v15555_v15 = vunpack.c.h.bf16 %v10227_v44 }
 0x49a   :  { %1491 = vmatprep.subr.mxu0 %v15547_v3  ;;  %1544 = vmatprep.subr.mxu1 %v15548_v46  ;;  %v15551_v3 = vunpack.c.h.bf16 %v10210_v2  ;;  %v15556_v46 = vunpack.c.l.bf16 %v8783_v16  ;;  %v15560_v16 = vunpack.c.l.bf16 %v8792_v17 }
 0x49b   :  { %1492 = vmatpush2.msra.mxu0 %v15549_v41  ;;  %1545 = vmatpush2.msra.mxu1 %v15550_v10  ;;  %v10269_v10 = vld [vmem:[%s14767_s6 + $0x298] sm:$0xff] }
 0x49c   :  { %1494 = vmatmul.mubr.f32.vlgmr.msra.gmra.mxu0 %v9560_v36  ;;  %1546 = vmatprep.subr.mxu1 %v15551_v3  ;;  %15553 = vst [vmem:[#allocation81_spill] sm:$0xff] %v10269_v10  ;;  %v10299_v41 = vld [vmem:[%s14767_s6 + $0x258] sm:$0xff] }
 0x49d   :  { %1547 = vmatpush2.msra.mxu1 %v15552_v25  ;;  %1620 = vmatprep.subr.mxu0 %v15554_v22  ;;  %v15557_v25 = vunpack.c.l.bf16 %v10227_v44  ;;  %v15558_v22 = vunpack.c.h.bf16 %v8792_v17  ;;  %v15564_v17 = vunpack.c.l.bf16 %v8805_v20  ;;  %v15577_v3 = vunpack.c.l.bf16 %v10299_v41 }
 0x49e   :  { %1548 = vmatprep.subr.mxu1 %v15555_v15  ;;  %1621 = vmatpush1.msra.mxu0 %v15556_v46  ;;  %v15559_v15 = vunpack.c.h.bf16 %v10242_v52  ;;  %v15561_v46 = vunpack.c.l.bf16 %v10242_v52 }
 0x49f   :  { %1549 = vmatpush2.msra.mxu1 %v15557_v25  ;;  %1622 = vmatprep.subr.mxu0 %v15558_v22  ;;  %v15562_v22 = vunpack.c.h.bf16 %v8805_v20  ;;  %v10314_v25 = vld [vmem:[%s14767_s6 + $0x238] sm:$0xff]  ;;  %v15568_v20 = vunpack.c.l.bf16 %v8818_v24 }
 0x4a0   :  { %1550 = vmatprep.subr.mxu1 %v15559_v15  ;;  %1623 = vmatpush1.msra.mxu0 %v15560_v16  ;;  %v15563_v15 = vunpack.c.h.bf16 %v10257_v13  ;;  %v15565_v16 = vunpack.c.l.bf16 %v10257_v13 }
 0x4a1   :  { %1551 = vmatpush2.msra.mxu1 %v15561_v46  ;;  %1624 = vmatprep.subr.mxu0 %v15562_v22  ;;  %v15566_v22 = vunpack.c.h.bf16 %v8818_v24  ;;  %v10329_v46 = vld [vmem:[%s14767_s6 + $0x218] sm:$0xff]  ;;  %v15572_v24 = vunpack.c.l.bf16 %v8831_v27  ;;  %s8315_s6 = smov 66  }
 0x4a2   :  { %1552 = vmatprep.subr.mxu1 %v15563_v15  ;;  %1625 = vmatpush1.msra.mxu0 %v15564_v17  ;;  %v15567_v15 = vunpack.c.h.bf16 %v10269_v10  ;;  %v15569_v17 = vunpack.c.l.bf16 %v10269_v10  ;;  %v15575_v10 = vunpack.c.h.bf16 %v10299_v41 }
 0x4a3   :  { %1553 = vmatpush2.msra.mxu1 %v15565_v16  ;;  %1626 = vmatprep.subr.mxu0 %v15566_v22  ;;  %v15570_v22 = vunpack.c.h.bf16 %v8831_v27  ;;  %v15574_v16 = vunpack.c.h.bf16 %v8844_v30  ;;  %v1165_v27 = vunpack.c.l.bf16 %v10329_v46 }
 0x4a4   :  { %1554 = vmatprep.subr.mxu1 %v15567_v15  ;;  %1627 = vmatpush1.msra.mxu0 %v15568_v20  ;;  %v15571_v15 = vunpack.c.h.bf16 %v10284_v32  ;;  %v15573_v20 = vunpack.c.l.bf16 %v10284_v32 }
 0x4a5   :  { %1555 = vmatpush2.msra.mxu1 %v15569_v17  ;;  %1628 = vmatprep.subr.mxu0 %v15570_v22  ;;  %v1173_v17 = vunpack.c.l.bf16 %v10314_v25  ;;  %v1166_v22 = vunpack.c.h.bf16 %v10329_v46 }
 0x4a6   :  { %1556 = vmatprep.subr.mxu1 %v15571_v15  ;;  %1629 = vmatpush1.msra.mxu0 %v15572_v24  ;;  %v15576_v15 = vunpack.c.l.bf16 %v8844_v30  ;;  %v15578_v24 = vunpack.c.h.bf16 %v8857_v34  ;;  %v15581_v30 = vunpack.c.h.bf16 %v8870_v37 }
 0x4a7   :  { %1557 = vmatpush2.msra.mxu1 %v15573_v20  ;;  %1630 = vmatprep.subr.mxu0 %v15574_v16  ;;  %v15579_v20 = vunpack.c.h.bf16 %v10314_v25  ;;  %v15580_v16 = vunpack.c.l.bf16 %v8857_v34  ;;  %v15584_v34 = vunpack.c.h.bf16 %v9262_v42 }
 0x4a8   :  { %1558 = vmatprep.subr.mxu1 %v15575_v10  ;;  %1631 = vmatpush1.msra.mxu0 %v15576_v15  ;;  %v15582_v10 = vunpack.c.l.bf16 %v8870_v37  ;;  %v15585_v15 = vunpack.c.l.bf16 %v9262_v42  ;;  %v15587_v37 = vunpack.c.h.bf16 %v9268_v26  ;;  %v15592_v42 = vunpack.c.h.bf16 %v8909_v48 }
 0x4a9   :  { %1559 = vmatpush2.msra.mxu1 %v15577_v3  ;;  %1632 = vmatprep.subr.mxu0 %v15578_v24  ;;  %v15583_v3 = vunpack.c.h.bf16 %v8883_v40  ;;  %v15586_v24 = vunpack.c.l.bf16 %v8883_v40  ;;  %v15593_v40 = vunpack.c.l.bf16 %v9283_v38 }
 0x4aa   :  { %1560 = vmatprep.subr.mxu1 %v15579_v20  ;;  %1633 = vmatpush1.msra.mxu0 %v15580_v16  ;;  %v15588_v20 = vunpack.c.h.bf16 %v8896_v45  ;;  %v15589_v16 = vunpack.c.l.bf16 %v9268_v26  ;;  %v15596_v26 = vunpack.c.h.bf16 %v8922_v53 }
 0x4ab   :  { %1561 = vmatpush2.msra.mxu1 %v1173_v17  ;;  %1634 = vmatprep.subr.mxu0 %v15581_v30  ;;  %v15591_v30 = vunpack.c.h.bf16 %v9283_v38  ;;  %v15600_v38 = vunpack.c.h.bf16 %v8935_v56 }
 0x4ac   :  { %1562 = vmatprep.subr.mxu1 %v1166_v22  ;;  %1635 = vmatpush1.msra.mxu0 %v15582_v10  ;;  %v15594_v10 = vunpack.c.l.bf16 %v8909_v48  ;;  %v15601_v48 = vunpack.c.l.bf16 %v9307_v14 }
 0x4ad   :  { %1563 = vmatpush2.msra.mxu1 %v1165_v27  ;;  %1636 = vmatprep.subr.mxu0 %v15583_v3  ;;  %v15595_v3 = vunpack.c.h.bf16 %v9294_v50 }
 0x4ae   :  { %1565 = vmatmul.mubr.f32.vlgmr.msra.gmra.mxu1 %v9560_v36  ;;  %1691 = vmatprep.subr.mxu1 %v15584_v34  ;;  %v15590_v36 = vunpack.c.l.bf16 %v8896_v45  ;;  %v15597_v45 = vunpack.c.l.bf16 %v9294_v50  ;;  %v15598_v34 = vunpack.c.l.bf16 %v8922_v53  ;;  %v15604_v50 = vunpack.c.h.bf16 %v8946_v61 }
 0x4af   :  { %1692 = vmatpush1.msra.mxu1 %v15585_v15  ;;  %1637 = vmatpush1.msra.mxu0 %v15586_v24  ;;  %v15599_v15 = vunpack.c.h.bf16 %v9307_v14  ;;  %v15602_v24 = vunpack.c.l.bf16 %v8935_v56  ;;  %v15605_v53 = vunpack.c.l.bf16 %v9318_v29  ;;  %v15608_v14 = vunpack.c.h.bf16 %v8959_v0 }
 0x4b0   :  { %1693 = vmatprep.subr.mxu1 %v15587_v37  ;;  %1638 = vmatprep.subr.mxu0 %v15588_v20  ;;  %v15603_v37 = vunpack.c.h.bf16 %v9318_v29  ;;  %v15606_v20 = vunpack.c.l.bf16 %v8946_v61  ;;  %v15609_v56 = vunpack.c.l.bf16 %v9329_v31  ;;  %v15612_v29 = vunpack.c.h.bf16 %v8970_v6 }
 0x4b1   :  { %1694 = vmatpush1.msra.mxu1 %v15589_v16  ;;  %1639 = vmatpush1.msra.mxu0 %v15590_v36  ;;  %v15607_v16 = vunpack.c.h.bf16 %v9329_v31  ;;  %v15610_v36 = vunpack.c.l.bf16 %v8959_v0  ;;  %v15613_v61 = vunpack.c.l.bf16 %v9340_v35  ;;  %v15616_v31 = vunpack.c.h.bf16 %v8981_v9 }
 0x4b2   :  { %1695 = vmatprep.subr.mxu1 %v15591_v30  ;;  %1640 = vmatprep.subr.mxu0 %v15592_v42  ;;  %v15611_v30 = vunpack.c.h.bf16 %v9340_v35  ;;  %v15614_v42 = vunpack.c.l.bf16 %v8970_v6  ;;  %v15617_v0 = vunpack.c.l.bf16 %v9351_v58  ;;  %v15620_v35 = vunpack.c.h.bf16 %v8992_v5 }
 0x4b3   :  { %1696 = vmatpush1.msra.mxu1 %v15593_v40  ;;  %1641 = vmatpush1.msra.mxu0 %v15594_v10  ;;  %v15615_v40 = vunpack.c.h.bf16 %v9351_v58  ;;  %v15618_v10 = vunpack.c.l.bf16 %v8981_v9  ;;  %v15621_v6 = vunpack.c.l.bf16 %v9362_v4  ;;  %v15624_v58 = vunpack.c.h.bf16 %v9003_v8 }
 0x4b4   :  { %1697 = vmatprep.subr.mxu1 %v15595_v3  ;;  %1642 = vmatprep.subr.mxu0 %v15596_v26  ;;  %v15619_v3 = vunpack.c.h.bf16 %v9362_v4  ;;  %v15622_v26 = vunpack.c.l.bf16 %v8992_v5  ;;  %v15625_v9 = vunpack.c.l.bf16 %v9373_v28  ;;  %v15628_v4 = vunpack.c.h.bf16 %v9014_v1 }
 0x4b5   :  { %1698 = vmatpush1.msra.mxu1 %v15597_v45  ;;  %1643 = vmatpush1.msra.mxu0 %v15598_v34  ;;  %v15623_v45 = vunpack.c.h.bf16 %v9373_v28  ;;  %v15626_v34 = vunpack.c.l.bf16 %v9003_v8  ;;  %v15629_v5 = vunpack.c.l.bf16 %v9384_v33  ;;  %v15632_v28 = vunpack.c.h.bf16 %v9025_v62 }
 0x4b6   :  { %1699 = vmatprep.subr.mxu1 %v15599_v15  ;;  %1644 = vmatprep.subr.mxu0 %v15600_v38  ;;  %v15627_v15 = vunpack.c.h.bf16 %v9384_v33  ;;  %v15630_v38 = vunpack.c.l.bf16 %v9014_v1  ;;  %v15633_v8 = vunpack.c.l.bf16 %v9395_v18  ;;  %v15636_v33 = vunpack.c.h.bf16 %v9036_v63 }
 0x4b7   :  { %1700 = vmatpush1.msra.mxu1 %v15601_v48  ;;  %1645 = vmatpush1.msra.mxu0 %v15602_v24  ;;  %v15631_v48 = vunpack.c.h.bf16 %v9395_v18  ;;  %v15634_v24 = vunpack.c.l.bf16 %v9025_v62  ;;  %v15637_v1 = vunpack.c.l.bf16 %v9406_v43  ;;  %v15640_v18 = vunpack.c.h.bf16 %v9047_v57 }
 0x4b8   :  { %1701 = vmatprep.subr.mxu1 %v15603_v37  ;;  %1646 = vmatprep.subr.mxu0 %v15604_v50  ;;  %v15635_v37 = vunpack.c.h.bf16 %v9406_v43  ;;  %v15638_v50 = vunpack.c.l.bf16 %v9036_v63  ;;  %v15641_v62 = vunpack.c.l.bf16 %v9417_v59  ;;  %v15644_v43 = vunpack.c.h.bf16 %v9058_v60 }
 0x4b9   :  { %1702 = vmatpush1.msra.mxu1 %v15605_v53  ;;  %1647 = vmatpush1.msra.mxu0 %v15606_v20  ;;  %v15639_v53 = vunpack.c.h.bf16 %v9417_v59  ;;  %v15642_v20 = vunpack.c.l.bf16 %v9047_v57  ;;  %v15645_v63 = vunpack.c.l.bf16 %v9428_v21  ;;  %v15648_v59 = vunpack.c.h.bf16 %v9069_v54 }
 0x4ba   :  { %1703 = vmatprep.subr.mxu1 %v15607_v16  ;;  %1648 = vmatprep.subr.mxu0 %v15608_v14  ;;  %v15643_v16 = vunpack.c.h.bf16 %v9428_v21  ;;  %v15646_v14 = vunpack.c.l.bf16 %v9058_v60  ;;  %v15649_v57 = vunpack.c.l.bf16 %v9439_v49  ;;  %v15652_v21 = vunpack.c.h.bf16 %v9080_v55 }
 0x4bb   :  { %1704 = vmatpush1.msra.mxu1 %v15609_v56  ;;  %1649 = vmatpush1.msra.mxu0 %v15610_v36  ;;  %v15647_v56 = vunpack.c.h.bf16 %v9439_v49  ;;  %v15650_v36 = vunpack.c.l.bf16 %v9069_v54  ;;  %v15653_v60 = vunpack.c.l.bf16 %v9450_v19  ;;  %v15656_v49 = vunpack.c.h.bf16 %v9091_v51 }
 0x4bc   :  { %1705 = vmatprep.subr.mxu1 %v15611_v30  ;;  %1650 = vmatprep.subr.mxu0 %v15612_v29  ;;  %v15651_v30 = vunpack.c.h.bf16 %v9450_v19  ;;  %v15654_v29 = vunpack.c.l.bf16 %v9080_v55  ;;  %v15657_v54 = vunpack.c.l.bf16 %v9461_v11  ;;  %v15661_v19 = vld [vmem:[#allocation6_spill] sm:$0xff] }
 0x4bd   :  { %1706 = vmatpush1.msra.mxu1 %v15613_v61  ;;  %1651 = vmatpush1.msra.mxu0 %v15614_v42  ;;  %v15655_v61 = vunpack.c.h.bf16 %v9461_v11  ;;  %v15658_v42 = vunpack.c.l.bf16 %v9091_v51  ;;  %v15667_v11 = vld [vmem:[#allocation7_spill] sm:$0xff] }
 0x4be   :  { %1707 = vmatprep.subr.mxu1 %v15615_v40  ;;  %1652 = vmatprep.subr.mxu0 %v15616_v31  ;;  %v15659_v40 = vld [vmem:[#allocation19_spill] sm:$0xff] }
 0x4bf   :  { %1708 = vmatpush1.msra.mxu1 %v15617_v0  ;;  %1653 = vmatpush2.msra.mxu0 %v15618_v10  ;;  %v15660_v31 = vunpack.c.h.bf16 %v15659_v40  ;;  %v15662_v0 = vunpack.c.h.bf16 %v15661_v19  ;;  %v15663_v55 = vunpack.c.l.bf16 %v15659_v40  ;;  %v15664_v10 = vunpack.c.l.bf16 %v15661_v19 }
 0x4c0   :  { %1709 = vmatprep.subr.mxu1 %v15619_v3  ;;  %1654 = vmatprep.subr.mxu0 %v15620_v35  ;;  %v15665_v3 = vld [vmem:[#allocation20_spill] sm:$0xff] }
 0x4c1   :  { %1710 = vmatpush1.msra.mxu1 %v15621_v6  ;;  %1655 = vmatpush2.msra.mxu0 %v15622_v26  ;;  %v15666_v35 = vunpack.c.h.bf16 %v15665_v3  ;;  %v15668_v6 = vunpack.c.h.bf16 %v15667_v11  ;;  %v15669_v51 = vunpack.c.l.bf16 %v15665_v3  ;;  %v15670_v26 = vunpack.c.l.bf16 %v15667_v11 }
 0x4c2   :  { %1711 = vmatprep.subr.mxu1 %v15623_v45  ;;  %1656 = vmatprep.subr.mxu0 %v15624_v58  ;;  %v15671_v45 = vld [vmem:[#allocation21_spill] sm:$0xff] }
 0x4c3   :  { %1712 = vmatpush1.msra.mxu1 %v15625_v9  ;;  %1657 = vmatpush2.msra.mxu0 %v15626_v34  ;;  %v15672_v58 = vunpack.c.h.bf16 %v15671_v45  ;;  %v15673_v9 = vld [vmem:[#allocation8_spill] sm:$0xff] }
 0x4c4   :  { %1713 = vmatprep.subr.mxu1 %v15627_v15  ;;  %1658 = vmatprep.subr.mxu0 %v15628_v4  ;;  %v15674_v34 = vunpack.c.h.bf16 %v15673_v9  ;;  %v15675_v15 = vunpack.c.l.bf16 %v15671_v45  ;;  %v15676_v4 = vunpack.c.l.bf16 %v15673_v9 }
 0x4c5   :  { %1714 = vmatpush1.msra.mxu1 %v15629_v5  ;;  %1659 = vmatpush2.msra.mxu0 %v15630_v38  ;;  %v15677_v5 = vld [vmem:[#allocation22_spill] sm:$0xff] }
 0x4c6   :  { %1715 = vmatprep.subr.mxu1 %v15631_v48  ;;  %1660 = vmatprep.subr.mxu0 %v15632_v28  ;;  %v15678_v38 = vunpack.c.h.bf16 %v15677_v5  ;;  %v15679_v48 = vld [vmem:[#allocation9_spill] sm:$0xff] }
 0x4c7   :  { %1716 = vmatpush1.msra.mxu1 %v15633_v8  ;;  %1661 = vmatpush2.msra.mxu0 %v15634_v24  ;;  %v15680_v28 = vunpack.c.h.bf16 %v15679_v48  ;;  %v15681_v8 = vunpack.c.l.bf16 %v15677_v5  ;;  %v15682_v24 = vunpack.c.l.bf16 %v15679_v48  ;;  %v15720_v5 = vld [vmem:[#allocation25_spill] sm:$0xff]  ;;  %v15722_v48 = vld [vmem:[#allocation42_spill] sm:$0xff] }
 0x4c8   :  { %1717 = vmatprep.subr.mxu1 %v15635_v37  ;;  %1662 = vmatprep.subr.mxu0 %v15636_v33  ;;  %v15683_v37 = vld [vmem:[#allocation23_spill] sm:$0xff] }
 0x4c9   :  { %1718 = vmatpush1.msra.mxu1 %v15637_v1  ;;  %1663 = vmatpush2.msra.mxu0 %v15638_v50  ;;  %v15684_v33 = vunpack.c.h.bf16 %v15683_v37  ;;  %v15685_v1 = vld [vmem:[#allocation10_spill] sm:$0xff] }
 0x4ca   :  { %1719 = vmatprep.subr.mxu1 %v15639_v53  ;;  %1664 = vmatprep.subr.mxu0 %v15640_v18  ;;  %v15686_v50 = vunpack.c.h.bf16 %v15685_v1  ;;  %v15687_v53 = vunpack.c.l.bf16 %v15683_v37  ;;  %v15688_v18 = vunpack.c.l.bf16 %v15685_v1  ;;  %v15726_v37 = vld [vmem:[#allocation27_spill] sm:$0xff]  ;;  %v15728_v1 = vld [vmem:[#allocation44_spill] sm:$0xff] }
 0x4cb   :  { %1720 = vmatpush1.msra.mxu1 %v15641_v62  ;;  %1665 = vmatpush2.msra.mxu0 %v15642_v20  ;;  %v15689_v62 = vld [vmem:[#allocation24_spill] sm:$0xff] }
 0x4cc   :  { %1721 = vmatprep.subr.mxu1 %v15643_v16  ;;  %1666 = vmatprep.subr.mxu0 %v15644_v43  ;;  %v15690_v20 = vunpack.c.h.bf16 %v15689_v62  ;;  %v15691_v16 = vld [vmem:[#allocation11_spill] sm:$0xff] }
 0x4cd   :  { %1722 = vmatpush1.msra.mxu1 %v15645_v63  ;;  %1667 = vmatpush2.msra.mxu0 %v15646_v14  ;;  %v15692_v43 = vunpack.c.h.bf16 %v15691_v16  ;;  %v15693_v63 = vunpack.c.l.bf16 %v15689_v62  ;;  %v15694_v14 = vld [vmem:[#allocation26_spill] sm:$0xff]  ;;  %v15732_v62 = vld [vmem:[#allocation29_spill] sm:$0xff] }
 0x4ce   :  { %1723 = vmatprep.subr.mxu1 %v15647_v56  ;;  %1668 = vmatprep.subr.mxu0 %v15648_v59  ;;  %v15695_v56 = vunpack.c.h.bf16 %v15694_v14  ;;  %v15696_v59 = vunpack.c.l.bf16 %v15694_v14 }
 0x4cf   :  { %1724 = vmatpush2.msra.mxu1 %v15649_v57  ;;  %1669 = vmatpush2.msra.mxu0 %v15650_v36  ;;  %v15697_v57 = vld [vmem:[#allocation28_spill] sm:$0xff] }
 0x4d0   :  { %1725 = vmatprep.subr.mxu1 %v15651_v30  ;;  %1670 = vmatprep.subr.mxu0 %v15652_v21  ;;  %v15698_v36 = vunpack.c.h.bf16 %v15697_v57  ;;  %v15699_v30 = vunpack.c.l.bf16 %v15697_v57  ;;  %v15700_v21 = vld [vmem:[#allocation30_spill] sm:$0xff]  ;;  %v15740_v57 = vld [vmem:[#allocation48_spill] sm:$0xff] }
 0x4d1   :  { %1726 = vmatpush2.msra.mxu1 %v15653_v60  ;;  %1671 = vmatpush2.msra.mxu0 %v15654_v29  ;;  %v15701_v60 = vunpack.c.h.bf16 %v15700_v21  ;;  %v15702_v29 = vunpack.c.l.bf16 %v15700_v21  ;;  %v15743_v21 = vunpack.c.l.bf16 %v15740_v57 }
 0x4d2   :  { %1727 = vmatprep.subr.mxu1 %v15655_v61  ;;  %1672 = vmatprep.subr.mxu0 %v15656_v49  ;;  %v15703_v61 = vunpack.c.h.bf16 %v9614_v7  ;;  %v15704_v49 = vunpack.c.l.bf16 %v9614_v7 }
 0x4d3   :  { %1728 = vmatpush2.msra.mxu1 %v15657_v54  ;;  %1673 = vmatpush2.msra.mxu0 %v15658_v42  ;;  %v15705_v54 = vld [vmem:[#allocation33_spill] sm:$0xff] }
 0x4d4   :  { %1729 = vmatprep.subr.mxu1 %v15660_v31  ;;  %1674 = vmatprep.subr.mxu0 %v15662_v0  ;;  %v15706_v42 = vunpack.c.h.bf16 %v15705_v54  ;;  %v15707_v40 = vunpack.c.l.bf16 %v15705_v54  ;;  %v15708_v31 = vld [vmem:[#allocation35_spill] sm:$0xff] }
 0x4d5   :  { %1730 = vmatpush2.msra.mxu1 %v15663_v55  ;;  %1675 = vmatpush2.msra.mxu0 %v15664_v10  ;;  %v15709_v19 = vunpack.c.h.bf16 %v15708_v31  ;;  %v15710_v55 = vunpack.c.l.bf16 %v15708_v31  ;;  %v15711_v10 = vld [vmem:[#allocation37_spill] sm:$0xff] }
 0x4d6   :  { %1731 = vmatprep.subr.mxu1 %v15666_v35  ;;  %1676 = vmatprep.subr.mxu0 %v15668_v6  ;;  %v15712_v3 = vunpack.c.h.bf16 %v15711_v10  ;;  %v15713_v35 = vld [vmem:[#allocation12_spill] sm:$0xff]  ;;  %v15714_v6 = vunpack.c.l.bf16 %v15711_v10 }
 0x4d7   :  { %1732 = vmatpush2.msra.mxu1 %v15669_v51  ;;  %1677 = vmatpush2.msra.mxu0 %v15670_v26  ;;  %v15715_v26 = vld [vmem:[#allocation40_spill] sm:$0xff] }
 0x4d8   :  { %1733 = vmatprep.subr.mxu1 %v15672_v58  ;;  %1678 = vmatprep.subr.mxu0 %v15674_v34  ;;  %v15716_v45 = vunpack.c.h.bf16 %v15715_v26  ;;  %v15717_v34 = vmov 0.0  }
 0x4d9   :  { %1734 = vmatpush2.msra.mxu1 %v15675_v15  ;;  %1679 = vmatpush2.msra.mxu0 %v15676_v4  ;;  %898 = vst.msk [vmem:[#allocation3] sm:$0xff] %vm897_vm1, %v15717_v34  ;;  %v15718_v15 = vunpack.c.l.bf16 %v15691_v16  ;;  %v15719_v4 = vunpack.c.l.bf16 %v15715_v26  ;;  %v15734_v16 = vld [vmem:[#allocation46_spill] sm:$0xff] }
 0x4da   :  { %1735 = vmatprep.subr.mxu1 %v15678_v38  ;;  %1680 = vmatprep.subr.mxu0 %v15680_v28  ;;  %900 = vst.msk [vmem:[#allocation3 + $0x80] sm:$0xff] %vm899_vm4, %v15717_v34  ;;  %v15721_v38 = vunpack.c.h.bf16 %v15720_v5  ;;  %v15723_v28 = vunpack.c.h.bf16 %v15722_v48  ;;  %v15737_v14 = vunpack.c.l.bf16 %v15734_v16  ;;  %v15762_v26 = vld [vmem:[#allocation38_spill] sm:$0xff] }
 0x4db   :  { %1736 = vmatpush2.msra.mxu1 %v15681_v8  ;;  %1681 = vmatpush2.msra.mxu0 %v15682_v24  ;;  %v15724_v8 = vunpack.c.l.bf16 %v15720_v5  ;;  %v15725_v24 = vunpack.c.l.bf16 %v15722_v48 }
 0x4dc   :  { %1737 = vmatprep.subr.mxu1 %v15684_v33  ;;  %1682 = vmatprep.subr.mxu0 %v15686_v50  ;;  %v15727_v33 = vunpack.c.h.bf16 %v15726_v37  ;;  %v15729_v50 = vunpack.c.h.bf16 %v15728_v1 }
 0x4dd   :  { %1738 = vmatpush2.msra.mxu1 %v15687_v53  ;;  %1683 = vmatpush2.msra.mxu0 %v15688_v18  ;;  %v15730_v53 = vunpack.c.l.bf16 %v15726_v37  ;;  %v15731_v18 = vunpack.c.l.bf16 %v15728_v1 }
 0x4de   :  { %1739 = vmatprep.subr.mxu1 %v15690_v20  ;;  %1762 = vmatprep.subr.mxu0 %v15692_v43  ;;  %v15733_v20 = vunpack.c.h.bf16 %v15732_v62  ;;  %v15735_v43 = vunpack.c.h.bf16 %v15734_v16 }
 0x4df   :  { %1740 = vmatpush2.msra.mxu1 %v15693_v63  ;;  %v15736_v63 = vunpack.c.l.bf16 %v15732_v62 }
 0x4e0   :  { %1741 = vmatprep.subr.mxu1 %v15695_v56  ;;  %v15738_v56 = vld [vmem:[#allocation31_spill] sm:$0xff] }
 0x4e1   :  { %1742 = vmatpush2.msra.mxu1 %v15696_v59  ;;  %v15739_v59 = vunpack.c.h.bf16 %v15738_v56 }
 0x4e2   :  { %1743 = vmatprep.subr.mxu1 %v15698_v36  ;;  %v15741_v36 = vunpack.c.h.bf16 %v15740_v57 }
 0x4e3   :  { %1744 = vmatpush2.msra.mxu1 %v15699_v30  ;;  %v15742_v30 = vunpack.c.l.bf16 %v15738_v56 }
 0x4e4   :  { %1745 = vmatprep.subr.mxu1 %v15701_v60  ;;  %v15744_v60 = vld [vmem:[#allocation32_spill] sm:$0xff] }
 0x4e5   :  { %1746 = vmatpush2.msra.mxu1 %v15702_v29  ;;  %v15745_v29 = vunpack.c.h.bf16 %v15744_v60  ;;  %v15748_v54 = vunpack.c.l.bf16 %v15744_v60 }
 0x4e6   :  { %1747 = vmatprep.subr.mxu1 %v15703_v61  ;;  %v15746_v61 = vld [vmem:[#allocation50_spill] sm:$0xff] }
 0x4e7   :  { %1748 = vmatpush2.msra.mxu1 %v15704_v49  ;;  %v15747_v49 = vunpack.c.h.bf16 %v15746_v61 }
 0x4e8   :  { %1749 = vmatprep.subr.mxu1 %v15706_v42  ;;  %v888_v0 = vpop.f32.mrf.mxu1  ;;  %v15749_v42 = vunpack.c.l.bf16 %v15746_v61 }
 0x4e9   :  { %1750 = vmatpush2.msra.mxu1 %v15707_v40  ;;  %v889_v11 = vadd.f32 %v888_v0, %v15713_v35  ;;  %v15750_v40 = vld [vmem:[#allocation34_spill] sm:$0xff] }
 0x4ea   :  { %1751 = vmatprep.subr.mxu1 %v15709_v19  ;;  %v890_v7 = vpop.f32.mrf.mxu1  ;;  %v15751_v31 = vunpack.c.h.bf16 %v15750_v40  ;;  %v15752_v19 = vld [vmem:[#allocation52_spill] sm:$0xff] }
 0x4eb   :  { %1752 = vmatpush2.msra.mxu1 %v15710_v55  ;;  %v891_v51 = vadd.f32 %v890_v7, %v15713_v35  ;;  %v10598_v9 = vmax.f32 %v889_v11, 0.0  ;;  %v15753_v0 = vunpack.c.h.bf16 %v15752_v19  ;;  %v15754_v55 = vunpack.c.l.bf16 %v15750_v40  ;;  %v15758_v11 = vld [vmem:[#allocation54_spill] sm:$0xff] }
 0x4ec   :  { %1753 = vmatprep.subr.mxu1 %v15712_v3  ;;  %v15755_v10 = vunpack.c.l.bf16 %v15752_v19  ;;  %v15756_v3 = vld [vmem:[#allocation36_spill] sm:$0xff]  ;;  %v15759_v7 = vunpack.c.h.bf16 %v15758_v11 }
 0x4ed   :  { %1754 = vmatpush2.msra.mxu1 %v15714_v6  ;;  %v896_v58 = vmax.f32 %v891_v51, 0.0  ;;  %v15757_v35 = vunpack.c.h.bf16 %v15756_v3  ;;  %v15760_v6 = vunpack.c.l.bf16 %v15756_v3  ;;  %v15761_v51 = vunpack.c.l.bf16 %v15758_v11 }
 0x4ee   :  { %1833 = vmatprep.subr.mxu1 %v15716_v45  ;;  %v15763_v45 = vunpack.c.h.bf16 %v15762_v26 }
 0x4ef   :  { %1684 = vmatprep.mubr.f32.mxu0 %v896_v58  ;;  %1755 = vmatprep.mubr.f32.mxu1 %v896_v58 }
 0x4f0   :  { %1685 = vmatmul.mubr.f32.vlgmr.msra.gmra.mxu0 %v10598_v9  ;;  %1756 = vmatmul.mubr.f32.vlgmr.msra.gmra.mxu1 %v10598_v9 }
 0x4f1   :  { %1763 = vmatpush1.msra.mxu0 %v15718_v15  ;;  %1834 = vmatpush1.msra.mxu1 %v15719_v4  ;;  %v15766_v4 = vunpack.c.l.bf16 %v15762_v26 }
 0x4f2   :  { %1764 = vmatprep.subr.mxu0 %v15721_v38  ;;  %1826 = vmatprep.mubr.f32.mxu0 %v896_v58  ;;  %v15768_v38 = vld [vmem:[#allocation39_spill] sm:$0xff] }
 0x4f3   :  { %1835 = vmatprep.subr.mxu1 %v15723_v28  ;;  %1897 = vmatprep.mubr.f32.mxu1 %v896_v58  ;;  %v15764_v58 = vld [vmem:[#allocation56_spill] sm:$0xff]  ;;  %v15769_v48 = vunpack.c.h.bf16 %v15768_v38  ;;  %v15770_v28 = vld [vmem:[#allocation58_spill] sm:$0xff] }
 0x4f4   :  { %1765 = vmatpush1.msra.mxu0 %v15724_v8  ;;  %1836 = vmatpush1.msra.mxu1 %v15725_v24  ;;  %v15765_v15 = vunpack.c.h.bf16 %v15764_v58  ;;  %v15767_v5 = vunpack.c.l.bf16 %v15764_v58  ;;  %v15771_v8 = vunpack.c.h.bf16 %v15770_v28  ;;  %v15772_v24 = vunpack.c.l.bf16 %v15768_v38 }
 0x4f5   :  { %1766 = vmatprep.subr.mxu0 %v15727_v33  ;;  %1837 = vmatprep.subr.mxu1 %v15729_v50  ;;  %v15773_v37 = vunpack.c.l.bf16 %v15770_v28  ;;  %v15774_v33 = vld [vmem:[#allocation41_spill] sm:$0xff]  ;;  %v15776_v50 = vld [vmem:[#allocation60_spill] sm:$0xff] }
 0x4f6   :  { %1767 = vmatpush1.msra.mxu0 %v15730_v53  ;;  %1838 = vmatpush1.msra.mxu1 %v15731_v18  ;;  %v15775_v1 = vunpack.c.h.bf16 %v15774_v33  ;;  %v15777_v53 = vunpack.c.h.bf16 %v15776_v50  ;;  %v15778_v18 = vunpack.c.l.bf16 %v15774_v33  ;;  %v15779_v62 = vunpack.c.l.bf16 %v15776_v50 }
 0x4f7   :  { %1768 = vmatprep.subr.mxu0 %v15733_v20  ;;  %1839 = vmatprep.subr.mxu1 %v15735_v43  ;;  %v15780_v20 = vld [vmem:[#allocation43_spill] sm:$0xff]  ;;  %v15782_v43 = vld [vmem:[#allocation62_spill] sm:$0xff] }
 0x4f8   :  { %1769 = vmatpush1.msra.mxu0 %v15736_v63  ;;  %1840 = vmatpush1.msra.mxu1 %v15737_v14  ;;  %v15781_v16 = vunpack.c.h.bf16 %v15780_v20  ;;  %v15783_v63 = vunpack.c.h.bf16 %v15782_v43  ;;  %v15784_v14 = vunpack.c.l.bf16 %v15780_v20  ;;  %v15785_v56 = vunpack.c.l.bf16 %v15782_v43 }
 0x4f9   :  { %1770 = vmatprep.subr.mxu0 %v15739_v59  ;;  %1841 = vmatprep.subr.mxu1 %v15741_v36  ;;  %v15786_v59 = vld [vmem:[#allocation45_spill] sm:$0xff]  ;;  %v15788_v36 = vld [vmem:[#allocation64_spill] sm:$0xff] }
 0x4fa   :  { %1771 = vmatpush1.msra.mxu0 %v15742_v30  ;;  %1842 = vmatpush1.msra.mxu1 %v15743_v21  ;;  %v15787_v57 = vunpack.c.h.bf16 %v15786_v59  ;;  %v15789_v30 = vunpack.c.h.bf16 %v15788_v36  ;;  %v15790_v21 = vunpack.c.l.bf16 %v15786_v59  ;;  %v15791_v60 = vunpack.c.l.bf16 %v15788_v36 }
 0x4fb   :  { %1772 = vmatprep.subr.mxu0 %v15745_v29  ;;  %1843 = vmatprep.subr.mxu1 %v15747_v49  ;;  %v15792_v29 = vld [vmem:[#allocation47_spill] sm:$0xff]  ;;  %v15794_v49 = vld [vmem:[#allocation66_spill] sm:$0xff] }
 0x4fc   :  { %1773 = vmatpush1.msra.mxu0 %v15748_v54  ;;  %1844 = vmatpush1.msra.mxu1 %v15749_v42  ;;  %v15793_v61 = vunpack.c.h.bf16 %v15792_v29  ;;  %v15795_v54 = vunpack.c.h.bf16 %v15794_v49  ;;  %v15796_v42 = vunpack.c.l.bf16 %v15792_v29  ;;  %v15797_v40 = vunpack.c.l.bf16 %v15794_v49 }
 0x4fd   :  { %1774 = vmatprep.subr.mxu0 %v15751_v31  ;;  %1845 = vmatprep.subr.mxu1 %v15753_v0  ;;  %v15798_v31 = vld [vmem:[#allocation49_spill] sm:$0xff]  ;;  %v15800_v0 = vld [vmem:[#allocation68_spill] sm:$0xff]  ;;  %v15837_v29 = vunpack.c.l.bf16 %v10149_v47  ;;  %v15840_v49 = vunpack.c.h.bf16 %v10171_v12 }
 0x4fe   :  { %1775 = vmatpush1.msra.mxu0 %v15754_v55  ;;  %1846 = vmatpush1.msra.mxu1 %v15755_v10  ;;  %v15799_v19 = vunpack.c.h.bf16 %v15798_v31  ;;  %v15801_v55 = vunpack.c.h.bf16 %v15800_v0  ;;  %v15802_v10 = vunpack.c.l.bf16 %v15798_v31  ;;  %v15803_v3 = vunpack.c.l.bf16 %v15800_v0 }
 0x4ff   :  { %1776 = vmatprep.subr.mxu0 %v15757_v35  ;;  %1847 = vmatprep.subr.mxu1 %v15759_v7  ;;  %v15804_v35 = vld [vmem:[#allocation51_spill] sm:$0xff]  ;;  %v15806_v7 = vld [vmem:[#allocation70_spill] sm:$0xff]  ;;  %v15847_v0 = vunpack.c.l.bf16 %v10193_v39 }
 0x500   :  { %1777 = vmatpush1.msra.mxu0 %v15760_v6  ;;  %1848 = vmatpush1.msra.mxu1 %v15761_v51  ;;  %v15805_v11 = vunpack.c.h.bf16 %v15804_v35  ;;  %v15807_v6 = vunpack.c.h.bf16 %v15806_v7  ;;  %v15808_v51 = vunpack.c.l.bf16 %v15804_v35  ;;  %v15809_v26 = vunpack.c.l.bf16 %v15806_v7 }
 0x501   :  { %1778 = vmatprep.subr.mxu0 %v15763_v45  ;;  %1849 = vmatprep.subr.mxu1 %v15765_v15  ;;  %v15810_v45 = vld [vmem:[#allocation53_spill] sm:$0xff]  ;;  %v15812_v15 = vld [vmem:[#allocation72_spill] sm:$0xff]  ;;  %v15852_v35 = vunpack.c.l.bf16 %v10210_v2 }
 0x502   :  { %1779 = vmatpush1.msra.mxu0 %v15766_v4  ;;  %1850 = vmatpush1.msra.mxu1 %v15767_v5  ;;  %v15811_v58 = vunpack.c.h.bf16 %v15810_v45  ;;  %v15813_v4 = vunpack.c.h.bf16 %v15812_v15  ;;  %v15814_v5 = vunpack.c.l.bf16 %v15810_v45  ;;  %v15815_v38 = vunpack.c.l.bf16 %v15812_v15 }
 0x503   :  { %1780 = vmatprep.subr.mxu0 %v15769_v48  ;;  %1851 = vmatprep.subr.mxu1 %v15771_v8  ;;  %v15816_v48 = vld [vmem:[#allocation55_spill] sm:$0xff]  ;;  %v15818_v8 = vld [vmem:[#allocation74_spill] sm:$0xff]  ;;  %v15862_v15 = vunpack.c.l.bf16 %v10242_v52 }
 0x504   :  { %1781 = vmatpush1.msra.mxu0 %v15772_v24  ;;  %1852 = vmatpush1.msra.mxu1 %v15773_v37  ;;  %v15817_v28 = vunpack.c.h.bf16 %v15816_v48  ;;  %v15819_v24 = vunpack.c.h.bf16 %v15818_v8  ;;  %v15820_v37 = vunpack.c.l.bf16 %v15816_v48  ;;  %v15821_v33 = vunpack.c.l.bf16 %v15818_v8 }
 0x505   :  { %1782 = vmatprep.subr.mxu0 %v15775_v1  ;;  %1853 = vmatprep.subr.mxu1 %v15777_v53  ;;  %v15822_v1 = vld [vmem:[#allocation57_spill] sm:$0xff]  ;;  %v15824_v53 = vld [vmem:[#allocation76_spill] sm:$0xff]  ;;  %v15867_v48 = vunpack.c.l.bf16 %v10257_v13 }
 0x506   :  { %1783 = vmatpush1.msra.mxu0 %v15778_v18  ;;  %1854 = vmatpush1.msra.mxu1 %v15779_v62  ;;  %v15823_v50 = vunpack.c.h.bf16 %v15822_v1  ;;  %v15825_v18 = vunpack.c.h.bf16 %v15824_v53  ;;  %v15826_v62 = vunpack.c.l.bf16 %v15822_v1  ;;  %v15827_v20 = vunpack.c.l.bf16 %v15824_v53  ;;  %v15874_v1 = vld [vmem:[#allocation77_spill] sm:$0xff] }
 0x507   :  { %1784 = vmatprep.subr.mxu0 %v15781_v16  ;;  %1855 = vmatprep.subr.mxu1 %v15783_v63  ;;  %v15828_v16 = vld [vmem:[#allocation59_spill] sm:$0xff]  ;;  %v15830_v63 = vunpack.c.h.bf16 %v10127_v23  ;;  %v15876_v53 = vunpack.c.h.bf16 %v10284_v32 }
 0x508   :  { %1785 = vmatpush1.msra.mxu0 %v15784_v14  ;;  %1856 = vmatpush1.msra.mxu1 %v15785_v56  ;;  %v15829_v43 = vunpack.c.h.bf16 %v15828_v16  ;;  %v15831_v14 = vunpack.c.l.bf16 %v15828_v16  ;;  %v15832_v56 = vunpack.c.l.bf16 %v10127_v23 }
 0x509   :  { %1786 = vmatprep.subr.mxu0 %v15787_v57  ;;  %1857 = vmatprep.subr.mxu1 %v15789_v30  ;;  %v15833_v57 = vld [vmem:[#allocation61_spill] sm:$0xff]  ;;  %v15835_v30 = vunpack.c.h.bf16 %v10149_v47  ;;  %v15845_v47 = vunpack.c.h.bf16 %v10193_v39 }
 0x50a   :  { %1787 = vmatpush1.msra.mxu0 %v15790_v21  ;;  %1858 = vmatpush1.msra.mxu1 %v15791_v60  ;;  %v15834_v36 = vunpack.c.h.bf16 %v15833_v57  ;;  %v15836_v21 = vunpack.c.l.bf16 %v15833_v57  ;;  %v15886_v57 = vunpack.c.h.bf16 %v10314_v25 }
 0x50b   :  { %1788 = vmatprep.subr.mxu0 %v15793_v61  ;;  %1859 = vmatprep.subr.mxu1 %v15795_v54  ;;  %v15838_v61 = vld [vmem:[#allocation63_spill] sm:$0xff] }
 0x50c   :  { %1789 = vmatpush1.msra.mxu0 %v15796_v42  ;;  %1860 = vmatpush1.msra.mxu1 %v15797_v40  ;;  %v15839_v23 = vunpack.c.h.bf16 %v15838_v61  ;;  %v15841_v54 = vunpack.c.l.bf16 %v15838_v61  ;;  %v15842_v42 = vunpack.c.l.bf16 %v10171_v12  ;;  %v15843_v40 = vld [vmem:[#allocation65_spill] sm:$0xff] }
 0x50d   :  { %1790 = vmatprep.subr.mxu0 %v15799_v19  ;;  %1861 = vmatprep.subr.mxu1 %v15801_v55  ;;  %v15844_v31 = vunpack.c.h.bf16 %v15843_v40  ;;  %v15846_v19 = vunpack.c.l.bf16 %v15843_v40  ;;  %v15848_v55 = vld [vmem:[#allocation67_spill] sm:$0xff] }
 0x50e   :  { %1791 = vmatpush1.msra.mxu0 %v15802_v10  ;;  %1862 = vmatpush1.msra.mxu1 %v15803_v3  ;;  %v15849_v10 = vunpack.c.h.bf16 %v15848_v55  ;;  %v15850_v3 = vunpack.c.h.bf16 %v10210_v2  ;;  %v15851_v12 = vunpack.c.l.bf16 %v15848_v55 }
 0x50f   :  { %1792 = vmatprep.subr.mxu0 %v15805_v11  ;;  %1863 = vmatprep.subr.mxu1 %v15807_v6  ;;  %v15853_v11 = vld [vmem:[#allocation69_spill] sm:$0xff]  ;;  %v15855_v6 = vunpack.c.h.bf16 %v10227_v44 }
 0x510   :  { %1793 = vmatpush1.msra.mxu0 %v15808_v51  ;;  %1864 = vmatpush1.msra.mxu1 %v15809_v26  ;;  %v15854_v7 = vunpack.c.h.bf16 %v15853_v11  ;;  %v15856_v39 = vunpack.c.l.bf16 %v15853_v11  ;;  %v15857_v51 = vunpack.c.l.bf16 %v10227_v44  ;;  %v15858_v26 = vld [vmem:[#allocation71_spill] sm:$0xff] }
 0x511   :  { %1794 = vmatprep.subr.mxu0 %v15811_v58  ;;  %1865 = vmatprep.subr.mxu1 %v15813_v4  ;;  %v15859_v45 = vunpack.c.h.bf16 %v15858_v26  ;;  %v15860_v58 = vunpack.c.h.bf16 %v10242_v52  ;;  %v15861_v2 = vunpack.c.l.bf16 %v15858_v26  ;;  %v15863_v4 = vld [vmem:[#allocation73_spill] sm:$0xff] }
 0x512   :  { %1795 = vmatpush2.msra.mxu0 %v15814_v5  ;;  %1866 = vmatpush2.msra.mxu1 %v15815_v38  ;;  %v15864_v5 = vunpack.c.h.bf16 %v15863_v4  ;;  %v15865_v38 = vunpack.c.h.bf16 %v10257_v13  ;;  %v15866_v44 = vunpack.c.l.bf16 %v15863_v4 }
 0x513   :  { %1796 = vmatprep.subr.mxu0 %v15817_v28  ;;  %1867 = vmatprep.subr.mxu1 %v15819_v24  ;;  %v15868_v28 = vld [vmem:[#allocation75_spill] sm:$0xff]  ;;  %v15870_v24 = vld [vmem:[#allocation81_spill] sm:$0xff] }
 0x514   :  { %1797 = vmatpush2.msra.mxu0 %v15820_v37  ;;  %1868 = vmatpush2.msra.mxu1 %v15821_v33  ;;  %v15869_v8 = vunpack.c.h.bf16 %v15868_v28  ;;  %v15871_v37 = vunpack.c.h.bf16 %v15870_v24  ;;  %v15872_v52 = vunpack.c.l.bf16 %v15868_v28  ;;  %v15873_v33 = vunpack.c.l.bf16 %v15870_v24 }
 0x515   :  { %1798 = vmatprep.subr.mxu0 %v15823_v50  ;;  %1869 = vmatprep.subr.mxu1 %v15825_v18  ;;  %v15875_v50 = vunpack.c.h.bf16 %v15874_v1  ;;  %v15877_v18 = vunpack.c.l.bf16 %v15874_v1 }
 0x516   :  { %1799 = vmatpush2.msra.mxu0 %v15826_v62  ;;  %1870 = vmatpush2.msra.mxu1 %v15827_v20  ;;  %v15878_v62 = vunpack.c.l.bf16 %v10284_v32  ;;  %v15879_v20 = vld [vmem:[#allocation78_spill] sm:$0xff] }
 0x517   :  { %1800 = vmatprep.subr.mxu0 %v15829_v43  ;;  %1871 = vmatprep.subr.mxu1 %v15830_v63  ;;  %v15880_v16 = vunpack.c.h.bf16 %v15879_v20  ;;  %v15881_v63 = vunpack.c.h.bf16 %v10299_v41 }
 0x518   :  { %1801 = vmatpush2.msra.mxu0 %v15831_v14  ;;  %1872 = vmatpush2.msra.mxu1 %v15832_v56  ;;  %v1353_v59 = vpop.f32.mrf.mxu0  ;;  %v15882_v14 = vunpack.c.l.bf16 %v15879_v20  ;;  %v15883_v56 = vunpack.c.l.bf16 %v10299_v41 }
 0x519   :  { %1802 = vmatprep.subr.mxu0 %v15834_v36  ;;  %1873 = vmatprep.subr.mxu1 %v15835_v30  ;;  %v15888_v30 = vld [vmem:[#allocation80_spill] sm:$0xff] }
 0x51a   :  { %1579 = vrot.lane.b32.xlu0 %v1353_v59, %s8315_s6  ;;  %1803 = vmatpush2.msra.mxu0 %v15836_v21  ;;  %v1355_v60 = vpop.f32.mrf.mxu0  ;;  %v15884_v59 = vld [vmem:[#allocation79_spill] sm:$0xff]  ;;  %v15889_v21 = vunpack.c.h.bf16 %v15888_v30  ;;  %v15890_v41 = vunpack.c.l.bf16 %v15888_v30 }
 0x51b   :  { %1874 = vmatpush2.msra.mxu1 %v15837_v29  ;;  %1804 = vmatprep.subr.mxu0 %v15839_v23  ;;  %v15885_v32 = vunpack.c.h.bf16 %v15884_v59  ;;  %v15887_v36 = vunpack.c.l.bf16 %v15884_v59 }
 0x51c   :  { %1875 = vmatprep.subr.mxu1 %v15840_v49  ;;  %1581 = vrot.lane.b32.xlu1 %v1355_v60, %s8315_s6 }
 0x51d   :  { %1805 = vmatpush2.msra.mxu0 %v15841_v54  ;;  %1876 = vmatpush2.msra.mxu1 %v15842_v42 }
 0x51e   :  { %1806 = vmatprep.subr.mxu0 %v15844_v31  ;;  %1877 = vmatprep.subr.mxu1 %v15845_v47 }
 0x51f   :  { %1807 = vmatpush2.msra.mxu0 %v15846_v19  ;;  %1878 = vmatpush2.msra.mxu1 %v15847_v0 }
 0x520   :  { %1808 = vmatprep.subr.mxu0 %v15849_v10  ;;  %1879 = vmatprep.subr.mxu1 %v15850_v3 }
 0x521   :  { %1809 = vmatpush2.msra.mxu0 %v15851_v12  ;;  %1880 = vmatpush2.msra.mxu1 %v15852_v35 }
 0x522   :  { %1810 = vmatprep.subr.mxu0 %v15854_v7  ;;  %1881 = vmatprep.subr.mxu1 %v15855_v6 }
 0x523   :  { %1811 = vmatpush2.msra.mxu0 %v15856_v39  ;;  %1882 = vmatpush2.msra.mxu1 %v15857_v51 }
 0x524   :  { %1812 = vmatprep.subr.mxu0 %v15859_v45  ;;  %1883 = vmatprep.subr.mxu1 %v15860_v58 }
 0x525   :  { %1813 = vmatpush2.msra.mxu0 %v15861_v2  ;;  %1884 = vmatpush2.msra.mxu1 %v15862_v15 }
 0x526   :  { %1814 = vmatprep.subr.mxu0 %v15864_v5  ;;  %1885 = vmatprep.subr.mxu1 %v15865_v38 }
 0x527   :  { %1815 = vmatpush2.msra.mxu0 %v15866_v44  ;;  %1886 = vmatpush2.msra.mxu1 %v15867_v48 }
 0x528   :  { %1816 = vmatprep.subr.mxu0 %v15869_v8  ;;  %1887 = vmatprep.subr.mxu1 %v15871_v37 }
 0x529   :  { %1817 = vmatpush2.msra.mxu0 %v15872_v52  ;;  %1888 = vmatpush2.msra.mxu1 %v15873_v33 }
 0x52a   :  { %1818 = vmatprep.subr.mxu0 %v15875_v50  ;;  %1889 = vmatprep.subr.mxu1 %v15876_v53 }
 0x52b   :  { %1819 = vmatpush2.msra.mxu0 %v15877_v18  ;;  %1890 = vmatpush2.msra.mxu1 %v15878_v62 }
 0x52c   :  { %v1424_v13 = vpop.f32.mrf.mxu1  ;;  %1820 = vmatprep.subr.mxu0 %v15880_v16  ;;  %1891 = vmatprep.subr.mxu1 %v15881_v63 }
 0x52d   :  { %1583 = vrot.lane.b32.xlu0 %v1424_v13, %s8315_s6  ;;  %1821 = vmatpush2.msra.mxu0 %v15882_v14 }
 0x52e   :  { %v1426_v43 = vpop.f32.mrf.mxu1  ;;  %1892 = vmatpush2.msra.mxu1 %v15883_v56  ;;  %1822 = vmatprep.subr.mxu0 %v15885_v32 }
 0x52f   :  { %1585 = vrot.lane.b32.xlu1 %v1426_v43, %s8315_s6  ;;  %1893 = vmatprep.subr.mxu1 %v15886_v57 }
 0x530   :  { %1823 = vmatpush2.msra.mxu0 %v15887_v36  ;;  %1894 = vmatpush2.msra.mxu1 %v1173_v17 }
 0x531   :  { %1824 = vmatprep.subr.mxu0 %v15889_v21  ;;  %1895 = vmatprep.subr.mxu1 %v1166_v22 }
 0x532   :  { %1825 = vmatpush2.msra.mxu0 %v15890_v41  ;;  %1896 = vmatpush2.msra.mxu1 %v1165_v27 }
 0x533   :  { %1827 = vmatmul.mubr.f32.vlgmr.msra.gmra.mxu0 %v10598_v9  ;;  %1898 = vmatmul.mubr.f32.vlgmr.msra.gmra.mxu1 %v10598_v9 }
 0x534   :  { %3468 = vmatprep.mubr.f32.mxu0 %v15717_v34  ;;  %3610 = vmatprep.mubr.f32.mxu1 %v15717_v34 }
 0x55c   :  { %v1495_v25 = vpop.f32.mrf.mxu0 }
 0x55d   :  { %1587 = vrot.lane.b32.xlu0 %v1495_v25, %s8315_s6 }
 0x55e   :  { %v1497_v17 = vpop.f32.mrf.mxu0 }
 0x55f   :  { %1589 = vrot.lane.b32.xlu1 %v1497_v17, %s8315_s6 }
 0x56e   :  { %v1566_v22 = vpop.f32.mrf.mxu1 }
 0x56f   :  { %1591 = vrot.lane.b32.xlu0 %v1566_v22, %s8315_s6 }
 0x570   :  { %v1568_v60 = vpop.f32.mrf.mxu1 }
 0x571   :  { %1593 = vrot.lane.b32.xlu1 %v1568_v60, %s8315_s6 }
 0x58c   :  { %v1580_v46 = vpop.permute.xlu0 %1579 }
 0x58d   :  { %1611 = vst.msk [vmem:[#allocation3] sm:$0xff] %vm899_vm4, %v1580_v46 }
 0x58e   :  { %v1582_v27 = vpop.permute.xlu1 %1581 }
 0x58f   :  { %v10872_v9 = vsel %vm897_vm1, %v1580_v46, %v1582_v27 }
 0x590   :  { %1612 = vst [vmem:[#allocation3 + $0x8] sm:$0xff] %v10872_v9 }
 0x594   :  { %v2477_v29 = vld [vmem:[#allocation3] sm:$0xff] }
 0x595   :  { %2641 = vrot.lane.b32.xlu1 %v2477_v29, %s8305_s24  ;;  %2559 = vrot.lane.b32.xlu0 %v2477_v29, %s8306_s29 }
 0x599   :  { %2838 = vrot.lane.b32.xlu1 %v2477_v29, %s8316_s3  ;;  %2739 = vrot.lane.b32.xlu0 %v2477_v29, %s8317_s23 }
 0x59d   :  { %3036 = vrot.lane.b32.xlu1 %v2477_v29, %s8310_s21  ;;  %2938 = vrot.lane.b32.xlu0 %v2477_v29, %s8311_s22 }
 0x59f   :  { %v1584_v61 = vpop.permute.xlu0 %1583 }
 0x5a0   :  { %v10882_v23 = vsel %vm897_vm1, %v1582_v27, %v1584_v61  ;;  %v15903_v27 = vld [vmem:[#allocation4_spill] sm:$0xff] }
 0x5a1   :  { %1613 = vst [vmem:[#allocation3 + $0x10] sm:$0xff] %v10882_v23  ;;  %v1586_v49 = vpop.permute.xlu1 %1585  ;;  %3216 = vrot.lane.b32.xlu1 %v2477_v29, %s8318_s25  ;;  %3118 = vrot.lane.b32.xlu0 %v2477_v29, %s8309_s20 }
 0x5a2   :  { %v10886_v54 = vsel %vm897_vm1, %v1584_v61, %v1586_v49 }
 0x5a3   :  { %1614 = vst [vmem:[#allocation3 + $0x18] sm:$0xff] %v10886_v54 }
 0x5a5   :  { %4658 = vrot.lane.b32.xlu1 %v2477_v29, %s8319_s26  ;;  %3315 = vrot.lane.b32.xlu0 %v2477_v29, %s8320_s27 }
 0x5a9   :  { %4824 = vrot.lane.b32.xlu1 %v2477_v29, %s8321_s28  ;;  %4576 = vrot.lane.b32.xlu0 %v2477_v29, %s8307_s19 }
 0x5ad   :  { %5895 = vrot.lane.b32.xlu1 %v2477_v29, %s8322_s30  ;;  %4741 = vrot.lane.b32.xlu0 %v2477_v29, %s8323_s10 }
 0x5b0   :  { %v1686_v52 = vpop.f32.mrf.mxu0  ;;  %v1757_v50 = vpop.f32.mrf.mxu1 }
 0x5b1   :  { %5713 = vrot.lane.b32.xlu1 %v2477_v29, %s8324_s13  ;;  %4907 = vrot.lane.b32.xlu0 %v2477_v29, %s8325_s14 }
 0x5b2   :  { %v1688_v53 = vpop.f32.mrf.mxu0  ;;  %v1759_v62 = vpop.f32.mrf.mxu1 }
 0x5b5   :  { %5994 = vrot.lane.b32.xlu0 %v2477_v29, %s8326_s12  ;;  %2561 = vrot.lane.b32.xlu1 %v10872_v9, %s8306_s29 }
 0x5b9   :  { %5796 = vrot.lane.b32.xlu0 %v2477_v29, %s8327_s2  ;;  %2565 = vrot.lane.b32.xlu1 %v10886_v54, %s8306_s29 }
 0x5bd   :  { %5614 = vrot.lane.b32.xlu0 %v2477_v29, %s8328_s16  ;;  %2645 = vrot.lane.b32.xlu1 %v10882_v23, %s8305_s24  ;;  %v15028_v29 = vand.u32 1023, %v15903_v27 }
 0x5bf   :  { %vm11178_vm14 = vcmp.ge.s32.totalorder %v15028_v29, 32 }
 0x5c1   :  { %2741 = vrot.lane.b32.xlu1 %v10872_v9, %s8317_s23  ;;  %2563 = vrot.lane.b32.xlu0 %v10882_v23, %s8306_s29 }
 0x5c5   :  { %2745 = vrot.lane.b32.xlu1 %v10886_v54, %s8317_s23  ;;  %2643 = vrot.lane.b32.xlu0 %v10872_v9, %s8305_s24 }
 0x5c9   :  { %2842 = vrot.lane.b32.xlu1 %v10882_v23, %s8316_s3  ;;  %2647 = vrot.lane.b32.xlu0 %v10886_v54, %s8305_s24 }
 0x5cd   :  { %2940 = vrot.lane.b32.xlu1 %v10872_v9, %s8311_s22  ;;  %2743 = vrot.lane.b32.xlu0 %v10882_v23, %s8317_s23 }
 0x5cf   :  { %v1588_v42 = vpop.permute.xlu0 %1587 }
 0x5d0   :  { %v10921_v40 = vsel %vm897_vm1, %v1586_v49, %v1588_v42  ;;  %v15905_v49 = vld [vmem:[#allocation5_spill] sm:$0xff] }
 0x5d1   :  { %1615 = vst [vmem:[#allocation3 + $0x20] sm:$0xff] %v10921_v40  ;;  %v1590_v31 = vpop.permute.xlu1 %1589  ;;  %2944 = vrot.lane.b32.xlu1 %v10886_v54, %s8311_s22  ;;  %2840 = vrot.lane.b32.xlu0 %v10872_v9, %s8316_s3 }
 0x5d2   :  { %v10929_v47 = vsel %vm897_vm1, %v1588_v42, %v1590_v31 }
 0x5d3   :  { %1616 = vst [vmem:[#allocation3 + $0x28] sm:$0xff] %v10929_v47 }
 0x5d5   :  { %3040 = vrot.lane.b32.xlu1 %v10882_v23, %s8310_s21  ;;  %2844 = vrot.lane.b32.xlu0 %v10886_v54, %s8316_s3 }
 0x5d9   :  { %3120 = vrot.lane.b32.xlu1 %v10872_v9, %s8309_s20  ;;  %2942 = vrot.lane.b32.xlu0 %v10882_v23, %s8311_s22 }
 0x5dd   :  { %3124 = vrot.lane.b32.xlu1 %v10886_v54, %s8309_s20  ;;  %3038 = vrot.lane.b32.xlu0 %v10872_v9, %s8310_s21 }
 0x5e1   :  { %v1592_v19 = vpop.permute.xlu0 %1591  ;;  %3220 = vrot.lane.b32.xlu1 %v10882_v23, %s8318_s25  ;;  %3042 = vrot.lane.b32.xlu0 %v10886_v54, %s8310_s21 }
 0x5e2   :  { %v10949_v0 = vsel %vm897_vm1, %v1590_v31, %v1592_v19 }
 0x5e3   :  { %1617 = vst [vmem:[#allocation3 + $0x30] sm:$0xff] %v10949_v0  ;;  %v1594_v55 = vpop.permute.xlu1 %1593 }
 0x5e4   :  { %v10953_v10 = vsel %vm897_vm1, %v1592_v19, %v1594_v55  ;;  %1619 = vst.msk [vmem:[#allocation3 + $0x40] sm:$0xff] %vm897_vm1, %v1594_v55 }
 0x5e5   :  { %1618 = vst [vmem:[#allocation3 + $0x38] sm:$0xff] %v10953_v10  ;;  %3317 = vrot.lane.b32.xlu1 %v10872_v9, %s8320_s27  ;;  %3122 = vrot.lane.b32.xlu0 %v10882_v23, %s8309_s20 }
 0x5e9   :  { %3321 = vrot.lane.b32.xlu1 %v10886_v54, %s8320_s27  ;;  %3218 = vrot.lane.b32.xlu0 %v10872_v9, %s8318_s25 }
 0x5ed   :  { %4578 = vrot.lane.b32.xlu1 %v10872_v9, %s8307_s19  ;;  %3222 = vrot.lane.b32.xlu0 %v10886_v54, %s8318_s25 }
 0x5f1   :  { %4582 = vrot.lane.b32.xlu1 %v10886_v54, %s8307_s19  ;;  %3319 = vrot.lane.b32.xlu0 %v10882_v23, %s8320_s27 }
 0x5f5   :  { %4662 = vrot.lane.b32.xlu1 %v10882_v23, %s8319_s26  ;;  %4580 = vrot.lane.b32.xlu0 %v10882_v23, %s8307_s19 }
 0x5f9   :  { %4743 = vrot.lane.b32.xlu1 %v10872_v9, %s8323_s10  ;;  %4660 = vrot.lane.b32.xlu0 %v10872_v9, %s8319_s26 }
 0x5fd   :  { %4747 = vrot.lane.b32.xlu1 %v10886_v54, %s8323_s10  ;;  %4664 = vrot.lane.b32.xlu0 %v10886_v54, %s8319_s26 }
 0x601   :  { %4828 = vrot.lane.b32.xlu1 %v10882_v23, %s8321_s28  ;;  %4745 = vrot.lane.b32.xlu0 %v10882_v23, %s8323_s10 }
 0x605   :  { %4911 = vrot.lane.b32.xlu1 %v10882_v23, %s8325_s14  ;;  %4826 = vrot.lane.b32.xlu0 %v10872_v9, %s8321_s28 }
 0x607   :  { %v10997_v3 = vpop.permute.xlu1 %2641  ;;  %v10999_v12 = vpop.permute.xlu0 %2559 }
 0x608   :  { %15891 = vst [vmem:[#allocation19_spill] sm:$0xff] %v10999_v12 }
 0x609   :  { %5998 = vrot.lane.b32.xlu1 %v10882_v23, %s8326_s12  ;;  %4830 = vrot.lane.b32.xlu0 %v10886_v54, %s8321_s28 }
 0x60b   :  { %v11005_v35 = vpop.permute.xlu1 %2838  ;;  %v11007_v11 = vpop.permute.xlu0 %2739 }
 0x60d   :  { %5897 = vrot.lane.b32.xlu1 %v10872_v9, %s8322_s30  ;;  %4909 = vrot.lane.b32.xlu0 %v10872_v9, %s8325_s14 }
 0x60f   :  { %v11013_v7 = vpop.permute.xlu1 %3036  ;;  %v11015_v6 = vpop.permute.xlu0 %2938 }
 0x611   :  { %5901 = vrot.lane.b32.xlu1 %v10886_v54, %s8322_s30  ;;  %4913 = vrot.lane.b32.xlu0 %v10886_v54, %s8325_s14 }
 0x613   :  { %v11021_v39 = vpop.permute.xlu1 %3216  ;;  %v11023_v51 = vpop.permute.xlu0 %3118 }
 0x615   :  { %5800 = vrot.lane.b32.xlu1 %v10882_v23, %s8327_s2  ;;  %5996 = vrot.lane.b32.xlu0 %v10872_v9, %s8326_s12 }
 0x617   :  { %v11029_v26 = vpop.permute.xlu1 %4658  ;;  %v11031_v45 = vpop.permute.xlu0 %3315 }
 0x618   :  { %15892 = vst [vmem:[#allocation6_spill] sm:$0xff] %v11029_v26 }
 0x619   :  { %5715 = vrot.lane.b32.xlu1 %v10872_v9, %s8324_s13  ;;  %6000 = vrot.lane.b32.xlu0 %v10886_v54, %s8326_s12 }
 0x61b   :  { %v11037_v58 = vpop.permute.xlu1 %4824  ;;  %v11039_v2 = vpop.permute.xlu0 %4576 }
 0x61c   :  { %15893 = vst [vmem:[#allocation20_spill] sm:$0xff] %v11037_v58  ;;  %15894 = vst [vmem:[#allocation7_spill] sm:$0xff] %v11039_v2 }
 0x61d   :  { %5719 = vrot.lane.b32.xlu1 %v10886_v54, %s8324_s13  ;;  %5899 = vrot.lane.b32.xlu0 %v10882_v23, %s8322_s30 }
 0x61f   :  { %v11045_v15 = vpop.permute.xlu1 %5895  ;;  %v11047_v4 = vpop.permute.xlu0 %4741 }
 0x620   :  { %15895 = vst [vmem:[#allocation21_spill] sm:$0xff] %v11045_v15  ;;  %15896 = vst [vmem:[#allocation8_spill] sm:$0xff] %v11047_v4 }
 0x621   :  { %5618 = vrot.lane.b32.xlu1 %v10882_v23, %s8328_s16  ;;  %5798 = vrot.lane.b32.xlu0 %v10872_v9, %s8327_s2 }
 0x623   :  { %v11053_v5 = vpop.permute.xlu1 %5713  ;;  %v11055_v38 = vpop.permute.xlu0 %4907 }
 0x624   :  { %15897 = vst [vmem:[#allocation22_spill] sm:$0xff] %v11053_v5  ;;  %15898 = vst [vmem:[#allocation9_spill] sm:$0xff] %v11055_v38 }
 0x625   :  { %7034 = vrot.lane.b32.xlu1 %v10882_v23, %s8316_s3  ;;  %5802 = vrot.lane.b32.xlu0 %v10886_v54, %s8327_s2 }
 0x627   :  { %v11061_v44 = vpop.permute.xlu1 %2561  ;;  %v11063_v48 = vpop.permute.xlu0 %5994 }
 0x628   :  { %15899 = vst [vmem:[#allocation23_spill] sm:$0xff] %v11061_v44  ;;  %15900 = vst [vmem:[#allocation10_spill] sm:$0xff] %v11063_v48 }
 0x629   :  { %7032 = vrot.lane.b32.xlu1 %v10872_v9, %s8316_s3  ;;  %5717 = vrot.lane.b32.xlu0 %v10882_v23, %s8324_s13 }
 0x62b   :  { %v11069_v28 = vpop.permute.xlu1 %2565  ;;  %v11071_v8 = vpop.permute.xlu0 %5796 }
 0x62c   :  { %15901 = vst [vmem:[#allocation24_spill] sm:$0xff] %v11071_v8 }
 0x62d   :  { %6938 = vrot.lane.b32.xlu1 %v10886_v54, %s8317_s23  ;;  %5616 = vrot.lane.b32.xlu0 %v10872_v9, %s8328_s16 }
 0x62f   :  { %v11077_v24 = vpop.permute.xlu1 %2645  ;;  %v11079_v37 = vpop.permute.xlu0 %5614 }
 0x630   :  { %15902 = vst [vmem:[#allocation11_spill] sm:$0xff] %v11079_v37 }
 0x631   :  { %6838 = vrot.lane.b32.xlu1 %v10882_v23, %s8305_s24  ;;  %5620 = vrot.lane.b32.xlu0 %v10886_v54, %s8328_s16 }
 0x633   :  { %v11085_v33 = vpop.permute.xlu1 %2741  ;;  %v11087_v1 = vpop.permute.xlu0 %2563 }
 0x635   :  { %1914 = vrot.lane.b32.xlu1 %v1688_v53, %s8315_s6  ;;  %7036 = vrot.lane.b32.xlu0 %v10886_v54, %s8316_s3  ;;  %v11170_v54 = vand.u32 31, %v15905_v49 }
 0x637   :  { %v11092_v13 = vpop.permute.xlu1 %2745  ;;  %v11094_v18 = vpop.permute.xlu0 %2643  ;;  %vm15027_vm2 = vcmp.lt.s32.totalorder %v11170_v54, 30  ;;  %vm15025_vm5 = vcmp.lt.s32.totalorder %v11170_v54, 31 }
 0x639   :  { %1918 = vrot.lane.b32.xlu1 %v1759_v62, %s8315_s6  ;;  %6936 = vrot.lane.b32.xlu0 %v10882_v23, %s8317_s23 }
 0x63b   :  { %v11099_v20 = vpop.permute.xlu1 %2842  ;;  %v11101_v16 = vpop.permute.xlu0 %2647 }
 0x63d   :  { %6934 = vrot.lane.b32.xlu0 %v10872_v9, %s8317_s23  ;;  %2649 = vrot.lane.b32.xlu1 %v10921_v40, %s8305_s24  ;;  %v11162_v9 = vand.u32 31, %v15903_v27 }
 0x63f   :  { %v11107_v43 = vpop.permute.xlu1 %2940  ;;  %v11109_v63 = vpop.permute.xlu0 %2743  ;;  %vm15023_vm0 = vcmp.lt.s32.totalorder %v11162_v9, 30  ;;  %vm15024_vm9 = vcmp.lt.s32.totalorder %v11162_v9, 31 }
 0x640   :  { %vm3299_vm3 = vmand %vm11178_vm14, %vm15023_vm0  ;;  %vm15026_vm0 = vcmp.ge.s32.totalorder %v11162_v9, 1 }
 0x641   :  { %1912 = vrot.lane.b32.xlu0 %v1686_v52, %s8315_s6  ;;  %2846 = vrot.lane.b32.xlu1 %v10921_v40, %s8316_s3  ;;  %vm3200_vm7 = vmand %vm11178_vm14, %vm15024_vm9  ;;  %vm15059_vm9 = vcmp.ge.s32.totalorder %v11162_v9, 2 }
 0x643   :  { %v11114_v14 = vpop.permute.xlu1 %2944  ;;  %v11116_v56 = vpop.permute.xlu0 %2840 }
 0x645   :  { %1916 = vrot.lane.b32.xlu0 %v1757_v50, %s8315_s6  ;;  %3044 = vrot.lane.b32.xlu1 %v10921_v40, %s8310_s21 }
 0x647   :  { %v11121_v59 = vpop.permute.xlu1 %3040  ;;  %v11123_v32 = vpop.permute.xlu0 %2844 }
 0x649   :  { %3224 = vrot.lane.b32.xlu1 %v10921_v40, %s8318_s25  ;;  %2567 = vrot.lane.b32.xlu0 %v10921_v40, %s8306_s29 }
 0x64b   :  { %v3121_v57 = vpop.permute.xlu1 %3120  ;;  %v11129_v36 = vpop.permute.xlu0 %2942 }
 0x64c   :  { %v3152_v49 = vsel %vm710_vm11, %v11023_v51, %v3121_v57 }
 0x64d   :  { %4666 = vrot.lane.b32.xlu1 %v10921_v40, %s8319_s26  ;;  %2747 = vrot.lane.b32.xlu0 %v10921_v40, %s8317_s23 }
 0x64f   :  { %v11135_v30 = vpop.permute.xlu1 %3124  ;;  %v3039_v21 = vpop.permute.xlu0 %3038 }
 0x650   :  { %v3070_v51 = vsel %vm683_vm6, %v11013_v7, %v3039_v21  ;;  %v2972_v7 = vsel %vm660_vm8, %v11015_v6, %v11107_v43 }
 0x651   :  { %4832 = vrot.lane.b32.xlu1 %v10921_v40, %s8321_s28  ;;  %2946 = vrot.lane.b32.xlu0 %v10921_v40, %s8311_s22 }
 0x653   :  { %v11141_v41 = vpop.permute.xlu1 %3220  ;;  %v11143_v25 = vpop.permute.xlu0 %3042 }
 0x655   :  { %4915 = vrot.lane.b32.xlu1 %v10921_v40, %s8325_s14  ;;  %3126 = vrot.lane.b32.xlu0 %v10921_v40, %s8309_s20 }
 0x657   :  { %v3318_v17 = vpop.permute.xlu1 %3317  ;;  %v11149_v22 = vpop.permute.xlu0 %3122 }
 0x658   :  { %v3350_v52 = vsel %vm3349_vm12, %v11031_v45, %v3318_v17 }
 0x659   :  { %6002 = vrot.lane.b32.xlu1 %v10921_v40, %s8326_s12  ;;  %3323 = vrot.lane.b32.xlu0 %v10921_v40, %s8320_s27 }
 0x65b   :  { %v11155_v60 = vpop.permute.xlu1 %3321  ;;  %v3219_v46 = vpop.permute.xlu0 %3218 }
 0x65c   :  { %v3252_v53 = vsel %vm3250_vm10, %v3219_v46, %v11141_v41  ;;  %v3251_v45 = vsel %vm3250_vm10, %v11021_v39, %v3219_v46  ;;  %v3071_v46 = vsel %vm683_vm6, %v3039_v21, %v11121_v59 }
 0x65d   :  { %5804 = vrot.lane.b32.xlu1 %v10921_v40, %s8327_s2  ;;  %4584 = vrot.lane.b32.xlu0 %v10921_v40, %s8307_s19 }
 0x65f   :  { %v11165_v61 = vpop.permute.xlu1 %4578  ;;  %v11167_v23 = vpop.permute.xlu0 %3222 }
 0x660   :  { %15904 = vst [vmem:[#allocation26_spill] sm:$0xff] %v11165_v61 }
 0x661   :  { %5622 = vrot.lane.b32.xlu1 %v10921_v40, %s8328_s16  ;;  %4749 = vrot.lane.b32.xlu0 %v10921_v40, %s8323_s10 }
 0x663   :  { %v11183_v31 = vpop.permute.xlu1 %4582  ;;  %v11185_v19 = vpop.permute.xlu0 %3319 }
 0x664   :  { %15908 = vst [vmem:[#allocation28_spill] sm:$0xff] %v11183_v31  ;;  %v3351_v55 = vsel %vm3349_vm12, %v3318_v17, %v11185_v19  ;;  %v3153_v17 = vsel %vm710_vm11, %v3121_v57, %v11149_v22  ;;  %v2973_v57 = vsel %vm660_vm8, %v11107_v43, %v11129_v36  ;;  %v15947_v31 = vld [vmem:[#allocation16_spill] sm:$0xff] }
 0x665   :  { %7038 = vrot.lane.b32.xlu1 %v10921_v40, %s8316_s3  ;;  %5903 = vrot.lane.b32.xlu0 %v10921_v40, %s8322_s30  ;;  %v11450_v26 = vand.u32 31, %v15947_v31 }
 0x666   :  { %7827 = vmatprep.subr.msk.mxu0 %vm15027_vm2, %v3351_v55  ;;  %vm3401_vm2 = vcmask 326656  }
 0x667   :  { %7828 = vmatpush1.msk.msra.mxu0 %vm3299_vm3, %v3350_v52  ;;  %v11208_v50 = vpop.permute.xlu1 %4662  ;;  %v11212_v62 = vpop.permute.xlu0 %4580  ;;  %vm15060_vm3 = vcmp.ge.s32.totalorder %v11170_v54, 1  ;;  %v15915_v52 = vld [vmem:[#allocation13_spill] sm:$0xff] }
 0x668   :  { %15909 = vst [vmem:[#allocation30_spill] sm:$0xff] %v11208_v50  ;;  %15910 = vst [vmem:[#allocation33_spill] sm:$0xff] %v11212_v62  ;;  %7829 = vmatprep.subr.msk.mxu0 %vm15025_vm5, %v3252_v53  ;;  %vm15058_vm5 = vcmp.ge.s32.totalorder %v11170_v54, 2 }
 0x669   :  { %7830 = vmatpush1.msk.msra.mxu0 %vm3200_vm7, %v3251_v45  ;;  %2569 = vrot.lane.b32.xlu1 %v10929_v47, %s8306_s29  ;;  %vm3020_vm7 = vmand %vm11178_vm14, %vm15026_vm0 }
 0x66a   :  { %5721 = vrot.lane.b32.xlu0 %v10921_v40, %s8324_s13  ;;  %3430 = vmatprep.subr.mxu0 %v3153_v17  ;;  %vm2922_vm0 = vmand %vm11178_vm14, %vm15059_vm9 }
 0x66b   :  { %7831 = vmatpush1.msk.msra.mxu0 %vm11178_vm14, %v3152_v49  ;;  %v11235_v39 = vpop.permute.xlu1 %4743  ;;  %v11239_v55 = vpop.permute.xlu0 %4660 }
 0x66c   :  { %15911 = vst [vmem:[#allocation35_spill] sm:$0xff] %v11235_v39  ;;  %15912 = vst [vmem:[#allocation37_spill] sm:$0xff] %v11239_v55  ;;  %7832 = vmatprep.subr.msk.mxu0 %vm15060_vm3, %v3071_v46  ;;  %vm15086_vm3 = vcmp.ge.s32.totalorder %v11450_v26, 2 }
 0x66d   :  { %7833 = vmatpush1.msk.msra.mxu0 %vm3020_vm7, %v3070_v51  ;;  %2573 = vrot.lane.b32.xlu1 %v10953_v10, %s8306_s29 }
 0x66e   :  { %6940 = vrot.lane.b32.xlu0 %v10921_v40, %s8317_s23  ;;  %7834 = vmatprep.subr.msk.mxu0 %vm15058_vm5, %v2973_v57  ;;  %vm15088_vm5 = vcmp.ge.s32.totalorder %v11450_v26, 1 }
 0x66f   :  { %7835 = vmatpush1.msk.msra.mxu0 %vm2922_vm0, %v2972_v7  ;;  %v11262_v21 = vpop.permute.xlu1 %4747  ;;  %v11264_v42 = vpop.permute.xlu0 %4664  ;;  %vm15175_vm0 = vcmp.lt.s32.totalorder %v11450_v26, 31 }
 0x670   :  { %15913 = vst [vmem:[#allocation12_spill] sm:$0xff] %v11262_v21  ;;  %15914 = vst [vmem:[#allocation40_spill] sm:$0xff] %v11264_v42  ;;  %7836 = vmatmul.mubr.msk.f32.vlgmr.msra.gmra.mxu0 %vm3401_vm2, %v15915_v52  ;;  %v15949_v42 = vld [vmem:[#allocation17_spill] sm:$0xff] }
 0x671   :  { %2653 = vrot.lane.b32.xlu1 %v10949_v0, %s8305_s24  ;;  %3539 = vmatprep.mubr.f32.mxu0 %v15717_v34 }
 0x672   :  { %2571 = vrot.lane.b32.xlu0 %v10949_v0, %s8306_s29 }
 0x673   :  { %v11273_v40 = vpop.permute.xlu1 %4828  ;;  %v11275_v6 = vpop.permute.xlu0 %4745 }
 0x674   :  { %15916 = vst [vmem:[#allocation25_spill] sm:$0xff] %v11273_v40  ;;  %15917 = vst [vmem:[#allocation42_spill] sm:$0xff] %v11275_v6 }
 0x675   :  { %2749 = vrot.lane.b32.xlu1 %v10929_v47, %s8317_s23 }
 0x676   :  { %2651 = vrot.lane.b32.xlu0 %v10929_v47, %s8305_s24 }
 0x677   :  { %v11281_v43 = vpop.permute.xlu1 %4911  ;;  %v11283_v53 = vpop.permute.xlu0 %4826 }
 0x678   :  { %15918 = vst [vmem:[#allocation27_spill] sm:$0xff] %v11281_v43  ;;  %15919 = vst [vmem:[#allocation44_spill] sm:$0xff] %v11283_v53  ;;  %v1954_v53 = vadd.s32 640, %v15903_v27 }
 0x679   :  { %2753 = vrot.lane.b32.xlu1 %v10953_v10, %s8317_s23 }
 0x67a   :  { %2655 = vrot.lane.b32.xlu0 %v10953_v10, %s8305_s24 }
 0x67b   :  { %v11289_v45 = vpop.permute.xlu1 %5998  ;;  %v11291_v17 = vpop.permute.xlu0 %4830 }
 0x67c   :  { %15920 = vst [vmem:[#allocation29_spill] sm:$0xff] %v11289_v45  ;;  %15921 = vst [vmem:[#allocation46_spill] sm:$0xff] %v11291_v17  ;;  %v1953_v17 = vadd.s32 512, %v15903_v27 }
 0x67d   :  { %2850 = vrot.lane.b32.xlu1 %v10949_v0, %s8316_s3 }
 0x67e   :  { %2751 = vrot.lane.b32.xlu0 %v10949_v0, %s8317_s23 }
 0x67f   :  { %v11297_v49 = vpop.permute.xlu1 %5897  ;;  %v11299_v46 = vpop.permute.xlu0 %4909 }
 0x680   :  { %15922 = vst [vmem:[#allocation31_spill] sm:$0xff] %v11297_v49  ;;  %15923 = vst [vmem:[#allocation48_spill] sm:$0xff] %v11299_v46 }
 0x681   :  { %2948 = vrot.lane.b32.xlu1 %v10929_v47, %s8311_s22 }
 0x682   :  { %2848 = vrot.lane.b32.xlu0 %v10929_v47, %s8316_s3 }
 0x683   :  { %v11305_v51 = vpop.permute.xlu1 %5901  ;;  %v11307_v57 = vpop.permute.xlu0 %4913 }
 0x684   :  { %15924 = vst [vmem:[#allocation32_spill] sm:$0xff] %v11305_v51  ;;  %15925 = vst [vmem:[#allocation50_spill] sm:$0xff] %v11307_v57 }
 0x685   :  { %2952 = vrot.lane.b32.xlu1 %v10953_v10, %s8311_s22 }
 0x686   :  { %2852 = vrot.lane.b32.xlu0 %v10953_v10, %s8316_s3 }
 0x687   :  { %v11313_v7 = vpop.permute.xlu1 %5800  ;;  %v11315_v29 = vpop.permute.xlu0 %5996 }
 0x688   :  { %15926 = vst [vmem:[#allocation34_spill] sm:$0xff] %v11313_v7  ;;  %15927 = vst [vmem:[#allocation52_spill] sm:$0xff] %v11315_v29 }
 0x689   :  { %3048 = vrot.lane.b32.xlu1 %v10949_v0, %s8310_s21 }
 0x68a   :  { %2950 = vrot.lane.b32.xlu0 %v10949_v0, %s8311_s22 }
 0x68b   :  { %v11321_v37 = vpop.permute.xlu1 %5715  ;;  %v11323_v5 = vpop.permute.xlu0 %6000 }
 0x68c   :  { %15928 = vst [vmem:[#allocation36_spill] sm:$0xff] %v11321_v37  ;;  %15929 = vst [vmem:[#allocation54_spill] sm:$0xff] %v11323_v5 }
 0x68d   :  { %3128 = vrot.lane.b32.xlu1 %v10929_v47, %s8309_s20 }
 0x68e   :  { %3046 = vrot.lane.b32.xlu0 %v10929_v47, %s8310_s21 }
 0x68f   :  { %v11329_v8 = vpop.permute.xlu1 %5719  ;;  %v11331_v7 = vpop.permute.xlu0 %5899 }
 0x690   :  { %15930 = vst [vmem:[#allocation38_spill] sm:$0xff] %v11329_v8  ;;  %15931 = vst [vmem:[#allocation56_spill] sm:$0xff] %v11331_v7 }
 0x691   :  { %3132 = vrot.lane.b32.xlu1 %v10953_v10, %s8309_s20 }
 0x692   :  { %3050 = vrot.lane.b32.xlu0 %v10953_v10, %s8310_s21 }
 0x693   :  { %v11337_v51 = vpop.permute.xlu1 %5618  ;;  %v11339_v37 = vpop.permute.xlu0 %5798 }
 0x694   :  { %15932 = vst [vmem:[#allocation39_spill] sm:$0xff] %v11337_v51  ;;  %15933 = vst [vmem:[#allocation58_spill] sm:$0xff] %v11339_v37 }
 0x695   :  { %3228 = vrot.lane.b32.xlu1 %v10949_v0, %s8318_s25 }
 0x696   :  { %3130 = vrot.lane.b32.xlu0 %v10949_v0, %s8309_s20 }
 0x697   :  { %v11345_v15 = vpop.permute.xlu1 %7034  ;;  %v11347_v8 = vpop.permute.xlu0 %5802 }
 0x698   :  { %15934 = vst [vmem:[#allocation41_spill] sm:$0xff] %v11345_v15  ;;  %15935 = vst [vmem:[#allocation60_spill] sm:$0xff] %v11347_v8 }
 0x699   :  { %3325 = vrot.lane.b32.xlu1 %v10929_v47, %s8320_s27 }
 0x69a   :  { %3226 = vrot.lane.b32.xlu0 %v10929_v47, %s8318_s25 }
 0x69b   :  { %v11353_v49 = vpop.permute.xlu1 %7032  ;;  %v11355_v51 = vpop.permute.xlu0 %5717 }
 0x69c   :  { %15936 = vst [vmem:[#allocation43_spill] sm:$0xff] %v11353_v49  ;;  %15937 = vst [vmem:[#allocation62_spill] sm:$0xff] %v11355_v51 }
 0x69d   :  { %3329 = vrot.lane.b32.xlu1 %v10953_v10, %s8320_s27 }
 0x69e   :  { %3230 = vrot.lane.b32.xlu0 %v10953_v10, %s8318_s25 }
 0x69f   :  { %v11361_v37 = vpop.permute.xlu1 %6938  ;;  %v11363_v15 = vpop.permute.xlu0 %5616 }
 0x6a0   :  { %15938 = vst [vmem:[#allocation45_spill] sm:$0xff] %v11361_v37  ;;  %15939 = vst [vmem:[#allocation64_spill] sm:$0xff] %v11363_v15 }
 0x6a1   :  { %4586 = vrot.lane.b32.xlu1 %v10929_v47, %s8307_s19 }
 0x6a2   :  { %3327 = vrot.lane.b32.xlu0 %v10949_v0, %s8320_s27 }
 0x6a3   :  { %v11369_v8 = vpop.permute.xlu1 %6838  ;;  %v11371_v49 = vpop.permute.xlu0 %5620 }
 0x6a4   :  { %15940 = vst [vmem:[#allocation47_spill] sm:$0xff] %v11369_v8  ;;  %15941 = vst [vmem:[#allocation66_spill] sm:$0xff] %v11371_v49 }
 0x6a5   :  { %4590 = vrot.lane.b32.xlu1 %v10953_v10, %s8307_s19 }
 0x6a6   :  { %4588 = vrot.lane.b32.xlu0 %v10949_v0, %s8307_s19 }
 0x6a7   :  { %v1915_v51 = vpop.permute.xlu1 %1914  ;;  %v11377_v37 = vpop.permute.xlu0 %7036 }
 0x6a8   :  { %15942 = vst [vmem:[#allocation49_spill] sm:$0xff] %v11377_v37 }
 0x6a9   :  { %4670 = vrot.lane.b32.xlu1 %v10949_v0, %s8319_s26 }
 0x6aa   :  { %4668 = vrot.lane.b32.xlu0 %v10929_v47, %s8319_s26 }
 0x6ab   :  { %v11383_v15 = vpop.permute.xlu1 %1918  ;;  %v11385_v8 = vpop.permute.xlu0 %6936 }
 0x6ac   :  { %15943 = vst [vmem:[#allocation68_spill] sm:$0xff] %v11385_v8 }
 0x6ad   :  { %4751 = vrot.lane.b32.xlu1 %v10929_v47, %s8323_s10 }
 0x6ae   :  { %4672 = vrot.lane.b32.xlu0 %v10953_v10, %s8319_s26 }
 0x6af   :  { %v11391_v49 = vpop.permute.xlu1 %2649  ;;  %v11393_v7 = vpop.permute.xlu0 %6934 }
 0x6b0   :  { %15944 = vst [vmem:[#allocation51_spill] sm:$0xff] %v11393_v7 }
 0x6b1   :  { %4755 = vrot.lane.b32.xlu1 %v10953_v10, %s8323_s10 }
 0x6b2   :  { %4753 = vrot.lane.b32.xlu0 %v10949_v0, %s8323_s10 }
 0x6b3   :  { %v11399_v37 = vpop.permute.xlu1 %2846  ;;  %v1913_v5 = vpop.permute.xlu0 %1912 }
 0x6b4   :  { %v11402_v8 = vsel %vm897_vm1, %v1913_v5, %v1915_v51  ;;  %1944 = vst.msk [vmem:[#allocation3 + $0x40] sm:$0xff] %vm899_vm4, %v1913_v5  ;;  %vm15286_vm4 = vcmp.lt.s32.totalorder %v11450_v26, 30 }
 0x6b5   :  { %1945 = vst [vmem:[#allocation3 + $0x48] sm:$0xff] %v11402_v8  ;;  %4834 = vrot.lane.b32.xlu1 %v10929_v47, %s8321_s28 }
 0x6b6   :  { %4836 = vrot.lane.b32.xlu0 %v10949_v0, %s8321_s28 }
 0x6b7   :  { %v11410_v7 = vpop.permute.xlu1 %3044  ;;  %v1917_v48 = vpop.permute.xlu0 %1916 }
 0x6b8   :  { %v11413_v29 = vsel %vm897_vm1, %v1915_v51, %v1917_v48  ;;  %v11417_v45 = vsel %vm897_vm1, %v1917_v48, %v11383_v15 }
 0x6b9   :  { %1946 = vst [vmem:[#allocation3 + $0x50] sm:$0xff] %v11413_v29  ;;  %1947 = vst [vmem:[#allocation3 + $0x58] sm:$0xff] %v11417_v45  ;;  %4838 = vrot.lane.b32.xlu1 %v10953_v10, %s8321_s28 }
 0x6ba   :  { %4917 = vrot.lane.b32.xlu0 %v10929_v47, %s8325_s14 }
 0x6bb   :  { %v11425_v5 = vpop.permute.xlu1 %3224  ;;  %v11427_v2 = vpop.permute.xlu0 %2567 }
 0x6bd   :  { %4919 = vrot.lane.b32.xlu1 %v10949_v0, %s8325_s14 }
 0x6be   :  { %4921 = vrot.lane.b32.xlu0 %v10953_v10, %s8325_s14 }
 0x6bf   :  { %v11433_v48 = vpop.permute.xlu1 %4666  ;;  %v11435_v51 = vpop.permute.xlu0 %2747 }
 0x6c0   :  { %15945 = vst [vmem:[#allocation70_spill] sm:$0xff] %v11433_v48  ;;  %v11457_v48 = vand.u32 31, %v15949_v42  ;;  %v3352_v42 = vsel %vm3349_vm12, %v11185_v19, %v11155_v60 }
 0x6c1   :  { %6004 = vrot.lane.b32.xlu1 %v10929_v47, %s8326_s12 }
 0x6c2   :  { %6006 = vrot.lane.b32.xlu0 %v10949_v0, %s8326_s12  ;;  %vm15180_vm14 = vcmp.lt.s32.totalorder %v11457_v48, 30  ;;  %vm15061_vm7 = vcmp.lt.s32.totalorder %v11457_v48, 31  ;;  %vm15087_vm9 = vcmp.ge.s32.totalorder %v11457_v48, 1 }
 0x6c3   :  { %v11441_v61 = vpop.permute.xlu1 %4832  ;;  %v11443_v62 = vpop.permute.xlu0 %2946 }
 0x6c4   :  { %15946 = vst [vmem:[#allocation53_spill] sm:$0xff] %v11441_v61 }
 0x6c5   :  { %6008 = vrot.lane.b32.xlu1 %v10953_v10, %s8326_s12 }
 0x6c6   :  { %5907 = vrot.lane.b32.xlu0 %v10949_v0, %s8322_s30 }
 0x6c7   :  { %v11452_v55 = vpop.permute.xlu1 %4915  ;;  %v11454_v50 = vpop.permute.xlu0 %3126 }
 0x6c8   :  { %15948 = vst [vmem:[#allocation72_spill] sm:$0xff] %v11452_v55 }
 0x6c9   :  { %5905 = vrot.lane.b32.xlu1 %v10929_v47, %s8322_s30 }
 0x6ca   :  { %5808 = vrot.lane.b32.xlu0 %v10949_v0, %s8327_s2 }
 0x6cb   :  { %v11464_v38 = vpop.permute.xlu1 %6002  ;;  %v11466_v46 = vpop.permute.xlu0 %3323 }
 0x6cc   :  { %15950 = vst [vmem:[#allocation55_spill] sm:$0xff] %v11464_v38  ;;  %v3353_v31 = vsel %vm3349_vm12, %v11155_v60, %v11466_v46  ;;  %v3254_v38 = vsel %vm3250_vm10, %v11167_v23, %v11425_v5  ;;  %v3253_v60 = vsel %vm3250_vm10, %v11141_v41, %v11167_v23  ;;  %v3154_v41 = vsel %vm710_vm11, %v11149_v22, %v11135_v30 }
 0x6cd   :  { %5909 = vrot.lane.b32.xlu1 %v10953_v10, %s8322_s30  ;;  %7837 = vmatprep.subr.msk.mxu0 %vm15286_vm4, %v3353_v31  ;;  %v3072_v23 = vsel %vm683_vm6, %v11121_v59, %v11143_v25  ;;  %v2974_v59 = vsel %vm660_vm8, %v11129_v36, %v11114_v14 }
 0x6ce   :  { %5725 = vrot.lane.b32.xlu0 %v10949_v0, %s8324_s13  ;;  %7838 = vmatpush1.msk.msra.mxu0 %vm15180_vm14, %v3352_v42  ;;  %v3155_v42 = vsel %vm710_vm11, %v11135_v30, %v11454_v50 }
 0x6cf   :  { %v11491_v19 = vpop.permute.xlu1 %5804  ;;  %7839 = vmatprep.subr.msk.mxu0 %vm15175_vm0, %v3254_v38  ;;  %v11495_v31 = vpop.permute.xlu0 %4584  ;;  %v3073_v38 = vsel %vm683_vm6, %v11143_v25, %v11410_v7 }
 0x6d0   :  { %15951 = vst [vmem:[#allocation74_spill] sm:$0xff] %v11491_v19  ;;  %15952 = vst [vmem:[#allocation57_spill] sm:$0xff] %v11495_v31  ;;  %7840 = vmatpush1.msk.msra.mxu0 %vm15061_vm7, %v3253_v60  ;;  %vm15084_vm7 = vcmp.ge.s32.totalorder %v11457_v48, 2 }
 0x6d1   :  { %5806 = vrot.lane.b32.xlu1 %v10929_v47, %s8327_s2  ;;  %3501 = vmatprep.subr.mxu0 %v3155_v42 }
 0x6d2   :  { %5626 = vrot.lane.b32.xlu0 %v10949_v0, %s8328_s16  ;;  %3502 = vmatpush1.msra.mxu0 %v3154_v41  ;;  %v2975_v0 = vsel %vm660_vm8, %v11114_v14, %v11443_v62  ;;  %v1828_v14 = vpop.f32.mrf.mxu0  ;;  %v1899_v41 = vpop.f32.mrf.mxu1 }
 0x6d3   :  { %v11518_v60 = vpop.permute.xlu1 %5622  ;;  %7841 = vmatprep.subr.msk.mxu0 %vm15088_vm5, %v3073_v38  ;;  %v11522_v30 = vpop.permute.xlu0 %4749 }
 0x6d4   :  { %15953 = vst [vmem:[#allocation76_spill] sm:$0xff] %v11518_v60  ;;  %15954 = vst [vmem:[#allocation59_spill] sm:$0xff] %v11522_v30  ;;  %7842 = vmatpush1.msk.msra.mxu0 %vm15087_vm9, %v3072_v23  ;;  %v1830_v60 = vpop.f32.mrf.mxu0  ;;  %v1901_v19 = vpop.f32.mrf.mxu1 }
 0x6d5   :  { %5810 = vrot.lane.b32.xlu1 %v10953_v10, %s8327_s2  ;;  %7843 = vmatprep.subr.msk.mxu0 %vm15086_vm3, %v2975_v0  ;;  %v11564_v0 = vld [vmem:[#allocation3 + $0x40] sm:$0xff] }
 0x6d6   :  { %7040 = vrot.lane.b32.xlu0 %v10929_v47, %s8316_s3  ;;  %7844 = vmatpush1.msk.msra.mxu0 %vm15084_vm7, %v2974_v59 }
 0x6d7   :  { %v11541_v25 = vpop.permute.xlu1 %7038  ;;  %7845 = vmatmul.mubr.msk.f32.vlgmr.msra.gmra.mxu0 %vm3401_vm2, %v15915_v52  ;;  %v11545_v22 = vpop.permute.xlu0 %5903 }
 0x6d8   :  { %15955 = vst [vmem:[#allocation61_spill] sm:$0xff] %v11541_v25  ;;  %15956 = vst [vmem:[#allocation63_spill] sm:$0xff] %v11545_v22  ;;  %3681 = vmatprep.mubr.f32.mxu0 %v15717_v34 }
 0x6d9   :  { %5723 = vrot.lane.b32.xlu1 %v10929_v47, %s8324_s13 }
 0x6da   :  { %1920 = vrot.lane.b32.xlu0 %v1828_v14, %s8315_s6 }
 0x6db   :  { %v11551_v36 = vpop.permute.xlu1 %2569 }
 0x6dc   :  { %15957 = vst [vmem:[#allocation65_spill] sm:$0xff] %v11551_v36  ;;  %v11553_v42 = vpop.permute.xlu0 %5721  ;;  %v11650_v36 = vand.u32 31, %v1954_v53 }
 0x6dd   :  { %15958 = vst [vmem:[#allocation67_spill] sm:$0xff] %v11553_v42  ;;  %5727 = vrot.lane.b32.xlu1 %v10953_v10, %s8324_s13 }
 0x6de   :  { %1924 = vrot.lane.b32.xlu0 %v1899_v41, %s8315_s6  ;;  %15971 = vst [vmem:[#allocation16_spill] sm:$0xff] %v11650_v36  ;;  %vm15095_vm7 = vcmp.lt.s32.totalorder %v11650_v36, 30  ;;  %vm15093_vm9 = vcmp.lt.s32.totalorder %v11650_v36, 31 }
 0x6df   :  { %v11558_v38 = vpop.permute.xlu1 %2573 }
 0x6e0   :  { %15959 = vst [vmem:[#allocation69_spill] sm:$0xff] %v11558_v38  ;;  %v11560_v23 = vpop.permute.xlu0 %6940  ;;  %v11654_v38 = vand.u32 31, %v1953_v17 }
 0x6e1   :  { %15960 = vst [vmem:[#allocation71_spill] sm:$0xff] %v11560_v23  ;;  %5624 = vrot.lane.b32.xlu1 %v10929_v47, %s8328_s16 }
 0x6e2   :  { %2575 = vrot.lane.b32.xlu0 %v11564_v0, %s8306_s29  ;;  %15972 = vst [vmem:[#allocation17_spill] sm:$0xff] %v11654_v38  ;;  %vm15092_vm3 = vcmp.lt.s32.totalorder %v11654_v38, 30  ;;  %vm15094_vm5 = vcmp.lt.s32.totalorder %v11654_v38, 31 }
 0x6e3   :  { %v11568_v59 = vpop.permute.xlu1 %2653 }
 0x6e4   :  { %15961 = vst [vmem:[#allocation73_spill] sm:$0xff] %v11568_v59  ;;  %v11570_v14 = vpop.permute.xlu0 %2571 }
 0x6e5   :  { %15962 = vst [vmem:[#allocation75_spill] sm:$0xff] %v11570_v14  ;;  %5628 = vrot.lane.b32.xlu1 %v10953_v10, %s8328_s16 }
 0x6e6   :  { %2755 = vrot.lane.b32.xlu0 %v11564_v0, %s8317_s23 }
 0x6e7   :  { %v11576_v41 = vpop.permute.xlu1 %2749 }
 0x6e8   :  { %15963 = vst [vmem:[#allocation81_spill] sm:$0xff] %v11576_v41  ;;  %v11578_v23 = vpop.permute.xlu0 %2651 }
 0x6e9   :  { %15964 = vst [vmem:[#allocation77_spill] sm:$0xff] %v11578_v23  ;;  %6942 = vrot.lane.b32.xlu1 %v10929_v47, %s8317_s23 }
 0x6ea   :  { %2954 = vrot.lane.b32.xlu0 %v11564_v0, %s8311_s22 }
 0x6eb   :  { %v11584_v25 = vpop.permute.xlu1 %2753 }
 0x6ec   :  { %15965 = vst [vmem:[#allocation78_spill] sm:$0xff] %v11584_v25  ;;  %v11586_v42 = vpop.permute.xlu0 %2655 }
 0x6ed   :  { %15966 = vst [vmem:[#allocation79_spill] sm:$0xff] %v11586_v42  ;;  %1922 = vrot.lane.b32.xlu1 %v1830_v60, %s8315_s6 }
 0x6ee   :  { %3134 = vrot.lane.b32.xlu0 %v11564_v0, %s8309_s20 }
 0x6ef   :  { %v11591_v10 = vpop.permute.xlu1 %2850 }
 0x6f0   :  { %15967 = vst [vmem:[#allocation80_spill] sm:$0xff] %v11591_v10  ;;  %v11593_v22 = vpop.permute.xlu0 %2751 }
 0x6f1   :  { %15968 = vst [vmem:[#allocation4_spill] sm:$0xff] %v11593_v22  ;;  %1926 = vrot.lane.b32.xlu1 %v1901_v19, %s8315_s6 }
 0x6f2   :  { %3331 = vrot.lane.b32.xlu0 %v11564_v0, %s8320_s27 }
 0x6f3   :  { %v11598_v47 = vpop.permute.xlu1 %2948 }
 0x6f4   :  { %v11600_v31 = vpop.permute.xlu0 %2848 }
 0x6f5   :  { %15969 = vst [vmem:[#allocation5_spill] sm:$0xff] %v11600_v31  ;;  %2657 = vrot.lane.b32.xlu1 %v11564_v0, %s8305_s24 }
 0x6f6   :  { %4592 = vrot.lane.b32.xlu0 %v11564_v0, %s8307_s19 }
 0x6f7   :  { %v11606_v60 = vpop.permute.xlu1 %2952 }
 0x6f8   :  { %v11608_v43 = vpop.permute.xlu0 %2852 }
 0x6f9   :  { %15970 = vst [vmem:[#allocation13_spill] sm:$0xff] %v11608_v43  ;;  %2854 = vrot.lane.b32.xlu1 %v11564_v0, %s8316_s3 }
 0x6fa   :  { %4757 = vrot.lane.b32.xlu0 %v11564_v0, %s8323_s10 }
 0x6fb   :  { %v11614_v19 = vpop.permute.xlu1 %3048 }
 0x6fc   :  { %v11616_v57 = vpop.permute.xlu0 %2950 }
 0x6fd   :  { %3052 = vrot.lane.b32.xlu1 %v11564_v0, %s8310_s21 }
 0x6fe   :  { %4840 = vrot.lane.b32.xlu0 %v11564_v0, %s8321_s28 }
 0x6ff   :  { %v3129_v55 = vpop.permute.xlu1 %3128 }
 0x700   :  { %v3047_v4 = vpop.permute.xlu0 %3046 }
 0x701   :  { %3232 = vrot.lane.b32.xlu1 %v11564_v0, %s8318_s25 }
 0x702   :  { %6010 = vrot.lane.b32.xlu0 %v11564_v0, %s8326_s12 }
 0x703   :  { %v11626_v39 = vpop.permute.xlu1 %3132 }
 0x704   :  { %v11628_v6 = vpop.permute.xlu0 %3050 }
 0x705   :  { %4674 = vrot.lane.b32.xlu1 %v11564_v0, %s8319_s26 }
 0x706   :  { %5911 = vrot.lane.b32.xlu0 %v11564_v0, %s8322_s30 }
 0x707   :  { %v11634_v21 = vpop.permute.xlu1 %3228 }
 0x708   :  { %v11636_v30 = vpop.permute.xlu0 %3130 }
 0x709   :  { %4923 = vrot.lane.b32.xlu1 %v11564_v0, %s8325_s14 }
 0x70a   :  { %5812 = vrot.lane.b32.xlu0 %v11564_v0, %s8327_s2 }
 0x70b   :  { %v3326_v58 = vpop.permute.xlu1 %3325 }
 0x70c   :  { %v3227_v40 = vpop.permute.xlu0 %3226  ;;  %v3354_v17 = vsel %vm3349_vm12, %v11466_v46, %v3326_v58  ;;  %v3157_v46 = vsel %vm710_vm11, %v3129_v55, %v11636_v30 }
 0x70d   :  { %2577 = vrot.lane.b32.xlu1 %v11402_v8, %s8306_s29  ;;  %v3256_v42 = vsel %vm3250_vm10, %v3227_v40, %v11634_v21  ;;  %v3255_v41 = vsel %vm3250_vm10, %v11425_v5, %v3227_v40  ;;  %v3156_v40 = vsel %vm710_vm11, %v11454_v50, %v3129_v55  ;;  %v2977_v50 = vsel %vm660_vm8, %v11598_v47, %v11616_v57 }
 0x70e   :  { %5729 = vrot.lane.b32.xlu0 %v11564_v0, %s8324_s13 }
 0x70f   :  { %v11648_v61 = vpop.permute.xlu1 %3329 }
 0x710   :  { %v11652_v14 = vpop.permute.xlu0 %3230 }
 0x711   :  { %2581 = vrot.lane.b32.xlu1 %v11417_v45, %s8306_s29 }
 0x712   :  { %5630 = vrot.lane.b32.xlu0 %v11564_v0, %s8328_s16 }
 0x713   :  { %v11660_v23 = vpop.permute.xlu1 %4586 }
 0x714   :  { %15973 = vst [vmem:[#allocation82_spill] sm:$0xff] %v11660_v23  ;;  %v11663_v59 = vpop.permute.xlu0 %3327 }
 0x715   :  { %2661 = vrot.lane.b32.xlu1 %v11413_v29, %s8305_s24  ;;  %v3355_v53 = vsel %vm3349_vm12, %v3326_v58, %v11663_v59 }
 0x716   :  { %2579 = vrot.lane.b32.xlu0 %v11413_v29, %s8306_s29  ;;  %7846 = vmatprep.subr.msk.mxu1 %vm15095_vm7, %v3355_v53  ;;  %vm15127_vm7 = vcmp.ge.s32.totalorder %v11654_v38, 2 }
 0x717   :  { %7847 = vmatpush1.msk.msra.mxu1 %vm15092_vm3, %v3354_v17  ;;  %v11680_v23 = vpop.permute.xlu1 %4590  ;;  %vm15136_vm3 = vcmp.ge.s32.totalorder %v11650_v36, 1 }
 0x718   :  { %15974 = vst [vmem:[#allocation83_spill] sm:$0xff] %v11680_v23  ;;  %7848 = vmatprep.subr.msk.mxu1 %vm15093_vm9, %v3256_v42  ;;  %v11688_v58 = vpop.permute.xlu0 %4588  ;;  %vm15131_vm9 = vcmp.ge.s32.totalorder %v11654_v38, 1  ;;  %v3075_v42 = vsel %vm683_vm6, %v3047_v4, %v11614_v19 }
 0x719   :  { %15975 = vst [vmem:[#allocation84_spill] sm:$0xff] %v11688_v58  ;;  %7849 = vmatpush1.msk.msra.mxu1 %vm15094_vm5, %v3255_v41  ;;  %2757 = vrot.lane.b32.xlu1 %v11402_v8, %s8317_s23  ;;  %vm15128_vm5 = vcmp.ge.s32.totalorder %v11650_v36, 2  ;;  %v3074_v41 = vsel %vm683_vm6, %v11410_v7, %v3047_v4  ;;  %v2976_v4 = vsel %vm660_vm8, %v11443_v62, %v11598_v47 }
 0x71a   :  { %2659 = vrot.lane.b32.xlu0 %v11402_v8, %s8305_s24  ;;  %3572 = vmatprep.subr.mxu1 %v3157_v46 }
 0x71b   :  { %3573 = vmatpush1.msra.mxu1 %v3156_v40  ;;  %v11702_v5 = vpop.permute.xlu1 %4670 }
 0x71c   :  { %15976 = vst [vmem:[#allocation85_spill] sm:$0xff] %v11702_v5  ;;  %7850 = vmatprep.subr.msk.mxu1 %vm15136_vm3, %v3075_v42  ;;  %v11711_v53 = vpop.permute.xlu0 %4668 }
 0x71d   :  { %15977 = vst [vmem:[#allocation86_spill] sm:$0xff] %v11711_v53  ;;  %7851 = vmatpush1.msk.msra.mxu1 %vm15131_vm9, %v3074_v41  ;;  %2761 = vrot.lane.b32.xlu1 %v11417_v45, %s8317_s23 }
 0x71e   :  { %2663 = vrot.lane.b32.xlu0 %v11417_v45, %s8305_s24  ;;  %7852 = vmatprep.subr.msk.mxu1 %vm15128_vm5, %v2977_v50 }
 0x71f   :  { %7853 = vmatpush1.msk.msra.mxu1 %vm15127_vm7, %v2976_v4  ;;  %v11730_v55 = vpop.permute.xlu1 %4751 }
 0x720   :  { %15978 = vst [vmem:[#allocation87_spill] sm:$0xff] %v11730_v55  ;;  %7854 = vmatmul.mubr.msk.f32.vlgmr.msra.gmra.mxu1 %vm3401_vm2, %v15915_v52  ;;  %v11734_v7 = vpop.permute.xlu0 %4672 }
 0x721   :  { %15979 = vst [vmem:[#allocation88_spill] sm:$0xff] %v11734_v7  ;;  %2858 = vrot.lane.b32.xlu1 %v11413_v29, %s8316_s3  ;;  %3752 = vmatprep.mubr.f32.mxu1 %v15717_v34 }
 0x722   :  { %2759 = vrot.lane.b32.xlu0 %v11413_v29, %s8317_s23 }
 0x723   :  { %v11741_v62 = vpop.permute.xlu1 %4755 }
 0x724   :  { %15980 = vst [vmem:[#allocation89_spill] sm:$0xff] %v11741_v62  ;;  %v11743_v47 = vpop.permute.xlu0 %4753 }
 0x725   :  { %15981 = vst [vmem:[#allocation90_spill] sm:$0xff] %v11743_v47  ;;  %2956 = vrot.lane.b32.xlu1 %v11402_v8, %s8311_s22 }
 0x726   :  { %2856 = vrot.lane.b32.xlu0 %v11402_v8, %s8316_s3 }
 0x727   :  { %v11749_v17 = vpop.permute.xlu1 %4834 }
 0x728   :  { %15982 = vst [vmem:[#allocation91_spill] sm:$0xff] %v11749_v17  ;;  %v11751_v46 = vpop.permute.xlu0 %4836 }
 0x729   :  { %15983 = vst [vmem:[#allocation92_spill] sm:$0xff] %v11751_v46  ;;  %2960 = vrot.lane.b32.xlu1 %v11417_v45, %s8311_s22 }
 0x72a   :  { %2860 = vrot.lane.b32.xlu0 %v11417_v45, %s8316_s3 }
 0x72b   :  { %v11757_v40 = vpop.permute.xlu1 %4838 }
 0x72c   :  { %15984 = vst [vmem:[#allocation93_spill] sm:$0xff] %v11757_v40  ;;  %v11759_v42 = vpop.permute.xlu0 %4917 }
 0x72d   :  { %15985 = vst [vmem:[#allocation94_spill] sm:$0xff] %v11759_v42  ;;  %3056 = vrot.lane.b32.xlu1 %v11413_v29, %s8310_s21 }
 0x72e   :  { %2958 = vrot.lane.b32.xlu0 %v11413_v29, %s8311_s22 }
 0x72f   :  { %v11765_v41 = vpop.permute.xlu1 %4919 }
 0x730   :  { %15986 = vst [vmem:[#allocation95_spill] sm:$0xff] %v11765_v41  ;;  %v11767_v50 = vpop.permute.xlu0 %4921 }
 0x731   :  { %15987 = vst [vmem:[#allocation96_spill] sm:$0xff] %v11767_v50  ;;  %3136 = vrot.lane.b32.xlu1 %v11402_v8, %s8309_s20  ;;  %v1955_v50 = vadd.s32 768, %v15903_v27 }
 0x732   :  { %3054 = vrot.lane.b32.xlu0 %v11402_v8, %s8310_s21 }
 0x733   :  { %v11773_v4 = vpop.permute.xlu1 %6004  ;;  %v11877_v17 = vand.u32 31, %v1955_v50 }
 0x734   :  { %15988 = vst [vmem:[#allocation97_spill] sm:$0xff] %v11773_v4  ;;  %v11775_v58 = vpop.permute.xlu0 %6006 }
 0x735   :  { %15989 = vst [vmem:[#allocation98_spill] sm:$0xff] %v11775_v58  ;;  %3140 = vrot.lane.b32.xlu1 %v11417_v45, %s8309_s20  ;;  %16009 = vst [vmem:[#allocation118_spill] sm:$0xff] %v11877_v17  ;;  %vm15140_vm5 = vcmp.lt.s32.totalorder %v11877_v17, 30  ;;  %vm15139_vm9 = vcmp.lt.s32.totalorder %v11877_v17, 31 }
 0x736   :  { %3058 = vrot.lane.b32.xlu0 %v11417_v45, %s8310_s21 }
 0x737   :  { %v11781_v23 = vpop.permute.xlu1 %6008 }
 0x738   :  { %15990 = vst [vmem:[#allocation99_spill] sm:$0xff] %v11781_v23  ;;  %v11783_v53 = vpop.permute.xlu0 %5907 }
 0x739   :  { %15991 = vst [vmem:[#allocation100_spill] sm:$0xff] %v11783_v53  ;;  %3236 = vrot.lane.b32.xlu1 %v11413_v29, %s8318_s25 }
 0x73a   :  { %3138 = vrot.lane.b32.xlu0 %v11413_v29, %s8309_s20 }
 0x73b   :  { %v11789_v5 = vpop.permute.xlu1 %5905 }
 0x73c   :  { %15992 = vst [vmem:[#allocation101_spill] sm:$0xff] %v11789_v5  ;;  %v11791_v4 = vpop.permute.xlu0 %5808 }
 0x73d   :  { %15993 = vst [vmem:[#allocation102_spill] sm:$0xff] %v11791_v4  ;;  %3333 = vrot.lane.b32.xlu1 %v11402_v8, %s8320_s27 }
 0x73e   :  { %3234 = vrot.lane.b32.xlu0 %v11402_v8, %s8318_s25 }
 0x73f   :  { %v11797_v58 = vpop.permute.xlu1 %5909 }
 0x740   :  { %15994 = vst [vmem:[#allocation103_spill] sm:$0xff] %v11797_v58  ;;  %v11799_v23 = vpop.permute.xlu0 %5725 }
 0x741   :  { %15995 = vst [vmem:[#allocation104_spill] sm:$0xff] %v11799_v23  ;;  %3337 = vrot.lane.b32.xlu1 %v11417_v45, %s8320_s27 }
 0x742   :  { %3238 = vrot.lane.b32.xlu0 %v11417_v45, %s8318_s25 }
 0x743   :  { %v11805_v53 = vpop.permute.xlu1 %5806 }
 0x744   :  { %15996 = vst [vmem:[#allocation105_spill] sm:$0xff] %v11805_v53  ;;  %v11807_v5 = vpop.permute.xlu0 %5626 }
 0x745   :  { %15997 = vst [vmem:[#allocation106_spill] sm:$0xff] %v11807_v5  ;;  %4594 = vrot.lane.b32.xlu1 %v11402_v8, %s8307_s19 }
 0x746   :  { %3335 = vrot.lane.b32.xlu0 %v11413_v29, %s8320_s27 }
 0x747   :  { %v11813_v4 = vpop.permute.xlu1 %5810 }
 0x748   :  { %15998 = vst [vmem:[#allocation107_spill] sm:$0xff] %v11813_v4  ;;  %v11815_v58 = vpop.permute.xlu0 %7040 }
 0x749   :  { %15999 = vst [vmem:[#allocation108_spill] sm:$0xff] %v11815_v58  ;;  %4598 = vrot.lane.b32.xlu1 %v11417_v45, %s8307_s19 }
 0x74a   :  { %4596 = vrot.lane.b32.xlu0 %v11413_v29, %s8307_s19 }
 0x74b   :  { %v11821_v23 = vpop.permute.xlu1 %5723 }
 0x74c   :  { %16000 = vst [vmem:[#allocation109_spill] sm:$0xff] %v11821_v23  ;;  %v1921_v53 = vpop.permute.xlu0 %1920 }
 0x74d   :  { %v11825_v5 = vsel %vm897_vm1, %v11383_v15, %v1921_v53  ;;  %4678 = vrot.lane.b32.xlu1 %v11413_v29, %s8319_s26 }
 0x74e   :  { %1948 = vst [vmem:[#allocation3 + $0x60] sm:$0xff] %v11825_v5  ;;  %4676 = vrot.lane.b32.xlu0 %v11402_v8, %s8319_s26 }
 0x74f   :  { %v11832_v58 = vpop.permute.xlu1 %5727 }
 0x750   :  { %16001 = vst [vmem:[#allocation110_spill] sm:$0xff] %v11832_v58  ;;  %v1925_v4 = vpop.permute.xlu0 %1924 }
 0x751   :  { %4759 = vrot.lane.b32.xlu1 %v11402_v8, %s8323_s10 }
 0x752   :  { %4680 = vrot.lane.b32.xlu0 %v11417_v45, %s8319_s26 }
 0x753   :  { %v11838_v23 = vpop.permute.xlu1 %5624 }
 0x754   :  { %16002 = vst [vmem:[#allocation111_spill] sm:$0xff] %v11838_v23  ;;  %v11840_v15 = vpop.permute.xlu0 %2575  ;;  %v11857_v23 = vadd.s32 896, %v15903_v27 }
 0x755   :  { %16003 = vst [vmem:[#allocation112_spill] sm:$0xff] %v11840_v15  ;;  %4763 = vrot.lane.b32.xlu1 %v11417_v45, %s8323_s10 }
 0x756   :  { %4761 = vrot.lane.b32.xlu0 %v11413_v29, %s8323_s10  ;;  %16007 = vst [vmem:[#allocation116_spill] sm:$0xff] %v11857_v23  ;;  %v11867_v55 = vand.u32 31, %v11857_v23 }
 0x757   :  { %v11846_v7 = vpop.permute.xlu1 %5628 }
 0x758   :  { %16004 = vst [vmem:[#allocation113_spill] sm:$0xff] %v11846_v7  ;;  %v11848_v58 = vpop.permute.xlu0 %2755  ;;  %16008 = vst [vmem:[#allocation117_spill] sm:$0xff] %v11867_v55  ;;  %vm15173_vm7 = vcmp.lt.s32.totalorder %v11867_v55, 30  ;;  %vm15172_vm3 = vcmp.ge.s32.totalorder %v11867_v55, 1 }
 0x759   :  { %16005 = vst [vmem:[#allocation114_spill] sm:$0xff] %v11848_v58  ;;  %4844 = vrot.lane.b32.xlu1 %v11413_v29, %s8321_s28 }
 0x75a   :  { %4842 = vrot.lane.b32.xlu0 %v11402_v8, %s8321_s28 }
 0x75b   :  { %v11854_v42 = vpop.permute.xlu1 %6942 }
 0x75c   :  { %16006 = vst [vmem:[#allocation115_spill] sm:$0xff] %v11854_v42  ;;  %v11859_v41 = vpop.permute.xlu0 %2954 }
 0x75d   :  { %4927 = vrot.lane.b32.xlu1 %v11413_v29, %s8325_s14 }
 0x75e   :  { %4846 = vrot.lane.b32.xlu0 %v11417_v45, %s8321_s28 }
 0x75f   :  { %v1923_v7 = vpop.permute.xlu1 %1922 }
 0x760   :  { %v11870_v47 = vsel %vm897_vm1, %v1921_v53, %v1923_v7  ;;  %v11873_v42 = vsel %vm897_vm1, %v1923_v7, %v1925_v4  ;;  %v11875_v62 = vpop.permute.xlu0 %3134 }
 0x761   :  { %1949 = vst [vmem:[#allocation3 + $0x68] sm:$0xff] %v11870_v47  ;;  %1950 = vst [vmem:[#allocation3 + $0x70] sm:$0xff] %v11873_v42  ;;  %6012 = vrot.lane.b32.xlu1 %v11402_v8, %s8326_s12 }
 0x762   :  { %4925 = vrot.lane.b32.xlu0 %v11402_v8, %s8325_s14 }
 0x763   :  { %v1927_v23 = vpop.permute.xlu1 %1926 }
 0x764   :  { %v11887_v53 = vsel %vm897_vm1, %v1925_v4, %v1927_v23  ;;  %1952 = vst.msk [vmem:[#allocation3 + $0x80] sm:$0xff] %vm897_vm1, %v1927_v23  ;;  %v11890_v7 = vpop.permute.xlu0 %3331  ;;  %v3356_v4 = vsel %vm3349_vm12, %v11663_v59, %v11648_v61  ;;  %vm15138_vm1 = vcmp.lt.s32.totalorder %v11867_v55, 31 }
 0x765   :  { %1951 = vst [vmem:[#allocation3 + $0x78] sm:$0xff] %v11887_v53  ;;  %6016 = vrot.lane.b32.xlu1 %v11417_v45, %s8326_s12  ;;  %v3357_v50 = vsel %vm3349_vm12, %v11648_v61, %v11890_v7 }
 0x766   :  { %4929 = vrot.lane.b32.xlu0 %v11417_v45, %s8325_s14  ;;  %7855 = vmatprep.subr.msk.mxu0 %vm15173_vm7, %v3357_v50 }
 0x767   :  { %7856 = vmatpush1.msk.msra.mxu0 %vm15140_vm5, %v3356_v4  ;;  %v11908_v23 = vpop.permute.xlu1 %2657  ;;  %vm15165_vm5 = vcmp.ge.s32.totalorder %v11877_v17, 2 }
 0x768   :  { %16010 = vst [vmem:[#allocation119_spill] sm:$0xff] %v11908_v23  ;;  %v11910_v46 = vpop.permute.xlu0 %4592 }
 0x769   :  { %16011 = vst [vmem:[#allocation120_spill] sm:$0xff] %v11910_v46  ;;  %5913 = vrot.lane.b32.xlu1 %v11402_v8, %s8322_s30 }
 0x76a   :  { %6014 = vrot.lane.b32.xlu0 %v11413_v29, %s8326_s12 }
 0x76b   :  { %v11916_v61 = vpop.permute.xlu1 %2854 }
 0x76c   :  { %16012 = vst [vmem:[#allocation121_spill] sm:$0xff] %v11916_v61  ;;  %v11918_v59 = vpop.permute.xlu0 %4757  ;;  %v1962_v61 = vadd.s32 1664, %v15903_v27 }
 0x76d   :  { %16013 = vst [vmem:[#allocation122_spill] sm:$0xff] %v11918_v59  ;;  %5917 = vrot.lane.b32.xlu1 %v11417_v45, %s8322_s30 }
 0x76e   :  { %5915 = vrot.lane.b32.xlu0 %v11413_v29, %s8322_s30 }
 0x76f   :  { %v11924_v50 = vpop.permute.xlu1 %3052 }
 0x770   :  { %v11926_v4 = vpop.permute.xlu0 %4840 }
 0x771   :  { %16014 = vst [vmem:[#allocation123_spill] sm:$0xff] %v11926_v4  ;;  %5814 = vrot.lane.b32.xlu1 %v11402_v8, %s8327_s2  ;;  %v3257_v4 = vsel %vm3250_vm10, %v11634_v21, %v11652_v14  ;;  %v3158_v21 = vsel %vm710_vm11, %v11636_v30, %v11626_v39 }
 0x772   :  { %5816 = vrot.lane.b32.xlu0 %v11413_v29, %s8327_s2 }
 0x773   :  { %v11933_v46 = vpop.permute.xlu1 %3232 }
 0x774   :  { %v11936_v59 = vpop.permute.xlu0 %6010  ;;  %v3258_v40 = vsel %vm3250_vm10, %v11652_v14, %v11933_v46 }
 0x775   :  { %16015 = vst [vmem:[#allocation124_spill] sm:$0xff] %v11936_v59  ;;  %5818 = vrot.lane.b32.xlu1 %v11417_v45, %s8327_s2  ;;  %7857 = vmatprep.subr.msk.mxu0 %vm15138_vm1, %v3258_v40  ;;  %v3159_v59 = vsel %vm710_vm11, %v11626_v39, %v11875_v62  ;;  %vm15171_vm1 = vcmp.ge.s32.totalorder %v11877_v17, 1  ;;  %v3077_v40 = vsel %vm683_vm6, %v11628_v6, %v11924_v50 }
 0x776   :  { %5733 = vrot.lane.b32.xlu0 %v11413_v29, %s8324_s13  ;;  %7858 = vmatpush1.msk.msra.mxu0 %vm15139_vm9, %v3257_v4  ;;  %vm15168_vm9 = vcmp.ge.s32.totalorder %v11867_v55, 2  ;;  %v3076_v4 = vsel %vm683_vm6, %v11614_v19, %v11628_v6  ;;  %v2979_v39 = vsel %vm660_vm8, %v11606_v60, %v11859_v41  ;;  %v2978_v6 = vsel %vm660_vm8, %v11616_v57, %v11606_v60 }
 0x777   :  { %v11956_v15 = vpop.permute.xlu1 %4674  ;;  %3643 = vmatprep.subr.mxu0 %v3159_v59 }
 0x778   :  { %16016 = vst [vmem:[#allocation125_spill] sm:$0xff] %v11956_v15  ;;  %v11962_v14 = vpop.permute.xlu0 %5911  ;;  %3644 = vmatpush1.msra.mxu0 %v3158_v21 }
 0x779   :  { %16017 = vst [vmem:[#allocation126_spill] sm:$0xff] %v11962_v14  ;;  %5731 = vrot.lane.b32.xlu1 %v11402_v8, %s8324_s13  ;;  %7859 = vmatprep.subr.msk.mxu0 %vm15172_vm3, %v3077_v40 }
 0x77a   :  { %5634 = vrot.lane.b32.xlu0 %v11413_v29, %s8328_s16  ;;  %7860 = vmatpush1.msk.msra.mxu0 %vm15171_vm1, %v3076_v4 }
 0x77b   :  { %v11986_v30 = vpop.permute.xlu1 %4923  ;;  %7861 = vmatprep.subr.msk.mxu0 %vm15168_vm9, %v2979_v39 }
 0x77c   :  { %16018 = vst [vmem:[#allocation127_spill] sm:$0xff] %v11986_v30  ;;  %v11990_v19 = vpop.permute.xlu0 %5812  ;;  %7862 = vmatpush1.msk.msra.mxu0 %vm15165_vm5, %v2978_v6 }
 0x77d   :  { %16019 = vst [vmem:[#allocation128_spill] sm:$0xff] %v11990_v19  ;;  %5735 = vrot.lane.b32.xlu1 %v11417_v45, %s8324_s13  ;;  %7863 = vmatmul.mubr.msk.f32.vlgmr.msra.gmra.mxu0 %vm3401_vm2, %v15915_v52 }
 0x77e   :  { %2583 = vrot.lane.b32.xlu0 %v11825_v5, %s8306_s29  ;;  %3823 = vmatprep.mubr.f32.mxu0 %v15717_v34 }
 0x77f   :  { %v12001_v29 = vpop.permute.xlu1 %2577 }
 0x780   :  { %16020 = vst [vmem:[#allocation129_spill] sm:$0xff] %v12001_v29  ;;  %v12003_v57 = vpop.permute.xlu0 %5729 }
 0x781   :  { %16021 = vst [vmem:[#allocation130_spill] sm:$0xff] %v12003_v57  ;;  %5632 = vrot.lane.b32.xlu1 %v11402_v8, %s8328_s16 }
 0x782   :  { %2763 = vrot.lane.b32.xlu0 %v11825_v5, %s8317_s23 }
 0x783   :  { %v12009_v60 = vpop.permute.xlu1 %2581 }
 0x784   :  { %16022 = vst [vmem:[#allocation131_spill] sm:$0xff] %v12009_v60  ;;  %v12011_v59 = vpop.permute.xlu0 %5630 }
 0x785   :  { %16023 = vst [vmem:[#allocation132_spill] sm:$0xff] %v12011_v59  ;;  %5636 = vrot.lane.b32.xlu1 %v11417_v45, %s8328_s16 }
 0x786   :  { %2962 = vrot.lane.b32.xlu0 %v11825_v5, %s8311_s22 }
 0x787   :  { %v12017_v21 = vpop.permute.xlu1 %2661 }
 0x788   :  { %16024 = vst [vmem:[#allocation133_spill] sm:$0xff] %v12017_v21  ;;  %v12019_v40 = vpop.permute.xlu0 %2579  ;;  %v12073_v21 = vld [vmem:[#allocation3 + $0x80] sm:$0xff] }
 0x789   :  { %16025 = vst [vmem:[#allocation134_spill] sm:$0xff] %v12019_v40  ;;  %2665 = vrot.lane.b32.xlu1 %v11825_v5, %s8305_s24  ;;  %16034 = vst [vmem:[#allocation143_spill] sm:$0xff] %v12073_v21 }
 0x78a   :  { %3142 = vrot.lane.b32.xlu0 %v11825_v5, %s8309_s20 }
 0x78b   :  { %v12025_v8 = vpop.permute.xlu1 %2757 }
 0x78c   :  { %16026 = vst [vmem:[#allocation135_spill] sm:$0xff] %v12025_v8  ;;  %v12027_v4 = vpop.permute.xlu0 %2659 }
 0x78d   :  { %16027 = vst [vmem:[#allocation136_spill] sm:$0xff] %v12027_v4  ;;  %2862 = vrot.lane.b32.xlu1 %v11825_v5, %s8316_s3 }
 0x78e   :  { %3339 = vrot.lane.b32.xlu0 %v11825_v5, %s8320_s27 }
 0x78f   :  { %v12033_v45 = vpop.permute.xlu1 %2761 }
 0x790   :  { %16028 = vst [vmem:[#allocation137_spill] sm:$0xff] %v12033_v45  ;;  %v12035_v39 = vpop.permute.xlu0 %2663  ;;  %v12094_v45 = vadd.s32 1024, %v15903_v27 }
 0x791   :  { %16029 = vst [vmem:[#allocation138_spill] sm:$0xff] %v12035_v39  ;;  %3060 = vrot.lane.b32.xlu1 %v11825_v5, %s8310_s21 }
 0x792   :  { %4600 = vrot.lane.b32.xlu0 %v11825_v5, %s8307_s19  ;;  %16035 = vst [vmem:[#allocation144_spill] sm:$0xff] %v12094_v45  ;;  %v12102_v23 = vand.u32 31, %v12094_v45  ;;  %v15174_v22 = vand.u32 1023, %v12094_v45 }
 0x793   :  { %v12041_v6 = vpop.permute.xlu1 %2858 }
 0x794   :  { %16030 = vst [vmem:[#allocation139_spill] sm:$0xff] %v12041_v6  ;;  %v12043_v59 = vpop.permute.xlu0 %2759  ;;  %v1958_v6 = vadd.s32 1152, %v15903_v27  ;;  %16036 = vst [vmem:[#allocation145_spill] sm:$0xff] %v12102_v23  ;;  %vm12117_vm5 = vcmp.ge.s32.totalorder %v15174_v22, 32  ;;  %vm15177_vm9 = vcmp.lt.s32.totalorder %v12102_v23, 30  ;;  %vm15181_vm3 = vcmp.lt.s32.totalorder %v12102_v23, 31 }
 0x795   :  { %16031 = vst [vmem:[#allocation140_spill] sm:$0xff] %v12043_v59  ;;  %3240 = vrot.lane.b32.xlu1 %v11825_v5, %s8318_s25  ;;  %vm3307_vm7 = vmand %vm12117_vm5, %vm15177_vm9  ;;  %vm15183_vm14 = vcmp.ge.s32.totalorder %v12102_v23, 1 }
 0x796   :  { %4765 = vrot.lane.b32.xlu0 %v11825_v5, %s8323_s10  ;;  %v12109_v58 = vand.u32 31, %v1958_v6  ;;  %vm3208_vm9 = vmand %vm12117_vm5, %vm15181_vm3  ;;  %vm15218_vm3 = vcmp.ge.s32.totalorder %v12102_v23, 2 }
 0x797   :  { %v12049_v57 = vpop.permute.xlu1 %2956 }
 0x798   :  { %v12051_v19 = vpop.permute.xlu0 %2856  ;;  %16037 = vst [vmem:[#allocation146_spill] sm:$0xff] %v12109_v58  ;;  %vm15276_vm1 = vcmp.lt.s32.totalorder %v12109_v58, 30  ;;  %vm15182_vm0 = vcmp.lt.s32.totalorder %v12109_v58, 31 }
 0x799   :  { %16032 = vst [vmem:[#allocation141_spill] sm:$0xff] %v12051_v19  ;;  %4682 = vrot.lane.b32.xlu1 %v11825_v5, %s8319_s26 }
 0x79a   :  { %6018 = vrot.lane.b32.xlu0 %v11825_v5, %s8326_s12 }
 0x79b   :  { %v12057_v14 = vpop.permute.xlu1 %2960 }
 0x79c   :  { %v12059_v15 = vpop.permute.xlu0 %2860 }
 0x79d   :  { %16033 = vst [vmem:[#allocation142_spill] sm:$0xff] %v12059_v15  ;;  %4848 = vrot.lane.b32.xlu1 %v11825_v5, %s8321_s28 }
 0x79e   :  { %5919 = vrot.lane.b32.xlu0 %v11825_v5, %s8322_s30 }
 0x79f   :  { %v12065_v30 = vpop.permute.xlu1 %3056 }
 0x7a0   :  { %v12067_v29 = vpop.permute.xlu0 %2958 }
 0x7a1   :  { %4931 = vrot.lane.b32.xlu1 %v11825_v5, %s8325_s14 }
 0x7a2   :  { %5820 = vrot.lane.b32.xlu0 %v11825_v5, %s8327_s2 }
 0x7a3   :  { %v3137_v40 = vpop.permute.xlu1 %3136 }
 0x7a4   :  { %v3055_v60 = vpop.permute.xlu0 %3054 }
 0x7a5   :  { %2673 = vrot.lane.b32.xlu1 %v12073_v21, %s8305_s24 }
 0x7a6   :  { %5737 = vrot.lane.b32.xlu0 %v11825_v5, %s8324_s13 }
 0x7a7   :  { %v12079_v39 = vpop.permute.xlu1 %3140 }
 0x7a8   :  { %v12081_v4 = vpop.permute.xlu0 %3058 }
 0x7a9   :  { %2870 = vrot.lane.b32.xlu1 %v12073_v21, %s8316_s3 }
 0x7aa   :  { %5638 = vrot.lane.b32.xlu0 %v11825_v5, %s8328_s16 }
 0x7ab   :  { %v12087_v8 = vpop.permute.xlu1 %3236 }
 0x7ac   :  { %v12089_v59 = vpop.permute.xlu0 %3138 }
 0x7ad   :  { %3068 = vrot.lane.b32.xlu1 %v12073_v21, %s8310_s21 }
 0x7ae   :  { %2591 = vrot.lane.b32.xlu0 %v12073_v21, %s8306_s29 }
 0x7af   :  { %v3334_v19 = vpop.permute.xlu1 %3333 }
 0x7b0   :  { %v3235_v15 = vpop.permute.xlu0 %3234 }
 0x7b1   :  { %3248 = vrot.lane.b32.xlu1 %v12073_v21, %s8318_s25  ;;  %v3260_v31 = vsel %vm3250_vm10, %v3235_v15, %v12087_v8 }
 0x7b2   :  { %2771 = vrot.lane.b32.xlu0 %v12073_v21, %s8317_s23 }
 0x7b3   :  { %v12107_v25 = vpop.permute.xlu1 %3337 }
 0x7b4   :  { %v12111_v38 = vpop.permute.xlu0 %3238 }
 0x7b5   :  { %4690 = vrot.lane.b32.xlu1 %v12073_v21, %s8319_s26 }
 0x7b6   :  { %2970 = vrot.lane.b32.xlu0 %v12073_v21, %s8311_s22 }
 0x7b7   :  { %v12124_v36 = vpop.permute.xlu1 %4594 }
 0x7b8   :  { %16040 = vst [vmem:[#allocation147_spill] sm:$0xff] %v12124_v36  ;;  %v12128_v6 = vpop.permute.xlu0 %3335  ;;  %v3358_v36 = vsel %vm3349_vm12, %v11890_v7, %v3334_v19  ;;  %v3259_v7 = vsel %vm3250_vm10, %v11933_v46, %v3235_v15  ;;  %v3079_v46 = vsel %vm683_vm6, %v3055_v60, %v12065_v30 }
 0x7b9   :  { %4856 = vrot.lane.b32.xlu1 %v12073_v21, %s8321_s28  ;;  %v3359_v22 = vsel %vm3349_vm12, %v3334_v19, %v12128_v6  ;;  %v3160_v19 = vsel %vm710_vm11, %v11875_v62, %v3137_v40  ;;  %v3078_v62 = vsel %vm683_vm6, %v11924_v50, %v3055_v60  ;;  %v2980_v50 = vsel %vm660_vm8, %v11859_v41, %v12049_v57 }
 0x7ba   :  { %3150 = vrot.lane.b32.xlu0 %v12073_v21, %s8309_s20  ;;  %7864 = vmatprep.subr.msk.mxu1 %vm15276_vm1, %v3359_v22 }
 0x7bb   :  { %7865 = vmatpush1.msk.msra.mxu1 %vm3307_vm7, %v3358_v36  ;;  %v12149_v45 = vpop.permute.xlu1 %4598  ;;  %v3161_v36 = vsel %vm710_vm11, %v3137_v40, %v12089_v59  ;;  %vm15220_vm7 = vcmp.ge.s32.totalorder %v12109_v58, 1  ;;  %v2981_v40 = vsel %vm660_vm8, %v12049_v57, %v12067_v29 }
 0x7bc   :  { %16041 = vst [vmem:[#allocation148_spill] sm:$0xff] %v12149_v45  ;;  %7866 = vmatprep.subr.msk.mxu1 %vm15182_vm0, %v3260_v31  ;;  %v12158_v22 = vpop.permute.xlu0 %4596  ;;  %vm15215_vm0 = vcmp.ge.s32.totalorder %v12109_v58, 2 }
 0x7bd   :  { %16042 = vst [vmem:[#allocation149_spill] sm:$0xff] %v12158_v22  ;;  %7867 = vmatpush1.msk.msra.mxu1 %vm3208_vm9, %v3259_v7  ;;  %4939 = vrot.lane.b32.xlu1 %v12073_v21, %s8325_s14  ;;  %vm3028_vm9 = vmand %vm12117_vm5, %vm15183_vm14 }
 0x7be   :  { %3347 = vrot.lane.b32.xlu0 %v12073_v21, %s8320_s27  ;;  %3714 = vmatprep.subr.mxu1 %v3161_v36  ;;  %vm2930_vm14 = vmand %vm12117_vm5, %vm15218_vm3 }
 0x7bf   :  { %7868 = vmatpush1.msk.msra.mxu1 %vm12117_vm5, %v3160_v19  ;;  %v12176_v31 = vpop.permute.xlu1 %4678  ;;  %vm901_vm5 = vcmask 31744  }
 0x7c0   :  { %16043 = vst [vmem:[#allocation150_spill] sm:$0xff] %v12176_v31  ;;  %7869 = vmatprep.subr.msk.mxu1 %vm15220_vm7, %v3079_v46  ;;  %v12185_v15 = vpop.permute.xlu0 %4676  ;;  %902 = vst.msk [vmem:[#allocation3 + $0x88] sm:$0xff] %vm901_vm5, %v15717_v34 }
 0x7c1   :  { %16044 = vst [vmem:[#allocation151_spill] sm:$0xff] %v12185_v15  ;;  %7870 = vmatpush1.msk.msra.mxu1 %vm3028_vm9, %v3078_v62  ;;  %2585 = vrot.lane.b32.xlu1 %v11870_v47, %s8306_s29 }
 0x7c2   :  { %4608 = vrot.lane.b32.xlu0 %v12073_v21, %s8307_s19  ;;  %7871 = vmatprep.subr.msk.mxu1 %vm15215_vm0, %v2981_v40 }
 0x7c3   :  { %7872 = vmatpush1.msk.msra.mxu1 %vm2930_vm14, %v2980_v50  ;;  %v12203_v17 = vpop.permute.xlu1 %4759 }
 0x7c4   :  { %16045 = vst [vmem:[#allocation152_spill] sm:$0xff] %v12203_v17  ;;  %7873 = vmatmul.mubr.msk.f32.vlgmr.msra.gmra.mxu1 %vm3401_vm2, %v15915_v52  ;;  %v12207_v60 = vpop.permute.xlu0 %4680 }
 0x7c5   :  { %16046 = vst [vmem:[#allocation153_spill] sm:$0xff] %v12207_v60  ;;  %2589 = vrot.lane.b32.xlu1 %v11887_v53, %s8306_s29  ;;  %3894 = vmatprep.mubr.f32.mxu1 %v15717_v34  ;;  %v1960_v60 = vadd.s32 1408, %v15903_v27 }
 0x7c6   :  { %4773 = vrot.lane.b32.xlu0 %v12073_v21, %s8323_s10 }
 0x7c7   :  { %v12214_v41 = vpop.permute.xlu1 %4763 }
 0x7c8   :  { %16047 = vst [vmem:[#allocation154_spill] sm:$0xff] %v12214_v41  ;;  %v12216_v57 = vpop.permute.xlu0 %4761  ;;  %v12333_v41 = vld [vmem:[#allocation3 + $0x18] sm:$0xff] }
 0x7c9   :  { %16048 = vst [vmem:[#allocation155_spill] sm:$0xff] %v12216_v57  ;;  %2669 = vrot.lane.b32.xlu1 %v11873_v42, %s8305_s24  ;;  %16077 = vst [vmem:[#allocation184_spill] sm:$0xff] %v12333_v41 }
 0x7ca   :  { %6026 = vrot.lane.b32.xlu0 %v12073_v21, %s8326_s12 }
 0x7cb   :  { %v12222_v7 = vpop.permute.xlu1 %4844 }
 0x7cc   :  { %16049 = vst [vmem:[#allocation156_spill] sm:$0xff] %v12222_v7  ;;  %v12224_v36 = vpop.permute.xlu0 %4842 }
 0x7cd   :  { %16050 = vst [vmem:[#allocation157_spill] sm:$0xff] %v12224_v36  ;;  %2765 = vrot.lane.b32.xlu1 %v11870_v47, %s8317_s23 }
 0x7ce   :  { %5927 = vrot.lane.b32.xlu0 %v12073_v21, %s8322_s30 }
 0x7cf   :  { %v12230_v19 = vpop.permute.xlu1 %4927 }
 0x7d0   :  { %16051 = vst [vmem:[#allocation158_spill] sm:$0xff] %v12230_v19  ;;  %v12232_v46 = vpop.permute.xlu0 %4846  ;;  %v1959_v19 = vadd.s32 1280, %v15903_v27 }
 0x7d1   :  { %16052 = vst [vmem:[#allocation159_spill] sm:$0xff] %v12232_v46  ;;  %2769 = vrot.lane.b32.xlu1 %v11887_v53, %s8317_s23  ;;  %v3360_v46 = vsel %vm3349_vm12, %v12128_v6, %v12107_v25 }
 0x7d2   :  { %5828 = vrot.lane.b32.xlu0 %v12073_v21, %s8327_s2  ;;  %v12331_v57 = vand.u32 31, %v1959_v19 }
 0x7d3   :  { %v12238_v62 = vpop.permute.xlu1 %6012 }
 0x7d4   :  { %16053 = vst [vmem:[#allocation160_spill] sm:$0xff] %v12238_v62  ;;  %v12240_v40 = vpop.permute.xlu0 %4925  ;;  %16076 = vst [vmem:[#allocation183_spill] sm:$0xff] %v12331_v57  ;;  %vm15275_vm9 = vcmp.lt.s32.totalorder %v12331_v57, 30  ;;  %vm15221_vm0 = vcmp.lt.s32.totalorder %v12331_v57, 31  ;;  %vm15273_vm7 = vcmp.ge.s32.totalorder %v12331_v57, 1 }
 0x7d5   :  { %16054 = vst [vmem:[#allocation161_spill] sm:$0xff] %v12240_v40  ;;  %2866 = vrot.lane.b32.xlu1 %v11873_v42, %s8316_s3 }
 0x7d6   :  { %5745 = vrot.lane.b32.xlu0 %v12073_v21, %s8324_s13 }
 0x7d7   :  { %v12246_v50 = vpop.permute.xlu1 %6016 }
 0x7d8   :  { %16055 = vst [vmem:[#allocation162_spill] sm:$0xff] %v12246_v50  ;;  %v12248_v22 = vpop.permute.xlu0 %4929 }
 0x7d9   :  { %16056 = vst [vmem:[#allocation163_spill] sm:$0xff] %v12248_v22  ;;  %2964 = vrot.lane.b32.xlu1 %v11870_v47, %s8311_s22 }
 0x7da   :  { %5646 = vrot.lane.b32.xlu0 %v12073_v21, %s8328_s16 }
 0x7db   :  { %v12254_v45 = vpop.permute.xlu1 %5913 }
 0x7dc   :  { %16057 = vst [vmem:[#allocation164_spill] sm:$0xff] %v12254_v45  ;;  %v12256_v62 = vpop.permute.xlu0 %6014 }
 0x7dd   :  { %16058 = vst [vmem:[#allocation165_spill] sm:$0xff] %v12256_v62  ;;  %2968 = vrot.lane.b32.xlu1 %v11887_v53, %s8311_s22 }
 0x7de   :  { %2587 = vrot.lane.b32.xlu0 %v11873_v42, %s8306_s29 }
 0x7df   :  { %v12262_v15 = vpop.permute.xlu1 %5917 }
 0x7e0   :  { %16059 = vst [vmem:[#allocation166_spill] sm:$0xff] %v12262_v15  ;;  %v12264_v50 = vpop.permute.xlu0 %5915 }
 0x7e1   :  { %16060 = vst [vmem:[#allocation167_spill] sm:$0xff] %v12264_v50  ;;  %3064 = vrot.lane.b32.xlu1 %v11873_v42, %s8310_s21 }
 0x7e2   :  { %2667 = vrot.lane.b32.xlu0 %v11870_v47, %s8305_s24 }
 0x7e3   :  { %v12270_v31 = vpop.permute.xlu1 %5814 }
 0x7e4   :  { %16061 = vst [vmem:[#allocation168_spill] sm:$0xff] %v12270_v31  ;;  %v12272_v45 = vpop.permute.xlu0 %5816 }
 0x7e5   :  { %16062 = vst [vmem:[#allocation169_spill] sm:$0xff] %v12272_v45  ;;  %3144 = vrot.lane.b32.xlu1 %v11870_v47, %s8309_s20 }
 0x7e6   :  { %2671 = vrot.lane.b32.xlu0 %v11887_v53, %s8305_s24 }
 0x7e7   :  { %v12278_v62 = vpop.permute.xlu1 %5818 }
 0x7e8   :  { %16063 = vst [vmem:[#allocation170_spill] sm:$0xff] %v12278_v62  ;;  %v12280_v15 = vpop.permute.xlu0 %5733 }
 0x7e9   :  { %16064 = vst [vmem:[#allocation171_spill] sm:$0xff] %v12280_v15  ;;  %3148 = vrot.lane.b32.xlu1 %v11887_v53, %s8309_s20 }
 0x7ea   :  { %2767 = vrot.lane.b32.xlu0 %v11873_v42, %s8317_s23 }
 0x7eb   :  { %v12286_v50 = vpop.permute.xlu1 %5731 }
 0x7ec   :  { %16065 = vst [vmem:[#allocation172_spill] sm:$0xff] %v12286_v50  ;;  %v12288_v31 = vpop.permute.xlu0 %5634 }
 0x7ed   :  { %16066 = vst [vmem:[#allocation173_spill] sm:$0xff] %v12288_v31  ;;  %3244 = vrot.lane.b32.xlu1 %v11873_v42, %s8318_s25  ;;  %v12306_v31 = vld [vmem:[#allocation3 + $0x20] sm:$0xff] }
 0x7ee   :  { %2864 = vrot.lane.b32.xlu0 %v11870_v47, %s8316_s3  ;;  %16071 = vst [vmem:[#allocation178_spill] sm:$0xff] %v12306_v31 }
 0x7ef   :  { %v12294_v45 = vpop.permute.xlu1 %5735 }
 0x7f0   :  { %16067 = vst [vmem:[#allocation174_spill] sm:$0xff] %v12294_v45  ;;  %v12296_v62 = vpop.permute.xlu0 %2583 }
 0x7f1   :  { %16068 = vst [vmem:[#allocation175_spill] sm:$0xff] %v12296_v62  ;;  %3341 = vrot.lane.b32.xlu1 %v11870_v47, %s8320_s27 }
 0x7f2   :  { %2868 = vrot.lane.b32.xlu0 %v11887_v53, %s8316_s3 }
 0x7f3   :  { %v12302_v15 = vpop.permute.xlu1 %5632 }
 0x7f4   :  { %16069 = vst [vmem:[#allocation176_spill] sm:$0xff] %v12302_v15  ;;  %v12304_v50 = vpop.permute.xlu0 %2763  ;;  %v12319_v15 = vld [vmem:[#allocation3 + $0x8] sm:$0xff] }
 0x7f5   :  { %16070 = vst [vmem:[#allocation177_spill] sm:$0xff] %v12304_v50  ;;  %6842 = vrot.lane.b32.xlu1 %v12306_v31, %s8305_s24  ;;  %16073 = vst [vmem:[#allocation180_spill] sm:$0xff] %v12319_v15 }
 0x7f6   :  { %2966 = vrot.lane.b32.xlu0 %v11873_v42, %s8311_s22 }
 0x7f7   :  { %v12312_v45 = vpop.permute.xlu1 %5636 }
 0x7f8   :  { %16072 = vst [vmem:[#allocation179_spill] sm:$0xff] %v12312_v45  ;;  %v12315_v40 = vpop.permute.xlu0 %2962  ;;  %v12327_v45 = vand.u32 31, %v1960_v60  ;;  %v12345_v60 = vld [vmem:[#allocation3 + $0x28] sm:$0xff] }
 0x7f9   :  { %6836 = vrot.lane.b32.xlu1 %v12319_v15, %s8305_s24  ;;  %16079 = vst [vmem:[#allocation186_spill] sm:$0xff] %v12345_v60 }
 0x7fa   :  { %3062 = vrot.lane.b32.xlu0 %v11870_v47, %s8310_s21  ;;  %16075 = vst [vmem:[#allocation182_spill] sm:$0xff] %v12327_v45  ;;  %vm15277_vm14 = vcmp.lt.s32.totalorder %v12327_v45, 30  ;;  %vm15222_vm5 = vcmp.lt.s32.totalorder %v12327_v45, 31  ;;  %vm15274_vm3 = vcmp.ge.s32.totalorder %v12327_v45, 1 }
 0x7fb   :  { %v12325_v22 = vpop.permute.xlu1 %2665 }
 0x7fc   :  { %16074 = vst [vmem:[#allocation181_spill] sm:$0xff] %v12325_v22  ;;  %v12329_v17 = vpop.permute.xlu0 %3142 }
 0x7fd   :  { %6758 = vrot.lane.b32.xlu1 %v12333_v41, %s8306_s29 }
 0x7fe   :  { %3066 = vrot.lane.b32.xlu0 %v11887_v53, %s8310_s21 }
 0x7ff   :  { %v12339_v36 = vpop.permute.xlu1 %2862 }
 0x800   :  { %16078 = vst [vmem:[#allocation185_spill] sm:$0xff] %v12339_v36  ;;  %v12342_v7 = vpop.permute.xlu0 %3339 }
 0x801   :  { %6762 = vrot.lane.b32.xlu1 %v12345_v60, %s8306_s29  ;;  %v3361_v19 = vsel %vm3349_vm12, %v12107_v25, %v12342_v7 }
 0x802   :  { %3146 = vrot.lane.b32.xlu0 %v11873_v42, %s8309_s20  ;;  %7874 = vmatprep.subr.msk.mxu0 %vm15277_vm14, %v3361_v19  ;;  %v12375_v19 = vld [vmem:[#allocation3 + $0x30] sm:$0xff] }
 0x803   :  { %7875 = vmatpush1.msk.msra.mxu0 %vm15275_vm9, %v3360_v46  ;;  %v12361_v62 = vpop.permute.xlu1 %3060 }
 0x804   :  { %v12363_v22 = vpop.permute.xlu0 %4600 }
 0x805   :  { %16080 = vst [vmem:[#allocation187_spill] sm:$0xff] %v12363_v22  ;;  %3345 = vrot.lane.b32.xlu1 %v11887_v53, %s8320_s27  ;;  %v3261_v22 = vsel %vm3250_vm10, %v12087_v8, %v12111_v38 }
 0x806   :  { %3242 = vrot.lane.b32.xlu0 %v11870_v47, %s8318_s25 }
 0x807   :  { %v12370_v25 = vpop.permute.xlu1 %3240 }
 0x808   :  { %v12373_v6 = vpop.permute.xlu0 %4765  ;;  %v3262_v46 = vsel %vm3250_vm10, %v12111_v38, %v12370_v25  ;;  %v3162_v38 = vsel %vm710_vm11, %v12089_v59, %v12079_v39  ;;  %v2983_v59 = vsel %vm660_vm8, %v12057_v14, %v12315_v40 }
 0x809   :  { %16081 = vst [vmem:[#allocation188_spill] sm:$0xff] %v12373_v6  ;;  %7042 = vrot.lane.b32.xlu1 %v12375_v19, %s8316_s3  ;;  %7876 = vmatprep.subr.msk.mxu0 %vm15222_vm5, %v3262_v46  ;;  %v3163_v6 = vsel %vm710_vm11, %v12079_v39, %v12329_v17  ;;  %v3080_v46 = vsel %vm683_vm6, %v12065_v30, %v12081_v4  ;;  %vm15260_vm5 = vcmp.ge.s32.totalorder %v12331_v57, 2 }
 0x80a   :  { %3246 = vrot.lane.b32.xlu0 %v11887_v53, %s8318_s25  ;;  %7877 = vmatpush1.msk.msra.mxu0 %vm15221_vm0, %v3261_v22  ;;  %v3081_v22 = vsel %vm683_vm6, %v12081_v4, %v12361_v62  ;;  %vm15272_vm0 = vcmp.ge.s32.totalorder %v12327_v45, 2  ;;  %v2982_v30 = vsel %vm660_vm8, %v12067_v29, %v12057_v14 }
 0x80b   :  { %v12395_v50 = vpop.permute.xlu1 %4682  ;;  %3785 = vmatprep.subr.mxu0 %v3163_v6  ;;  %v7114_v6 = vld [vmem:[%s14765_s7 + $0x4] sm:$0x7] }
 0x80c   :  { %16082 = vst [vmem:[#allocation189_spill] sm:$0xff] %v12395_v50  ;;  %v12401_v8 = vpop.permute.xlu0 %6018  ;;  %3786 = vmatpush1.msra.mxu0 %v3162_v38 }
 0x80d   :  { %16083 = vst [vmem:[#allocation190_spill] sm:$0xff] %v12401_v8  ;;  %7046 = vrot.lane.b32.xlu1 %v11564_v0, %s8316_s3  ;;  %7878 = vmatprep.subr.msk.mxu0 %vm15274_vm3, %v3081_v22 }
 0x80e   :  { %3343 = vrot.lane.b32.xlu0 %v11873_v42, %s8320_s27  ;;  %7879 = vmatpush1.msk.msra.mxu0 %vm15273_vm7, %v3080_v46  ;;  %v12456_v46 = vld [vmem:[#allocation3 + $0x10] sm:$0xff] }
 0x80f   :  { %v12425_v4 = vpop.permute.xlu1 %4848  ;;  %7880 = vmatprep.subr.msk.mxu0 %vm15272_vm0, %v2983_v59  ;;  %16090 = vst [vmem:[#allocation197_spill] sm:$0xff] %v12456_v46 }
 0x810   :  { %16084 = vst [vmem:[#allocation191_spill] sm:$0xff] %v12425_v4  ;;  %v12429_v39 = vpop.permute.xlu0 %5919  ;;  %7881 = vmatpush1.msk.msra.mxu0 %vm15260_vm5, %v2982_v30 }
 0x811   :  { %16085 = vst [vmem:[#allocation192_spill] sm:$0xff] %v12429_v39  ;;  %6944 = vrot.lane.b32.xlu1 %v12375_v19, %s8317_s23  ;;  %7882 = vmatmul.mubr.msk.f32.vlgmr.msra.gmra.mxu0 %vm3401_vm2, %v15915_v52 }
 0x812   :  { %6840 = vrot.lane.b32.xlu0 %v12333_v41, %s8305_s24  ;;  %3965 = vmatprep.mubr.f32.mxu0 %v15717_v34 }
 0x813   :  { %v12440_v14 = vpop.permute.xlu1 %4931 }
 0x814   :  { %16086 = vst [vmem:[#allocation193_spill] sm:$0xff] %v12440_v14  ;;  %v12442_v29 = vpop.permute.xlu0 %5820 }
 0x815   :  { %16087 = vst [vmem:[#allocation194_spill] sm:$0xff] %v12442_v29  ;;  %6948 = vrot.lane.b32.xlu1 %v11564_v0, %s8317_s23  ;;  %v6678_v29 = vld [vmem:[#allocation3 + $0x38] sm:$0xff] }
 0x816   :  { %6844 = vrot.lane.b32.xlu0 %v12345_v60, %s8305_s24 }
 0x817   :  { %v12451_v38 = vpop.permute.xlu1 %2673 }
 0x818   :  { %16088 = vst [vmem:[#allocation195_spill] sm:$0xff] %v12451_v38  ;;  %v12453_v22 = vpop.permute.xlu0 %5737 }
 0x819   :  { %16089 = vst [vmem:[#allocation196_spill] sm:$0xff] %v12453_v22  ;;  %7116 = vrot.lane.b32.xlu1 %v7114_v6, %s8311_s22  ;;  %v6680_v6 = vld [vmem:[#allocation3 + $0x48] sm:$0xff] }
 0x81a   :  { %6756 = vrot.lane.b32.xlu0 %v12456_v46, %s8306_s29 }
 0x81b   :  { %v12460_v59 = vpop.permute.xlu1 %2870 }
 0x81c   :  { %16091 = vst [vmem:[#allocation198_spill] sm:$0xff] %v12460_v59  ;;  %v12462_v30 = vpop.permute.xlu0 %5638 }
 0x81d   :  { %16092 = vst [vmem:[#allocation199_spill] sm:$0xff] %v12462_v30  ;;  %6848 = vrot.lane.b32.xlu1 %v6678_v29, %s8305_s24 }
 0x81e   :  { %6760 = vrot.lane.b32.xlu0 %v12306_v31, %s8306_s29  ;;  %v12620_v31 = vadd.s32 1920, %v15903_v27 }
 0x81f   :  { %v12467_v39 = vpop.permute.xlu1 %3068 }
 0x820   :  { %v12469_v22 = vpop.permute.xlu0 %2591  ;;  %16120 = vst [vmem:[#allocation227_spill] sm:$0xff] %v12620_v31 }
 0x821   :  { %16093 = vst [vmem:[#allocation200_spill] sm:$0xff] %v12469_v22  ;;  %6852 = vrot.lane.b32.xlu1 %v6680_v6, %s8305_s24 }
 0x822   :  { %6754 = vrot.lane.b32.xlu0 %v12319_v15, %s8306_s29  ;;  %v1961_v15 = vadd.s32 1536, %v15903_v27 }
 0x823   :  { %v12474_v8 = vpop.permute.xlu1 %3248 }
 0x824   :  { %v12476_v50 = vpop.permute.xlu0 %2771  ;;  %v12658_v44 = vand.u32 31, %v1961_v15 }
 0x825   :  { %16094 = vst [vmem:[#allocation201_spill] sm:$0xff] %v12476_v50  ;;  %6766 = vrot.lane.b32.xlu1 %v6678_v29, %s8306_s29 }
 0x826   :  { %7044 = vrot.lane.b32.xlu0 %v6678_v29, %s8316_s3  ;;  %vm2473_vm7 = vcmp.lt.s32.totalorder %v12658_v44, 30  ;;  %vm15278_vm14 = vcmp.lt.s32.totalorder %v12658_v44, 31 }
 0x827   :  { %v12480_v30 = vpop.permute.xlu1 %4690 }
 0x828   :  { %16095 = vst [vmem:[#allocation202_spill] sm:$0xff] %v12480_v30  ;;  %v12482_v14 = vpop.permute.xlu0 %2970 }
 0x829   :  { %6770 = vrot.lane.b32.xlu1 %v6680_v6, %s8306_s29 }
 0x82a   :  { %7048 = vrot.lane.b32.xlu0 %v6680_v6, %s8316_s3 }
 0x82b   :  { %v12486_v4 = vpop.permute.xlu1 %4856 }
 0x82c   :  { %16096 = vst [vmem:[#allocation203_spill] sm:$0xff] %v12486_v4  ;;  %v12488_v22 = vpop.permute.xlu0 %3150 }
 0x82d   :  { %4602 = vrot.lane.b32.xlu1 %v11870_v47, %s8307_s19 }
 0x82e   :  { %6946 = vrot.lane.b32.xlu0 %v6678_v29, %s8317_s23 }
 0x82f   :  { %v12493_v38 = vpop.permute.xlu1 %4939 }
 0x830   :  { %16097 = vst [vmem:[#allocation204_spill] sm:$0xff] %v12493_v38  ;;  %v12495_v50 = vpop.permute.xlu0 %3347 }
 0x831   :  { %4606 = vrot.lane.b32.xlu1 %v11887_v53, %s8307_s19 }
 0x832   :  { %6950 = vrot.lane.b32.xlu0 %v6680_v6, %s8317_s23 }
 0x833   :  { %v12500_v30 = vpop.permute.xlu1 %2585 }
 0x834   :  { %16098 = vst [vmem:[#allocation205_spill] sm:$0xff] %v12500_v30  ;;  %v12502_v59 = vpop.permute.xlu0 %4608 }
 0x835   :  { %16099 = vst [vmem:[#allocation206_spill] sm:$0xff] %v12502_v59  ;;  %4686 = vrot.lane.b32.xlu1 %v11873_v42, %s8319_s26 }
 0x836   :  { %6846 = vrot.lane.b32.xlu0 %v12375_v19, %s8305_s24 }
 0x837   :  { %v12508_v29 = vpop.permute.xlu1 %2589 }
 0x838   :  { %16100 = vst [vmem:[#allocation207_spill] sm:$0xff] %v12508_v29  ;;  %v12510_v38 = vpop.permute.xlu0 %4773  ;;  %v6682_v29 = vld [vmem:[#allocation3 + $0x58] sm:$0xff] }
 0x839   :  { %16101 = vst [vmem:[#allocation208_spill] sm:$0xff] %v12510_v38  ;;  %4767 = vrot.lane.b32.xlu1 %v11870_v47, %s8323_s10  ;;  %v12530_v38 = vld [vmem:[#allocation3 + $0x40] sm:$0xff] }
 0x83a   :  { %6850 = vrot.lane.b32.xlu0 %v11564_v0, %s8305_s24  ;;  %16106 = vst [vmem:[#allocation213_spill] sm:$0xff] %v12530_v38 }
 0x83b   :  { %v12516_v6 = vpop.permute.xlu1 %2669 }
 0x83c   :  { %16102 = vst [vmem:[#allocation209_spill] sm:$0xff] %v12516_v6  ;;  %v12518_v4 = vpop.permute.xlu0 %6026 }
 0x83d   :  { %16103 = vst [vmem:[#allocation210_spill] sm:$0xff] %v12518_v4  ;;  %4771 = vrot.lane.b32.xlu1 %v11887_v53, %s8323_s10 }
 0x83e   :  { %6764 = vrot.lane.b32.xlu0 %v12375_v19, %s8306_s29 }
 0x83f   :  { %v12524_v59 = vpop.permute.xlu1 %2765 }
 0x840   :  { %16104 = vst [vmem:[#allocation211_spill] sm:$0xff] %v12524_v59  ;;  %v12526_v30 = vpop.permute.xlu0 %5927 }
 0x841   :  { %16105 = vst [vmem:[#allocation212_spill] sm:$0xff] %v12526_v30  ;;  %4852 = vrot.lane.b32.xlu1 %v11873_v42, %s8321_s28 }
 0x842   :  { %6768 = vrot.lane.b32.xlu0 %v12530_v38, %s8306_s29 }
 0x843   :  { %v12534_v0 = vpop.permute.xlu1 %2769 }
 0x844   :  { %16107 = vst [vmem:[#allocation214_spill] sm:$0xff] %v12534_v0  ;;  %v12536_v4 = vpop.permute.xlu0 %5828 }
 0x845   :  { %16108 = vst [vmem:[#allocation215_spill] sm:$0xff] %v12536_v4  ;;  %4935 = vrot.lane.b32.xlu1 %v11873_v42, %s8325_s14 }
 0x846   :  { %4604 = vrot.lane.b32.xlu0 %v11873_v42, %s8307_s19 }
 0x847   :  { %v12542_v19 = vpop.permute.xlu1 %2866 }
 0x848   :  { %16109 = vst [vmem:[#allocation216_spill] sm:$0xff] %v12542_v19  ;;  %v12544_v30 = vpop.permute.xlu0 %5745 }
 0x849   :  { %16110 = vst [vmem:[#allocation217_spill] sm:$0xff] %v12544_v30  ;;  %7052 = vrot.lane.b32.xlu1 %v6682_v29, %s8316_s3 }
 0x84a   :  { %4684 = vrot.lane.b32.xlu0 %v11870_v47, %s8319_s26 }
 0x84b   :  { %v12549_v6 = vpop.permute.xlu1 %2964 }
 0x84c   :  { %v12551_v59 = vpop.permute.xlu0 %5646 }
 0x84d   :  { %16111 = vst [vmem:[#allocation218_spill] sm:$0xff] %v12551_v59  ;;  %6954 = vrot.lane.b32.xlu1 %v6682_v29, %s8317_s23 }
 0x84e   :  { %4688 = vrot.lane.b32.xlu0 %v11887_v53, %s8319_s26 }
 0x84f   :  { %v12556_v4 = vpop.permute.xlu1 %2968 }
 0x850   :  { %v12558_v0 = vpop.permute.xlu0 %2587 }
 0x851   :  { %16112 = vst [vmem:[#allocation219_spill] sm:$0xff] %v12558_v0  ;;  %6856 = vrot.lane.b32.xlu1 %v6682_v29, %s8305_s24 }
 0x852   :  { %4769 = vrot.lane.b32.xlu0 %v11873_v42, %s8323_s10 }
 0x853   :  { %v12563_v30 = vpop.permute.xlu1 %3064 }
 0x854   :  { %v12565_v19 = vpop.permute.xlu0 %2667 }
 0x855   :  { %16113 = vst [vmem:[#allocation220_spill] sm:$0xff] %v12565_v19  ;;  %6020 = vrot.lane.b32.xlu1 %v11870_v47, %s8326_s12 }
 0x856   :  { %4850 = vrot.lane.b32.xlu0 %v11870_v47, %s8321_s28 }
 0x857   :  { %v12571_v59 = vpop.permute.xlu1 %3144 }
 0x858   :  { %v12573_v38 = vpop.permute.xlu0 %2671 }
 0x859   :  { %16114 = vst [vmem:[#allocation221_spill] sm:$0xff] %v12573_v38  ;;  %6024 = vrot.lane.b32.xlu1 %v11887_v53, %s8326_s12 }
 0x85a   :  { %4854 = vrot.lane.b32.xlu0 %v11887_v53, %s8321_s28 }
 0x85b   :  { %v12579_v0 = vpop.permute.xlu1 %3148 }
 0x85c   :  { %v12581_v57 = vpop.permute.xlu0 %2767 }
 0x85d   :  { %16115 = vst [vmem:[#allocation222_spill] sm:$0xff] %v12581_v57  ;;  %5921 = vrot.lane.b32.xlu1 %v11870_v47, %s8322_s30  ;;  %v12599_v57 = vld [vmem:[#allocation3 + $0x50] sm:$0xff] }
 0x85e   :  { %4933 = vrot.lane.b32.xlu0 %v11870_v47, %s8325_s14  ;;  %16118 = vst [vmem:[#allocation225_spill] sm:$0xff] %v12599_v57 }
 0x85f   :  { %v12587_v19 = vpop.permute.xlu1 %3244 }
 0x860   :  { %v12589_v58 = vpop.permute.xlu0 %2864 }
 0x861   :  { %16116 = vst [vmem:[#allocation223_spill] sm:$0xff] %v12589_v58  ;;  %5925 = vrot.lane.b32.xlu1 %v11887_v53, %s8322_s30 }
 0x862   :  { %4937 = vrot.lane.b32.xlu0 %v11887_v53, %s8325_s14 }
 0x863   :  { %v3342_v38 = vpop.permute.xlu1 %3341 }
 0x864   :  { %v12595_v45 = vpop.permute.xlu0 %2868  ;;  %v3362_v15 = vsel %vm3349_vm12, %v12342_v7, %v3342_v38 }
 0x865   :  { %16117 = vst [vmem:[#allocation224_spill] sm:$0xff] %v12595_v45  ;;  %5822 = vrot.lane.b32.xlu1 %v11870_v47, %s8327_s2 }
 0x866   :  { %7050 = vrot.lane.b32.xlu0 %v12599_v57, %s8316_s3 }
 0x867   :  { %v12603_v23 = vpop.permute.xlu1 %6842 }
 0x868   :  { %v12605_v58 = vpop.permute.xlu0 %2966 }
 0x869   :  { %5826 = vrot.lane.b32.xlu1 %v11887_v53, %s8327_s2 }
 0x86a   :  { %7054 = vrot.lane.b32.xlu0 %v11825_v5, %s8316_s3 }
 0x86b   :  { %v12611_v36 = vpop.permute.xlu1 %6836 }
 0x86c   :  { %16119 = vst [vmem:[#allocation226_spill] sm:$0xff] %v12611_v36  ;;  %v12613_v45 = vpop.permute.xlu0 %3062  ;;  %v12631_v36 = vand.u32 31, %v12620_v31  ;;  %v1963_v31 = vadd.s32 1792, %v15903_v27 }
 0x86d   :  { %5739 = vrot.lane.b32.xlu1 %v11870_v47, %s8324_s13 }
 0x86e   :  { %6952 = vrot.lane.b32.xlu0 %v12599_v57, %s8317_s23  ;;  %vm15271_vm5 = vcmp.lt.s32.totalorder %v12631_v36, 30  ;;  %v12656_v12 = vand.u32 31, %v1963_v31  ;;  %vm15283_vm3 = vcmp.lt.s32.totalorder %v12631_v36, 31 }
 0x86f   :  { %v12622_v60 = vpop.permute.xlu1 %6758 }
 0x870   :  { %v12624_v21 = vpop.permute.xlu0 %3066  ;;  %vm2475_vm0 = vcmp.lt.s32.totalorder %v12656_v12, 30  ;;  %vm15279_vm1 = vcmp.lt.s32.totalorder %v12656_v12, 31 }
 0x871   :  { %5743 = vrot.lane.b32.xlu1 %v11887_v53, %s8324_s13 }
 0x872   :  { %6956 = vrot.lane.b32.xlu0 %v11825_v5, %s8317_s23 }
 0x873   :  { %v12633_v10 = vpop.permute.xlu1 %6762 }
 0x874   :  { %v3147_v55 = vpop.permute.xlu0 %3146 }
 0x875   :  { %5640 = vrot.lane.b32.xlu1 %v11870_v47, %s8328_s16  ;;  %v12650_v47 = vld [vmem:[#allocation3 + $0x88] sm:$0xff] }
 0x876   :  { %6854 = vrot.lane.b32.xlu0 %v12599_v57, %s8305_s24  ;;  %v12654_v57 = vand.u32 31, %v1962_v61 }
 0x877   :  { %v3346_v43 = vpop.permute.xlu1 %3345 }
 0x878   :  { %v3365_v34 = vsel %vm3349_vm12, %v3346_v43, %v12495_v50  ;;  %v3243_v46 = vpop.permute.xlu0 %3242  ;;  %vm15280_vm9 = vcmp.lt.s32.totalorder %v12654_v57, 31 }
 0x879   :  { %6774 = vrot.lane.b32.xlu1 %v6682_v29, %s8306_s29  ;;  %7892 = vmatprep.subr.msk.mxu0 %vm15271_vm5, %v3365_v34  ;;  %vm2474_vm5 = vcmp.lt.s32.totalorder %v12654_v57, 30 }
 0x87a   :  { %6858 = vrot.lane.b32.xlu0 %v11825_v5, %s8305_s24 }
 0x87b   :  { %v12652_v41 = vpop.permute.xlu1 %7042 }
 0x87c   :  { %16121 = vst [vmem:[#allocation228_spill] sm:$0xff] %v12652_v41  ;;  %v3247_v50 = vpop.permute.xlu0 %3246 }
 0x87d   :  { %7064 = vrot.lane.b32.xlu1 %v12650_v47, %s8316_s3  ;;  %v3266_v29 = vsel %vm3250_vm10, %v3247_v50, %v12474_v8 }
 0x87e   :  { %6022 = vrot.lane.b32.xlu0 %v11873_v42, %s8326_s12 }
 0x87f   :  { %v12664_v34 = vpop.permute.xlu1 %7046 }
 0x880   :  { %v3344_v5 = vpop.permute.xlu0 %3343 }
 0x881   :  { %v3363_v61 = vsel %vm3349_vm12, %v3342_v38, %v3344_v5  ;;  %v3364_v31 = vsel %vm3349_vm12, %v3344_v5, %v3346_v43  ;;  %6966 = vrot.lane.b32.xlu1 %v12650_v47, %s8317_s23  ;;  %v3264_v43 = vsel %vm3250_vm10, %v3243_v46, %v12587_v19  ;;  %v3263_v38 = vsel %vm3250_vm10, %v12370_v25, %v3243_v46 }
 0x882   :  { %5923 = vrot.lane.b32.xlu0 %v11873_v42, %s8322_s30  ;;  %7883 = vmatprep.subr.msk.mxu1 %vm2474_vm5, %v3363_v61  ;;  %v3265_v5 = vsel %vm3250_vm10, %v12587_v19, %v3247_v50  ;;  %v3167_v25 = vsel %vm710_vm11, %v12579_v0, %v12488_v22  ;;  %v3165_v46 = vsel %vm710_vm11, %v12571_v59, %v3147_v55  ;;  %vm15282_vm12 = vcmp.ge.s32.totalorder %v12631_v36, 1 }
 0x883   :  { %7893 = vmatpush1.msk.msra.mxu0 %vm2475_vm0, %v3364_v31  ;;  %7884 = vmatpush1.msk.msra.mxu1 %vm2473_vm7, %v3362_v15  ;;  %v12691_v7 = vpop.permute.xlu1 %6944  ;;  %vm15281_vm10 = vcmp.ge.s32.totalorder %v12654_v57, 1  ;;  %v3166_v19 = vsel %vm710_vm11, %v3147_v55, %v12579_v0  ;;  %v3164_v22 = vsel %vm710_vm11, %v12329_v17, %v12571_v59  ;;  %v3085_v55 = vsel %vm683_vm6, %v12624_v21, %v12467_v39 }
 0x884   :  { %16122 = vst [vmem:[#allocation229_spill] sm:$0xff] %v12691_v7  ;;  %7894 = vmatprep.subr.msk.mxu0 %vm15283_vm3, %v3266_v29  ;;  %7885 = vmatprep.subr.msk.mxu1 %vm15280_vm9, %v3264_v43  ;;  %v12701_v8 = vpop.permute.xlu0 %6840  ;;  %vm15288_vm11 = vcmp.ge.s32.totalorder %v12631_v36, 2  ;;  %v3082_v17 = vsel %vm683_vm6, %v12361_v62, %v12613_v45  ;;  %v3084_v59 = vsel %vm683_vm6, %v12563_v30, %v12624_v21  ;;  %vm15284_vm9 = vcmp.ge.s32.totalorder %v12654_v57, 2  ;;  %v8268_v62 = vld [vmem:[#allocation3] sm:$0xff] }
 0x885   :  { %7895 = vmatpush1.msk.msra.mxu0 %vm15279_vm1, %v3265_v5  ;;  %v12708_v61 = vsel %vm15299_vm13, %v12701_v8, %v12603_v23  ;;  %7886 = vmatpush1.msk.msra.mxu1 %vm15278_vm14, %v3263_v38  ;;  %vm15290_vm14 = vcmp.ge.s32.totalorder %v12656_v12, 1  ;;  %vm15289_vm1 = vcmp.ge.s32.totalorder %v12658_v44, 1  ;;  %v2987_v21 = vsel %vm660_vm8, %v12556_v4, %v12482_v14 }
 0x886   :  { %3927 = vmatprep.subr.mxu0 %v3167_v25  ;;  %5644 = vrot.lane.b32.xlu1 %v11887_v53, %s8328_s16  ;;  %v3083_v53 = vsel %vm683_vm6, %v12613_v45, %v12563_v30  ;;  %vm15287_vm6 = vcmp.ge.s32.totalorder %v12656_v12, 2  ;;  %v16123_v45 = vand.u32 1023, %v15903_v27  ;;  %vm15304_vm3 = vcmask 1014784  }
 0x887   :  { %5824 = vrot.lane.b32.xlu0 %v11873_v42, %s8327_s2  ;;  %3856 = vmatprep.subr.mxu1 %v3165_v46  ;;  %v12728_v50 = vpop.permute.xlu1 %6948  ;;  %v2984_v27 = vsel %vm660_vm8, %v12315_v40, %v12549_v6  ;;  %v2986_v30 = vsel %vm660_vm8, %v12605_v58, %v12556_v4  ;;  %v2876_v40 = vsel %vm15304_vm3, %v11123_v32, %v11399_v37 }
 0x888   :  { %3928 = vmatpush1.msra.mxu0 %v3166_v19  ;;  %3857 = vmatpush1.msra.mxu1 %v3164_v22  ;;  %v12738_v0 = vpop.permute.xlu0 %6844  ;;  %v2874_v4 = vsel %vm15304_vm3, %v11116_v56, %v11099_v20  ;;  %v2875_v15 = vsel %vm15304_vm3, %v11099_v20, %v11123_v32  ;;  %v2596_v25 = vsel %vm15298_vm15, %v11069_v28, %v11427_v2  ;;  %v16138_v22 = vld [vmem:[#allocation225_spill] sm:$0xff] }
 0x889   :  { %7896 = vmatprep.subr.msk.mxu0 %vm15282_vm12, %v3085_v55  ;;  %7887 = vmatprep.subr.msk.mxu1 %vm15281_vm10, %v3083_v53  ;;  %v12755_v39 = vsel %vm15299_vm13, %v12603_v23, %v12738_v0  ;;  %vm15285_vm10 = vcmp.ge.s32.totalorder %v12658_v44, 2  ;;  %vm12768_vm12 = vcmp.ge.s32.totalorder %v16123_v45, 64  ;;  %v2985_v23 = vsel %vm660_vm8, %v12549_v6, %v12605_v58 }
 0x88a   :  { %7897 = vmatpush1.msk.msra.mxu0 %vm15290_vm14, %v3084_v59  ;;  %7888 = vmatpush1.msk.msra.mxu1 %vm15289_vm1, %v3082_v17  ;;  %vm16126_vm8 = vcmp.lt.s32.totalorder %v11162_v9, 30  ;;  %v2873_v6 = vsel %vm15304_vm3, %v11005_v35, %v11116_v56  ;;  %v12830_v56 = vld [vmem:[#allocation3 + $0x68] sm:$0xff]  ;;  %v2595_v19 = vsel %vm15298_vm15, %v11087_v1, %v11069_v28  ;;  %v16142_v17 = vld [vmem:[#allocation184_spill] sm:$0xff]  ;;  %vm16143_vm1 = vcmp.ge.s32.totalorder %v11450_v26, 2 }
 0x88b   :  { %7898 = vmatprep.subr.msk.mxu0 %vm15288_vm11, %v2987_v21  ;;  %6868 = vrot.lane.b32.xlu1 %v12650_v47, %s8305_s24  ;;  %v12779_v14 = vpop.permute.xlu1 %7116  ;;  %v16144_v28 = vld [vmem:[#allocation180_spill] sm:$0xff]  ;;  %vm16145_vm14 = vcmp.ge.s32.totalorder %v11170_v54, 2  ;;  %v16148_v21 = vld [vmem:[#allocation197_spill] sm:$0xff]  ;;  %v16150_v45 = vmov 0.0  }
 0x88c   :  { %5741 = vrot.lane.b32.xlu0 %v11873_v42, %s8324_s13  ;;  %7889 = vmatprep.subr.msk.mxu1 %vm15284_vm9, %v2985_v23  ;;  %v6757_v31 = vpop.permute.xlu0 %6756  ;;  %vm2822_vm9 = vmand %vm12768_vm12, %vm16126_vm8  ;;  %vm16127_vm8 = vcmp.lt.s32.totalorder %v11170_v54, 30  ;;  %v16151_v23 = vld [vmem:[#allocation121_spill] sm:$0xff] }
 0x88d   :  { %7899 = vmatpush1.msk.msra.mxu0 %vm15287_vm6, %v2986_v30  ;;  %7890 = vmatpush1.msk.msra.mxu1 %vm15285_vm10, %v2984_v27  ;;  %v12800_v58 = vsel %vm15298_vm15, %v6757_v31, %v12622_v60  ;;  %vm15300_vm10 = vcmask 1022976   ;;  %vm16129_vm6 = vcmp.lt.s32.totalorder %v11162_v9, 31  ;;  %v16152_v27 = vld [vmem:[#allocation13_spill] sm:$0xff] }
 0x88e   :  { %7900 = vmatmul.mubr.msk.f32.vlgmr.msra.gmra.mxu0 %vm3401_vm2, %v15915_v52  ;;  %7911 = vmatprep.subr.msk.mxu0 %vm15286_vm4, %v2876_v40  ;;  %vm16128_vm4 = vcmp.lt.s32.totalorder %v11457_v48, 30  ;;  %v2777_v35 = vsel %vm15300_vm10, %v11092_v13, %v11435_v51  ;;  %vm2723_vm11 = vmand %vm12768_vm12, %vm16129_vm6  ;;  %v2775_v32 = vsel %vm15300_vm10, %v11085_v33, %v11109_v63  ;;  %v2774_v38 = vsel %vm15300_vm10, %v11007_v11, %v11085_v33  ;;  %v12941_v40 = vld [vmem:[%s14765_s7] sm:$0x7] }
 0x88f   :  { %7891 = vmatmul.mubr.msk.f32.vlgmr.msra.gmra.mxu1 %vm3401_vm2, %v15915_v52  ;;  %7901 = vmatprep.subr.msk.mxu1 %vm16127_vm8, %v2874_v4  ;;  %v12823_v43 = vpop.permute.xlu1 %6848  ;;  %vm16130_vm8 = vcmp.lt.s32.totalorder %v11450_v26, 31  ;;  %v2776_v5 = vsel %vm15300_vm10, %v11109_v63, %v11092_v13  ;;  %v2676_v11 = vsel %vm15299_vm13, %v11094_v18, %v11077_v24  ;;  %v2675_v13 = vsel %vm15299_vm13, %v10997_v3, %v11094_v18  ;;  %v16154_v4 = vld [vmem:[#allocation117_spill] sm:$0xff] }
 0x890   :  { %7912 = vmatpush1.msk.msra.mxu0 %vm16128_vm4, %v2875_v15  ;;  %7902 = vmatpush1.msk.msra.mxu1 %vm2822_vm9, %v2873_v6  ;;  %v6761_v20 = vpop.permute.xlu0 %6760  ;;  %vm16131_vm4 = vcmp.lt.s32.totalorder %v11170_v54, 31  ;;  %vm16132_vm9 = vcmp.lt.s32.totalorder %v11457_v48, 31  ;;  %v2677_v63 = vsel %vm15299_vm13, %v11077_v24, %v11101_v16  ;;  %v16136_v24 = vld [vmem:[#allocation23_spill] sm:$0xff]  ;;  %v2880_v30 = vsel %vm15304_vm3, %v16152_v27, %v16151_v23  ;;  %v12951_v15 = vld [vmem:[#allocation3 + $0x60] sm:$0xff] }
 0x891   :  { %7913 = vmatprep.subr.msk.mxu0 %vm16130_vm8, %v2777_v35  ;;  %7056 = vrot.lane.b32.xlu1 %v12830_v56, %s8316_s3  ;;  %v12845_v52 = vsel %vm15298_vm15, %v12622_v60, %v6761_v20  ;;  %v12849_v29 = vsel %vm15298_vm15, %v6761_v20, %v12633_v10  ;;  %v2678_v60 = vsel %vm15299_vm13, %v11101_v16, %v11391_v49  ;;  %vm16135_vm8 = vcmp.ge.s32.totalorder %v11450_v26, 1  ;;  %v16137_v16 = vld [vmem:[#allocation19_spill] sm:$0xff]  ;;  %v16156_v35 = vld [vmem:[#allocation80_spill] sm:$0xff]  ;;  %v16157_v20 = vld [vmem:[#allocation5_spill] sm:$0xff] }
 0x892   :  { %5642 = vrot.lane.b32.xlu0 %v11873_v42, %s8328_s16  ;;  %7903 = vmatprep.subr.msk.mxu1 %vm16131_vm4, %v2775_v32  ;;  %v2594_v18 = vsel %vm15298_vm15, %v16136_v24, %v11087_v1  ;;  %v2593_v46 = vsel %vm15298_vm15, %v16137_v16, %v16136_v24  ;;  %vm16139_vm4 = vcmp.ge.s32.totalorder %v11170_v54, 1  ;;  %v2878_v32 = vsel %vm15304_vm3, %v16157_v20, %v16156_v35  ;;  %v16168_v24 = vld [vmem:[#allocation81_spill] sm:$0xff] }
 0x893   :  { %7914 = vmatpush1.msk.msra.mxu0 %vm16132_vm9, %v2776_v5  ;;  %7904 = vmatpush1.msk.msra.mxu1 %vm2723_vm11, %v2774_v38  ;;  %v12869_v33 = vpop.permute.xlu1 %6852  ;;  %vm16134_vm11 = vcmp.ge.s32.totalorder %v11162_v9, 1  ;;  %vm16140_vm9 = vcmp.ge.s32.totalorder %v11457_v48, 1  ;;  %v2877_v5 = vsel %vm15304_vm3, %v11399_v37, %v16157_v20 }
 0x894   :  { %16133 = vst [vmem:[#allocation230_spill] sm:$0xff] %v12869_v33  ;;  %4071 = vmatprep.subr.mxu0 %v2678_v60  ;;  %4000 = vmatprep.subr.mxu1 %v2676_v11  ;;  %v6755_v42 = vpop.permute.xlu0 %6754  ;;  %vm2526_vm6 = vmand %vm12768_vm12, %vm16134_vm11  ;;  %vm16141_vm11 = vcmp.ge.s32.totalorder %v11162_v9, 2  ;;  %v2879_v60 = vsel %vm15304_vm3, %v16156_v35, %v16152_v27  ;;  %v16159_v11 = vld [vmem:[#allocation16_spill] sm:$0xff]  ;;  %v16178_v27 = vld [vmem:[#allocation77_spill] sm:$0xff] }
 0x895   :  { %4072 = vmatpush1.msra.mxu0 %v2677_v63  ;;  %7905 = vmatpush1.msk.msra.mxu1 %vm12768_vm12, %v2675_v13  ;;  %v12887_v3 = vsel %vm15298_vm15, %v6755_v42, %v6757_v31  ;;  %v16161_v13 = vld [vmem:[#allocation118_spill] sm:$0xff]  ;;  %v16163_v63 = vld [vmem:[#allocation17_spill] sm:$0xff]  ;;  %v16179_v35 = vld [vmem:[#allocation143_spill] sm:$0xff] }
 0x896   :  { %7915 = vmatprep.subr.msk.mxu0 %vm16135_vm8, %v2596_v25  ;;  %6958 = vrot.lane.b32.xlu1 %v12830_v56, %s8317_s23  ;;  %vm2493_vm8 = vmand %vm12768_vm12, %vm16141_vm11  ;;  %vm16149_vm12 = vcmp.ge.s32.totalorder %v11457_v48, 2  ;;  %v16166_v42 = vld [vmem:[#allocation78_spill] sm:$0xff]  ;;  %v16167_v25 = vld [vmem:[#allocation4_spill] sm:$0xff]  ;;  %vm16170_vm11 = vcmp.lt.s32.totalorder %v16159_v11, 31 }
 0x897   :  { %6772 = vrot.lane.b32.xlu0 %v16138_v22, %s8306_s29  ;;  %7906 = vmatprep.subr.msk.mxu1 %vm16139_vm4, %v2594_v18  ;;  %v12906_v53 = vpop.permute.xlu1 %6766  ;;  %vm16164_vm4 = vcmp.lt.s32.totalorder %v16163_v63, 30  ;;  %v2779_v18 = vsel %vm15300_vm10, %v16168_v24, %v16167_v25  ;;  %v16301_v33 = vld [vmem:[#allocation30_spill] sm:$0xff] }
 0x898   :  { %7916 = vmatpush1.msk.msra.mxu0 %vm16140_vm9, %v2595_v19  ;;  %7907 = vmatpush1.msk.msra.mxu1 %vm2526_vm6, %v2593_v46  ;;  %v7045_v55 = vpop.permute.xlu0 %7044  ;;  %vm16162_vm6 = vcmp.lt.s32.totalorder %v16161_v13, 30  ;;  %v2778_v46 = vsel %vm15300_vm10, %v11435_v51, %v16168_v24  ;;  %v2780_v19 = vsel %vm15300_vm10, %v16167_v25, %v16166_v42  ;;  %vm16169_vm9 = vcmp.lt.s32.totalorder %v16154_v4, 31  ;;  %v16183_v25 = vld [vmem:[#allocation65_spill] sm:$0xff] }
 0x899   :  { %7917 = vmatprep.subr.msk.mxu0 %vm16143_vm1, %v16142_v17  ;;  %7908 = vmatprep.subr.msk.mxu1 %vm16145_vm14, %v16144_v28  ;;  %v12922_v1 = vsel %vm15304_vm3, %v12652_v41, %v7045_v55  ;;  %v12926_v59 = vsel %vm15304_vm3, %v7045_v55, %v12664_v34  ;;  %vm16155_vm1 = vcmp.lt.s32.totalorder %v16154_v4, 30  ;;  %vm16160_vm14 = vcmp.lt.s32.totalorder %v16159_v11, 30  ;;  %v16173_v55 = vld [vmem:[#allocation119_spill] sm:$0xff] }
 0x89a   :  { %16146 = vst [vmem:[#allocation23_spill] sm:$0xff] %v12922_v1  ;;  %16147 = vst [vmem:[#allocation19_spill] sm:$0xff] %v12926_v59  ;;  %7918 = vmatpush1.msk.msra.mxu0 %vm16149_vm12, %v16148_v21  ;;  %4109 = vmatprep.mubr.f32.mxu0 %v16150_v45  ;;  %vm16172_vm12 = vcmp.lt.s32.totalorder %v16163_v63, 31  ;;  %v16174_v17 = vld [vmem:[#allocation79_spill] sm:$0xff]  ;;  %v16331_v59 = vld [vmem:[#allocation90_spill] sm:$0xff] }
 0x89b   :  { %7909 = vmatpush1.msk.msra.mxu1 %vm2493_vm8, %v8268_v62  ;;  %4038 = vmatprep.mubr.f32.mxu1 %v16150_v45  ;;  %v12936_v31 = vpop.permute.xlu1 %6770  ;;  %vm16171_vm8 = vcmp.lt.s32.totalorder %v16161_v13, 31  ;;  %v2682_v51 = vsel %vm15299_vm13, %v16174_v17, %v16173_v55  ;;  %v16177_v62 = vld [vmem:[#allocation73_spill] sm:$0xff] }
 0x89c   :  { %16153 = vst [vmem:[#allocation225_spill] sm:$0xff] %v12936_v31  ;;  %7919 = vmatmul.mubr.msk.f32.vlgmr.msra.gmra.mxu0 %vm3401_vm2, %v12941_v40  ;;  %7929 = vmatprep.subr.msk.mxu0 %vm16155_vm1, %v2880_v30  ;;  %v12947_v6 = vpop.permute.xlu0 %7048  ;;  %v2680_v30 = vsel %vm15299_vm13, %v16178_v27, %v16177_v62  ;;  %v2681_v20 = vsel %vm15299_vm13, %v16177_v62, %v16174_v17  ;;  %vm16185_vm1 = vcmp.ge.s32.totalorder %v16154_v4, 1  ;;  %v16191_v17 = vld [vmem:[#allocation144_spill] sm:$0xff] }
 0x89d   :  { %6860 = vrot.lane.b32.xlu1 %v12830_v56, %s8305_s24  ;;  %6776 = vrot.lane.b32.xlu0 %v12951_v15, %s8306_s29  ;;  %v12961_v38 = vsel %vm15304_vm3, %v12664_v34, %v12947_v6  ;;  %v16165_v34 = vld [vmem:[#allocation114_spill] sm:$0xff] }
 0x89e   :  { %16158 = vst [vmem:[#allocation184_spill] sm:$0xff] %v12961_v38  ;;  %7910 = vmatmul.mubr.msk.f32.vlgmr.msra.gmra.mxu1 %vm3401_vm2, %v12941_v40  ;;  %7920 = vmatprep.subr.msk.mxu1 %vm16160_vm14, %v2878_v32  ;;  %v2781_v37 = vsel %vm15300_vm10, %v16166_v42, %v16165_v34  ;;  %v2679_v32 = vsel %vm15299_vm13, %v11391_v49, %v16178_v27  ;;  %vm16186_vm14 = vcmp.ge.s32.totalorder %v16159_v11, 1  ;;  %v16195_v27 = vld [vmem:[#allocation186_spill] sm:$0xff] }
 0x89f   :  { %7930 = vmatpush1.msk.msra.mxu0 %vm16162_vm6, %v2879_v60  ;;  %7921 = vmatpush1.msk.msra.mxu1 %vm16164_vm4, %v2877_v5  ;;  %v12983_v16 = vpop.permute.xlu1 %4602  ;;  %v16181_v60 = vld [vmem:[#allocation69_spill] sm:$0xff]  ;;  %vm16188_vm6 = vcmp.ge.s32.totalorder %v16161_v13, 1  ;;  %vm16189_vm4 = vcmp.ge.s32.totalorder %v16163_v63, 1 }
 0x8a0   :  { %7931 = vmatprep.subr.msk.mxu0 %vm16169_vm9, %v2781_v37  ;;  %7922 = vmatprep.subr.msk.mxu1 %vm16170_vm11, %v2779_v18  ;;  %v6947_v22 = vpop.permute.xlu0 %6946  ;;  %v16182_v37 = vld [vmem:[#allocation75_spill] sm:$0xff]  ;;  %vm16190_vm9 = vcmp.ge.s32.totalorder %v16154_v4, 2 }
 0x8a1   :  { %7932 = vmatpush1.msk.msra.mxu0 %vm16171_vm8, %v2780_v19  ;;  %7923 = vmatpush1.msk.msra.mxu1 %vm16172_vm12, %v2778_v46  ;;  %v13004_v28 = vsel %vm15300_vm10, %v12691_v7, %v6947_v22  ;;  %v13008_v21 = vsel %vm15300_vm10, %v6947_v22, %v12728_v50  ;;  %v2598_v24 = vsel %vm15298_vm15, %v16183_v25, %v16182_v37  ;;  %v8271_v22 = vld [vmem:[#allocation3 + $0x38] sm:$0xff]  ;;  %vm16196_vm8 = vcmp.ge.s32.totalorder %v16159_v11, 2 }
 0x8a2   :  { %16175 = vst [vmem:[#allocation180_spill] sm:$0xff] %v13004_v28  ;;  %16176 = vst [vmem:[#allocation197_spill] sm:$0xff] %v13008_v21  ;;  %4213 = vmatprep.subr.mxu0 %v2682_v51  ;;  %6778 = vrot.lane.b32.xlu1 %v12830_v56, %s8306_s29  ;;  %v16180_v56 = vld [vmem:[#allocation112_spill] sm:$0xff]  ;;  %v2597_v46 = vsel %vm15298_vm15, %v11427_v2, %v16183_v25  ;;  %v2599_v49 = vsel %vm15298_vm15, %v16182_v37, %v16181_v60  ;;  %v13052_v2 = vld [vmem:[#allocation3 + $0x78] sm:$0xff]  ;;  %v16192_v51 = vand.u32 1023, %v16191_v17 }
 0x8a3   :  { %7062 = vrot.lane.b32.xlu0 %v16179_v35, %s8316_s3  ;;  %4142 = vmatprep.subr.mxu1 %v2680_v30  ;;  %v13023_v5 = vpop.permute.xlu1 %4606  ;;  %v2600_v42 = vsel %vm15298_vm15, %v16181_v60, %v16180_v56  ;;  %vm16197_vm12 = vcmp.ge.s32.totalorder %v16161_v13, 2  ;;  %v16203_v37 = vld [vmem:[#allocation142_spill] sm:$0xff]  ;;  %v16265_v21 = vld [vmem:[#allocation219_spill] sm:$0xff]  ;;  %v16330_v28 = vld [vmem:[#allocation89_spill] sm:$0xff] }
 0x8a4   :  { %4214 = vmatpush1.msra.mxu0 %v2681_v20  ;;  %4143 = vmatpush1.msra.mxu1 %v2679_v32  ;;  %v13031_v18 = vpop.permute.xlu0 %6950  ;;  %vm13060_vm11 = vcmp.ge.s32.totalorder %v16192_v51, 64  ;;  %v8272_v20 = vld [vmem:[#allocation3 + $0x30] sm:$0xff] }
 0x8a5   :  { %16184 = vst [vmem:[#allocation121_spill] sm:$0xff] %v13031_v18  ;;  %7933 = vmatprep.subr.msk.mxu0 %vm16185_vm1, %v2600_v42  ;;  %7924 = vmatprep.subr.msk.mxu1 %vm16186_vm14, %v2598_v24  ;;  %v13046_v19 = vsel %vm15300_vm10, %v12728_v50, %v13031_v18  ;;  %vm16201_vm1 = vcmp.ge.s32.totalorder %v16163_v63, 2  ;;  %v16202_v42 = vld [vmem:[#allocation185_spill] sm:$0xff] }
 0x8a6   :  { %16187 = vst [vmem:[#allocation13_spill] sm:$0xff] %v13046_v19  ;;  %7934 = vmatpush1.msk.msra.mxu0 %vm16188_vm6, %v2599_v49  ;;  %7925 = vmatpush1.msk.msra.mxu1 %vm16189_vm4, %v2597_v46  ;;  %v2884_v25 = vsel %vm15304_vm3, %v16203_v37, %v16202_v42  ;;  %v16204_v24 = vld [vmem:[#allocation145_spill] sm:$0xff]  ;;  %v16208_v46 = vld [vmem:[#allocation139_spill] sm:$0xff] }
 0x8a7   :  { %7935 = vmatprep.subr.msk.mxu0 %vm16190_vm9, %v8271_v22  ;;  %7060 = vrot.lane.b32.xlu1 %v13052_v2, %s8316_s3  ;;  %v13064_v62 = vpop.permute.xlu1 %4686  ;;  %vm16205_vm14 = vcmp.lt.s32.totalorder %v16204_v24, 30  ;;  %v16209_v49 = vld [vmem:[#allocation141_spill] sm:$0xff] }
 0x8a8   :  { %6964 = vrot.lane.b32.xlu0 %v16179_v35, %s8317_s23  ;;  %7926 = vmatprep.subr.msk.mxu1 %vm16196_vm8, %v16195_v27  ;;  %v6847_v30 = vpop.permute.xlu0 %6846  ;;  %v16200_v35 = vld [vmem:[#allocation178_spill] sm:$0xff]  ;;  %vm2830_vm6 = vmand %vm13060_vm11, %vm16205_vm14  ;;  %v2882_v22 = vsel %vm15304_vm3, %v16209_v49, %v16208_v46  ;;  %v2881_v51 = vsel %vm15304_vm3, %v16151_v23, %v16209_v49  ;;  %v2883_v27 = vsel %vm15304_vm3, %v16208_v46, %v16203_v37  ;;  %v16216_v18 = vld [vmem:[#allocation137_spill] sm:$0xff] }
 0x8a9   :  { %7936 = vmatpush1.msk.msra.mxu0 %vm16197_vm12, %v8272_v20  ;;  %4251 = vmatprep.mubr.f32.mxu0 %v16150_v45  ;;  %v13076_v32 = vsel %vm15299_vm13, %v12738_v0, %v6847_v30  ;;  %v13080_v60 = vsel %vm15299_vm13, %v6847_v30, %v12823_v43  ;;  %v16206_v0 = vld [vmem:[#allocation182_spill] sm:$0xff]  ;;  %vm16217_vm12 = vcmp.lt.s32.totalorder %v16204_v24, 31  ;;  %v16220_v46 = vld [vmem:[#allocation140_spill] sm:$0xff]  ;;  %v16221_v49 = vld [vmem:[#allocation135_spill] sm:$0xff] }
 0x8aa   :  { %16198 = vst [vmem:[#allocation117_spill] sm:$0xff] %v13076_v32  ;;  %16199 = vst [vmem:[#allocation80_spill] sm:$0xff] %v13080_v60  ;;  %7927 = vmatpush1.msk.msra.mxu1 %vm16201_vm1, %v16200_v35  ;;  %4180 = vmatprep.mubr.f32.mxu1 %v16150_v45  ;;  %vm16207_vm4 = vcmp.lt.s32.totalorder %v16206_v0, 30  ;;  %v16210_v30 = vld [vmem:[#allocation146_spill] sm:$0xff]  ;;  %v16213_v35 = vld [vmem:[#allocation183_spill] sm:$0xff]  ;;  %vm16219_vm14 = vcmp.lt.s32.totalorder %v16206_v0, 31 }
 0x8ab   :  { %7937 = vmatmul.mubr.msk.f32.vlgmr.msra.gmra.mxu0 %vm3401_vm2, %v12941_v40  ;;  %7948 = vmatprep.subr.msk.mxu0 %vm16207_vm4, %v2884_v25  ;;  %v13100_v17 = vpop.permute.xlu1 %4767  ;;  %vm16211_vm9 = vcmp.lt.s32.totalorder %v16210_v30, 30  ;;  %vm16214_vm8 = vcmp.lt.s32.totalorder %v16213_v35, 30  ;;  %v16215_v25 = vld [vmem:[#allocation177_spill] sm:$0xff]  ;;  %vm2731_vm1 = vmand %vm13060_vm11, %vm16217_vm12  ;;  %vm16224_vm4 = vcmp.lt.s32.totalorder %v16213_v35, 31  ;;  %vm16233_vm12 = vcmp.ge.s32.totalorder %v16206_v0, 1 }
 0x8ac   :  { %7928 = vmatmul.mubr.msk.f32.vlgmr.msra.gmra.mxu1 %vm3401_vm2, %v12941_v40  ;;  %7938 = vmatprep.subr.msk.mxu1 %vm16211_vm9, %v2882_v22  ;;  %v13112_v20 = vpop.permute.xlu0 %6850  ;;  %v2785_v23 = vsel %vm15300_vm10, %v16216_v18, %v16215_v25  ;;  %v2783_v22 = vsel %vm15300_vm10, %v16221_v49, %v16220_v46  ;;  %vm16232_vm9 = vcmp.ge.s32.totalorder %v16204_v24, 1 }
 0x8ad   :  { %16212 = vst [vmem:[#allocation5_spill] sm:$0xff] %v13112_v20  ;;  %7949 = vmatpush1.msk.msra.mxu0 %vm16214_vm8, %v2883_v27  ;;  %7939 = vmatpush1.msk.msra.mxu1 %vm2830_vm6, %v2881_v51  ;;  %v13126_v37 = vsel %vm15299_vm13, %v12823_v43, %v13112_v20  ;;  %v2782_v51 = vsel %vm15300_vm10, %v16165_v34, %v16221_v49  ;;  %v13141_v43 = vld [vmem:[#allocation3 + $0x80] sm:$0xff]  ;;  %vm16222_vm6 = vcmp.lt.s32.totalorder %v16210_v30, 31  ;;  %v16225_v34 = vld [vmem:[#allocation181_spill] sm:$0xff]  ;;  %vm2534_vm8 = vmand %vm13060_vm11, %vm16232_vm9  ;;  %vm16241_vm9 = vcmp.ge.s32.totalorder %v16206_v0, 2 }
 0x8ae   :  { %16218 = vst [vmem:[#allocation16_spill] sm:$0xff] %v13126_v37  ;;  %7950 = vmatprep.subr.msk.mxu0 %vm16219_vm14, %v2785_v23  ;;  %6962 = vrot.lane.b32.xlu1 %v13052_v2, %s8317_s23  ;;  %v2784_v27 = vsel %vm15300_vm10, %v16220_v46, %v16216_v18  ;;  %v16223_v37 = vld [vmem:[#allocation136_spill] sm:$0xff]  ;;  %v16226_v18 = vld [vmem:[#allocation138_spill] sm:$0xff]  ;;  %v16227_v49 = vld [vmem:[#allocation133_spill] sm:$0xff]  ;;  %vm16238_vm14 = vcmp.ge.s32.totalorder %v16213_v35, 1 }
 0x8af   :  { %6866 = vrot.lane.b32.xlu0 %v13141_v43, %s8305_s24  ;;  %7940 = vmatprep.subr.msk.mxu1 %vm16222_vm6, %v2783_v22  ;;  %v13147_v23 = vpop.permute.xlu1 %4771  ;;  %v2683_v31 = vsel %vm15299_vm13, %v16173_v55, %v16223_v37  ;;  %v2686_v46 = vsel %vm15299_vm13, %v16226_v18, %v16225_v34  ;;  %v2684_v32 = vsel %vm15299_vm13, %v16223_v37, %v16227_v49  ;;  %v16230_v37 = vld [vmem:[#allocation175_spill] sm:$0xff]  ;;  %vm16239_vm6 = vcmp.ge.s32.totalorder %v16204_v24, 2 }
 0x8b0   :  { %7951 = vmatpush1.msk.msra.mxu0 %vm16224_vm4, %v2784_v27  ;;  %7941 = vmatpush1.msk.msra.mxu1 %vm2731_vm1, %v2782_v51  ;;  %v6765_v60 = vpop.permute.xlu0 %6764  ;;  %v2685_v22 = vsel %vm15299_vm13, %v16227_v49, %v16226_v18  ;;  %v16231_v27 = vld [vmem:[#allocation131_spill] sm:$0xff]  ;;  %v16235_v18 = vld [vmem:[#allocation129_spill] sm:$0xff]  ;;  %vm16236_vm1 = vcmp.ge.s32.totalorder %v16210_v30, 1  ;;  %vm2501_vm4 = vmand %vm13060_vm11, %vm16239_vm6  ;;  %vm16256_vm6 = vcmp.lt.s32.totalorder %v12656_v12, 31 }
 0x8b1   :  { %4355 = vmatprep.subr.mxu0 %v2686_v46  ;;  %4284 = vmatprep.subr.mxu1 %v2684_v32  ;;  %v13165_v55 = vsel %vm15298_vm15, %v12633_v10, %v6765_v60  ;;  %v13169_v51 = vsel %vm15298_vm15, %v6765_v60, %v12906_v53  ;;  %v2604_v32 = vsel %vm15298_vm15, %v16231_v27, %v16230_v37  ;;  %v13184_v10 = vld [vmem:[#allocation3 + $0x70] sm:$0xff]  ;;  %v16234_v60 = vld [vmem:[#allocation134_spill] sm:$0xff] }
 0x8b2   :  { %16228 = vst [vmem:[#allocation118_spill] sm:$0xff] %v13165_v55  ;;  %16229 = vst [vmem:[#allocation17_spill] sm:$0xff] %v13169_v51  ;;  %4356 = vmatpush1.msra.mxu0 %v2685_v22  ;;  %7942 = vmatpush1.msk.msra.mxu1 %vm13060_vm11, %v2683_v31  ;;  %v2602_v31 = vsel %vm15298_vm15, %v16235_v18, %v16234_v60  ;;  %v2601_v49 = vsel %vm15298_vm15, %v16180_v56, %v16235_v18  ;;  %v8276_v18 = vld [vmem:[#allocation3 + $0x50] sm:$0xff]  ;;  %vm16247_vm11 = vcmp.lt.s32.totalorder %v12631_v36, 30  ;;  %v16252_v55 = vld [vmem:[#allocation222_spill] sm:$0xff] }
 0x8b3   :  { %7952 = vmatprep.subr.msk.mxu0 %vm16233_vm12, %v2604_v32  ;;  %6864 = vrot.lane.b32.xlu1 %v13052_v2, %s8305_s24  ;;  %v13189_v46 = vpop.permute.xlu1 %4852  ;;  %v2603_v22 = vsel %vm15298_vm15, %v16234_v60, %v16231_v27  ;;  %v8274_v27 = vld [vmem:[#allocation3 + $0x58] sm:$0xff]  ;;  %v8275_v60 = vld [vmem:[#allocation3 + $0x48] sm:$0xff]  ;;  %vm16242_vm12 = vcmp.ge.s32.totalorder %v16210_v30, 2 }
 0x8b4   :  { %7058 = vrot.lane.b32.xlu0 %v13184_v10, %s8316_s3  ;;  %7943 = vmatprep.subr.msk.mxu1 %vm16236_vm1, %v2602_v31  ;;  %v13201_v32 = vpop.permute.xlu0 %6768  ;;  %v16244_v31 = vld [vmem:[#allocation213_spill] sm:$0xff]  ;;  %vm16254_vm1 = vcmp.lt.s32.totalorder %v12631_v36, 31 }
 0x8b5   :  { %16237 = vst [vmem:[#allocation114_spill] sm:$0xff] %v13201_v32  ;;  %7953 = vmatpush1.msk.msra.mxu0 %vm16238_vm14, %v2603_v22  ;;  %7944 = vmatpush1.msk.msra.mxu1 %vm2534_vm8, %v2601_v49  ;;  %v13212_v56 = vsel %vm15298_vm15, %v12906_v53, %v13201_v32  ;;  %vm16243_vm8 = vcmp.ge.s32.totalorder %v16213_v35, 2  ;;  %v16245_v53 = vld [vmem:[#allocation198_spill] sm:$0xff]  ;;  %v16246_v49 = vld [vmem:[#allocation224_spill] sm:$0xff]  ;;  %vm16255_vm14 = vcmp.lt.s32.totalorder %v12654_v57, 31 }
 0x8b6   :  { %16240 = vst [vmem:[#allocation78_spill] sm:$0xff] %v13212_v56  ;;  %7954 = vmatprep.subr.msk.mxu0 %vm16241_vm9, %v8274_v27  ;;  %7945 = vmatprep.subr.msk.mxu1 %vm16242_vm12, %v8275_v60  ;;  %v2888_v22 = vsel %vm15304_vm3, %v16246_v49, %v16245_v53  ;;  %v16248_v60 = vld [vmem:[#allocation216_spill] sm:$0xff]  ;;  %vm16266_vm9 = vcmp.ge.s32.totalorder %v12631_v36, 1  ;;  %vm16268_vm12 = vcmp.ge.s32.totalorder %v12654_v57, 1 }
 0x8b7   :  { %7955 = vmatpush1.msk.msra.mxu0 %vm16243_vm8, %v8276_v18  ;;  %4393 = vmatprep.mubr.f32.mxu0 %v16150_v45  ;;  %v13221_v50 = vpop.permute.xlu1 %4935  ;;  %v16249_v18 = vld [vmem:[#allocation223_spill] sm:$0xff]  ;;  %v2887_v56 = vsel %vm15304_vm3, %v16248_v60, %v16246_v49  ;;  %vm16269_vm8 = vcmp.ge.s32.totalorder %v12656_v12, 1 }
 0x8b8   :  { %7946 = vmatpush1.msk.msra.mxu1 %vm2501_vm4, %v16244_v31  ;;  %4322 = vmatprep.mubr.f32.mxu1 %v16150_v45  ;;  %v13228_v27 = vpop.permute.xlu0 %4604  ;;  %v2886_v31 = vsel %vm15304_vm3, %v16249_v18, %v16248_v60  ;;  %v2885_v53 = vsel %vm15304_vm3, %v16202_v42, %v16249_v18  ;;  %v16251_v42 = vld [vmem:[#allocation214_spill] sm:$0xff]  ;;  %v16253_v49 = vld [vmem:[#allocation211_spill] sm:$0xff]  ;;  %vm16257_vm4 = vcmp.lt.s32.totalorder %v12658_v44, 31 }
 0x8b9   :  { %7956 = vmatmul.mubr.msk.f32.vlgmr.msra.gmra.mxu0 %vm3401_vm2, %v12941_v40  ;;  %7966 = vmatprep.subr.msk.mxu0 %vm16247_vm11, %v2888_v22  ;;  %v16250_v22 = vld [vmem:[#allocation201_spill] sm:$0xff]  ;;  %v2787_v60 = vsel %vm15300_vm10, %v16253_v49, %v16252_v55  ;;  %vm16270_vm11 = vcmp.ge.s32.totalorder %v12658_v44, 1 }
 0x8ba   :  { %6782 = vrot.lane.b32.xlu1 %v13052_v2, %s8306_s29  ;;  %6960 = vrot.lane.b32.xlu0 %v13184_v10, %s8317_s23  ;;  %v2789_v18 = vsel %vm15300_vm10, %v16251_v42, %v16250_v22  ;;  %v16259_v22 = vld [vmem:[#allocation221_spill] sm:$0xff] }
 0x8bb   :  { %7947 = vmatmul.mubr.msk.f32.vlgmr.msra.gmra.mxu1 %vm3401_vm2, %v12941_v40  ;;  %7957 = vmatprep.subr.msk.mxu1 %vm2474_vm5, %v2886_v31  ;;  %v13251_v2 = vpop.permute.xlu1 %7052  ;;  %v2786_v31 = vsel %vm15300_vm10, %v16215_v25, %v16253_v49 }
 0x8bc   :  { %7967 = vmatpush1.msk.msra.mxu0 %vm2475_vm0, %v2887_v56  ;;  %7958 = vmatpush1.msk.msra.mxu1 %vm2473_vm7, %v2885_v53  ;;  %v13263_v51 = vpop.permute.xlu0 %4684  ;;  %v2788_v56 = vsel %vm15300_vm10, %v16252_v55, %v16251_v42  ;;  %v16258_v53 = vld [vmem:[#allocation195_spill] sm:$0xff]  ;;  %v16260_v55 = vld [vmem:[#allocation209_spill] sm:$0xff]  ;;  %v16261_v42 = vld [vmem:[#allocation220_spill] sm:$0xff]  ;;  %vm16319_vm10 = vcmp.ge.s32.totalorder %v11457_v48, 2 }
 0x8bd   :  { %7968 = vmatprep.subr.msk.mxu0 %vm16254_vm1, %v2789_v18  ;;  %7959 = vmatprep.subr.msk.mxu1 %vm16255_vm14, %v2787_v60  ;;  %v2690_v25 = vsel %vm15299_vm13, %v16259_v22, %v16258_v53  ;;  %v2688_v18 = vsel %vm15299_vm13, %v16261_v42, %v16260_v55  ;;  %v2689_v49 = vsel %vm15299_vm13, %v16260_v55, %v16259_v22  ;;  %v16267_v22 = vld [vmem:[#allocation205_spill] sm:$0xff]  ;;  %vm16271_vm1 = vcmp.ge.s32.totalorder %v12631_v36, 2 }
 0x8be   :  { %7969 = vmatpush1.msk.msra.mxu0 %vm16256_vm6, %v2788_v56  ;;  %7960 = vmatpush1.msk.msra.mxu1 %vm16257_vm4, %v2786_v31  ;;  %v2687_v60 = vsel %vm15299_vm13, %v16225_v34, %v16261_v42  ;;  %v16262_v31 = vld [vmem:[#allocation200_spill] sm:$0xff]  ;;  %v16263_v56 = vld [vmem:[#allocation207_spill] sm:$0xff]  ;;  %v2606_v34 = vsel %vm15298_vm15, %v16267_v22, %v16265_v21  ;;  %v2605_v55 = vsel %vm15298_vm15, %v16230_v37, %v16267_v22  ;;  %v8277_v42 = vld [vmem:[#allocation3 + $0x78] sm:$0xff]  ;;  %vm4858_vm14 = vcmask 490496  }
 0x8bf   :  { %4497 = vmatprep.subr.mxu0 %v2690_v25  ;;  %6862 = vrot.lane.b32.xlu0 %v13184_v10, %s8305_s24  ;;  %v2608_v53 = vsel %vm15298_vm15, %v16263_v56, %v16262_v31  ;;  %v13296_v25 = vpop.permute.xlu1 %6954  ;;  %v2607_v20 = vsel %vm15298_vm15, %v16265_v21, %v16263_v56  ;;  %v8278_v21 = vld [vmem:[#allocation3 + $0x68] sm:$0xff]  ;;  %vm16272_vm6 = vcmp.ge.s32.totalorder %v12654_v57, 2  ;;  %vm16273_vm4 = vcmp.ge.s32.totalorder %v12656_v12, 2  ;;  %v16279_v31 = vld [vmem:[#allocation25_spill] sm:$0xff]  ;;  %v16280_v56 = vld [vmem:[#allocation44_spill] sm:$0xff] }
 0x8c0   :  { %4426 = vmatprep.subr.mxu1 %v2688_v18  ;;  %4498 = vmatpush1.msra.mxu0 %v2689_v49  ;;  %16264 = vst [vmem:[#allocation4_spill] sm:$0xff] %v13296_v25  ;;  %v13298_v32 = vpop.permute.xlu0 %4688  ;;  %v8279_v18 = vld [vmem:[#allocation3 + $0x70] sm:$0xff]  ;;  %vm16312_vm15 = vcmp.ge.s32.totalorder %v11162_v9, 1  ;;  %vm16313_vm13 = vcmp.ge.s32.totalorder %v11450_v26, 2 }
 0x8c1   :  { %4427 = vmatpush1.msra.mxu1 %v2687_v60  ;;  %7970 = vmatprep.subr.msk.mxu0 %vm16266_vm9, %v2608_v53  ;;  %vm16274_vm9 = vcmp.ge.s32.totalorder %v12658_v44, 2  ;;  %v4860_v53 = vsel %vm4858_vm14, %v16280_v56, %v16279_v31 }
 0x8c2   :  { %7961 = vmatprep.subr.msk.mxu1 %vm16268_vm12, %v2606_v34  ;;  %7971 = vmatpush1.msk.msra.mxu0 %vm16269_vm8, %v2607_v20  ;;  %v16275_v20 = vld [vmem:[#allocation53_spill] sm:$0xff]  ;;  %vm16278_vm12 = vcmp.lt.s32.totalorder %v11450_v26, 30  ;;  %vm4775_vm8 = vcmask 498688  }
 0x8c3   :  { %7962 = vmatpush1.msk.msra.mxu1 %vm16270_vm11, %v2605_v55  ;;  %7972 = vmatprep.subr.msk.mxu0 %vm16271_vm1, %v8277_v42  ;;  %v13335_v60 = vpop.permute.xlu1 %6856  ;;  %vm16282_vm11 = vcmp.lt.s32.totalorder %v11170_v54, 30  ;;  %vm16283_vm1 = vcmp.lt.s32.totalorder %v11457_v48, 30  ;;  %v16285_v42 = vld [vmem:[#allocation59_spill] sm:$0xff]  ;;  %v4782_v7 = vsel %vm4775_vm8, %v16331_v59, %v16330_v28 }
 0x8c4   :  { %6780 = vrot.lane.b32.xlu0 %v13184_v10, %s8306_s29  ;;  %7963 = vmatprep.subr.msk.mxu1 %vm16272_vm6, %v8278_v21  ;;  %v13323_v37 = vpop.permute.xlu0 %4769  ;;  %v16276_v10 = vld [vmem:[#allocation46_spill] sm:$0xff]  ;;  %16277 = vst [vmem:[#allocation81_spill] sm:$0xff] %v13335_v60  ;;  %vm16284_vm6 = vcmp.lt.s32.totalorder %v11162_v9, 30  ;;  %v16286_v21 = vld [vmem:[#allocation12_spill] sm:$0xff] }
 0x8c5   :  { %7973 = vmatpush1.msk.msra.mxu0 %vm16273_vm4, %v8279_v18  ;;  %4535 = vmatprep.mubr.f32.mxu0 %v16150_v45  ;;  %v4862_v49 = vsel %vm4858_vm14, %v16276_v10, %v16275_v20  ;;  %v4861_v34 = vsel %vm4858_vm14, %v16279_v31, %v16276_v10  ;;  %v4779_v18 = vsel %vm4775_vm8, %v16286_v21, %v16285_v42  ;;  %vm4941_vm4 = vcmask 506880   ;;  %v16289_v10 = vld [vmem:[#allocation35_spill] sm:$0xff]  ;;  %v16290_v31 = vld [vmem:[#allocation8_spill] sm:$0xff] }
 0x8c6   :  { %7964 = vmatpush1.msk.msra.mxu1 %vm16274_vm9, %v12951_v15  ;;  %4464 = vmatprep.mubr.f32.mxu1 %v16150_v45  ;;  %v16281_v15 = vld [vmem:[#allocation20_spill] sm:$0xff]  ;;  %vm16287_vm9 = vcmp.lt.s32.totalorder %v11450_v26, 31 }
 0x8c7   :  { %7974 = vmatmul.mubr.msk.f32.vlgmr.msra.gmra.mxu0 %vm3401_vm2, %v12941_v40  ;;  %7984 = vmatprep.subr.msk.mxu0 %vm16278_vm12, %v4862_v49  ;;  %v4859_v22 = vsel %vm4858_vm14, %v16281_v15, %v16280_v56  ;;  %v4776_v56 = vsel %vm4775_vm8, %v16290_v31, %v16289_v10  ;;  %vm16291_vm12 = vcmp.lt.s32.totalorder %v11170_v54, 31  ;;  %v16295_v15 = vld [vmem:[#allocation50_spill] sm:$0xff]  ;;  %v16298_v31 = vld [vmem:[#allocation9_spill] sm:$0xff]  ;;  %v16300_v60 = vld [vmem:[#allocation40_spill] sm:$0xff] }
 0x8c8   :  { %7965 = vmatmul.mubr.msk.f32.vlgmr.msra.gmra.mxu1 %vm3401_vm2, %v12941_v40  ;;  %7975 = vmatprep.subr.msk.mxu1 %vm16282_vm11, %v4860_v53  ;;  %v13354_v55 = vpop.permute.xlu0 %4850  ;;  %v16288_v40 = vld [vmem:[#allocation42_spill] sm:$0xff]  ;;  %vm4692_vm11 = vcmask 515072  }
 0x8c9   :  { %7985 = vmatpush1.msk.msra.mxu0 %vm16283_vm1, %v4861_v34  ;;  %7976 = vmatpush1.msk.msra.mxu1 %vm16284_vm6, %v4859_v22  ;;  %v4777_v49 = vsel %vm4775_vm8, %v16289_v10, %v16288_v40  ;;  %v4778_v53 = vsel %vm4775_vm8, %v16288_v40, %v16286_v21  ;;  %vm16292_vm1 = vcmp.lt.s32.totalorder %v11457_v48, 31  ;;  %vm16293_vm6 = vcmp.lt.s32.totalorder %v11162_v9, 31  ;;  %v16296_v34 = vld [vmem:[#allocation27_spill] sm:$0xff]  ;;  %v13393_v40 = vpop.permute.xlu1 %6020 }
 0x8ca   :  { %7986 = vmatprep.subr.msk.mxu0 %vm16287_vm9, %v4779_v18  ;;  %6786 = vrot.lane.b32.xlu1 %v12650_v47, %s8306_s29  ;;  %v16294_v47 = vld [vmem:[#allocation72_spill] sm:$0xff]  ;;  %v4695_v19 = vsel %vm4692_vm11, %v16301_v33, %v16300_v60  ;;  %vm16302_vm9 = vcmp.ge.s32.totalorder %v11450_v26, 1 }
 0x8cb   :  { %6784 = vrot.lane.b32.xlu0 %v13141_v43, %s8306_s29  ;;  %7977 = vmatprep.subr.msk.mxu1 %vm16291_vm12, %v4777_v49  ;;  %v4945_v22 = vsel %vm4941_vm4, %v16295_v15, %v16294_v47  ;;  %v16297_v18 = vld [vmem:[#allocation48_spill] sm:$0xff]  ;;  %v7704_v43 = vld [vmem:[%s14768_s8] sm:$0x7]  ;;  %v4944_v49 = vsel %vm4941_vm4, %v16296_v34, %v16295_v15  ;;  %vm16305_vm12 = vcmp.ge.s32.totalorder %v11170_v54, 1 }
 0x8cc   :  { %7987 = vmatpush1.msk.msra.mxu0 %vm16292_vm1, %v4778_v53  ;;  %7978 = vmatpush1.msk.msra.mxu1 %vm16293_vm6, %v4776_v56  ;;  %v4943_v21 = vsel %vm4941_vm4, %v16297_v18, %v16296_v34  ;;  %v13395_v10 = vpop.permute.xlu0 %4854  ;;  %v4942_v56 = vsel %vm4941_vm4, %v16298_v31, %v16297_v18  ;;  %v16299_v53 = vld [vmem:[#allocation70_spill] sm:$0xff]  ;;  %v16303_v15 = vld [vmem:[#allocation37_spill] sm:$0xff]  ;;  %vm16306_vm1 = vcmp.ge.s32.totalorder %v11457_v48, 1  ;;  %vm16309_vm6 = vcmask 523264  }
 0x8cd   :  { %5077 = vmatprep.subr.mxu0 %v4945_v22  ;;  %5006 = vmatprep.subr.mxu1 %v4943_v21  ;;  %v4696_v25 = vsel %vm4692_vm11, %v16300_v60, %v16299_v53  ;;  %v4694_v22 = vsel %vm4692_vm11, %v16303_v15, %v16301_v33  ;;  %v16304_v34 = vld [vmem:[#allocation6_spill] sm:$0xff]  ;;  %v16307_v21 = vld [vmem:[#allocation57_spill] sm:$0xff]  ;;  %v16308_v60 = vld [vmem:[#allocation28_spill] sm:$0xff] }
 0x8ce   :  { %5078 = vmatpush1.msra.mxu0 %v4944_v49  ;;  %5007 = vmatpush1.msra.mxu1 %v4942_v56  ;;  %v4693_v18 = vsel %vm4692_vm11, %v16304_v34, %v16303_v15  ;;  %v4613_v49 = vsel %vm16309_vm6, %v16308_v60, %v16307_v21  ;;  %v16314_v31 = vld [vmem:[#allocation26_spill] sm:$0xff]  ;;  %v16316_v56 = vld [vmem:[#allocation7_spill] sm:$0xff] }
 0x8cf   :  { %7988 = vmatprep.subr.msk.mxu0 %vm16302_vm9, %v4696_v25  ;;  %7707 = vperm.xlu0 %8259, %v7704_v43   ;;  %v16310_v43 = vld [vmem:[#allocation33_spill] sm:$0xff]  ;;  %vm16311_vm9 = vmmov %vm16309_vm6  ;;  %v16321_v34 = vld [vmem:[#allocation14_spill] sm:$0xff] }
 0x8d0   :  { %7979 = vmatprep.subr.msk.mxu1 %vm16305_vm12, %v4694_v22  ;;  %7989 = vmatpush1.msk.msra.mxu0 %vm16306_vm1, %v4695_v19  ;;  %v13424_v25 = vpop.permute.xlu0 %4933  ;;  %v4612_v33 = vsel %vm16311_vm9, %v16310_v43, %v16308_v60  ;;  %vm16315_vm12 = vmmov %vm16309_vm6  ;;  %v13443_v22 = vpop.permute.xlu1 %6024  ;;  %v16323_v60 = vld [vmem:[#allocation93_spill] sm:$0xff]  ;;  %vm16328_vm9 = vcmp.lt.s32.totalorder %v16161_v13, 30 }
 0x8d1   :  { %7980 = vmatpush1.msk.msra.mxu1 %vm16312_vm15, %v4693_v18  ;;  %7990 = vmatprep.subr.msk.mxu0 %vm16313_vm13, %v4613_v49  ;;  %v4611_v19 = vsel %vm16315_vm12, %v16314_v31, %v16310_v43  ;;  %vm16317_vm1 = vmmov %vm16309_vm6  ;;  %vm16318_vm6 = vcmp.ge.s32.totalorder %v11170_v54, 2  ;;  %vm16320_vm13 = vcmp.ge.s32.totalorder %v11162_v9, 2  ;;  %v16322_v18 = vld [vmem:[#allocation123_spill] sm:$0xff]  ;;  %vm16325_vm15 = vcmp.lt.s32.totalorder %v16154_v4, 30 }
 0x8d2   :  { %v4610_v15 = vsel %vm16317_vm1, %v16316_v56, %v16314_v31  ;;  %7981 = vmatprep.subr.msk.mxu1 %vm16318_vm6, %v4611_v19  ;;  %7991 = vmatpush1.msk.msra.mxu0 %vm16319_vm10, %v4612_v33  ;;  %v4866_v49 = vsel %vm4858_vm14, %v16323_v60, %v16322_v18  ;;  %v16324_v33 = vld [vmem:[#allocation92_spill] sm:$0xff]  ;;  %v16326_v19 = vld [vmem:[#allocation91_spill] sm:$0xff]  ;;  %vm16327_vm10 = vcmp.lt.s32.totalorder %v16159_v11, 30  ;;  %vm16332_vm12 = vcmp.lt.s32.totalorder %v16163_v63, 30 }
 0x8d3   :  { %5115 = vmatprep.mubr.f32.mxu0 %v16150_v45  ;;  %7982 = vmatpush1.msk.msra.mxu1 %vm16320_vm13, %v4610_v15  ;;  %v4865_v31 = vsel %vm4858_vm14, %v16324_v33, %v16323_v60  ;;  %v4864_v56 = vsel %vm4858_vm14, %v16326_v19, %v16324_v33  ;;  %v4863_v15 = vsel %vm4858_vm14, %v16275_v20, %v16326_v19  ;;  %v16329_v60 = vld [vmem:[#allocation122_spill] sm:$0xff]  ;;  %vm16333_vm1 = vcmp.lt.s32.totalorder %v16154_v4, 31  ;;  %v16334_v20 = vld [vmem:[#allocation87_spill] sm:$0xff]  ;;  %v16338_v19 = vld [vmem:[#allocation96_spill] sm:$0xff] }
 0x8d4   :  { %5044 = vmatprep.mubr.f32.mxu1 %v16150_v45  ;;  %7992 = vmatmul.mubr.msk.f32.vlgmr.msra.gmra.mxu0 %vm3401_vm2, %v16321_v34  ;;  %v13454_v43 = vpop.permute.xlu0 %4937  ;;  %v4781_v33 = vsel %vm4775_vm8, %v16334_v20, %v16331_v59  ;;  %vm16335_vm6 = vcmp.lt.s32.totalorder %v16159_v11, 31  ;;  %vm16336_vm13 = vcmp.lt.s32.totalorder %v16161_v13, 31  ;;  %v13499_v1 = vpop.permute.xlu1 %5921 }
 0x8d5   :  { %8002 = vmatprep.subr.msk.mxu0 %vm16325_vm15, %v4866_v49  ;;  %7983 = vmatmul.mubr.msk.f32.vlgmr.msra.gmra.mxu1 %vm3401_vm2, %v16321_v34  ;;  %v4783_v49 = vsel %vm4775_vm8, %v16330_v28, %v16329_v60  ;;  %v16337_v28 = vld [vmem:[#allocation127_spill] sm:$0xff]  ;;  %vm16341_vm15 = vcmp.lt.s32.totalorder %v16163_v63, 31 }
 0x8d6   :  { %7993 = vmatprep.subr.msk.mxu1 %vm16327_vm10, %v4864_v56  ;;  %8003 = vmatpush1.msk.msra.mxu0 %vm16328_vm9, %v4865_v31  ;;  %v4780_v31 = vsel %vm4775_vm8, %v16285_v42, %v16334_v20  ;;  %v4949_v56 = vsel %vm4941_vm4, %v16338_v19, %v16337_v28  ;;  %vm16347_vm10 = vcmp.ge.s32.totalorder %v16154_v4, 1  ;;  %vm16349_vm9 = vcmp.ge.s32.totalorder %v16159_v11, 1 }
 0x8d7   :  { %7994 = vmatpush1.msk.msra.mxu1 %vm16332_vm12, %v4863_v15  ;;  %8004 = vmatprep.subr.msk.mxu0 %vm16333_vm1, %v4783_v49  ;;  %v16339_v15 = vld [vmem:[#allocation95_spill] sm:$0xff]  ;;  %v16340_v49 = vld [vmem:[#allocation94_spill] sm:$0xff]  ;;  %vm16350_vm12 = vcmp.ge.s32.totalorder %v16161_v13, 1  ;;  %vm16353_vm1 = vcmask 523264  }
 0x8d8   :  { %7995 = vmatprep.subr.msk.mxu1 %vm16335_vm6, %v4781_v33  ;;  %8005 = vmatpush1.msk.msra.mxu0 %vm16336_vm13, %v4782_v7  ;;  %v4947_v38 = vsel %vm4941_vm4, %v16340_v49, %v16339_v15  ;;  %v7051_v59 = vpop.permute.xlu0 %7050  ;;  %v4948_v42 = vsel %vm4941_vm4, %v16339_v15, %v16338_v19  ;;  %v4946_v33 = vsel %vm4941_vm4, %v16294_v47, %v16340_v49  ;;  %v16346_v19 = vld [vmem:[#allocation85_spill] sm:$0xff]  ;;  %v16351_v49 = vld [vmem:[#allocation120_spill] sm:$0xff]  ;;  %vm16355_vm6 = vmmov %vm16353_vm1  ;;  %vm16356_vm13 = vcmp.ge.s32.totalorder %v16163_v63, 1 }
 0x8d9   :  { %7996 = vmatpush1.msk.msra.mxu1 %vm16341_vm15, %v4780_v31  ;;  %5219 = vmatprep.subr.mxu0 %v4949_v56  ;;  %v13508_v7 = vsel %vm15304_vm3, %v12947_v6, %v7051_v59  ;;  %v13512_v20 = vsel %vm15304_vm3, %v7051_v59, %v13251_v2  ;;  %v16344_v31 = vld [vmem:[#allocation125_spill] sm:$0xff]  ;;  %v16345_v56 = vld [vmem:[#allocation88_spill] sm:$0xff]  ;;  %v16348_v6 = vld [vmem:[#allocation86_spill] sm:$0xff]  ;;  %vm16357_vm15 = vcmp.ge.s32.totalorder %v16154_v4, 2 }
 0x8da   :  { %16342 = vst [vmem:[#allocation119_spill] sm:$0xff] %v13508_v7  ;;  %16343 = vst [vmem:[#allocation79_spill] sm:$0xff] %v13512_v20  ;;  %5148 = vmatprep.subr.mxu1 %v4947_v38  ;;  %5220 = vmatpush1.msra.mxu0 %v4948_v42  ;;  %v4700_v41 = vsel %vm4692_vm11, %v16345_v56, %v16344_v31  ;;  %v4699_v15 = vsel %vm4692_vm11, %v16346_v19, %v16345_v56  ;;  %v16352_v59 = vld [vmem:[#allocation83_spill] sm:$0xff] }
 0x8db   :  { %5149 = vmatpush1.msra.mxu1 %v4946_v33  ;;  %8006 = vmatprep.subr.msk.mxu0 %vm16347_vm10, %v4700_v41  ;;  %v4698_v38 = vsel %vm4692_vm11, %v16348_v6, %v16346_v19  ;;  %v4697_v47 = vsel %vm4692_vm11, %v16299_v53, %v16348_v6  ;;  %v4617_v42 = vsel %vm16353_vm1, %v16352_v59, %v16351_v49  ;;  %v16354_v41 = vld [vmem:[#allocation84_spill] sm:$0xff]  ;;  %v16358_v53 = vld [vmem:[#allocation82_spill] sm:$0xff]  ;;  %vm16359_vm10 = vmmov %vm16353_vm1 }
 0x8dc   :  { %7997 = vmatprep.subr.msk.mxu1 %vm16349_vm9, %v4698_v38  ;;  %8007 = vmatpush1.msk.msra.mxu0 %vm16350_vm12, %v4699_v15  ;;  %v13538_v33 = vpop.permute.xlu0 %7054  ;;  %v4616_v56 = vsel %vm16355_vm6, %v16354_v41, %v16352_v59  ;;  %v4615_v19 = vsel %vm16359_vm10, %v16358_v53, %v16354_v41  ;;  %vm16361_vm9 = vmmov %vm16353_vm1  ;;  %vm16362_vm12 = vcmp.ge.s32.totalorder %v16159_v11, 2  ;;  %vm16363_vm1 = vcmp.ge.s32.totalorder %v16161_v13, 2  ;;  %v13562_v38 = vpop.permute.xlu1 %5925  ;;  %v16367_v59 = vld [vmem:[#allocation156_spill] sm:$0xff]  ;;  %v16369_v41 = vld [vmem:[#allocation157_spill] sm:$0xff] }
 0x8dd   :  { %7998 = vmatpush1.msk.msra.mxu1 %vm16356_vm13, %v4697_v47  ;;  %8008 = vmatprep.subr.msk.mxu0 %vm16357_vm15, %v4617_v42  ;;  %v13553_v15 = vsel %vm15304_vm3, %v13251_v2, %v13538_v33  ;;  %v4614_v6 = vsel %vm16361_vm9, %v16307_v21, %v16358_v53  ;;  %vm16364_vm6 = vcmp.ge.s32.totalorder %v16163_v63, 2  ;;  %v16365_v2 = vld [vmem:[#allocation191_spill] sm:$0xff]  ;;  %vm16368_vm13 = vcmp.lt.s32.totalorder %v16206_v0, 30 }
 0x8de   :  { %16360 = vst [vmem:[#allocation73_spill] sm:$0xff] %v13553_v15  ;;  %7999 = vmatprep.subr.msk.mxu1 %vm16362_vm12, %v4615_v19  ;;  %8009 = vmatpush1.msk.msra.mxu0 %vm16363_vm1, %v4616_v56  ;;  %v16366_v21 = vld [vmem:[#allocation159_spill] sm:$0xff]  ;;  %v4868_v56 = vsel %vm4858_vm14, %v16369_v41, %v16367_v59  ;;  %v4867_v53 = vsel %vm4858_vm14, %v16322_v18, %v16369_v41  ;;  %vm16370_vm15 = vcmp.lt.s32.totalorder %v16210_v30, 30  ;;  %vm16371_vm10 = vcmp.lt.s32.totalorder %v16213_v35, 30  ;;  %v16372_v19 = vld [vmem:[#allocation188_spill] sm:$0xff] }
 0x8df   :  { %5257 = vmatprep.mubr.f32.mxu0 %v16150_v45  ;;  %8000 = vmatpush1.msk.msra.mxu1 %vm16364_vm6, %v4614_v6  ;;  %v4870_v47 = vsel %vm4858_vm14, %v16366_v21, %v16365_v2  ;;  %v4869_v42 = vsel %vm4858_vm14, %v16367_v59, %v16366_v21  ;;  %v16373_v6 = vld [vmem:[#allocation154_spill] sm:$0xff]  ;;  %v16375_v15 = vld [vmem:[#allocation155_spill] sm:$0xff]  ;;  %vm16376_vm9 = vcmp.lt.s32.totalorder %v16204_v24, 30  ;;  %vm16377_vm12 = vcmp.lt.s32.totalorder %v16206_v0, 31  ;;  %v16378_v18 = vld [vmem:[#allocation152_spill] sm:$0xff] }
 0x8e0   :  { %5186 = vmatprep.mubr.f32.mxu1 %v16150_v45  ;;  %8010 = vmatmul.mubr.msk.f32.vlgmr.msra.gmra.mxu0 %vm3401_vm2, %v16321_v34  ;;  %v4787_v21 = vsel %vm4775_vm8, %v16373_v6, %v16372_v19  ;;  %v4786_v59 = vsel %vm4775_vm8, %v16375_v15, %v16373_v6  ;;  %v4784_v41 = vsel %vm4775_vm8, %v16329_v60, %v16378_v18  ;;  %vm16379_vm1 = vcmp.lt.s32.totalorder %v16210_v30, 31  ;;  %v16382_v6 = vld [vmem:[#allocation163_spill] sm:$0xff]  ;;  %v13615_v7 = vpop.permute.xlu1 %5822 }
 0x8e1   :  { %8020 = vmatprep.subr.msk.mxu0 %vm16368_vm13, %v4870_v47  ;;  %8001 = vmatmul.mubr.msk.f32.vlgmr.msra.gmra.mxu1 %vm3401_vm2, %v16321_v34  ;;  %v13593_v47 = vpop.permute.xlu0 %6952  ;;  %vm16380_vm6 = vcmp.lt.s32.totalorder %v16213_v35, 31  ;;  %vm16383_vm13 = vcmp.lt.s32.totalorder %v16204_v24, 31 }
 0x8e2   :  { %8011 = vmatprep.subr.msk.mxu1 %vm16370_vm15, %v4868_v56  ;;  %8021 = vmatpush1.msk.msra.mxu0 %vm16371_vm10, %v4869_v42  ;;  %16374 = vst [vmem:[#allocation77_spill] sm:$0xff] %v13593_v47  ;;  %v4785_v42 = vsel %vm4775_vm8, %v16378_v18, %v16375_v15  ;;  %v16381_v56 = vld [vmem:[#allocation193_spill] sm:$0xff]  ;;  %v16384_v15 = vld [vmem:[#allocation158_spill] sm:$0xff]  ;;  %vm16389_vm15 = vcmp.ge.s32.totalorder %v16206_v0, 1  ;;  %vm16391_vm10 = vcmp.ge.s32.totalorder %v16210_v30, 1 }
 0x8e3   :  { %8012 = vmatpush1.msk.msra.mxu1 %vm16376_vm9, %v4867_v53  ;;  %8022 = vmatprep.subr.msk.mxu0 %vm16377_vm12, %v4787_v21  ;;  %v4953_v53 = vsel %vm4941_vm4, %v16382_v6, %v16381_v56  ;;  %v16385_v21 = vld [vmem:[#allocation161_spill] sm:$0xff]  ;;  %v4952_v18 = vsel %vm4941_vm4, %v16384_v15, %v16382_v6  ;;  %v16390_v6 = vld [vmem:[#allocation151_spill] sm:$0xff]  ;;  %vm16392_vm9 = vcmp.ge.s32.totalorder %v16213_v35, 1  ;;  %vm16395_vm12 = vcmask 523264  }
 0x8e4   :  { %8013 = vmatprep.subr.msk.mxu1 %vm16379_vm1, %v4785_v42  ;;  %8023 = vmatpush1.msk.msra.mxu0 %vm16380_vm6, %v4786_v59  ;;  %v4951_v60 = vsel %vm4941_vm4, %v16385_v21, %v16384_v15  ;;  %v4950_v59 = vsel %vm4941_vm4, %v16337_v28, %v16385_v21  ;;  %v16386_v42 = vld [vmem:[#allocation189_spill] sm:$0xff]  ;;  %v4701_v28 = vsel %vm4692_vm11, %v16344_v31, %v16390_v6  ;;  %v16393_v21 = vld [vmem:[#allocation187_spill] sm:$0xff]  ;;  %vm16397_vm1 = vmmov %vm16395_vm12  ;;  %vm16398_vm6 = vcmp.ge.s32.totalorder %v16204_v24, 1 }
 0x8e5   :  { %8014 = vmatpush1.msk.msra.mxu1 %vm16383_vm13, %v4784_v41  ;;  %5361 = vmatprep.subr.mxu0 %v4953_v53  ;;  %v16387_v47 = vld [vmem:[#allocation153_spill] sm:$0xff]  ;;  %v16388_v41 = vld [vmem:[#allocation150_spill] sm:$0xff]  ;;  %vm16399_vm13 = vcmp.ge.s32.totalorder %v16206_v0, 2  ;;  %v16400_v31 = vld [vmem:[#allocation147_spill] sm:$0xff] }
 0x8e6   :  { %5290 = vmatprep.subr.mxu1 %v4951_v60  ;;  %5362 = vmatpush1.msra.mxu0 %v4952_v18  ;;  %v4704_v20 = vsel %vm4692_vm11, %v16387_v47, %v16386_v42  ;;  %v4703_v53 = vsel %vm4692_vm11, %v16388_v41, %v16387_v47  ;;  %v4702_v15 = vsel %vm4692_vm11, %v16390_v6, %v16388_v41  ;;  %v16394_v47 = vld [vmem:[#allocation148_spill] sm:$0xff]  ;;  %v13649_v18 = vpop.permute.xlu0 %6956  ;;  %v13668_v6 = vpop.permute.xlu1 %5826 }
 0x8e7   :  { %5291 = vmatpush1.msra.mxu1 %v4950_v59  ;;  %8024 = vmatprep.subr.msk.mxu0 %vm16389_vm15, %v4704_v20  ;;  %v4621_v60 = vsel %vm16395_vm12, %v16394_v47, %v16393_v21  ;;  %v16396_v20 = vld [vmem:[#allocation149_spill] sm:$0xff]  ;;  %vm16401_vm15 = vmmov %vm16397_vm1  ;;  %vm16404_vm12 = vcmp.ge.s32.totalorder %v16213_v35, 2 }
 0x8e8   :  { %8015 = vmatprep.subr.msk.mxu1 %vm16391_vm10, %v4702_v15  ;;  %8025 = vmatpush1.msk.msra.mxu0 %vm16392_vm9, %v4703_v53  ;;  %v4620_v59 = vsel %vm16397_vm1, %v16396_v20, %v16394_v47  ;;  %v4619_v41 = vsel %vm16401_vm15, %v16400_v31, %v16396_v20  ;;  %vm16402_vm10 = vmmov %vm16397_vm1  ;;  %vm16403_vm9 = vcmp.ge.s32.totalorder %v16210_v30, 2  ;;  %vm16405_vm1 = vcmp.ge.s32.totalorder %v16204_v24, 2  ;;  %v16406_v15 = vld [vmem:[#allocation203_spill] sm:$0xff] }
 0x8e9   :  { %8016 = vmatpush1.msk.msra.mxu1 %vm16398_vm6, %v4701_v28  ;;  %8026 = vmatprep.subr.msk.mxu0 %vm16399_vm13, %v4621_v60  ;;  %v4618_v53 = vsel %vm16402_vm10, %v16351_v49, %v16400_v31  ;;  %v4874_v28 = vsel %vm4858_vm14, %v13395_v10, %v16406_v15  ;;  %v4872_v49 = vsel %vm4858_vm14, %v13354_v55, %v13189_v46  ;;  %vm16407_vm6 = vcmp.lt.s32.totalorder %v12631_v36, 30  ;;  %v16408_v60 = vld [vmem:[#allocation208_spill] sm:$0xff] }
 0x8ea   :  { %8017 = vmatprep.subr.msk.mxu1 %vm16403_vm9, %v4619_v41  ;;  %8027 = vmatpush1.msk.msra.mxu0 %vm16404_vm12, %v4620_v59  ;;  %v4873_v47 = vsel %vm4858_vm14, %v13189_v46, %v13395_v10  ;;  %v4791_v20 = vsel %vm4775_vm8, %v13147_v23, %v16408_v60  ;;  %v4871_v59 = vsel %vm4858_vm14, %v16365_v2, %v13354_v55  ;;  %v16409_v46 = vld [vmem:[#allocation204_spill] sm:$0xff]  ;;  %v13702_v31 = vpop.permute.xlu0 %6854  ;;  %vm16410_vm14 = vcmp.lt.s32.totalorder %v12631_v36, 31  ;;  %v16432_v60 = vld [vmem:[#allocation55_spill] sm:$0xff] }
 0x8eb   :  { %5399 = vmatprep.mubr.f32.mxu0 %v16150_v45  ;;  %8018 = vmatpush1.msk.msra.mxu1 %vm16405_vm1, %v4618_v53  ;;  %v4957_v10 = vsel %vm4941_vm4, %v13454_v43, %v16409_v46  ;;  %v4789_v41 = vsel %vm4775_vm8, %v13100_v17, %v13323_v37  ;;  %v4790_v55 = vsel %vm4775_vm8, %v13323_v37, %v13147_v23  ;;  %vm16411_vm13 = vcmp.lt.s32.totalorder %v12654_v57, 31  ;;  %v13724_v23 = vpop.permute.xlu1 %5739 }
 0x8ec   :  { %5328 = vmatprep.mubr.f32.mxu1 %v16150_v45  ;;  %8028 = vmatmul.mubr.msk.f32.vlgmr.msra.gmra.mxu0 %vm3401_vm2, %v16321_v34  ;;  %v4956_v2 = vsel %vm4941_vm4, %v13221_v50, %v13454_v43  ;;  %v4788_v53 = vsel %vm4775_vm8, %v16372_v19, %v13100_v17  ;;  %vm16412_vm15 = vcmp.lt.s32.totalorder %v12656_v12, 31  ;;  %vm16413_vm10 = vcmp.lt.s32.totalorder %v12658_v44, 31  ;;  %v16414_v43 = vld [vmem:[#allocation202_spill] sm:$0xff] }
 0x8ed   :  { %8038 = vmatprep.subr.msk.mxu0 %vm16407_vm6, %v4874_v28  ;;  %8019 = vmatmul.mubr.msk.f32.vlgmr.msra.gmra.mxu1 %vm3401_vm2, %v16321_v34  ;;  %v4955_v37 = vsel %vm4941_vm4, %v13424_v25, %v13221_v50  ;;  %v4708_v17 = vsel %vm4692_vm11, %v13298_v32, %v16414_v43  ;;  %v4954_v19 = vsel %vm4941_vm4, %v16381_v56, %v13424_v25  ;;  %vm16415_vm8 = vcmp.ge.s32.totalorder %v12631_v36, 1  ;;  %v16416_v50 = vld [vmem:[#allocation206_spill] sm:$0xff]  ;;  %v16442_v43 = vld [vmem:[#allocation32_spill] sm:$0xff] }
 0x8ee   :  { %8029 = vmatprep.subr.msk.mxu1 %vm2474_vm5, %v4872_v49  ;;  %8039 = vmatpush1.msk.msra.mxu0 %vm2475_vm0, %v4873_v47  ;;  %v4706_v15 = vsel %vm4692_vm11, %v13263_v51, %v13064_v62  ;;  %v4707_v28 = vsel %vm4692_vm11, %v13064_v62, %v13298_v32  ;;  %vm16417_vm9 = vcmask 523264   ;;  %v4705_v25 = vsel %vm4692_vm11, %v16386_v42, %v13263_v51  ;;  %v13755_v56 = vpop.permute.xlu0 %6858 }
 0x8ef   :  { %8030 = vmatpush1.msk.msra.mxu1 %vm2473_vm7, %v4871_v59  ;;  %8040 = vmatprep.subr.msk.mxu0 %vm16410_vm14, %v4791_v20  ;;  %v4625_v49 = vsel %vm16417_vm9, %v13023_v5, %v16416_v50  ;;  %vm16418_vm4 = vcmp.ge.s32.totalorder %v12654_v57, 1  ;;  %vm16419_vm12 = vcmp.ge.s32.totalorder %v12656_v12, 1  ;;  %vm6028_vm1 = vcmask 228352   ;;  %vm16420_vm6 = vmmov %vm16417_vm9  ;;  %v13773_v42 = vpop.permute.xlu1 %5743  ;;  %v16433_v20 = vld [vmem:[#allocation54_spill] sm:$0xff] }
 0x8f0   :  { %8031 = vmatprep.subr.msk.mxu1 %vm16411_vm13, %v4789_v41  ;;  %8041 = vmatpush1.msk.msra.mxu0 %vm16412_vm15, %v4790_v55  ;;  %v4623_v62 = vsel %vm16420_vm6, %v12983_v16, %v13228_v27  ;;  %vm16421_vm14 = vcmp.ge.s32.totalorder %v12658_v44, 1  ;;  %vm16422_vm13 = vcmp.ge.s32.totalorder %v12631_v36, 2  ;;  %vm16423_vm11 = vmmov %vm16420_vm6  ;;  %vm16427_vm9 = vcmp.ge.s32.totalorder %v12656_v12, 2  ;;  %v16437_v41 = vld [vmem:[#allocation31_spill] sm:$0xff] }
 0x8f1   :  { %8032 = vmatpush1.msk.msra.mxu1 %vm16413_vm10, %v4788_v53  ;;  %5503 = vmatprep.subr.mxu0 %v4957_v10  ;;  %v4622_v51 = vsel %vm16423_vm11, %v16393_v21, %v12983_v16  ;;  %vm16424_vm15 = vmmov %vm16420_vm6  ;;  %vm16425_vm10 = vcmp.ge.s32.totalorder %v12654_v57, 2  ;;  %v16428_v16 = vld [vmem:[#allocation29_spill] sm:$0xff]  ;;  %v16430_v21 = vld [vmem:[#allocation10_spill] sm:$0xff]  ;;  %vm16431_vm6 = vcmp.lt.s32.totalorder %v11170_v54, 30  ;;  %v6032_v59 = vsel %vm6028_vm1, %v16433_v20, %v16432_v60 }
 0x8f2   :  { %5432 = vmatprep.subr.mxu1 %v4955_v37  ;;  %5504 = vmatpush1.msra.mxu0 %v4956_v2  ;;  %v4624_v32 = vsel %vm16424_vm15, %v13228_v27, %v13023_v5  ;;  %v16429_v5 = vld [vmem:[#allocation52_spill] sm:$0xff]  ;;  %v6031_v46 = vsel %vm6028_vm1, %v16428_v16, %v16433_v20  ;;  %v13805_v55 = vpop.permute.xlu0 %6022  ;;  %v16438_v2 = vld [vmem:[#allocation21_spill] sm:$0xff]  ;;  %vm16439_vm11 = vcmp.lt.s32.totalorder %v11457_v48, 30  ;;  %vm16440_vm15 = vcmp.lt.s32.totalorder %v11170_v54, 31  ;;  %v16441_v37 = vld [vmem:[#allocation63_spill] sm:$0xff] }
 0x8f3   :  { %5433 = vmatpush1.msra.mxu1 %v4954_v19  ;;  %8042 = vmatprep.subr.msk.mxu0 %vm16415_vm8, %v4708_v17  ;;  %vm16426_vm8 = vcmp.ge.s32.totalorder %v12658_v44, 2  ;;  %v6030_v27 = vsel %vm6028_vm1, %v16429_v5, %v16428_v16  ;;  %v6029_v47 = vsel %vm6028_vm1, %v16430_v21, %v16429_v5  ;;  %v16436_v10 = vld [vmem:[#allocation56_spill] sm:$0xff] }
 0x8f4   :  { %8033 = vmatprep.subr.msk.mxu1 %vm16418_vm4, %v4706_v15  ;;  %8043 = vmatpush1.msk.msra.mxu0 %vm16419_vm12, %v4707_v28  ;;  %vm5929_vm4 = vcmask 236544   ;;  %vm5830_vm12 = vcmask 244736   ;;  %v16445_v15 = vld [vmem:[#allocation34_spill] sm:$0xff]  ;;  %v16451_v5 = vld [vmem:[#allocation24_spill] sm:$0xff] }
 0x8f5   :  { %8034 = vmatpush1.msk.msra.mxu1 %vm16421_vm14, %v4705_v25  ;;  %8044 = vmatprep.subr.msk.mxu0 %vm16422_vm13, %v4625_v49  ;;  %vm16434_vm14 = vcmp.lt.s32.totalorder %v11450_v26, 30  ;;  %vm16435_vm13 = vcmp.lt.s32.totalorder %v11162_v9, 30  ;;  %v5930_v53 = vsel %vm5929_vm4, %v16438_v2, %v16437_v41  ;;  %v5933_v17 = vsel %vm5929_vm4, %v16442_v43, %v16441_v37  ;;  %v16446_v28 = vld [vmem:[#allocation58_spill] sm:$0xff]  ;;  %v16447_v49 = vld [vmem:[#allocation116_spill] sm:$0xff] }
 0x8f6   :  { %8035 = vmatprep.subr.msk.mxu1 %vm16425_vm10, %v4623_v62  ;;  %5470 = vmatprep.mubr.f32.mxu1 %v16150_v45  ;;  %vm5747_vm10 = vcmask 252928   ;;  %v5932_v19 = vsel %vm5929_vm4, %v16436_v10, %v16442_v43  ;;  %v5832_v50 = vsel %vm5830_vm12, %v16446_v28, %v16445_v15  ;;  %v15305_v25 = vand.u32 1023, %v16447_v49  ;;  %v13828_v62 = vpop.permute.xlu1 %5640  ;;  %v16453_v20 = vld [vmem:[#allocation36_spill] sm:$0xff]  ;;  %v16460_v43 = vld [vmem:[#allocation39_spill] sm:$0xff] }
 0x8f7   :  { %8036 = vmatpush1.msk.msra.mxu1 %vm16426_vm8, %v4622_v51  ;;  %8045 = vmatpush1.msk.msra.mxu0 %vm16427_vm9, %v4624_v32  ;;  %vm16443_vm8 = vcmp.lt.s32.totalorder %v11450_v26, 31  ;;  %vm16444_vm9 = vcmp.lt.s32.totalorder %v11162_v9, 31  ;;  %v16449_v51 = vld [vmem:[#allocation74_spill] sm:$0xff]  ;;  %v16450_v32 = vld [vmem:[#allocation60_spill] sm:$0xff] }
 0x8f8   :  { %5541 = vmatprep.mubr.f32.mxu0 %v16150_v45  ;;  %8037 = vmatmul.mubr.msk.f32.vlgmr.msra.gmra.mxu1 %vm3401_vm2, %v16321_v34  ;;  %v5834_v16 = vsel %vm5830_vm12, %v16450_v32, %v16449_v51  ;;  %v5833_v21 = vsel %vm5830_vm12, %v16445_v15, %v16450_v32  ;;  %v16508_v15 = vld [vmem:[#allocation132_spill] sm:$0xff] }
 0x8f9   :  { %8046 = vmatmul.mubr.msk.f32.vlgmr.msra.gmra.mxu0 %vm3401_vm2, %v16321_v34  ;;  %8047 = vmatprep.subr.msk.mxu1 %vm16431_vm6, %v6030_v27  ;;  %v5931_v34 = vsel %vm5929_vm4, %v16437_v41, %v16436_v10  ;;  %vm5648_vm6 = vcmask 261120   ;;  %v5831_v27 = vsel %vm5830_vm12, %v16451_v5, %v16446_v28  ;;  %v16456_v41 = vld [vmem:[#allocation67_spill] sm:$0xff]  ;;  %v13868_v28 = vpop.permute.xlu0 %5923  ;;  %v16468_v5 = vld [vmem:[#allocation66_spill] sm:$0xff] }
 0x8fa   :  { %8056 = vmatprep.subr.msk.mxu0 %vm16434_vm14, %v6032_v59  ;;  %8048 = vmatpush1.msk.msra.mxu1 %vm16435_vm13, %v6029_v47  ;;  %vm16448_vm14 = vcmp.lt.s32.totalorder %v11457_v48, 31  ;;  %v16452_v47 = vld [vmem:[#allocation62_spill] sm:$0xff]  ;;  %vm16455_vm13 = vcmp.ge.s32.totalorder %v11170_v54, 1 }
 0x8fb   :  { %8057 = vmatpush1.msk.msra.mxu0 %vm16439_vm11, %v6031_v46  ;;  %8049 = vmatprep.subr.msk.mxu1 %vm16440_vm15, %v5931_v34  ;;  %v5749_v59 = vsel %vm5747_vm10, %v16453_v20, %v16452_v47  ;;  %v16454_v46 = vld [vmem:[#allocation22_spill] sm:$0xff]  ;;  %vm6084_vm11 = vcmask 64512   ;;  %vm16458_vm15 = vcmp.ge.s32.totalorder %v11450_v26, 1 }
 0x8fc   :  { %8058 = vmatprep.subr.msk.mxu0 %vm16443_vm8, %v5933_v17  ;;  %8050 = vmatpush1.msk.msra.mxu1 %vm16444_vm9, %v5930_v53  ;;  %v5748_v10 = vsel %vm5747_vm10, %v16454_v46, %v16453_v20  ;;  %v16457_v34 = vld [vmem:[#allocation38_spill] sm:$0xff]  ;;  %vm16459_vm8 = vcmp.ge.s32.totalorder %v11162_v9, 1  ;;  %v16461_v17 = vld [vmem:[#allocation64_spill] sm:$0xff]  ;;  %vm13864_vm9 = vcmp.lt.s32.totalorder %v15305_v25, 992 }
 0x8fd   :  { %8059 = vmatpush1.msk.msra.mxu0 %vm16448_vm14, %v5932_v19  ;;  %6114 = vmatprep.subr.mxu1 %v5832_v50  ;;  %v5751_v2 = vsel %vm5747_vm10, %v16457_v34, %v16456_v41  ;;  %v5750_v53 = vsel %vm5747_vm10, %v16452_v47, %v16457_v34  ;;  %v5650_v19 = vsel %vm5648_vm6, %v16461_v17, %v16460_v43  ;;  %v16464_v50 = vld [vmem:[#allocation11_spill] sm:$0xff]  ;;  %vm16465_vm14 = vcmp.ge.s32.totalorder %v11457_v48, 1  ;;  %v13887_v47 = vpop.permute.xlu1 %6774  ;;  %v16472_v20 = vld [vmem:[#allocation18_spill] sm:$0xff]  ;;  %v16477_v34 = vld [vmem:[#allocation97_spill] sm:$0xff] }
 0x8fe   :  { %6185 = vmatprep.subr.mxu0 %v5834_v16  ;;  %6115 = vmatpush1.msra.mxu1 %v5831_v27  ;;  %v5649_v32 = vsel %vm5648_vm6, %v16464_v50, %v16461_v17  ;;  %v16467_v16 = vld [vmem:[#allocation76_spill] sm:$0xff]  ;;  %16471 = vst [vmem:[#allocation143_spill] sm:$0xff] %v13887_v47  ;;  %v16480_v17 = vld [vmem:[#allocation99_spill] sm:$0xff] }
 0x8ff   :  { %6186 = vmatpush1.msra.mxu0 %v5833_v21  ;;  %8051 = vmatprep.subr.msk.mxu1 %vm16455_vm13, %v5749_v59  ;;  %vm16466_vm13 = vcmp.ge.s32.totalorder %v11170_v54, 2  ;;  %v5652_v27 = vsel %vm5648_vm6, %v16468_v5, %v16467_v16  ;;  %v5651_v21 = vsel %vm5648_vm6, %v16460_v43, %v16468_v5  ;;  %v16473_v59 = vld [vmem:[#allocation15_spill] sm:$0xff]  ;;  %v16479_v43 = vld [vmem:[#allocation124_spill] sm:$0xff] }
 0x900   :  { %8060 = vmatprep.subr.msk.mxu0 %vm16458_vm15, %v5751_v2  ;;  %8052 = vmatpush1.msk.msra.mxu1 %vm16459_vm8, %v5748_v10  ;;  %vm16469_vm15 = vcmp.ge.s32.totalorder %v11450_v26, 2  ;;  %vm16470_vm8 = vcmp.ge.s32.totalorder %v11162_v9, 2  ;;  %v13891_v46 = vsel %vm6084_vm11, %v16473_v59, %v16472_v20  ;;  %v16476_v10 = vld [vmem:[#allocation98_spill] sm:$0xff]  ;;  %vm16478_vm11 = vcmp.lt.s32.totalorder %v16159_v11, 30  ;;  %v16488_v59 = vld [vmem:[#allocation103_spill] sm:$0xff]  ;;  %v16535_v25 = vld [vmem:[#allocation172_spill] sm:$0xff] }
 0x901   :  { %8061 = vmatpush1.msk.msra.mxu0 %vm16465_vm14, %v5750_v53  ;;  %8053 = vmatprep.subr.msk.mxu1 %vm16466_vm13, %v5650_v19  ;;  %vm16474_vm14 = vcmp.ge.s32.totalorder %v11457_v48, 2  ;;  %vm16475_vm13 = vcmp.lt.s32.totalorder %v16154_v4, 30  ;;  %v6034_v2 = vsel %vm6028_vm1, %v16477_v34, %v16476_v10  ;;  %v6033_v53 = vsel %vm6028_vm1, %v16432_v60, %v16477_v34  ;;  %v16483_v60 = vld [vmem:[#allocation100_spill] sm:$0xff]  ;;  %v16487_v20 = vld [vmem:[#allocation126_spill] sm:$0xff] }
 0x902   :  { %8062 = vmatprep.subr.msk.mxu0 %vm16469_vm15, %v5652_v27  ;;  %8054 = vmatpush1.msk.msra.mxu1 %vm16470_vm8, %v5649_v32  ;;  %vm5985_vm3 = vmand %vm13864_vm9, %vm16475_vm13  ;;  %v6036_v19 = vsel %vm6028_vm1, %v16480_v17, %v16479_v43  ;;  %vm16481_vm15 = vcmp.lt.s32.totalorder %v16154_v4, 31  ;;  %v6035_v50 = vsel %vm6028_vm1, %v16476_v10, %v16480_v17  ;;  %v16484_v32 = vld [vmem:[#allocation101_spill] sm:$0xff]  ;;  %v13928_v27 = vpop.permute.xlu0 %5824  ;;  %vm16485_vm13 = vcmp.lt.s32.totalorder %v16161_v13, 30  ;;  %v13948_v17 = vpop.permute.xlu1 %7064 }
 0x903   :  { %6152 = vmatprep.mubr.f32.mxu1 %v16150_v45  ;;  %8063 = vmatpush1.msk.msra.mxu0 %vm16474_vm14, %v5651_v21  ;;  %vm5886_vm8 = vmand %vm13864_vm9, %vm16481_vm15  ;;  %vm16482_vm14 = vcmp.lt.s32.totalorder %v16163_v63, 30  ;;  %v5935_v5 = vsel %vm5929_vm4, %v16484_v32, %v16483_v60  ;;  %v5934_v21 = vsel %vm5929_vm4, %v16441_v37, %v16484_v32  ;;  %v5937_v10 = vsel %vm5929_vm4, %v16488_v59, %v16487_v20  ;;  %v16491_v37 = vld [vmem:[#allocation105_spill] sm:$0xff] }
 0x904   :  { %6223 = vmatprep.mubr.f32.mxu0 %v16150_v45  ;;  %8055 = vmatmul.mubr.msk.f32.vlgmr.msra.gmra.mxu1 %vm3401_vm2, %v13891_v46  ;;  %v5936_v34 = vsel %vm5929_vm4, %v16483_v60, %v16488_v59  ;;  %16492 = vst [vmem:[#allocation112_spill] sm:$0xff] %v13948_v17  ;;  %vm16493_vm15 = vcmp.lt.s32.totalorder %v16161_v13, 31  ;;  %v5835_v60 = vsel %vm5830_vm12, %v16449_v51, %v16491_v37  ;;  %v16498_v59 = vld [vmem:[#allocation109_spill] sm:$0xff]  ;;  %v16534_v17 = vld [vmem:[#allocation171_spill] sm:$0xff] }
 0x905   :  { %8064 = vmatmul.mubr.msk.f32.vlgmr.msra.gmra.mxu0 %vm3401_vm2, %v13891_v46  ;;  %8065 = vmatprep.subr.msk.mxu1 %vm16478_vm11, %v6034_v2  ;;  %vm16486_vm11 = vcmp.lt.s32.totalorder %v16159_v11, 31  ;;  %v16490_v2 = vld [vmem:[#allocation102_spill] sm:$0xff]  ;;  %v5752_v51 = vsel %vm5747_vm10, %v16456_v41, %v16498_v59  ;;  %v5757_v47 = vsel %vm5747_vm10, %v16535_v25, %v16534_v17 }
 0x906   :  { %8074 = vmatprep.subr.msk.mxu0 %vm5985_vm3, %v6036_v19  ;;  %8066 = vmatpush1.msk.msra.mxu1 %vm16482_vm14, %v6033_v53  ;;  %vm16489_vm3 = vcmp.lt.s32.totalorder %v16163_v63, 31  ;;  %v5836_v53 = vsel %vm5830_vm12, %v16491_v37, %v16490_v2  ;;  %v16494_v19 = vld [vmem:[#allocation128_spill] sm:$0xff]  ;;  %v16501_v37 = vld [vmem:[#allocation110_spill] sm:$0xff] }
 0x907   :  { %8075 = vmatpush1.msk.msra.mxu0 %vm16485_vm13, %v6035_v50  ;;  %8067 = vmatprep.subr.msk.mxu1 %vm16486_vm11, %v5935_v5  ;;  %v16495_v50 = vld [vmem:[#allocation107_spill] sm:$0xff]  ;;  %vm16499_vm13 = vcmp.ge.s32.totalorder %v16159_v11, 1  ;;  %vm16502_vm11 = vcmp.ge.s32.totalorder %v16154_v4, 2  ;;  %v16504_v41 = vld [vmem:[#allocation106_spill] sm:$0xff] }
 0x908   :  { %8076 = vmatprep.subr.msk.mxu0 %vm5886_vm8, %v5937_v10  ;;  %8068 = vmatpush1.msk.msra.mxu1 %vm16489_vm3, %v5934_v21  ;;  %v5838_v32 = vsel %vm5830_vm12, %v16495_v50, %v16494_v19  ;;  %vm16496_vm8 = vcmp.ge.s32.totalorder %v16154_v4, 1  ;;  %v5837_v5 = vsel %vm5830_vm12, %v16490_v2, %v16495_v50  ;;  %v16497_v21 = vld [vmem:[#allocation104_spill] sm:$0xff]  ;;  %vm5588_vm3 = vmand %vm13864_vm9, %vm16502_vm11  ;;  %v16505_v50 = vld [vmem:[#allocation111_spill] sm:$0xff]  ;;  %vm16515_vm11 = vcmp.lt.s32.totalorder %v16210_v30, 30 }
 0x909   :  { %8077 = vmatpush1.msk.msra.mxu0 %vm16493_vm15, %v5936_v34  ;;  %6256 = vmatprep.subr.mxu1 %v5836_v53  ;;  %vm5704_vm14 = vmand %vm13864_vm9, %vm16496_vm8  ;;  %v5753_v10 = vsel %vm5747_vm10, %v16498_v59, %v16497_v21  ;;  %v16500_v34 = vld [vmem:[#allocation130_spill] sm:$0xff]  ;;  %v5754_v2 = vsel %vm5747_vm10, %v16497_v21, %v16501_v37  ;;  %vm16503_vm15 = vcmp.ge.s32.totalorder %v16163_v63, 1  ;;  %vm16507_vm8 = vcmp.ge.s32.totalorder %v16159_v11, 2  ;;  %v16509_v21 = vld [vmem:[#allocation113_spill] sm:$0xff] }
 0x90a   :  { %8078 = vmatprep.subr.msk.mxu0 %vm13864_vm9, %v5838_v32  ;;  %6257 = vmatpush1.msra.mxu1 %v5835_v60  ;;  %v5755_v53 = vsel %vm5747_vm10, %v16501_v37, %v16500_v34  ;;  %v5654_v32 = vsel %vm5648_vm6, %v16505_v50, %v16504_v41  ;;  %v13990_v60 = vpop.permute.xlu0 %5741  ;;  %vm16506_vm9 = vcmp.ge.s32.totalorder %v16161_v13, 1  ;;  %v5656_v59 = vsel %vm5648_vm6, %v16509_v21, %v16508_v15  ;;  %v16514_v37 = vld [vmem:[#allocation160_spill] sm:$0xff] }
 0x90b   :  { %6328 = vmatpush1.msra.mxu0 %v5837_v5  ;;  %8069 = vmatprep.subr.msk.mxu1 %vm16499_vm13, %v5753_v10  ;;  %v5653_v5 = vsel %vm5648_vm6, %v16467_v16, %v16505_v50  ;;  %v5655_v10 = vsel %vm5648_vm6, %v16504_v41, %v16509_v21  ;;  %vm16512_vm13 = vcmp.ge.s32.totalorder %v16161_v13, 2  ;;  %v16513_v16 = vld [vmem:[#allocation165_spill] sm:$0xff]  ;;  %v16516_v41 = vld [vmem:[#allocation190_spill] sm:$0xff]  ;;  %v16521_v21 = vld [vmem:[#allocation164_spill] sm:$0xff] }
 0x90c   :  { %8079 = vmatprep.subr.msk.mxu0 %vm5704_vm14, %v5755_v53  ;;  %8070 = vmatpush1.msk.msra.mxu1 %vm16503_vm15, %v5752_v51  ;;  %vm16510_vm14 = vcmp.ge.s32.totalorder %v16163_v63, 2  ;;  %v14007_v51 = vpop.permute.xlu1 %6966  ;;  %v6038_v53 = vsel %vm6028_vm1, %v16514_v37, %v16513_v16  ;;  %v16517_v50 = vld [vmem:[#allocation162_spill] sm:$0xff]  ;;  %vm16519_vm15 = vcmp.lt.s32.totalorder %v16204_v24, 30 }
 0x90d   :  { %8080 = vmatpush1.msk.msra.mxu0 %vm16506_vm9, %v5754_v2  ;;  %8071 = vmatprep.subr.msk.mxu1 %vm16507_vm8, %v5654_v32  ;;  %16511 = vst [vmem:[#allocation69_spill] sm:$0xff] %v14007_v51  ;;  %v6037_v2 = vsel %vm6028_vm1, %v16479_v43, %v16514_v37  ;;  %v6040_v32 = vsel %vm6028_vm1, %v16517_v50, %v16516_v41  ;;  %v16520_v43 = vld [vmem:[#allocation167_spill] sm:$0xff]  ;;  %vm16522_vm9 = vcmp.lt.s32.totalorder %v16213_v35, 30  ;;  %vm16523_vm8 = vcmp.lt.s32.totalorder %v16210_v30, 31  ;;  %v16532_v51 = vld [vmem:[#allocation194_spill] sm:$0xff] }
 0x90e   :  { %8081 = vmatprep.subr.msk.mxu0 %vm5588_vm3, %v5656_v59  ;;  %8072 = vmatpush1.msk.msra.mxu1 %vm16510_vm14, %v5653_v5  ;;  %v6039_v5 = vsel %vm6028_vm1, %v16513_v16, %v16517_v50  ;;  %vm16518_vm3 = vcmp.lt.s32.totalorder %v16206_v0, 30  ;;  %v5939_v59 = vsel %vm5929_vm4, %v16521_v21, %v16520_v43  ;;  %v5938_v37 = vsel %vm5929_vm4, %v16487_v20, %v16521_v21  ;;  %v16524_v16 = vld [vmem:[#allocation192_spill] sm:$0xff]  ;;  %v16528_v20 = vld [vmem:[#allocation169_spill] sm:$0xff] }
 0x90f   :  { %6294 = vmatprep.mubr.f32.mxu1 %v16150_v45  ;;  %8082 = vmatpush1.msk.msra.mxu0 %vm16512_vm13, %v5655_v10  ;;  %v14038_v10 = vpop.permute.xlu0 %5642  ;;  %vm16526_vm14 = vcmp.lt.s32.totalorder %v16206_v0, 31  ;;  %vm16527_vm13 = vcmp.lt.s32.totalorder %v16204_v24, 31 }
 0x910   :  { %6365 = vmatprep.mubr.f32.mxu0 %v16150_v45  ;;  %8073 = vmatmul.mubr.msk.f32.vlgmr.msra.gmra.mxu1 %vm3401_vm2, %v13891_v46  ;;  %v14060_v21 = vpop.permute.xlu1 %5644 }
 0x911   :  { %8083 = vmatmul.mubr.msk.f32.vlgmr.msra.gmra.mxu0 %vm3401_vm2, %v13891_v46  ;;  %8084 = vmatprep.subr.msk.mxu1 %vm16515_vm11, %v6038_v53  ;;  %v16525_v53 = vld [vmem:[#allocation166_spill] sm:$0xff]  ;;  %vm16531_vm11 = vcmp.lt.s32.totalorder %v16213_v35, 31 }
 0x912   :  { %8093 = vmatprep.subr.msk.mxu0 %vm16518_vm3, %v6040_v32  ;;  %8085 = vmatpush1.msk.msra.mxu1 %vm16519_vm15, %v6037_v2  ;;  %v5941_v2 = vsel %vm5929_vm4, %v16525_v53, %v16524_v16  ;;  %v5940_v50 = vsel %vm5929_vm4, %v16520_v43, %v16525_v53  ;;  %v16529_v32 = vld [vmem:[#allocation168_spill] sm:$0xff]  ;;  %v16533_v43 = vld [vmem:[#allocation170_spill] sm:$0xff]  ;;  %vm16536_vm3 = vcmp.ge.s32.totalorder %v16210_v30, 1  ;;  %vm16539_vm15 = vcmp.ge.s32.totalorder %v16206_v0, 1 }
 0x913   :  { %8094 = vmatpush1.msk.msra.mxu0 %vm16522_vm9, %v6039_v5  ;;  %8086 = vmatprep.subr.msk.mxu1 %vm16523_vm8, %v5939_v59  ;;  %v5840_v5 = vsel %vm5830_vm12, %v16529_v32, %v16528_v20  ;;  %v16530_v59 = vld [vmem:[#allocation227_spill] sm:$0xff]  ;;  %v5842_v53 = vsel %vm5830_vm12, %v16533_v43, %v16532_v51  ;;  %vm16540_vm9 = vcmp.ge.s32.totalorder %v16204_v24, 1 }
 0x914   :  { %8095 = vmatprep.subr.msk.mxu0 %vm16526_vm14, %v5941_v2  ;;  %8087 = vmatpush1.msk.msra.mxu1 %vm16527_vm13, %v5938_v37  ;;  %v5839_v37 = vsel %vm5830_vm12, %v16494_v19, %v16529_v32  ;;  %v5841_v2 = vsel %vm5830_vm12, %v16528_v20, %v16533_v43  ;;  %v16538_v19 = vld [vmem:[#allocation174_spill] sm:$0xff]  ;;  %v16541_v43 = vld [vmem:[#allocation173_spill] sm:$0xff]  ;;  %vm16546_vm14 = vcmp.ge.s32.totalorder %v16213_v35, 1  ;;  %vm16547_vm13 = vcmp.ge.s32.totalorder %v16210_v30, 2 }
 0x915   :  { %8096 = vmatpush1.msk.msra.mxu0 %vm16531_vm11, %v5940_v50  ;;  %6398 = vmatprep.subr.mxu1 %v5840_v5  ;;  %v5756_v50 = vsel %vm5747_vm10, %v16500_v34, %v16535_v25  ;;  %v16537_v5 = vld [vmem:[#allocation196_spill] sm:$0xff]  ;;  %v5758_v20 = vsel %vm5747_vm10, %v16534_v17, %v16538_v19  ;;  %vm16550_vm11 = vcmp.ge.s32.totalorder %v16206_v0, 2 }
 0x916   :  { %6469 = vmatprep.subr.mxu0 %v5842_v53  ;;  %6399 = vmatpush1.msra.mxu1 %v5839_v37  ;;  %v5759_v32 = vsel %vm5747_vm10, %v16538_v19, %v16537_v5  ;;  %v16542_v25 = vld [vmem:[#allocation176_spill] sm:$0xff]  ;;  %v14101_v37 = vpop.permute.xlu0 %6772  ;;  %v16566_v53 = vld [vmem:[#allocation218_spill] sm:$0xff] }
 0x917   :  { %6470 = vmatpush1.msra.mxu0 %v5841_v2  ;;  %8088 = vmatprep.subr.msk.mxu1 %vm16536_vm3, %v5757_v47  ;;  %v5658_v34 = vsel %vm5648_vm6, %v16542_v25, %v16541_v43  ;;  %v16543_v47 = vand.u32 1023, %v16530_v59  ;;  %v5657_v17 = vsel %vm5648_vm6, %v16508_v15, %v16542_v25  ;;  %v16548_v2 = vld [vmem:[#allocation199_spill] sm:$0xff]  ;;  %vm16551_vm3 = vcmp.ge.s32.totalorder %v16204_v24, 2  ;;  %v14120_v15 = vpop.permute.xlu1 %6868  ;;  %v16554_v25 = vld [vmem:[#allocation210_spill] sm:$0xff] }
 0x918   :  { %8097 = vmatprep.subr.msk.mxu0 %vm16539_vm15, %v5759_v32  ;;  %8089 = vmatpush1.msk.msra.mxu1 %vm16540_vm9, %v5756_v50  ;;  %v16549_v50 = vld [vmem:[#allocation179_spill] sm:$0xff]  ;;  %vm16552_vm15 = vcmp.ge.s32.totalorder %v16213_v35, 2  ;;  %vm16553_vm9 = vcmp.lt.s32.totalorder %v12631_v36, 30 }
 0x919   :  { %vm14097_vm8 = vcmp.lt.s32.totalorder %v16543_v47, 992  ;;  %8098 = vmatpush1.msk.msra.mxu0 %vm16546_vm14, %v5758_v20  ;;  %8090 = vmatprep.subr.msk.mxu1 %vm16547_vm13, %v5658_v34  ;;  %v5660_v19 = vsel %vm5648_vm6, %v16549_v50, %v16548_v2  ;;  %v5659_v32 = vsel %vm5648_vm6, %v16541_v43, %v16549_v50  ;;  %v6042_v20 = vsel %vm6028_vm1, %v13393_v40, %v13805_v55  ;;  %v16556_v50 = vld [vmem:[#allocation212_spill] sm:$0xff] }
 0x91a   :  { %8099 = vmatprep.subr.msk.mxu0 %vm16550_vm11, %v5660_v19  ;;  %8091 = vmatpush1.msk.msra.mxu1 %vm16551_vm3, %v5657_v17  ;;  %vm5993_vm14 = vmand %vm14097_vm8, %vm16553_vm9  ;;  %v6041_v43 = vsel %vm6028_vm1, %v16516_v41, %v13393_v40  ;;  %v6044_v34 = vsel %vm6028_vm1, %v13443_v22, %v16554_v25  ;;  %vm16555_vm13 = vcmp.lt.s32.totalorder %v12631_v36, 31  ;;  %v6043_v47 = vsel %vm6028_vm1, %v13805_v55, %v13443_v22  ;;  %v14157_v41 = vpop.permute.xlu0 %6776 }
 0x91b   :  { %6436 = vmatprep.mubr.f32.mxu1 %v16150_v45  ;;  %8100 = vmatpush1.msk.msra.mxu0 %vm16552_vm15, %v5659_v32  ;;  %vm5894_vm11 = vmand %vm14097_vm8, %vm16555_vm13  ;;  %v5943_v40 = vsel %vm5929_vm4, %v13499_v1, %v13868_v28  ;;  %v5942_v17 = vsel %vm5929_vm4, %v16524_v16, %v13499_v1  ;;  %v5945_v19 = vsel %vm5929_vm4, %v13562_v38, %v16556_v50  ;;  %vm16557_vm1 = vcmp.lt.s32.totalorder %v12654_v57, 31  ;;  %v14177_v55 = vpop.permute.xlu1 %7056  ;;  %v16559_v32 = vld [vmem:[#allocation215_spill] sm:$0xff] }
 0x91c   :  { %6507 = vmatprep.mubr.f32.mxu0 %v16150_v45  ;;  %8092 = vmatmul.mubr.msk.f32.vlgmr.msra.gmra.mxu1 %vm3401_vm2, %v13891_v46  ;;  %v5944_v22 = vsel %vm5929_vm4, %v13868_v28, %v13562_v38  ;;  %vm16558_vm3 = vcmp.lt.s32.totalorder %v12658_v44, 31  ;;  %v5844_v1 = vsel %vm5830_vm12, %v13615_v7, %v13928_v27  ;;  %v5843_v16 = vsel %vm5830_vm12, %v16532_v51, %v13615_v7 }
 0x91d   :  { %8101 = vmatmul.mubr.msk.f32.vlgmr.msra.gmra.mxu0 %vm3401_vm2, %v13891_v46  ;;  %8102 = vmatprep.subr.msk.mxu1 %vm2474_vm5, %v6042_v20  ;;  %v5846_v20 = vsel %vm5830_vm12, %v13668_v6, %v16559_v32  ;;  %vm16560_vm4 = vcmp.lt.s32.totalorder %v12656_v12, 31  ;;  %vm16561_vm15 = vcmp.ge.s32.totalorder %v12631_v36, 1  ;;  %v5845_v38 = vsel %vm5830_vm12, %v13928_v27, %v13668_v6 }
 0x91e   :  { %8111 = vmatprep.subr.msk.mxu0 %vm5993_vm14, %v6044_v34  ;;  %8103 = vmatpush1.msk.msra.mxu1 %vm2473_vm7, %v6041_v43  ;;  %vm5712_vm9 = vmand %vm14097_vm8, %vm16561_vm15  ;;  %v5761_v7 = vsel %vm5747_vm10, %v13724_v23, %v13990_v60  ;;  %v5662_v28 = vsel %vm5648_vm6, %v13828_v62, %v14038_v10  ;;  %v5760_v51 = vsel %vm5747_vm10, %v16537_v5, %v13724_v23  ;;  %v16562_v43 = vld [vmem:[#allocation217_spill] sm:$0xff]  ;;  %vm16563_vm12 = vcmp.ge.s32.totalorder %v12654_v57, 1  ;;  %v14222_v5 = vpop.permute.xlu0 %7062 }
 0x91f   :  { %8112 = vmatpush1.msk.msra.mxu0 %vm2475_vm0, %v6043_v47  ;;  %8104 = vmatprep.subr.msk.mxu1 %vm16557_vm1, %v5943_v40  ;;  %v5763_v6 = vsel %vm5747_vm10, %v13773_v42, %v16562_v43  ;;  %vm16564_vm14 = vcmp.ge.s32.totalorder %v12631_v36, 2  ;;  %v5762_v27 = vsel %vm5747_vm10, %v13990_v60, %v13773_v42  ;;  %v5663_v23 = vsel %vm5648_vm6, %v14038_v10, %v14060_v21  ;;  %v14236_v42 = vpop.permute.xlu1 %6958  ;;  %v16572_v60 = vld [vmem:[#allocation41_spill] sm:$0xff]  ;;  %v16577_v47 = vld [vmem:[#allocation108_spill] sm:$0xff]  ;;  %v16596_v43 = vld [vmem:[#allocation47_spill] sm:$0xff] }
 0x920   :  { %8113 = vmatprep.subr.msk.mxu0 %vm5894_vm11, %v5945_v19  ;;  %8105 = vmatpush1.msk.msra.mxu1 %vm16558_vm3, %v5942_v17  ;;  %vm5596_vm13 = vmand %vm14097_vm8, %vm16564_vm14  ;;  %vm16565_vm11 = vcmp.ge.s32.totalorder %v12658_v44, 1  ;;  %v5661_v25 = vsel %vm5648_vm6, %v16548_v2, %v13828_v62  ;;  %v5664_v34 = vsel %vm5648_vm6, %v14060_v21, %v16566_v53  ;;  %vm16567_vm10 = vcmp.ge.s32.totalorder %v12656_v12, 1  ;;  %v16571_v62 = vld [vmem:[#allocation49_spill] sm:$0xff]  ;;  %v16574_v21 = vld [vmem:[#allocation43_spill] sm:$0xff] }
 0x921   :  { %8114 = vmatpush1.msk.msra.mxu0 %vm16560_vm4, %v5944_v22  ;;  %6540 = vmatprep.subr.mxu1 %v5844_v1  ;;  %vm16569_vm1 = vcmp.ge.s32.totalorder %v12658_v44, 2  ;;  %vm16570_vm3 = vcmp.ge.s32.totalorder %v12656_v12, 2  ;;  %vm16573_vm6 = vcmask 1014784   ;;  %vm16576_vm15 = vcmp.lt.s32.totalorder %v11170_v54, 30  ;;  %v16578_v40 = vld [vmem:[#allocation61_spill] sm:$0xff]  ;;  %v16584_v22 = vld [vmem:[#allocation68_spill] sm:$0xff] }
 0x922   :  { %8115 = vmatprep.subr.msk.mxu0 %vm14097_vm8, %v5846_v20  ;;  %6541 = vmatpush1.msra.mxu1 %v5843_v16  ;;  %vm16568_vm8 = vcmp.ge.s32.totalorder %v12654_v57, 2  ;;  %v7067_v10 = vsel %vm16573_vm6, %v16572_v60, %v16571_v62  ;;  %vm16575_vm4 = vmmov %vm16573_vm6  ;;  %vm16581_vm14 = vcmp.lt.s32.totalorder %v11450_v26, 30  ;;  %v16583_v19 = vld [vmem:[#allocation45_spill] sm:$0xff]  ;;  %v14267_v1 = vpop.permute.xlu0 %6964  ;;  %v16586_v16 = vld [vmem:[#allocation51_spill] sm:$0xff] }
 0x923   :  { %6612 = vmatpush1.msra.mxu0 %v5845_v38  ;;  %8106 = vmatprep.subr.msk.mxu1 %vm16563_vm12, %v5761_v7  ;;  %v7066_v2 = vsel %vm16575_vm4, %v16574_v21, %v16572_v60  ;;  %vm16580_vm12 = vmmov %vm16575_vm4  ;;  %v16590_v20 = vld [vmem:[#allocation115_spill] sm:$0xff]  ;;  %v16620_v53 = vld [vmem:[#allocation229_spill] sm:$0xff] }
 0x924   :  { %8116 = vmatprep.subr.msk.mxu0 %vm5712_vm9, %v5763_v6  ;;  %8107 = vmatpush1.msk.msra.mxu1 %vm16565_vm11, %v5760_v51  ;;  %vm16579_vm9 = vmmov %vm16575_vm4  ;;  %v7068_v50 = vsel %vm16580_vm12, %v16571_v62, %v16578_v40  ;;  %vm16585_vm11 = vcmask 1022976   ;;  %v16591_v38 = vld [vmem:[#allocation71_spill] sm:$0xff]  ;;  %vm16594_vm4 = vcmp.lt.s32.totalorder %v11450_v26, 31  ;;  %v14286_v51 = vpop.permute.xlu1 %6860  ;;  %v16624_v60 = vld [vmem:[#allocation180_spill] sm:$0xff] }
 0x925   :  { %8117 = vmatpush1.msk.msra.mxu0 %vm16567_vm10, %v5762_v27  ;;  %8108 = vmatprep.subr.msk.mxu1 %vm16568_vm8, %v5662_v28  ;;  %v7069_v17 = vsel %vm16579_vm9, %v16578_v40, %v16577_v47  ;;  %vm16587_vm10 = vmmov %vm16585_vm11  ;;  %vm16588_vm8 = vcmp.lt.s32.totalorder %v11457_v48, 30  ;;  %vm16597_vm9 = vcmask 1031168   ;;  %v16598_v27 = vld [vmem:[#allocation226_spill] sm:$0xff]  ;;  %v16622_v62 = vld [vmem:[#allocation19_spill] sm:$0xff] }
 0x926   :  { %8118 = vmatprep.subr.msk.mxu0 %vm5596_vm13, %v5664_v34  ;;  %8109 = vmatpush1.msk.msra.mxu1 %vm16569_vm1, %v5661_v25  ;;  %vm16582_vm13 = vcmp.lt.s32.totalorder %v11162_v9, 30  ;;  %v6968_v32 = vsel %vm16587_vm10, %v16586_v16, %v16584_v22  ;;  %vm16589_vm1 = vcmp.lt.s32.totalorder %v11170_v54, 31  ;;  %v6871_v6 = vsel %vm16597_vm9, %v16596_v43, %v12701_v8  ;;  %vm16599_vm12 = vmmov %vm16597_vm9  ;;  %v16626_v21 = vld [vmem:[#allocation13_spill] sm:$0xff] }
 0x927   :  { %6578 = vmatprep.mubr.f32.mxu1 %v16150_v45  ;;  %8119 = vmatpush1.msk.msra.mxu0 %vm16570_vm3, %v5663_v23  ;;  %vm16592_vm3 = vmmov %vm16587_vm10  ;;  %v6870_v23 = vsel %vm16599_vm12, %v16598_v27, %v16596_v43  ;;  %vm16603_vm10 = vcmp.ge.s32.totalorder %v11162_v9, 1  ;;  %v16604_v8 = vand.u32 1023, %v16447_v49  ;;  %v8283_v49 = vld [vmem:[#allocation3 + $0x18] sm:$0xff]  ;;  %vm16612_vm9 = vcmp.lt.s32.totalorder %v16154_v4, 30  ;;  %v8284_v43 = vld [vmem:[#allocation3 + $0x30] sm:$0xff] }
 0x928   :  { %6649 = vmatprep.mubr.f32.mxu0 %v16150_v45  ;;  %8110 = vmatmul.mubr.msk.f32.vlgmr.msra.gmra.mxu1 %vm3401_vm2, %v13891_v46  ;;  %v6971_v7 = vsel %vm16592_vm3, %v16591_v38, %v16590_v20  ;;  %vm16593_vm6 = vmmov %vm16592_vm3  ;;  %vm16608_vm3 = vcmp.ge.s32.totalorder %v11170_v54, 2  ;;  %v8286_v27 = vld [vmem:[#allocation3 + $0x28] sm:$0xff]  ;;  %v16654_v25 = vld [vmem:[#allocation77_spill] sm:$0xff] }
 0x929   :  { %8120 = vmatmul.mubr.msk.f32.vlgmr.msra.gmra.mxu0 %vm3401_vm2, %v13891_v46  ;;  %8121 = vmatprep.subr.msk.mxu1 %vm16576_vm15, %v7067_v10  ;;  %v6969_v46 = vsel %vm16585_vm11, %v16584_v22, %v16583_v19  ;;  %v6970_v28 = vsel %vm16593_vm6, %v16583_v19, %v16591_v38  ;;  %vm16595_vm15 = vcmp.lt.s32.totalorder %v11162_v9, 31  ;;  %vm16602_vm11 = vcmp.ge.s32.totalorder %v11450_v26, 1  ;;  %v16635_v19 = vld [vmem:[#allocation117_spill] sm:$0xff]  ;;  %v16643_v38 = vld [vmem:[#allocation118_spill] sm:$0xff] }
 0x92a   :  { %8130 = vmatprep.subr.msk.mxu0 %vm16581_vm14, %v7069_v17  ;;  %8122 = vmatpush1.msk.msra.mxu1 %vm16582_vm13, %v7066_v2  ;;  %vm16600_vm14 = vcmp.lt.s32.totalorder %v11457_v48, 31  ;;  %vm16601_vm13 = vcmp.ge.s32.totalorder %v11170_v54, 1  ;;  %vm16609_vm6 = vcmp.ge.s32.totalorder %v11450_v26, 2  ;;  %v16613_v26 = vld [vmem:[#allocation228_spill] sm:$0xff]  ;;  %v16615_v54 = vld [vmem:[#allocation23_spill] sm:$0xff]  ;;  %v16628_v2 = vld [vmem:[#allocation230_spill] sm:$0xff] }
 0x92b   :  { %8131 = vmatpush1.msk.msra.mxu0 %vm16588_vm8, %v7068_v50  ;;  %8123 = vmatprep.subr.msk.mxu1 %vm16589_vm1, %v6969_v46  ;;  %vm14309_vm8 = vcmp.lt.s32.totalorder %v16604_v8, 960  ;;  %vm16607_vm1 = vcmp.ge.s32.totalorder %v11457_v48, 1  ;;  %v16631_v17 = vld [vmem:[#allocation197_spill] sm:$0xff]  ;;  %v16633_v50 = vld [vmem:[#allocation80_spill] sm:$0xff]  ;;  %v16637_v46 = vld [vmem:[#allocation114_spill] sm:$0xff] }
 0x92c   :  { %8132 = vmatprep.subr.msk.mxu0 %vm16594_vm4, %v6971_v7  ;;  %8124 = vmatpush1.msk.msra.mxu1 %vm16595_vm15, %v6968_v32  ;;  %vm16610_vm4 = vcmp.ge.s32.totalorder %v11162_v9, 2  ;;  %vm16611_vm15 = vcmp.ge.s32.totalorder %v11457_v48, 2  ;;  %vm7023_vm12 = vmand %vm14309_vm8, %vm16612_vm9  ;;  %v16618_v48 = vld [vmem:[#allocation184_spill] sm:$0xff]  ;;  %vm16630_vm9 = vcmask 1031168   ;;  %v16636_v22 = vld [vmem:[#allocation225_spill] sm:$0xff] }
 0x92d   :  { %8133 = vmatpush1.msk.msra.mxu0 %vm16600_vm14, %v6970_v28  ;;  %7146 = vmatprep.subr.mxu1 %v6871_v6  ;;  %vm16614_vm14 = vcmask 1014784   ;;  %v16639_v32 = vld [vmem:[#allocation16_spill] sm:$0xff]  ;;  %v16645_v28 = vld [vmem:[#allocation78_spill] sm:$0xff] }
 0x92e   :  { %7217 = vmatprep.subr.mxu0 %v12755_v39  ;;  %7147 = vmatpush1.msra.mxu1 %v6870_v23  ;;  %v14313_v39 = vpop.permute.xlu0 %6866  ;;  %v7070_v9 = vsel %vm16614_vm14, %v16577_v47, %v16613_v26  ;;  %v16629_v47 = vld [vmem:[#allocation5_spill] sm:$0xff]  ;;  %vm16634_vm14 = vcmp.ge.s32.totalorder %v16154_v4, 1  ;;  %v16653_v8 = vld [vmem:[#allocation4_spill] sm:$0xff] }
 0x92f   :  { %7218 = vmatpush1.msra.mxu0 %v12708_v61  ;;  %8125 = vmatprep.subr.msk.mxu1 %vm16601_vm13, %v12800_v58  ;;  %v8280_v61 = vld [vmem:[#allocation3 + $0x10] sm:$0xff]  ;;  %v14320_v58 = vpop.permute.xlu1 %6778  ;;  %vm16616_vm13 = vcmp.lt.s32.totalorder %v16159_v11, 30  ;;  %v6877_v40 = vsel %vm16630_vm9, %v16629_v47, %v16628_v2  ;;  %v8287_v23 = vld [vmem:[#allocation3 + $0x38] sm:$0xff]  ;;  %vm16649_vm9 = vcmp.ge.s32.totalorder %v16161_v13, 2 }
 0x930   :  { %8134 = vmatprep.subr.msk.mxu0 %vm16602_vm11, %v12849_v29  ;;  %8126 = vmatpush1.msk.msra.mxu1 %vm16603_vm10, %v12887_v3  ;;  %v8281_v29 = vld [vmem:[#allocation3 + $0x20] sm:$0xff]  ;;  %v8282_v3 = vld [vmem:[#allocation3 + $0x8] sm:$0xff]  ;;  %vm16617_vm11 = vcmp.lt.s32.totalorder %v16154_v4, 31  ;;  %v16662_v26 = vld [vmem:[#allocation73_spill] sm:$0xff] }
 0x931   :  { %8135 = vmatpush1.msk.msra.mxu0 %vm16607_vm1, %v12845_v52  ;;  %8127 = vmatprep.subr.msk.mxu1 %vm16608_vm3, %v8280_v61  ;;  %vm6925_vm10 = vmand %vm14309_vm8, %vm16617_vm11  ;;  %vm16619_vm1 = vcmp.lt.s32.totalorder %v16163_v63, 30  ;;  %vm16621_vm3 = vcmask 1022976   ;;  %vm16638_vm11 = vcmask 1039360   ;;  %v16657_v61 = vld [vmem:[#allocation119_spill] sm:$0xff] }
 0x932   :  { %8136 = vmatprep.subr.msk.mxu0 %vm16609_vm6, %v8281_v29  ;;  %8128 = vmatpush1.msk.msra.mxu1 %vm16610_vm4, %v8282_v3  ;;  %v14351_v52 = vpop.permute.xlu0 %7058  ;;  %v6972_v34 = vsel %vm16621_vm3, %v16590_v20, %v16620_v53  ;;  %vm16623_vm6 = vcmp.lt.s32.totalorder %v16161_v13, 30  ;;  %vm16625_vm4 = vcmp.lt.s32.totalorder %v16159_v11, 31  ;;  %v6795_v16 = vsel %vm16638_vm11, %v16637_v46, %v16636_v22  ;;  %v16640_v20 = vld [vmem:[#allocation17_spill] sm:$0xff] }
 0x933   :  { %7184 = vmatprep.mubr.f32.mxu1 %v16150_v45  ;;  %8137 = vmatpush1.msk.msra.mxu0 %vm16611_vm15, %v8283_v49  ;;  %v14362_v10 = vpop.permute.xlu1 %7060  ;;  %vm16627_vm15 = vcmp.lt.s32.totalorder %v16163_v63, 31  ;;  %vm16656_vm11 = vcmp.lt.s32.totalorder %v16206_v0, 30 }
 0x934   :  { %7255 = vmatprep.mubr.f32.mxu0 %v16150_v45  ;;  %8129 = vmatmul.mubr.msk.f32.vlgmr.msra.gmra.mxu1 %vm3401_vm2, %v12779_v14 }
 0x935   :  { %8138 = vmatmul.mubr.msk.f32.vlgmr.msra.gmra.mxu0 %vm3401_vm2, %v12779_v14  ;;  %8139 = vmatprep.subr.msk.mxu1 %vm16616_vm13, %v16615_v54  ;;  %vm6728_vm13 = vmand %vm14309_vm8, %vm16634_vm14  ;;  %vm16652_vm14 = vcmp.lt.s32.totalorder %v16210_v30, 30 }
 0x936   :  { %8148 = vmatprep.subr.msk.mxu0 %vm7023_vm12, %v16618_v48  ;;  %8140 = vmatpush1.msk.msra.mxu1 %vm16619_vm1, %v7070_v9  ;;  %vm16632_vm12 = vcmp.lt.s32.totalorder %v16161_v13, 31  ;;  %vm16642_vm1 = vcmp.ge.s32.totalorder %v16154_v4, 2  ;;  %v14395_v7 = vpop.permute.xlu0 %6960  ;;  %v8285_v4 = vld [vmem:[#allocation3 + $0x40] sm:$0xff]  ;;  %v16668_v48 = vld [vmem:[#allocation81_spill] sm:$0xff] }
 0x937   :  { %8149 = vmatpush1.msk.msra.mxu0 %vm16623_vm6, %v16622_v62  ;;  %8141 = vmatprep.subr.msk.mxu1 %vm16625_vm4, %v16624_v60  ;;  %vm6695_vm3 = vmand %vm14309_vm8, %vm16642_vm1  ;;  %vm16644_vm6 = vcmp.ge.s32.totalorder %v16163_v63, 1  ;;  %vm16646_vm4 = vcmp.ge.s32.totalorder %v16161_v13, 1  ;;  %v14402_v6 = vpop.permute.xlu1 %6962  ;;  %v16674_v60 = vld [vmem:[#allocation143_spill] sm:$0xff] }
 0x938   :  { %8150 = vmatprep.subr.msk.mxu0 %vm6925_vm10, %v16626_v21  ;;  %8142 = vmatpush1.msk.msra.mxu1 %vm16627_vm15, %v6972_v34  ;;  %vm16641_vm10 = vcmp.ge.s32.totalorder %v16159_v11, 1  ;;  %vm16647_vm15 = vcmp.ge.s32.totalorder %v16159_v11, 2 }
 0x939   :  { %8151 = vmatpush1.msk.msra.mxu0 %vm16632_vm12, %v16631_v17  ;;  %7288 = vmatprep.subr.mxu1 %v16633_v50  ;;  %vm16650_vm12 = vcmask 1014784   ;;  %v8288_v17 = vld [vmem:[#allocation3 + $0x50] sm:$0xff]  ;;  %v8289_v50 = vld [vmem:[#allocation3 + $0x60] sm:$0xff] }
 0x93a   :  { %8152 = vmatprep.subr.msk.mxu0 %vm14309_vm8, %v6877_v40  ;;  %7289 = vmatpush1.msra.mxu1 %v16635_v19  ;;  %vm16648_vm8 = vcmp.ge.s32.totalorder %v16163_v63, 2  ;;  %v7077_v11 = vsel %vm16650_vm12, %v13538_v33, %v14177_v55  ;;  %v16651_v63 = vld [vmem:[#allocation79_spill] sm:$0xff]  ;;  %v14428_v29 = vpop.permute.xlu0 %6862  ;;  %v16659_v33 = vld [vmem:[#allocation121_spill] sm:$0xff]  ;;  %vm16669_vm12 = vcmask 1031168  }
 0x93b   :  { %7360 = vmatpush1.msra.mxu0 %v16639_v32  ;;  %8143 = vmatprep.subr.msk.mxu1 %vm16641_vm10, %v16640_v20  ;;  %vm16658_vm10 = vcmp.lt.s32.totalorder %v16204_v24, 30  ;;  %v6865_v54 = vpop.permute.xlu1 %6864  ;;  %v6879_v53 = vsel %vm16669_vm12, %v13702_v31, %v16668_v48  ;;  %v8290_v19 = vld [vmem:[#allocation3 + $0x48] sm:$0xff] }
 0x93c   :  { %8153 = vmatprep.subr.msk.mxu0 %vm6728_vm13, %v6795_v16  ;;  %8144 = vmatpush1.msk.msra.mxu1 %vm16644_vm6, %v16643_v38  ;;  %vm16655_vm13 = vcmask 1022976   ;;  %vm16663_vm6 = vcmp.lt.s32.totalorder %v16213_v35, 30  ;;  %v16698_v16 = vld [vmem:[#allocation69_spill] sm:$0xff] }
 0x93d   :  { %8154 = vmatpush1.msk.msra.mxu0 %vm16646_vm4, %v16645_v28  ;;  %8145 = vmatprep.subr.msk.mxu1 %vm16647_vm15, %v8284_v43  ;;  %v6977_v13 = vsel %vm16655_vm13, %v16654_v25, %v16653_v8  ;;  %vm16660_vm1 = vmmov %vm16655_vm13  ;;  %vm16664_vm4 = vcmp.lt.s32.totalorder %v16210_v30, 31  ;;  %vm16671_vm13 = vcmp.lt.s32.totalorder %v16213_v35, 31  ;;  %v14582_v43 = vpop.f32.mrf.mxu0 }
 0x93e   :  { %8155 = vmatprep.subr.msk.mxu0 %vm6695_vm3, %v8285_v4  ;;  %8146 = vmatpush1.msk.msra.mxu1 %vm16648_vm8, %v8286_v27  ;;  %v6976_v3 = vsel %vm16660_vm1, %v16659_v33, %v16654_v25  ;;  %vm16661_vm3 = vmmov %vm16660_vm1  ;;  %vm16666_vm8 = vcmp.lt.s32.totalorder %v16206_v0, 31  ;;  %v6781_v40 = vpop.permute.xlu0 %6780 }
 0x93f   :  { %7326 = vmatprep.mubr.f32.mxu1 %v16150_v45  ;;  %8156 = vmatpush1.msk.msra.mxu0 %vm16649_vm9, %v8287_v23  ;;  %v6979_v49 = vsel %vm16661_vm3, %v13649_v18, %v14236_v42  ;;  %vm16665_vm15 = vmmov %vm16660_vm1  ;;  %vm16667_vm9 = vcmp.lt.s32.totalorder %v16204_v24, 31  ;;  %vm16675_vm1 = vcmask 1039360   ;;  %v14599_v23 = vpop.f32.mrf.mxu1 }
 0x940   :  { %7397 = vmatprep.mubr.f32.mxu0 %v16150_v45  ;;  %8147 = vmatmul.mubr.msk.f32.vlgmr.msra.gmra.mxu1 %vm3401_vm2, %v12779_v14  ;;  %v6978_v9 = vsel %vm16665_vm15, %v16653_v8, %v13649_v18  ;;  %v6797_v21 = vsel %vm16675_vm1, %v14101_v37, %v16674_v60  ;;  %vm16676_vm3 = vmmov %vm16675_vm1 }
 0x941   :  { %8157 = vmatmul.mubr.msk.f32.vlgmr.msra.gmra.mxu0 %vm3401_vm2, %v12779_v14  ;;  %8158 = vmatprep.subr.msk.mxu1 %vm16652_vm14, %v16651_v63  ;;  %vm16670_vm14 = vmmov %vm16669_vm12  ;;  %v14603_v63 = vpop.f32.mrf.mxu1 }
 0x942   :  { %8167 = vmatprep.subr.msk.mxu0 %vm16656_vm11, %v7077_v11  ;;  %8159 = vmatpush1.msk.msra.mxu1 %vm16658_vm10, %v16657_v61  ;;  %v6878_v34 = vsel %vm16670_vm14, %v16628_v2, %v13702_v31  ;;  %vm16672_vm11 = vmmov %vm16669_vm12  ;;  %v6796_v31 = vsel %vm16676_vm3, %v16636_v22, %v14101_v37  ;;  %v16682_v37 = vand.u32 1023, %v16530_v59  ;;  %vm16685_vm14 = vcmp.ge.s32.totalorder %v16213_v35, 1  ;;  %v8291_v59 = vld [vmem:[#allocation3 + $0x58] sm:$0xff] }
 0x943   :  { %8168 = vmatpush1.msk.msra.mxu0 %vm16663_vm6, %v16662_v26  ;;  %8160 = vmatprep.subr.msk.mxu1 %vm16664_vm4, %v6977_v13  ;;  %v6881_v18 = vsel %vm16672_vm11, %v13755_v56, %v14286_v51  ;;  %vm16673_vm10 = vmmov %vm16672_vm11  ;;  %vm16678_vm4 = vcmp.ge.s32.totalorder %v16210_v30, 1  ;;  %vm16687_vm11 = vcmp.ge.s32.totalorder %v16206_v0, 2  ;;  %vm16690_vm3 = vcmp.lt.s32.totalorder %v12631_v36, 30 }
 0x944   :  { %8169 = vmatprep.subr.msk.mxu0 %vm16666_vm8, %v6979_v49  ;;  %8161 = vmatpush1.msk.msra.mxu1 %vm16667_vm9, %v6976_v3  ;;  %v6880_v62 = vsel %vm16673_vm10, %v16668_v48, %v13755_v56  ;;  %vm16677_vm6 = vmmov %vm16675_vm1  ;;  %vm16680_vm8 = vcmp.ge.s32.totalorder %v16206_v0, 1  ;;  %vm16681_vm9 = vcmp.ge.s32.totalorder %v16204_v24, 1  ;;  %vm14482_vm12 = vcmp.lt.s32.totalorder %v16682_v37, 960 }
 0x945   :  { %8170 = vmatpush1.msk.msra.mxu0 %vm16671_vm13, %v6978_v9  ;;  %7430 = vmatprep.subr.mxu1 %v6879_v53  ;;  %v6799_v2 = vsel %vm16677_vm6, %v14157_v41, %v14320_v58  ;;  %vm16679_vm15 = vmmov %vm16675_vm1  ;;  %vm16686_vm13 = vcmp.ge.s32.totalorder %v16210_v30, 2  ;;  %vm16688_vm10 = vcmp.ge.s32.totalorder %v16204_v24, 2  ;;  %vm16689_vm1 = vcmp.ge.s32.totalorder %v16213_v35, 2  ;;  %v16692_v24 = vld [vmem:[#allocation112_spill] sm:$0xff] }
 0x946   :  { %7501 = vmatprep.subr.mxu0 %v6881_v18  ;;  %7431 = vmatpush1.msra.mxu1 %v6878_v34  ;;  %v6798_v56 = vsel %vm16679_vm15, %v16674_v60, %v14157_v41  ;;  %v6783_v41 = vpop.permute.xlu1 %6782  ;;  %vm7031_vm6 = vmand %vm14482_vm12, %vm16690_vm3 }
 0x947   :  { %7502 = vmatpush1.msra.mxu0 %v6880_v62  ;;  %8162 = vmatprep.subr.msk.mxu1 %vm16678_vm4, %v6797_v21  ;;  %vm16691_vm4 = vcmask 1014784  }
 0x948   :  { %8171 = vmatprep.subr.msk.mxu0 %vm16680_vm8, %v6799_v2  ;;  %8163 = vmatpush1.msk.msra.mxu1 %vm16681_vm9, %v6796_v31  ;;  %v7079_v0 = vsel %vm16691_vm4, %v14351_v52, %v14362_v10  ;;  %vm16693_vm15 = vmmov %vm16691_vm4  ;;  %vm16695_vm9 = vcmp.lt.s32.totalorder %v12631_v36, 31 }
 0x949   :  { %8172 = vmatpush1.msk.msra.mxu0 %vm16685_vm14, %v6798_v56  ;;  %8164 = vmatprep.subr.msk.mxu1 %vm16686_vm13, %v8288_v17  ;;  %v7081_v30 = vsel %vm16693_vm15, %v14222_v5, %v16692_v24  ;;  %vm16694_vm8 = vmmov %vm16691_vm4  ;;  %vm16707_vm15 = vcmp.lt.s32.totalorder %v12656_v12, 31 }
 0x94a   :  { %8173 = vmatprep.subr.msk.mxu0 %vm16687_vm11, %v8289_v50  ;;  %8165 = vmatpush1.msk.msra.mxu1 %vm16688_vm10, %v8290_v19  ;;  %v7078_v35 = vsel %vm16694_vm8, %v14177_v55, %v14351_v52  ;;  %vm6933_vm14 = vmand %vm14482_vm12, %vm16695_vm9  ;;  %vm16697_vm11 = vcmask 1022976   ;;  %v6787_v55 = vpop.permute.xlu1 %6786  ;;  %v6785_v52 = vpop.permute.xlu0 %6784  ;;  %vm16708_vm8 = vcmask 1039360   ;;  %vm16709_vm9 = vcmp.ge.s32.totalorder %v12631_v36, 1 }
 0x94b   :  { %7468 = vmatprep.mubr.f32.mxu1 %v16150_v45  ;;  %8174 = vmatpush1.msk.msra.mxu0 %vm16689_vm1, %v8291_v59  ;;  %vm16696_vm13 = vmmov %vm16691_vm4  ;;  %v6981_v46 = vsel %vm16697_vm11, %v14395_v7, %v14402_v6  ;;  %vm16701_vm1 = vcmp.lt.s32.totalorder %v12654_v57, 31 }
 0x94c   :  { %7539 = vmatprep.mubr.f32.mxu0 %v16150_v45  ;;  %8166 = vmatmul.mubr.msk.f32.vlgmr.msra.gmra.mxu1 %vm3401_vm2, %v12779_v14  ;;  %v7080_v22 = vsel %vm16696_vm13, %v14362_v10, %v14222_v5 }
 0x94d   :  { %8175 = vmatmul.mubr.msk.f32.vlgmr.msra.gmra.mxu0 %vm3401_vm2, %v12779_v14  ;;  %8176 = vmatprep.subr.msk.mxu1 %vm2474_vm5, %v7079_v0  ;;  %vm16699_vm5 = vmmov %vm16697_vm11 }
 0x94e   :  { %8185 = vmatprep.subr.msk.mxu0 %vm7031_vm6, %v7081_v30  ;;  %8177 = vmatpush1.msk.msra.mxu1 %vm2473_vm7, %v7078_v35  ;;  %v6983_v32 = vsel %vm16699_vm5, %v14267_v1, %v16698_v16  ;;  %vm16700_vm10 = vmmov %vm16699_vm5  ;;  %vm16703_vm7 = vcmp.lt.s32.totalorder %v12658_v44, 31  ;;  %vm16704_vm6 = vcmask 1031168  }
 0x94f   :  { %v6980_v20 = vsel %vm16700_vm10, %v14236_v42, %v14395_v7  ;;  %8186 = vmatpush1.msk.msra.mxu0 %vm2475_vm0, %v7080_v22  ;;  %8178 = vmatprep.subr.msk.mxu1 %vm16701_vm1, %v6981_v46  ;;  %vm16702_vm3 = vmmov %vm16699_vm5  ;;  %v6883_v10 = vsel %vm16704_vm6, %v14428_v29, %v6865_v54  ;;  %vm16713_vm10 = vcmp.ge.s32.totalorder %v12654_v57, 1 }
 0x950   :  { %v6982_v5 = vsel %vm16702_vm3, %v14402_v6, %v14267_v1  ;;  %8187 = vmatprep.subr.msk.mxu0 %vm6933_vm14, %v6983_v32  ;;  %8179 = vmatpush1.msk.msra.mxu1 %vm16703_vm7, %v6980_v20  ;;  %vm16705_vm4 = vmmov %vm16704_vm6  ;;  %v6803_v1 = vsel %vm16708_vm8, %v6785_v52, %v6787_v55  ;;  %vm16715_vm3 = vcmp.ge.s32.totalorder %v12658_v44, 1  ;;  %vm16716_vm7 = vcmp.ge.s32.totalorder %v12631_v36, 2  ;;  %v8294_v36 = vld [vmem:[#allocation3 + $0x80] sm:$0xff]  ;;  %v8295_v6 = vld [vmem:[#allocation3 + $0x78] sm:$0xff] }
 0x951   :  { %v6885_v42 = vsel %vm16705_vm4, %v14313_v39, %v14120_v15  ;;  %vm16706_vm0 = vmmov %vm16705_vm4  ;;  %8188 = vmatpush1.msk.msra.mxu0 %vm16707_vm15, %v6982_v5  ;;  %7572 = vmatprep.subr.mxu1 %v6883_v10  ;;  %vm16717_vm4 = vcmp.ge.s32.totalorder %v12654_v57, 2  ;;  %vm16719_vm15 = vcmp.ge.s32.totalorder %v12656_v12, 1 }
 0x952   :  { %v6882_v38 = vsel %vm16706_vm0, %v14286_v51, %v14428_v29  ;;  %vm6736_vm14 = vmand %vm14482_vm12, %vm16709_vm9  ;;  %8189 = vmatprep.subr.msk.mxu0 %vm14482_vm12, %v6885_v42  ;;  %7610 = vmatprep.mubr.f32.mxu1 %v16150_v45 }
 0x953   :  { %vm16710_vm13 = vmmov %vm16706_vm0  ;;  %7573 = vmatpush1.msra.mxu1 %v6882_v38  ;;  %vm16718_vm0 = vcmp.ge.s32.totalorder %v12658_v44, 2  ;;  %7681 = vmatprep.mubr.f32.mxu0 %v16150_v45  ;;  %v14591_v44 = vpop.f32.mrf.mxu0  ;;  %v14607_v45 = vpop.f32.mrf.mxu1 }
 0x954   :  { %v6884_v7 = vsel %vm16710_vm13, %v6865_v54, %v14313_v39  ;;  %vm16711_vm11 = vmmov %vm16708_vm8  ;;  %v8292_v39 = vld [vmem:[#allocation3 + $0x70] sm:$0xff] }
 0x955   :  { %v6801_v15 = vsel %vm16711_vm11, %v6781_v40, %v6783_v41  ;;  %vm16712_vm5 = vmmov %vm16708_vm8  ;;  %7644 = vmatpush1.msra.mxu0 %v6884_v7  ;;  %v14593_v57 = vpop.f32.mrf.mxu0 }
 0x956   :  { %v6800_v51 = vsel %vm16712_vm5, %v14320_v58, %v6781_v40  ;;  %8180 = vmatprep.subr.msk.mxu1 %vm16713_vm10, %v6801_v15  ;;  %vm16714_vm1 = vmmov %vm16712_vm5  ;;  %8190 = vmatprep.subr.msk.mxu0 %vm6736_vm14, %v6803_v1  ;;  %v8293_v58 = vld [vmem:[#allocation3 + $0x68] sm:$0xff] }
 0x957   :  { %v6802_v28 = vsel %vm16714_vm1, %v6783_v41, %v6785_v52  ;;  %8181 = vmatpush1.msk.msra.mxu1 %vm16715_vm3, %v6800_v51  ;;  %vm6703_vm6 = vmand %vm14482_vm12, %vm16716_vm7  ;;  %vm16720_vm12 = vcmp.ge.s32.totalorder %v12656_v12, 2  ;;  %v14595_v4 = vpop.f32.mrf.mxu0 }
 0x958   :  { %8182 = vmatprep.subr.msk.mxu1 %vm16717_vm4, %v8292_v39  ;;  %8191 = vmatpush1.msk.msra.mxu0 %vm16719_vm15, %v6802_v28 }
 0x959   :  { %8183 = vmatpush1.msk.msra.mxu1 %vm16718_vm0, %v8293_v58  ;;  %8192 = vmatprep.subr.msk.mxu0 %vm6703_vm6, %v8294_v36  ;;  %v14597_v27 = vpop.f32.mrf.mxu0 }
 0x95a   :  { %8184 = vmatmul.mubr.msk.f32.vlgmr.msra.gmra.mxu1 %vm3401_vm2, %v12779_v14  ;;  %8193 = vmatpush1.msk.msra.mxu0 %vm16720_vm12, %v8295_v6 }
 0x95b   :  { %8194 = vmatmul.mubr.msk.f32.vlgmr.msra.gmra.mxu0 %vm3401_vm2, %v12779_v14  ;;  %v14601_v11 = vpop.f32.mrf.mxu0  ;;  %v14611_v14 = vpop.f32.mrf.mxu1 }
 0x95d   :  { %v14605_v12 = vpop.f32.mrf.mxu0  ;;  %v3896_v13 = vpop.f32.mrf.mxu1 }
 0x95f   :  { %v14609_v8 = vpop.f32.mrf.mxu0  ;;  %v3898_v29 = vpop.f32.mrf.mxu1 }
 0x961   :  { %v3967_v25 = vpop.f32.mrf.mxu0  ;;  %v4040_v3 = vpop.f32.mrf.mxu1 }
 0x963   :  { %v3969_v61 = vpop.f32.mrf.mxu0  ;;  %v4042_v26 = vpop.f32.mrf.mxu1 }
 0x965   :  { %v4111_v33 = vpop.f32.mrf.mxu0 }
 0x967   :  { %v4113_v49 = vpop.f32.mrf.mxu0 }
 0x96b   :  { %v14613_v9 = vpop.f32.mrf.mxu0 }
 0x96c   :  { %v14615_v54 = vpop.f32.mrf.mxu1 }
 0x96d   :  { %v14617_v48 = vpop.f32.mrf.mxu0 }
 0x96e   :  { %v14619_v53 = vpop.f32.mrf.mxu1 }
 0x979   :  { %v14621_v34 = vpop.f32.mrf.mxu0 }
 0x97b   :  { %v14623_v18 = vpop.f32.mrf.mxu1  ;;  %v14625_v62 = vpop.f32.mrf.mxu0 }
 0x97d   :  { %v14627_v60 = vpop.f32.mrf.mxu1 }
 0x987   :  { %v4537_v21 = vpop.f32.mrf.mxu0 }
 0x988   :  { %v14629_v31 = vadd.f32 %v4537_v21, %v3967_v25  ;;  %v4466_v2 = vpop.f32.mrf.mxu1  ;;  %v4043_v21 = vadd.f32 %v4042_v26, %v14591_v44 }
 0x989   :  { %v14631_v56 = vadd.f32 %v4466_v2, %v3896_v13  ;;  %v4539_v37 = vpop.f32.mrf.mxu0  ;;  %v4041_v13 = vadd.f32 %v4040_v3, %v14582_v43 }
 0x98a   :  { %16721 = vst [vmem:[#allocation75_spill] sm:$0xff] %v14629_v31  ;;  %v14633_v47 = vadd.f32 %v4539_v37, %v3969_v61  ;;  %v4468_v40 = vpop.f32.mrf.mxu1  ;;  %v4114_v37 = vadd.f32 %v4113_v49, %v14595_v4 }
 0x98b   :  { %v14635_v17 = vadd.f32 %v4468_v40, %v3898_v29  ;;  %v4112_v29 = vadd.f32 %v4111_v33, %v14593_v57 }
 0x98c   :  { %16722 = vst [vmem:[#allocation65_spill] sm:$0xff] %v14633_v47 }
 0x98d   :  { %16723 = vst [vmem:[#allocation144_spill] sm:$0xff] %v14635_v17 }
 0x994   :  { %v5117_v50 = vpop.f32.mrf.mxu0 }
 0x995   :  { %v5046_v41 = vpop.f32.mrf.mxu1  ;;  %v5550_v40 = vadd.f32 %v5117_v50, %v4112_v29 }
 0x996   :  { %v5119_v59 = vpop.f32.mrf.mxu0  ;;  %v5548_v2 = vadd.f32 %v5046_v41, %v4041_v13  ;;  %v4256_v13 = vadd.f32 %v14617_v48, %v14601_v11 }
 0x997   :  { %v5048_v19 = vpop.f32.mrf.mxu1 }
 0x998   :  { %v5549_v47 = vadd.f32 %v5048_v19, %v4043_v21 }
 0x9a0   :  { %v14637_v24 = vpop.f32.mrf.mxu0 }
 0x9a1   :  { %v5188_v0 = vpop.f32.mrf.mxu1 }
 0x9a2   :  { %v14641_v35 = vpop.f32.mrf.mxu0 }
 0x9a3   :  { %v14639_v30 = vpop.f32.mrf.mxu1 }
 0x9ac   :  { %v14645_v46 = vpop.f32.mrf.mxu0 }
 0x9ad   :  { %v14643_v22 = vpop.f32.mrf.mxu1 }
 0x9ae   :  { %v14649_v52 = vpop.f32.mrf.mxu0 }
 0x9af   :  { %v14647_v55 = vpop.f32.mrf.mxu1 }
 0x9b8   :  { %v14651_v16 = vpop.f32.mrf.mxu1 }
 0x9b9   :  { %16724 = vst [vmem:[#allocation186_spill] sm:$0xff] %v14651_v16  ;;  %v14653_v32 = vpop.f32.mrf.mxu0  ;;  %v14679_v16 = vpop.permute.xlu0 %7707 }
 0x9ba   :  { %16725 = vst [vmem:[#allocation178_spill] sm:$0xff] %v14653_v32  ;;  %v14655_v20 = vpop.f32.mrf.mxu1  ;;  %v5551_v32 = vadd.f32 %v5119_v59, %v4114_v37 }
 0x9bb   :  { %16726 = vst [vmem:[#allocation185_spill] sm:$0xff] %v14655_v20  ;;  %v14657_v5 = vpop.f32.mrf.mxu0 }
 0x9bc   :  { %16727 = vst [vmem:[#allocation142_spill] sm:$0xff] %v14657_v5 }
 0x9c4   :  { %v6154_v10 = vpop.f32.mrf.mxu1 }
 0x9c5   :  { %v6225_v42 = vpop.f32.mrf.mxu0  ;;  %v6656_v20 = vadd.f32 %v6154_v10, %v5548_v2 }
 0x9c6   :  { %v6156_v38 = vpop.f32.mrf.mxu1 }
 0x9c7   :  { %v6227_v1 = vpop.f32.mrf.mxu0  ;;  %v6657_v43 = vadd.f32 %v6156_v38, %v5549_v47  ;;  %v4185_v38 = vadd.f32 %v14619_v53, %v14603_v63 }
 0x9c8   :  { %v6659_v57 = vadd.f32 %v6227_v1, %v5551_v32  ;;  %v4254_v32 = vadd.f32 %v14613_v9, %v14597_v27  ;;  %v5555_v27 = vadd.f32 %v14641_v35, %v4256_v13 }
 0x9d0   :  { %v6296_v7 = vpop.f32.mrf.mxu1 }
 0x9d1   :  { %v6367_v15 = vpop.f32.mrf.mxu0 }
 0x9d2   :  { %v6298_v51 = vpop.f32.mrf.mxu1 }
 0x9d3   :  { %v6369_v28 = vpop.f32.mrf.mxu0 }
 0x9dc   :  { %v14659_v39 = vpop.f32.mrf.mxu1 }
 0x9dd   :  { %v14661_v58 = vpop.f32.mrf.mxu0 }
 0x9de   :  { %v14663_v36 = vpop.f32.mrf.mxu1 }
 0x9df   :  { %v14665_v6 = vpop.f32.mrf.mxu0 }
 0x9e8   :  { %v14667_v25 = vpop.f32.mrf.mxu1 }
 0x9e9   :  { %16728 = vst [vmem:[#allocation145_spill] sm:$0xff] %v14667_v25  ;;  %v14670_v61 = vpop.f32.mrf.mxu0  ;;  %v6658_v25 = vadd.f32 %v6225_v42, %v5550_v40 }
 0x9ea   :  { %16729 = vst [vmem:[#allocation182_spill] sm:$0xff] %v14670_v61  ;;  %v14675_v5 = vpop.f32.mrf.mxu1 }
 0x9eb   :  { %v14677_v17 = vpop.f32.mrf.mxu0 }
 0x9f4   :  { %v7186_v31 = vpop.f32.mrf.mxu1 }
 0x9f5   :  { %v7688_v3 = vadd.f32 %v7186_v31, %v6656_v20  ;;  %v7257_v61 = vpop.f32.mrf.mxu0  ;;  %v4183_v31 = vadd.f32 %v14615_v54, %v14599_v23  ;;  %v5553_v23 = vadd.f32 %v14639_v30, %v4185_v38 }
 0x9f6   :  { %v7690_v44 = vadd.f32 %v7257_v61, %v6658_v25  ;;  %v7188_v33 = vpop.f32.mrf.mxu1  ;;  %v5554_v61 = vadd.f32 %v14637_v24, %v4254_v32 }
 0x9f7   :  { %v7710_v4 = vadd.f32 %v14679_v16, %v7688_v3  ;;  %v7689_v49 = vadd.f32 %v7188_v33, %v6657_v43  ;;  %v7259_v26 = vpop.f32.mrf.mxu0  ;;  %v5552_v1 = vadd.f32 %v5188_v0, %v4183_v31  ;;  %v6661_v53 = vadd.f32 %v6298_v51, %v5553_v23 }
 0x9f8   :  { %v7712_v41 = vadd.f32 %v14679_v16, %v7690_v44  ;;  %v7691_v50 = vadd.f32 %v7259_v26, %v6659_v57  ;;  %v6662_v9 = vadd.f32 %v6367_v15, %v5554_v61  ;;  %v6663_v0 = vadd.f32 %v6369_v28, %v5555_v27  ;;  %v16733_v61 = vld [vmem:[#allocation144_spill] sm:$0xff] }
 0x9f9   :  { %v7711_v19 = vadd.f32 %v14679_v16, %v7689_v49  ;;  %v7726_v47 = vmax.f32 %v7710_v4, 0.0  ;;  %v6660_v54 = vadd.f32 %v6296_v7, %v5552_v1  ;;  %v4325_v43 = vadd.f32 %v14623_v18, %v14607_v45  ;;  %v16731_v1 = vld [vmem:[#allocation75_spill] sm:$0xff] }
 0x9fa   :  { %v7713_v59 = vadd.f32 %v14679_v16, %v7691_v50  ;;  %v7728_v10 = vmax.f32 %v7712_v41, 0.0  ;;  %v4396_v28 = vadd.f32 %v14621_v34, %v14605_v12  ;;  %v4327_v33 = vadd.f32 %v14627_v60, %v14611_v14 }
 0x9fb   :  { %v7727_v20 = vmax.f32 %v7711_v19, 0.0  ;;  %v5556_v4 = vadd.f32 %v14643_v22, %v4325_v43  ;;  %v4398_v26 = vadd.f32 %v14625_v62, %v14609_v8 }
 0x9fc   :  { %v7729_v42 = vmax.f32 %v7713_v59, 0.0  ;;  %v5558_v41 = vadd.f32 %v14645_v46, %v4396_v28  ;;  %v5557_v45 = vadd.f32 %v14647_v55, %v4327_v33 }
 0x9fd   :  { %v7758_v25 = vcombine.low %v7726_v47, %v7727_v20  ;;  %v6664_v18 = vadd.f32 %v14659_v39, %v5556_v4  ;;  %v5559_v12 = vadd.f32 %v14649_v52, %v4398_v26 }
 0x9fe   :  { %v7759_v29 = vcombine.low %v7728_v10, %v7729_v42  ;;  %v6666_v14 = vadd.f32 %v14661_v58, %v5558_v41  ;;  %v6665_v34 = vadd.f32 %v14663_v36, %v5557_v45  ;;  %v16730_v36 = vld [vmem:[#allocation186_spill] sm:$0xff] }
 0x9ff   :  { %7774 = vst [vmem:[%s14769_s9] sm:$0x77] %v7758_v25  ;;  %v6667_v22 = vadd.f32 %v14665_v6, %v5559_v12  ;;  %v5560_v10 = vadd.f32 %v16730_v36, %v14631_v56  ;;  %v16732_v25 = vld [vmem:[#allocation178_spill] sm:$0xff] }
 0xa00   :  { %7775 = vst [vmem:[%s14769_s9 + $0x8] sm:$0x77] %v7759_v29  ;;  %v7328_v63 = vpop.f32.mrf.mxu1  ;;  %v5562_v13 = vadd.f32 %v16732_v25, %v16731_v1  ;;  %v16734_v29 = vld [vmem:[#allocation185_spill] sm:$0xff] }
 0xa01   :  { %v7692_v11 = vadd.f32 %v7328_v63, %v6660_v54  ;;  %v7399_v48 = vpop.f32.mrf.mxu0  ;;  %v5561_v23 = vadd.f32 %v16734_v29, %v16733_v61  ;;  %v16735_v54 = vld [vmem:[#allocation145_spill] sm:$0xff] }
 0xa02   :  { %v7694_v24 = vadd.f32 %v7399_v48, %v6662_v9  ;;  %v7330_v21 = vpop.f32.mrf.mxu1  ;;  %v6668_v27 = vadd.f32 %v16735_v54, %v5560_v10  ;;  %v16738_v48 = vld [vmem:[#allocation182_spill] sm:$0xff] }
 0xa03   :  { %v7714_v30 = vadd.f32 %v14679_v16, %v7692_v11  ;;  %v7693_v7 = vadd.f32 %v7330_v21, %v6661_v53  ;;  %v7401_v2 = vpop.f32.mrf.mxu0  ;;  %v16736_v53 = vld [vmem:[#allocation65_spill] sm:$0xff]  ;;  %v16737_v11 = vld [vmem:[#allocation142_spill] sm:$0xff] }
 0xa04   :  { %v7716_v37 = vadd.f32 %v14679_v16, %v7694_v24  ;;  %v7695_v40 = vadd.f32 %v7401_v2, %v6663_v0  ;;  %v5563_v56 = vadd.f32 %v16737_v11, %v16736_v53  ;;  %v6670_v0 = vadd.f32 %v16738_v48, %v5562_v13 }
 0xa05   :  { %v7715_v35 = vadd.f32 %v14679_v16, %v7693_v7  ;;  %v7730_v51 = vmax.f32 %v7714_v30, 0.0  ;;  %v6669_v24 = vadd.f32 %v14675_v5, %v5561_v23 }
 0xa06   :  { %v7717_v15 = vadd.f32 %v14679_v16, %v7695_v40  ;;  %v7732_v57 = vmax.f32 %v7716_v37, 0.0  ;;  %v6671_v2 = vadd.f32 %v14677_v17, %v5563_v56 }
 0xa07   :  { %v7731_v3 = vmax.f32 %v7715_v35, 0.0 }
 0xa08   :  { %v7733_v44 = vmax.f32 %v7717_v15, 0.0 }
 0xa09   :  { %v7760_v49 = vcombine.low %v7730_v51, %v7731_v3 }
 0xa0a   :  { %v7761_v50 = vcombine.low %v7732_v57, %v7733_v44 }
 0xa0b   :  { %7776 = vst [vmem:[%s14769_s9 + $0x10] sm:$0x77] %v7760_v49 }
 0xa0c   :  { %7777 = vst [vmem:[%s14769_s9 + $0x18] sm:$0x77] %v7761_v50  ;;  %v7470_v8 = vpop.f32.mrf.mxu1 }
 0xa0d   :  { %v7696_v62 = vadd.f32 %v7470_v8, %v6664_v18  ;;  %v7541_v60 = vpop.f32.mrf.mxu0 }
 0xa0e   :  { %v7698_v46 = vadd.f32 %v7541_v60, %v6666_v14  ;;  %v7472_v55 = vpop.f32.mrf.mxu1 }
 0xa0f   :  { %v7718_v39 = vadd.f32 %v14679_v16, %v7696_v62  ;;  %v7697_v19 = vadd.f32 %v7472_v55, %v6665_v34  ;;  %v7543_v59 = vpop.f32.mrf.mxu0 }
 0xa10   :  { %v7720_v52 = vadd.f32 %v14679_v16, %v7698_v46  ;;  %v7699_v58 = vadd.f32 %v7543_v59, %v6667_v22 }
 0xa11   :  { %v7719_v31 = vadd.f32 %v14679_v16, %v7697_v19  ;;  %v7734_v20 = vmax.f32 %v7718_v39, 0.0 }
 0xa12   :  { %v7721_v47 = vadd.f32 %v14679_v16, %v7699_v58  ;;  %v7736_v42 = vmax.f32 %v7720_v52, 0.0 }
 0xa13   :  { %v7735_v32 = vmax.f32 %v7719_v31, 0.0 }
 0xa14   :  { %v7737_v6 = vmax.f32 %v7721_v47, 0.0 }
 0xa15   :  { %v7762_v38 = vcombine.low %v7734_v20, %v7735_v32 }
 0xa16   :  { %v7763_v9 = vcombine.low %v7736_v42, %v7737_v6 }
 0xa17   :  { %7778 = vst [vmem:[%s14769_s9 + $0x20] sm:$0x77] %v7762_v38 }
 0xa18   :  { %7779 = vst [vmem:[%s14769_s9 + $0x28] sm:$0x77] %v7763_v9 }
 0xa1a   :  { %v7612_v63 = vpop.f32.mrf.mxu1 }
 0xa1b   :  { %v7700_v21 = vadd.f32 %v7612_v63, %v6668_v27  ;;  %v7683_v7 = vpop.f32.mrf.mxu0 }
 0xa1c   :  { %v7614_v30 = vpop.f32.mrf.mxu1  ;;  %v7702_v35 = vadd.f32 %v7683_v7, %v6670_v0 }
 0xa1d   :  { %v7722_v37 = vadd.f32 %v14679_v16, %v7700_v21  ;;  %v7701_v40 = vadd.f32 %v7614_v30, %v6669_v24  ;;  %v7685_v15 = vpop.f32.mrf.mxu0 }
 0xa1e   :  { %v7724_v51 = vadd.f32 %v14679_v16, %v7702_v35  ;;  %v7703_v3 = vadd.f32 %v7685_v15, %v6671_v2 }
 0xa1f   :  { %v7723_v43 = vadd.f32 %v14679_v16, %v7701_v40  ;;  %v7738_v5 = vmax.f32 %v7722_v37, 0.0 }
 0xa20   :  { %v7725_v57 = vadd.f32 %v14679_v16, %v7703_v3  ;;  %v7740_v33 = vmax.f32 %v7724_v51, 0.0 }
 0xa21   :  { %v7739_v28 = vmax.f32 %v7723_v43, 0.0 }
 0xa22   :  { %v7741_v4 = vmax.f32 %v7725_v57, 0.0 }
 0xa23   :  { %v7764_v44 = vcombine.low %v7738_v5, %v7739_v28 }
 0xa24   :  { %v7765_v17 = vcombine.low %v7740_v33, %v7741_v4 }
 0xa25   :  { %7780 = vst [vmem:[%s14769_s9 + $0x30] sm:$0x77] %v7764_v44 }
 0xa26   :  { %7781 = vst [vmem:[%s14769_s9 + $0x38] sm:$0x77] %v7765_v17 }

</bundles_post_ra>
